<compile_context>
chip_gen: v7x
topology: tpu7x:2x2x1
jax: 0.10.0
libtpu: 0.0.40
codegen_flags: <defaults>
</compile_context>

<pallas_src>
import jax
import jax.numpy as jnp
from jax.experimental import pallas as pl
from jax.experimental.pallas import tpu as pltpu


# ----------------------------------------------------------------------------
# Static model configuration (demo size).
# ----------------------------------------------------------------------------
H = W = 32                 # input spatial size
C_IN = 3
C1, C2 = 32, 64            # conv channel counts
H1, W1 = H // 2, W // 2    # after pool1 (16, 16)
H2, W2 = H // 4, W // 4    # after pool2 (8, 8)
K1 = 32                    # conv1 im2col contraction: 9*3=27 padded to 32
D_HID = 256
FLAT_DIM = C2 * H2 * W2    # 4096


# ----------------------------------------------------------------------------
# In-kernel 2x2 max-pool helper.
# src_ref holds (h*w, c) rows in (h, w) row-major order; W pairs are adjacent
# rows -> sublane-strided reads; H pairs become a free leading-dim split.
# ----------------------------------------------------------------------------
def _pool2x2(src_ref, h, w, c):
    half = (h * w) // 2
    m = jnp.maximum(src_ref[pl.ds(0, half, stride=2), :],
                    src_ref[pl.ds(1, half, stride=2), :])      # (h*w/2, c)
    m = m.reshape(h // 2, 2, w // 2, c)                        # free split
    return jnp.maximum(m[:, 0], m[:, 1])                       # (h/2, w/2, c)


# ----------------------------------------------------------------------------
# Kernel A: fused conv1+ReLU+pool1+conv2+ReLU+pool2 (one image per grid step).
# ----------------------------------------------------------------------------
def features_kernel(x_ref, w1_ref, b1_ref, w2_ref, b2_ref, o_ref,
                    act1_ref, act2_ref, pad_ref):
    # ---- conv1: single im2col matmul (H*W, 32) @ (32, 32), bias, ReLU ------
    x = x_ref[0].astype(jnp.bfloat16)                          # (1024, 32)
    a1 = jnp.dot(x, w1_ref[...], preferred_element_type=jnp.float32)
    a1 = jnp.maximum(a1 + b1_ref[...], 0.0)                    # f32
    act1_ref[...] = a1

    # ---- maxpool1 2x2 ------------------------------------------------------
    p1 = _pool2x2(act1_ref, H, W, C1)                          # (16, 16, 32)

    # ---- conv2: zero-padded scratch, 9 shifted (256,32)@(32,64) matmuls ----
    # pad_ref is (H1+2, 32, C1); the 16x16 interior lives at rows 1..16 and
    # sublane columns 8..23 (aligned store), zeros elsewhere give the halo.
    pad_ref[...] = jnp.zeros_like(pad_ref)
    pad_ref[1:H1 + 1, 8:8 + W1, :] = p1
    acc = jnp.zeros((H1 * W1, C2), jnp.float32)
    for t in range(9):                                         # unrolled taps
        dy, dx = t // 3, t % 3
        patch = pad_ref[dy:dy + H1, 7 + dx:7 + dx + W1, :]     # (16, 16, 32)
        acc = acc + jnp.dot(patch.reshape(H1 * W1, C1).astype(jnp.bfloat16),
                            w2_ref[t], preferred_element_type=jnp.float32)
    a2 = jnp.maximum(acc + b2_ref[...], 0.0)                   # (256, 64) f32
    act2_ref[...] = a2

    # ---- maxpool2 2x2 ------------------------------------------------------
    p2 = _pool2x2(act2_ref, H1, W1, C2)                        # (8, 8, 64)
    o_ref[...] = p2.reshape(1, H2, W2, C2)


def features(x_cols, w1, b1, w2, b2):
    n = x_cols.shape[0]
    return pl.pallas_call(
        features_kernel,
        out_shape=jax.ShapeDtypeStruct((n, H2, W2, C2), jnp.float32),
        grid=(n,),
        in_specs=[
            pl.BlockSpec((1, H * W, K1), lambda i: (i, 0, 0)),
            pl.BlockSpec((K1, C1), lambda i: (0, 0)),
            pl.BlockSpec((1, C1), lambda i: (0, 0)),
            pl.BlockSpec((9, C1, C2), lambda i: (0, 0, 0)),
            pl.BlockSpec((1, C2), lambda i: (0, 0)),
        ],
        out_specs=pl.BlockSpec((1, H2, W2, C2), lambda i: (i, 0, 0, 0)),
        scratch_shapes=[
            pltpu.VMEM((H * W, C1), jnp.float32),        # conv1 output
            pltpu.VMEM((H1 * W1, C2), jnp.float32),      # conv2 output
            pltpu.VMEM((H1 + 2, 32, C1), jnp.float32),   # padded conv2 input
        ],
        compiler_params=pltpu.CompilerParams(
            dimension_semantics=("parallel",)),
    )(x_cols, w1, b1, w2, b2)


# ----------------------------------------------------------------------------
# Kernel B: classifier Linear -> ReLU -> Linear, hidden dim split into tiles
# so the (memory-bound) w_fc1 stream is shared by both TensorCores on v7x.
# Per-tile partial logits are summed (and fc2 bias added) by a tiny XLA op.
# ----------------------------------------------------------------------------
def classifier_kernel(x_ref, w1_ref, b1_ref, w2_ref, o_ref):
    h = jnp.dot(x_ref[...].astype(jnp.bfloat16), w1_ref[...],
                preferred_element_type=jnp.float32) + b1_ref[...]
    h = jnp.maximum(h, 0.0)
    o_ref[...] = jnp.dot(h.astype(jnp.bfloat16), w2_ref[...],
                         preferred_element_type=jnp.float32)[None]


def classifier(x_flat, w1, b1, w2, b2, *, hid_tiles=2):
    n = x_flat.shape[0]
    d_in, d_hid = w1.shape
    nc = w2.shape[1]
    th = d_hid // hid_tiles
    partial = pl.pallas_call(
        classifier_kernel,
        out_shape=jax.ShapeDtypeStruct((hid_tiles, n, nc), jnp.float32),
        grid=(hid_tiles,),
        in_specs=[
            pl.BlockSpec((n, d_in), lambda j: (0, 0)),
            pl.BlockSpec((d_in, th), lambda j: (0, j)),
            pl.BlockSpec((1, th), lambda j: (0, j)),
            pl.BlockSpec((th, nc), lambda j: (j, 0)),
        ],
        out_specs=pl.BlockSpec((1, n, nc), lambda j: (j, 0, 0)),
        compiler_params=pltpu.CompilerParams(
            dimension_semantics=("parallel",)),
    )(x_flat, w1, b1.reshape(1, d_hid), w2)
    return partial.sum(axis=0) + b2[None, :]


# ----------------------------------------------------------------------------
# XLA-side prep (cheap, input is tiny): im2col for conv1, K padded 27 -> 32.
# ----------------------------------------------------------------------------
def conv1_im2col(x_nhwc):
    n, h, w, c = x_nhwc.shape
    xp = jnp.pad(x_nhwc, ((0, 0), (1, 1), (1, 1), (0, 0)))
    cols = [xp[:, dy:dy + h, dx:dx + w, :]
            for dy in range(3) for dx in range(3)]
    pat = jnp.concatenate(cols, axis=-1)                       # (n, h, w, 27)
    pat = jnp.pad(pat, ((0, 0), (0, 0), (0, 0), (0, K1 - 9 * c)))
    return pat.reshape(n, h * w, K1).astype(jnp.float32)


# ----------------------------------------------------------------------------
# One-time parameter prep: reshape conv weights for the folded contractions,
# fold the PyTorch NCHW-flatten permutation into w_fc1, cast weights to bf16.
# ----------------------------------------------------------------------------
def prepare_params(params):
    w1 = params["w_conv1"].reshape(9 * C_IN, C1)
    w1 = jnp.pad(w1, ((0, K1 - 9 * C_IN), (0, 0))).astype(jnp.bfloat16)
    b1 = params["b_conv1"].reshape(1, C1).astype(jnp.float32)
    w2 = params["w_conv2"].reshape(9, C1, C2).astype(jnp.bfloat16)
    b2 = params["b_conv2"].reshape(1, C2).astype(jnp.float32)
    # rows of w_fc1 are in PyTorch (C, H, W) flatten order; permute them to
    # (H, W, C) order so the kernel consumes the NHWC feature map directly.
    wf1 = (params["w_fc1"].reshape(C2, H2, W2, D_HID)
           .transpose(1, 2, 0, 3).reshape(FLAT_DIM, D_HID)
           .astype(jnp.bfloat16))
    bf1 = params["b_fc1"].astype(jnp.float32)
    wf2 = params["w_fc2"].astype(jnp.bfloat16)
    bf2 = params["b_fc2"].astype(jnp.float32)
    return dict(w1=w1, b1=b1, w2=w2, b2=b2, wf1=wf1, bf1=bf1, wf2=wf2, bf2=bf2)


# ----------------------------------------------------------------------------
# Full forward pass (PyTorch-style NCHW in / (N, num_classes) logits out).
# ----------------------------------------------------------------------------
def simple_cnn_forward(x_nchw, prepared):
    n = x_nchw.shape[0]
    x_nhwc = jnp.transpose(x_nchw, (0, 2, 3, 1))
    x_cols = conv1_im2col(x_nhwc)
    feats = features(x_cols, prepared["w1"], prepared["b1"],
                     prepared["w2"], prepared["b2"])           # (n, 8, 8, 64)
    flat = feats.reshape(n, FLAT_DIM)                          # free reshape
    return classifier(flat, prepared["wf1"], prepared["bf1"],
                      prepared["wf2"], prepared["bf2"])


# ----------------------------------------------------------------------------
# Pure-JAX f32 reference for verification (original un-prepared params).
# ----------------------------------------------------------------------------
def reference_forward(x_nchw, params):
    def conv(x, w_hwio, b):
        w_oihw = jnp.transpose(w_hwio, (3, 2, 0, 1))
        y = jax.lax.conv_general_dilated(
            x, w_oihw, (1, 1), "SAME",
            dimension_numbers=("NCHW", "OIHW", "NCHW"))
        return jnp.maximum(y + b[None, :, None, None], 0.0)

    def pool(x):
        return jax.lax.reduce_window(x, -jnp.inf, jax.lax.max,
                                     (1, 1, 2, 2), (1, 1, 2, 2), "VALID")

    y = pool(conv(x_nchw, params["w_conv1"], params["b_conv1"]))
    y = pool(conv(y, params["w_conv2"], params["b_conv2"]))
    y = y.reshape(y.shape[0], -1)
    y = jnp.maximum(y @ params["w_fc1"] + params["b_fc1"], 0.0)
    return y @ params["w_fc2"] + params["b_fc2"]


if __name__ == "__main__":
    N = 2
    num_classes = 10

    key = jax.random.PRNGKey(0)
    ks = jax.random.split(key, 9)
    params = {
        "w_conv1": 0.05 * jax.random.normal(ks[0], (3, 3, C_IN, C1), jnp.float32),
        "b_conv1": 0.05 * jax.random.normal(ks[1], (C1,), jnp.float32),
        "w_conv2": 0.05 * jax.random.normal(ks[2], (3, 3, C1, C2), jnp.float32),
        "b_conv2": 0.05 * jax.random.normal(ks[3], (C2,), jnp.float32),
        "w_fc1": 0.02 * jax.random.normal(ks[4], (FLAT_DIM, D_HID), jnp.float32),
        "b_fc1": 0.02 * jax.random.normal(ks[5], (D_HID,), jnp.float32),
        "w_fc2": 0.05 * jax.random.normal(ks[6], (D_HID, num_classes), jnp.float32),
        "b_fc2": 0.05 * jax.random.normal(ks[7], (num_classes,), jnp.float32),
    }
    x = jax.random.normal(ks[8], (N, C_IN, H, W), jnp.float32)

    prepared = prepare_params(params)
    fwd = jax.jit(simple_cnn_forward)

    out = jax.block_until_ready(fwd(x, prepared))
    ref = jax.block_until_ready(reference_forward(x, params))

    assert out.shape == (N, num_classes), out.shape
    assert bool(jnp.all(jnp.isfinite(out)))
    assert bool(jnp.allclose(out, ref, atol=5e-2, rtol=5e-2)), (
        float(jnp.max(jnp.abs(out - ref))))
    print("KERNEL_OK")
</pallas_src>

<mosaic_0001>
module attributes {stable_mosaic.version = 11 : i64} {
  func.func @features_kernel(%arg0: i32, %arg1: memref<1x1024x32xf32, #tpu.memory_space<vmem>>, %arg2: memref<32x32xbf16, #tpu.memory_space<vmem>>, %arg3: memref<1x32xf32, #tpu.memory_space<vmem>>, %arg4: memref<9x32x64xbf16, #tpu.memory_space<vmem>>, %arg5: memref<1x64xf32, #tpu.memory_space<vmem>>, %arg6: memref<1x8x8x64xf32, #tpu.memory_space<vmem>>, %arg7: memref<1024x32xf32, #tpu.memory_space<vmem>>, %arg8: memref<256x64xf32, #tpu.memory_space<vmem>>, %arg9: memref<18x32x32xf32, #tpu.memory_space<vmem>>) attributes {dimension_semantics = [#tpu.dimension_semantics<parallel>], iteration_bounds = array<i64: 2>, scalar_prefetch = 0 : i64, scratch_operands = 3 : i64, tpu.core_type = #tpu.core_type<tc>, window_params = [{transform_indices = @transform_0, window_bounds = array<i64: 1, 1024, 32>}, {pipeline_mode = #tpu.pipeline_mode<synchronous>, transform_indices = @transform_1, window_bounds = array<i64: 32, 32>}, {pipeline_mode = #tpu.pipeline_mode<synchronous>, transform_indices = @transform_2, window_bounds = array<i64: 1, 32>}, {pipeline_mode = #tpu.pipeline_mode<synchronous>, transform_indices = @transform_3, window_bounds = array<i64: 9, 32, 64>}, {pipeline_mode = #tpu.pipeline_mode<synchronous>, transform_indices = @transform_4, window_bounds = array<i64: 1, 64>}, {transform_indices = @transform_5, window_bounds = array<i64: 1, 8, 8, 64>}]} {
    %c0 = arith.constant 0 : index
    %c0_0 = arith.constant 0 : index
    %c0_1 = arith.constant 0 : index
    %0 = vector.load %arg1[%c0, %c0_0, %c0_1] : memref<1x1024x32xf32, #tpu.memory_space<vmem>>, vector<1x1024x32xf32>
    %1 = vector.shape_cast %0 : vector<1x1024x32xf32> to vector<1024x32xf32>
    %2 = arith.truncf %1 : vector<1024x32xf32> to vector<1024x32xbf16>
    %c0_2 = arith.constant 0 : index
    %c0_3 = arith.constant 0 : index
    %3 = vector.load %arg2[%c0_2, %c0_3] : memref<32x32xbf16, #tpu.memory_space<vmem>>, vector<32x32xbf16>
    %cst = arith.constant dense<0.000000e+00> : vector<1024x32xf32>
    %4 = tpu.matmul %2, %3, %cst {dimension_numbers = #tpu.dot_dimension_numbers<[1], [0], [0], [1], [0, 0, 1, 1], [], []>} : vector<1024x32xbf16>, vector<32x32xbf16>, vector<1024x32xf32> -> vector<1024x32xf32>
    %c0_4 = arith.constant 0 : index
    %c0_5 = arith.constant 0 : index
    %5 = vector.load %arg3[%c0_4, %c0_5] : memref<1x32xf32, #tpu.memory_space<vmem>>, vector<1x32xf32>
    %6 = vector.broadcast %5 : vector<1x32xf32> to vector<1024x32xf32>
    %7 = arith.addf %4, %6 : vector<1024x32xf32>
    %cst_6 = arith.constant 0.000000e+00 : f32
    %8 = vector.broadcast %cst_6 : f32 to vector<1024x32xf32>
    %9 = arith.maximumf %7, %8 : vector<1024x32xf32>
    %c0_7 = arith.constant 0 : index
    %c0_8 = arith.constant 0 : index
    %10 = vector.load %arg7[%c0_7, %c0_8] : memref<1024x32xf32, #tpu.memory_space<vmem>>, vector<1024x32xf32>
    tpu.vector_store %arg7[%c0_7, %c0_8], %9 {strides = array<i32>} : memref<1024x32xf32, #tpu.memory_space<vmem>>, vector<1024x32xf32>,
    %c0_9 = arith.constant 0 : index
    %c0_10 = arith.constant 0 : index
    %11 = tpu.strided_load %arg7[%c0_9, %c0_10] {strides = array<i32: 2, 1>} : memref<1024x32xf32, #tpu.memory_space<vmem>>, vector<512x32xf32>
    %c1 = arith.constant 1 : index
    %c0_11 = arith.constant 0 : index
    %12 = tpu.strided_load %arg7[%c1, %c0_11] {strides = array<i32: 2, 1>} : memref<1024x32xf32, #tpu.memory_space<vmem>>, vector<512x32xf32>
    %13 = arith.maximumf %11, %12 : vector<512x32xf32>
    %14 = vector.shape_cast %13 : vector<512x32xf32> to vector<16x2x16x32xf32>
    %15 = vector.extract_strided_slice %14 {offsets = [0, 0, 0, 0], sizes = [16, 1, 16, 32], strides = [1, 1, 1, 1]} : vector<16x2x16x32xf32> to vector<16x1x16x32xf32>
    %16 = vector.shape_cast %15 : vector<16x1x16x32xf32> to vector<16x16x32xf32>
    %17 = vector.extract_strided_slice %14 {offsets = [0, 1, 0, 0], sizes = [16, 1, 16, 32], strides = [1, 1, 1, 1]} : vector<16x2x16x32xf32> to vector<16x1x16x32xf32>
    %18 = vector.shape_cast %17 : vector<16x1x16x32xf32> to vector<16x16x32xf32>
    %19 = arith.maximumf %16, %18 : vector<16x16x32xf32>
    %cst_12 = arith.constant 0.000000e+00 : f32
    %20 = vector.broadcast %cst_12 : f32 to vector<18x32x32xf32>
    %c0_13 = arith.constant 0 : index
    %c0_14 = arith.constant 0 : index
    %c0_15 = arith.constant 0 : index
    %21 = vector.load %arg9[%c0_13, %c0_14, %c0_15] : memref<18x32x32xf32, #tpu.memory_space<vmem>>, vector<18x32x32xf32>
    tpu.vector_store %arg9[%c0_13, %c0_14, %c0_15], %20 {strides = array<i32>} : memref<18x32x32xf32, #tpu.memory_space<vmem>>, vector<18x32x32xf32>,
    %c1_16 = arith.constant 1 : index
    %c8 = arith.constant 8 : index
    %c0_17 = arith.constant 0 : index
    %22 = vector.load %arg9[%c1_16, %c8, %c0_17] : memref<18x32x32xf32, #tpu.memory_space<vmem>>, vector<16x16x32xf32>
    tpu.vector_store %arg9[%c1_16, %c8, %c0_17], %19 {strides = array<i32>} : memref<18x32x32xf32, #tpu.memory_space<vmem>>, vector<16x16x32xf32>,
    %cst_18 = arith.constant 0.000000e+00 : f32
    %23 = vector.broadcast %cst_18 : f32 to vector<256x64xf32>
    %c0_19 = arith.constant 0 : index
    %c7 = arith.constant 7 : index
    %c0_20 = arith.constant 0 : index
    %24 = vector.load %arg9[%c0_19, %c7, %c0_20] : memref<18x32x32xf32, #tpu.memory_space<vmem>>, vector<16x16x32xf32>
    %25 = vector.shape_cast %24 : vector<16x16x32xf32> to vector<256x32xf32>
    %26 = arith.truncf %25 : vector<256x32xf32> to vector<256x32xbf16>
    %c0_21 = arith.constant 0 : index
    %c0_22 = arith.constant 0 : index
    %c0_23 = arith.constant 0 : index
    %27 = vector.load %arg4[%c0_21, %c0_22, %c0_23] : memref<9x32x64xbf16, #tpu.memory_space<vmem>>, vector<1x32x64xbf16>
    %28 = vector.shape_cast %27 : vector<1x32x64xbf16> to vector<32x64xbf16>
    %cst_24 = arith.constant dense<0.000000e+00> : vector<256x64xf32>
    %29 = tpu.matmul %26, %28, %cst_24 {dimension_numbers = #tpu.dot_dimension_numbers<[1], [0], [0], [1], [0, 0, 1, 1], [], []>} : vector<256x32xbf16>, vector<32x64xbf16>, vector<256x64xf32> -> vector<256x64xf32>
    %30 = arith.addf %23, %29 : vector<256x64xf32>
    %c0_25 = arith.constant 0 : index
    %c8_26 = arith.constant 8 : index
    %c0_27 = arith.constant 0 : index
    %31 = vector.load %arg9[%c0_25, %c8_26, %c0_27] : memref<18x32x32xf32, #tpu.memory_space<vmem>>, vector<16x16x32xf32>
    %32 = vector.shape_cast %31 : vector<16x16x32xf32> to vector<256x32xf32>
    %33 = arith.truncf %32 : vector<256x32xf32> to vector<256x32xbf16>
    %c1_28 = arith.constant 1 : index
    %c0_29 = arith.constant 0 : index
    %c0_30 = arith.constant 0 : index
    %34 = vector.load %arg4[%c1_28, %c0_29, %c0_30] : memref<9x32x64xbf16, #tpu.memory_space<vmem>>, vector<1x32x64xbf16>
    %35 = vector.shape_cast %34 : vector<1x32x64xbf16> to vector<32x64xbf16>
    %cst_31 = arith.constant dense<0.000000e+00> : vector<256x64xf32>
    %36 = tpu.matmul %33, %35, %cst_31 {dimension_numbers = #tpu.dot_dimension_numbers<[1], [0], [0], [1], [0, 0, 1, 1], [], []>} : vector<256x32xbf16>, vector<32x64xbf16>, vector<256x64xf32> -> vector<256x64xf32>
    %37 = arith.addf %30, %36 : vector<256x64xf32>
    %c0_32 = arith.constant 0 : index
    %c9 = arith.constant 9 : index
    %c0_33 = arith.constant 0 : index
    %38 = vector.load %arg9[%c0_32, %c9, %c0_33] : memref<18x32x32xf32, #tpu.memory_space<vmem>>, vector<16x16x32xf32>
    %39 = vector.shape_cast %38 : vector<16x16x32xf32> to vector<256x32xf32>
    %40 = arith.truncf %39 : vector<256x32xf32> to vector<256x32xbf16>
    %c2 = arith.constant 2 : index
    %c0_34 = arith.constant 0 : index
    %c0_35 = arith.constant 0 : index
    %41 = vector.load %arg4[%c2, %c0_34, %c0_35] : memref<9x32x64xbf16, #tpu.memory_space<vmem>>, vector<1x32x64xbf16>
    %42 = vector.shape_cast %41 : vector<1x32x64xbf16> to vector<32x64xbf16>
    %cst_36 = arith.constant dense<0.000000e+00> : vector<256x64xf32>
    %43 = tpu.matmul %40, %42, %cst_36 {dimension_numbers = #tpu.dot_dimension_numbers<[1], [0], [0], [1], [0, 0, 1, 1], [], []>} : vector<256x32xbf16>, vector<32x64xbf16>, vector<256x64xf32> -> vector<256x64xf32>
    %44 = arith.addf %37, %43 : vector<256x64xf32>
    %c1_37 = arith.constant 1 : index
    %c7_38 = arith.constant 7 : index
    %c0_39 = arith.constant 0 : index
    %45 = vector.load %arg9[%c1_37, %c7_38, %c0_39] : memref<18x32x32xf32, #tpu.memory_space<vmem>>, vector<16x16x32xf32>
    %46 = vector.shape_cast %45 : vector<16x16x32xf32> to vector<256x32xf32>
    %47 = arith.truncf %46 : vector<256x32xf32> to vector<256x32xbf16>
    %c3 = arith.constant 3 : index
    %c0_40 = arith.constant 0 : index
    %c0_41 = arith.constant 0 : index
    %48 = vector.load %arg4[%c3, %c0_40, %c0_41] : memref<9x32x64xbf16, #tpu.memory_space<vmem>>, vector<1x32x64xbf16>
    %49 = vector.shape_cast %48 : vector<1x32x64xbf16> to vector<32x64xbf16>
    %cst_42 = arith.constant dense<0.000000e+00> : vector<256x64xf32>
    %50 = tpu.matmul %47, %49, %cst_42 {dimension_numbers = #tpu.dot_dimension_numbers<[1], [0], [0], [1], [0, 0, 1, 1], [], []>} : vector<256x32xbf16>, vector<32x64xbf16>, vector<256x64xf32> -> vector<256x64xf32>
    %51 = arith.addf %44, %50 : vector<256x64xf32>
    %c1_43 = arith.constant 1 : index
    %c8_44 = arith.constant 8 : index
    %c0_45 = arith.constant 0 : index
    %52 = vector.load %arg9[%c1_43, %c8_44, %c0_45] : memref<18x32x32xf32, #tpu.memory_space<vmem>>, vector<16x16x32xf32>
    %53 = vector.shape_cast %52 : vector<16x16x32xf32> to vector<256x32xf32>
    %54 = arith.truncf %53 : vector<256x32xf32> to vector<256x32xbf16>
    %c4 = arith.constant 4 : index
    %c0_46 = arith.constant 0 : index
    %c0_47 = arith.constant 0 : index
    %55 = vector.load %arg4[%c4, %c0_46, %c0_47] : memref<9x32x64xbf16, #tpu.memory_space<vmem>>, vector<1x32x64xbf16>
    %56 = vector.shape_cast %55 : vector<1x32x64xbf16> to vector<32x64xbf16>
    %cst_48 = arith.constant dense<0.000000e+00> : vector<256x64xf32>
    %57 = tpu.matmul %54, %56, %cst_48 {dimension_numbers = #tpu.dot_dimension_numbers<[1], [0], [0], [1], [0, 0, 1, 1], [], []>} : vector<256x32xbf16>, vector<32x64xbf16>, vector<256x64xf32> -> vector<256x64xf32>
    %58 = arith.addf %51, %57 : vector<256x64xf32>
    %c1_49 = arith.constant 1 : index
    %c9_50 = arith.constant 9 : index
    %c0_51 = arith.constant 0 : index
    %59 = vector.load %arg9[%c1_49, %c9_50, %c0_51] : memref<18x32x32xf32, #tpu.memory_space<vmem>>, vector<16x16x32xf32>
    %60 = vector.shape_cast %59 : vector<16x16x32xf32> to vector<256x32xf32>
    %61 = arith.truncf %60 : vector<256x32xf32> to vector<256x32xbf16>
    %c5 = arith.constant 5 : index
    %c0_52 = arith.constant 0 : index
    %c0_53 = arith.constant 0 : index
    %62 = vector.load %arg4[%c5, %c0_52, %c0_53] : memref<9x32x64xbf16, #tpu.memory_space<vmem>>, vector<1x32x64xbf16>
    %63 = vector.shape_cast %62 : vector<1x32x64xbf16> to vector<32x64xbf16>
    %cst_54 = arith.constant dense<0.000000e+00> : vector<256x64xf32>
    %64 = tpu.matmul %61, %63, %cst_54 {dimension_numbers = #tpu.dot_dimension_numbers<[1], [0], [0], [1], [0, 0, 1, 1], [], []>} : vector<256x32xbf16>, vector<32x64xbf16>, vector<256x64xf32> -> vector<256x64xf32>
    %65 = arith.addf %58, %64 : vector<256x64xf32>
    %c2_55 = arith.constant 2 : index
    %c7_56 = arith.constant 7 : index
    %c0_57 = arith.constant 0 : index
    %66 = vector.load %arg9[%c2_55, %c7_56, %c0_57] : memref<18x32x32xf32, #tpu.memory_space<vmem>>, vector<16x16x32xf32>
    %67 = vector.shape_cast %66 : vector<16x16x32xf32> to vector<256x32xf32>
    %68 = arith.truncf %67 : vector<256x32xf32> to vector<256x32xbf16>
    %c6 = arith.constant 6 : index
    %c0_58 = arith.constant 0 : index
    %c0_59 = arith.constant 0 : index
    %69 = vector.load %arg4[%c6, %c0_58, %c0_59] : memref<9x32x64xbf16, #tpu.memory_space<vmem>>, vector<1x32x64xbf16>
    %70 = vector.shape_cast %69 : vector<1x32x64xbf16> to vector<32x64xbf16>
    %cst_60 = arith.constant dense<0.000000e+00> : vector<256x64xf32>
    %71 = tpu.matmul %68, %70, %cst_60 {dimension_numbers = #tpu.dot_dimension_numbers<[1], [0], [0], [1], [0, 0, 1, 1], [], []>} : vector<256x32xbf16>, vector<32x64xbf16>, vector<256x64xf32> -> vector<256x64xf32>
    %72 = arith.addf %65, %71 : vector<256x64xf32>
    %c2_61 = arith.constant 2 : index
    %c8_62 = arith.constant 8 : index
    %c0_63 = arith.constant 0 : index
    %73 = vector.load %arg9[%c2_61, %c8_62, %c0_63] : memref<18x32x32xf32, #tpu.memory_space<vmem>>, vector<16x16x32xf32>
    %74 = vector.shape_cast %73 : vector<16x16x32xf32> to vector<256x32xf32>
    %75 = arith.truncf %74 : vector<256x32xf32> to vector<256x32xbf16>
    %c7_64 = arith.constant 7 : index
    %c0_65 = arith.constant 0 : index
    %c0_66 = arith.constant 0 : index
    %76 = vector.load %arg4[%c7_64, %c0_65, %c0_66] : memref<9x32x64xbf16, #tpu.memory_space<vmem>>, vector<1x32x64xbf16>
    %77 = vector.shape_cast %76 : vector<1x32x64xbf16> to vector<32x64xbf16>
    %cst_67 = arith.constant dense<0.000000e+00> : vector<256x64xf32>
    %78 = tpu.matmul %75, %77, %cst_67 {dimension_numbers = #tpu.dot_dimension_numbers<[1], [0], [0], [1], [0, 0, 1, 1], [], []>} : vector<256x32xbf16>, vector<32x64xbf16>, vector<256x64xf32> -> vector<256x64xf32>
    %79 = arith.addf %72, %78 : vector<256x64xf32>
    %c2_68 = arith.constant 2 : index
    %c9_69 = arith.constant 9 : index
    %c0_70 = arith.constant 0 : index
    %80 = vector.load %arg9[%c2_68, %c9_69, %c0_70] : memref<18x32x32xf32, #tpu.memory_space<vmem>>, vector<16x16x32xf32>
    %81 = vector.shape_cast %80 : vector<16x16x32xf32> to vector<256x32xf32>
    %82 = arith.truncf %81 : vector<256x32xf32> to vector<256x32xbf16>
    %c8_71 = arith.constant 8 : index
    %c0_72 = arith.constant 0 : index
    %c0_73 = arith.constant 0 : index
    %83 = vector.load %arg4[%c8_71, %c0_72, %c0_73] : memref<9x32x64xbf16, #tpu.memory_space<vmem>>, vector<1x32x64xbf16>
    %84 = vector.shape_cast %83 : vector<1x32x64xbf16> to vector<32x64xbf16>
    %cst_74 = arith.constant dense<0.000000e+00> : vector<256x64xf32>
    %85 = tpu.matmul %82, %84, %cst_74 {dimension_numbers = #tpu.dot_dimension_numbers<[1], [0], [0], [1], [0, 0, 1, 1], [], []>} : vector<256x32xbf16>, vector<32x64xbf16>, vector<256x64xf32> -> vector<256x64xf32>
    %86 = arith.addf %79, %85 : vector<256x64xf32>
    %c0_75 = arith.constant 0 : index
    %c0_76 = arith.constant 0 : index
    %87 = vector.load %arg5[%c0_75, %c0_76] : memref<1x64xf32, #tpu.memory_space<vmem>>, vector<1x64xf32>
    %88 = vector.broadcast %87 : vector<1x64xf32> to vector<256x64xf32>
    %89 = arith.addf %86, %88 : vector<256x64xf32>
    %cst_77 = arith.constant 0.000000e+00 : f32
    %90 = vector.broadcast %cst_77 : f32 to vector<256x64xf32>
    %91 = arith.maximumf %89, %90 : vector<256x64xf32>
    %c0_78 = arith.constant 0 : index
    %c0_79 = arith.constant 0 : index
    %92 = vector.load %arg8[%c0_78, %c0_79] : memref<256x64xf32, #tpu.memory_space<vmem>>, vector<256x64xf32>
    tpu.vector_store %arg8[%c0_78, %c0_79], %91 {strides = array<i32>} : memref<256x64xf32, #tpu.memory_space<vmem>>, vector<256x64xf32>,
    %c0_80 = arith.constant 0 : index
    %c0_81 = arith.constant 0 : index
    %93 = tpu.strided_load %arg8[%c0_80, %c0_81] {strides = array<i32: 2, 1>} : memref<256x64xf32, #tpu.memory_space<vmem>>, vector<128x64xf32>
    %c1_82 = arith.constant 1 : index
    %c0_83 = arith.constant 0 : index
    %94 = tpu.strided_load %arg8[%c1_82, %c0_83] {strides = array<i32: 2, 1>} : memref<256x64xf32, #tpu.memory_space<vmem>>, vector<128x64xf32>
    %95 = arith.maximumf %93, %94 : vector<128x64xf32>
    %96 = vector.shape_cast %95 : vector<128x64xf32> to vector<8x2x8x64xf32>
    %97 = vector.extract_strided_slice %96 {offsets = [0, 0, 0, 0], sizes = [8, 1, 8, 64], strides = [1, 1, 1, 1]} : vector<8x2x8x64xf32> to vector<8x1x8x64xf32>
    %98 = vector.shape_cast %97 : vector<8x1x8x64xf32> to vector<8x8x64xf32>
    %99 = vector.extract_strided_slice %96 {offsets = [0, 1, 0, 0], sizes = [8, 1, 8, 64], strides = [1, 1, 1, 1]} : vector<8x2x8x64xf32> to vector<8x1x8x64xf32>
    %100 = vector.shape_cast %99 : vector<8x1x8x64xf32> to vector<8x8x64xf32>
    %101 = arith.maximumf %98, %100 : vector<8x8x64xf32>
    %102 = vector.shape_cast %101 : vector<8x8x64xf32> to vector<1x8x8x64xf32>
    %c0_84 = arith.constant 0 : index
    %c0_85 = arith.constant 0 : index
    %c0_86 = arith.constant 0 : index
    %c0_87 = arith.constant 0 : index
    %103 = vector.load %arg6[%c0_84, %c0_85, %c0_86, %c0_87] : memref<1x8x8x64xf32, #tpu.memory_space<vmem>>, vector<1x8x8x64xf32>
    tpu.vector_store %arg6[%c0_84, %c0_85, %c0_86, %c0_87], %102 {strides = array<i32>} : memref<1x8x8x64xf32, #tpu.memory_space<vmem>>, vector<1x8x8x64xf32>,
    return
  }
  func.func @transform_0(%arg0: i32) -> (i32, i32, i32) {
    %c0_i32 = arith.constant 0 : i32
    %c0_i32_0 = arith.constant 0 : i32
    %c0_i32_1 = arith.constant 0 : i32
    return %arg0, %c0_i32, %c0_i32_0 : i32, i32, i32
  }
  func.func @transform_1(%arg0: i32) -> (i32, i32) {
    %c0_i32 = arith.constant 0 : i32
    %c0_i32_0 = arith.constant 0 : i32
    %c0_i32_1 = arith.constant 0 : i32
    return %c0_i32, %c0_i32_0 : i32, i32
  }
  func.func @transform_2(%arg0: i32) -> (i32, i32) {
    %c0_i32 = arith.constant 0 : i32
    %c0_i32_0 = arith.constant 0 : i32
    %c0_i32_1 = arith.constant 0 : i32
    return %c0_i32, %c0_i32_0 : i32, i32
  }
  func.func @transform_3(%arg0: i32) -> (i32, i32, i32) {
    %c0_i32 = arith.constant 0 : i32
    %c0_i32_0 = arith.constant 0 : i32
    %c0_i32_1 = arith.constant 0 : i32
    %c0_i32_2 = arith.constant 0 : i32
    return %c0_i32, %c0_i32_0, %c0_i32_1 : i32, i32, i32
  }
  func.func @transform_4(%arg0: i32) -> (i32, i32) {
    %c0_i32 = arith.constant 0 : i32
    %c0_i32_0 = arith.constant 0 : i32
    %c0_i32_1 = arith.constant 0 : i32
    return %c0_i32, %c0_i32_0 : i32, i32
  }
  func.func @transform_5(%arg0: i32) -> (i32, i32, i32, i32) {
    %c0_i32 = arith.constant 0 : i32
    %c0_i32_0 = arith.constant 0 : i32
    %c0_i32_1 = arith.constant 0 : i32
    %c0_i32_2 = arith.constant 0 : i32
    return %arg0, %c0_i32, %c0_i32_0, %c0_i32_1 : i32, i32, i32, i32
  }
}

module attributes {stable_mosaic.version = 11 : i64} {
  func.func @classifier_kernel(%arg0: i32, %arg1: memref<2x4096xf32, #tpu.memory_space<vmem>>, %arg2: memref<4096x128xbf16, #tpu.memory_space<vmem>>, %arg3: memref<1x128xf32, #tpu.memory_space<vmem>>, %arg4: memref<128x10xbf16, #tpu.memory_space<vmem>>, %arg5: memref<1x2x10xf32, #tpu.memory_space<vmem>>) attributes {dimension_semantics = [#tpu.dimension_semantics<parallel>], iteration_bounds = array<i64: 2>, scalar_prefetch = 0 : i64, scratch_operands = 0 : i64, tpu.core_type = #tpu.core_type<tc>, window_params = [{pipeline_mode = #tpu.pipeline_mode<synchronous>, transform_indices = @transform_0, window_bounds = array<i64: 2, 4096>}, {transform_indices = @transform_1, window_bounds = array<i64: 4096, 128>}, {transform_indices = @transform_2, window_bounds = array<i64: 1, 128>}, {transform_indices = @transform_3, window_bounds = array<i64: 128, 10>}, {transform_indices = @transform_4, window_bounds = array<i64: 1, 2, 10>}]} {
    %c0 = arith.constant 0 : index
    %c0_0 = arith.constant 0 : index
    %0 = vector.load %arg1[%c0, %c0_0] : memref<2x4096xf32, #tpu.memory_space<vmem>>, vector<2x4096xf32>
    %1 = arith.truncf %0 : vector<2x4096xf32> to vector<2x4096xbf16>
    %c0_1 = arith.constant 0 : index
    %c0_2 = arith.constant 0 : index
    %2 = vector.load %arg2[%c0_1, %c0_2] : memref<4096x128xbf16, #tpu.memory_space<vmem>>, vector<4096x128xbf16>
    %cst = arith.constant dense<0.000000e+00> : vector<2x128xf32>
    %3 = tpu.matmul %1, %2, %cst {dimension_numbers = #tpu.dot_dimension_numbers<[1], [0], [0], [1], [0, 0, 1, 1], [], []>} : vector<2x4096xbf16>, vector<4096x128xbf16>, vector<2x128xf32> -> vector<2x128xf32>
    %c0_3 = arith.constant 0 : index
    %c0_4 = arith.constant 0 : index
    %4 = vector.load %arg3[%c0_3, %c0_4] : memref<1x128xf32, #tpu.memory_space<vmem>>, vector<1x128xf32>
    %5 = vector.broadcast %4 : vector<1x128xf32> to vector<2x128xf32>
    %6 = arith.addf %3, %5 : vector<2x128xf32>
    %cst_5 = arith.constant 0.000000e+00 : f32
    %7 = vector.broadcast %cst_5 : f32 to vector<2x128xf32>
    %8 = arith.maximumf %6, %7 : vector<2x128xf32>
    %9 = arith.truncf %8 : vector<2x128xf32> to vector<2x128xbf16>
    %c0_6 = arith.constant 0 : index
    %c0_7 = arith.constant 0 : index
    %10 = vector.load %arg4[%c0_6, %c0_7] : memref<128x10xbf16, #tpu.memory_space<vmem>>, vector<128x10xbf16>
    %cst_8 = arith.constant dense<0.000000e+00> : vector<2x10xf32>
    %11 = tpu.matmul %9, %10, %cst_8 {dimension_numbers = #tpu.dot_dimension_numbers<[1], [0], [0], [1], [0, 0, 1, 1], [], []>} : vector<2x128xbf16>, vector<128x10xbf16>, vector<2x10xf32> -> vector<2x10xf32>
    %12 = vector.shape_cast %11 : vector<2x10xf32> to vector<1x2x10xf32>
    %c0_9 = arith.constant 0 : index
    %c0_10 = arith.constant 0 : index
    %c0_11 = arith.constant 0 : index
    %13 = vector.load %arg5[%c0_9, %c0_10, %c0_11] : memref<1x2x10xf32, #tpu.memory_space<vmem>>, vector<1x2x10xf32>
    tpu.vector_store %arg5[%c0_9, %c0_10, %c0_11], %12 {strides = array<i32>} : memref<1x2x10xf32, #tpu.memory_space<vmem>>, vector<1x2x10xf32>,
    return
  }
  func.func @transform_0(%arg0: i32) -> (i32, i32) {
    %c0_i32 = arith.constant 0 : i32
    %c0_i32_0 = arith.constant 0 : i32
    %c0_i32_1 = arith.constant 0 : i32
    return %c0_i32, %c0_i32_0 : i32, i32
  }
  func.func @transform_1(%arg0: i32) -> (i32, i32) {
    %c0_i32 = arith.constant 0 : i32
    %c0_i32_0 = arith.constant 0 : i32
    return %c0_i32, %arg0 : i32, i32
  }
  func.func @transform_2(%arg0: i32) -> (i32, i32) {
    %c0_i32 = arith.constant 0 : i32
    %c0_i32_0 = arith.constant 0 : i32
    return %c0_i32, %arg0 : i32, i32
  }
  func.func @transform_3(%arg0: i32) -> (i32, i32) {
    %c0_i32 = arith.constant 0 : i32
    %c0_i32_0 = arith.constant 0 : i32
    return %arg0, %c0_i32 : i32, i32
  }
  func.func @transform_4(%arg0: i32) -> (i32, i32, i32) {
    %c0_i32 = arith.constant 0 : i32
    %c0_i32_0 = arith.constant 0 : i32
    %c0_i32_1 = arith.constant 0 : i32
    return %arg0, %c0_i32, %c0_i32_0 : i32, i32, i32
  }
}

</mosaic_0001>

<bundles_post_ra>
// kernel: simple_cnn_forward.2
= control target key start
LH: loop header
LB: loop body
LE: loop exit
PB: predicated region body
PF: predicated region fallthrough
CT: control target
= control target key end

     0   :  { %s6125_s18 = smov 0   ;;  %s7414_s0 = inlined_call_operand.vmem [shape: f32[2,1024,32], index: 0, kind: input, shape index: {}]   ;;  %s7415_s1 = inlined_call_operand.vmem [shape: bf16[32,32], index: 1, kind: input, shape index: {}]   ;;  %s7416_s2 = inlined_call_operand.vmem [shape: f32[1,32], index: 2, kind: input, shape index: {}]   ;;  %s7417_s3 = inlined_call_operand.vmem [shape: bf16[9,32,64], index: 3, kind: input, shape index: {}]   ;;  %s7418_s4 = inlined_call_operand.vmem [shape: f32[1,64], index: 4, kind: input, shape index: {}]   ;;  %s7419_s5 = inlined_call_operand.vmem [shape: f32[2,8,8,64], index: 5, kind: output, shape index: {}]  }
   0x1 LB: > { %s4835_s19 = sadd.s32 4294967295, %s6092_s18   ;;  %p4839_p0 = scmp.ge.s32.totalorder %s6092_s18, 1  ;;  %s6092_s18 = sphi %s6125_s18, %s15_s18  }
   0x2   : > { %p187_p1 = scmp.lt.s32.totalorder %s6092_s18, 3 }
   0x4   : > { %p188_p2 = pnand %p4839_p0, %p187_p1 }
   0x5   : > { %v6063_v0 = vld [vmem:[%s7415_s1] sm:$0xff] (!%p188_p2)   ;;  %p215_p3 = scmp.lt.s32.totalorder (!%p188_p2), %s4835_s19, 1  ;;  %v6064_v1 = vld [vmem:[%s7415_s1 + $0x8] sm:$0xff] (!%p188_p2)   ;;  %vm441_vm0 = vcmask (!%p188_p2), 261120   ;;  %vm4652_vm1 = vcmask (!%p188_p2), 523264  }
   0x6   : > { %191 = sbr.rel (%p188_p2) target bundleno = 1113 (0x459), region = 40  ;;  %5338 = vmatprep.subr.bf16.mxu0 (!%p188_p2), %v6063_v0 }
   0x7   : > { %5339 = vmatpush3.bf16.msra.mxu0 (!%p188_p2), %v6063_v0 }
   0x8   : > { %5340 = vmatprep.subr.bf16.mxu0 (!%p188_p2), %v6064_v1 }
   0xb   : > { %5341 = vmatpush3.bf16.msra.mxu0 (!%p188_p2), %v6064_v1 }
   0xd   : > { %s7421_s19 = smov (!%p215_p3, %s4835_s19), 1 }
   0xe   : > { %s5108_s24 = sshll.u32 %s7421_s19, 10  ;;  %s5109_s28 = sshll.u32 %s7421_s19, 6 }
   0xf   : > { %s6145_s27 = scalar_lea.vmem %s7414_s0, %s5108_s24  ;;  %s7323_s30 = scalar_lea.vmem %s7419_s5, %s5109_s28 }
  0x10   : > { %v226_v2 = vld [vmem:[%s6145_s27] sm:$0xff]  ;;  %v227_v3 = vld [vmem:[%s6145_s27 + $0x8] sm:$0xff]  ;;  %v228_v4 = vld [vmem:[%s6145_s27 + $0x10] sm:$0xff] }
  0x11   : > { %v354_v5 = vpack.c.bf16 %v227_v3, %v226_v2  ;;  %v229_v6 = vld [vmem:[%s6145_s27 + $0x18] sm:$0xff]  ;;  %v230_v7 = vld [vmem:[%s6145_s27 + $0x20] sm:$0xff]  ;;  %v231_v8 = vld [vmem:[%s6145_s27 + $0x28] sm:$0xff] }
  0x12   : > { %v355_v9 = vpack.c.bf16 %v229_v6, %v228_v4  ;;  %v356_v10 = vpack.c.bf16 %v231_v8, %v230_v7  ;;  %v232_v11 = vld [vmem:[%s6145_s27 + $0x30] sm:$0xff]  ;;  %v233_v12 = vld [vmem:[%s6145_s27 + $0x38] sm:$0xff]  ;;  %v234_v13 = vld [vmem:[%s6145_s27 + $0x40] sm:$0xff] }
  0x13   : > { %5342 = vmatprep.mubr.msk.bf16.mxu0 %vm441_vm0, %v354_v5  ;;  %v235_v14 = vld [vmem:[%s6145_s27 + $0x48] sm:$0xff]  ;;  %v357_v15 = vpack.c.bf16 %v233_v12, %v232_v11  ;;  %v236_v17 = vld [vmem:[%s6145_s27 + $0x50] sm:$0xff]  ;;  %v237_v18 = vld [vmem:[%s6145_s27 + $0x58] sm:$0xff] }
  0x14   : > { %5343 = vmatmul.mubr.msk.bf16.vlgmr.msra.gmra.mrb[0].mxu0 %vm441_vm0, %v355_v9  ;;  %v358_v16 = vpack.c.bf16 %v235_v14, %v234_v13  ;;  %v238_v19 = vld [vmem:[%s6145_s27 + $0x60] sm:$0xff]  ;;  %v239_v20 = vld [vmem:[%s6145_s27 + $0x68] sm:$0xff]  ;;  %v359_v21 = vpack.c.bf16 %v237_v18, %v236_v17  ;;  %v240_v23 = vld [vmem:[%s6145_s27 + $0x70] sm:$0xff] }
  0x15   : > { %5346 = vmatprep.mubr.msk.bf16.mxu0 %vm441_vm0, %v356_v10  ;;  %v360_v22 = vpack.c.bf16 %v239_v20, %v238_v19  ;;  %v241_v24 = vld [vmem:[%s6145_s27 + $0x78] sm:$0xff]  ;;  %v242_v25 = vld [vmem:[%s6145_s27 + $0x80] sm:$0xff]  ;;  %v243_v26 = vld [vmem:[%s6145_s27 + $0x88] sm:$0xff] }
  0x16   : > { %v361_v27 = vpack.c.bf16 %v241_v24, %v240_v23  ;;  %v362_v28 = vpack.c.bf16 %v243_v26, %v242_v25  ;;  %v244_v29 = vld [vmem:[%s6145_s27 + $0x90] sm:$0xff]  ;;  %v245_v30 = vld [vmem:[%s6145_s27 + $0x98] sm:$0xff]  ;;  %v246_v31 = vld [vmem:[%s6145_s27 + $0xa0] sm:$0xff] }
  0x17   : > { %v247_v32 = vld [vmem:[%s6145_s27 + $0xa8] sm:$0xff]  ;;  %v363_v33 = vpack.c.bf16 %v245_v30, %v244_v29  ;;  %v248_v35 = vld [vmem:[%s6145_s27 + $0xb0] sm:$0xff]  ;;  %v249_v36 = vld [vmem:[%s6145_s27 + $0xb8] sm:$0xff] }
  0x18   : > { %v364_v34 = vpack.c.bf16 %v247_v32, %v246_v31  ;;  %v250_v37 = vld [vmem:[%s6145_s27 + $0xc0] sm:$0xff]  ;;  %v251_v38 = vld [vmem:[%s6145_s27 + $0xc8] sm:$0xff]  ;;  %v365_v39 = vpack.c.bf16 %v249_v36, %v248_v35  ;;  %v252_v41 = vld [vmem:[%s6145_s27 + $0xd0] sm:$0xff]  ;;  %v6094_v31 = vmov 0.0  }
  0x19   : > { %v366_v40 = vpack.c.bf16 %v251_v38, %v250_v37  ;;  %v253_v42 = vld [vmem:[%s6145_s27 + $0xd8] sm:$0xff]  ;;  %v254_v43 = vld [vmem:[%s6145_s27 + $0xe0] sm:$0xff]  ;;  %v255_v44 = vld [vmem:[%s6145_s27 + $0xe8] sm:$0xff]  ;;  %1792 = vst.msk [vmem:[#allocation4 + $0x30] sm:$0xff] %vm441_vm0, %v6094_v31 }
  0x1a   : > { %v367_v45 = vpack.c.bf16 %v253_v42, %v252_v41  ;;  %v368_v46 = vpack.c.bf16 %v255_v44, %v254_v43  ;;  %v256_v47 = vld [vmem:[%s6145_s27 + $0xf0] sm:$0xff]  ;;  %v257_v48 = vld [vmem:[%s6145_s27 + $0xf8] sm:$0xff]  ;;  %v258_v49 = vld [vmem:[%s6145_s27 + $0x100] sm:$0xff]  ;;  %1786 = vst.msk [vmem:[#allocation4] sm:$0xff] %vm441_vm0, %v6094_v31 }
  0x1b   : > { %v259_v50 = vld [vmem:[%s6145_s27 + $0x108] sm:$0xff]  ;;  %v369_v51 = vpack.c.bf16 %v257_v48, %v256_v47  ;;  %v260_v53 = vld [vmem:[%s6145_s27 + $0x110] sm:$0xff]  ;;  %v261_v54 = vld [vmem:[%s6145_s27 + $0x118] sm:$0xff]  ;;  %1787 = vst.msk [vmem:[#allocation4 + $0x8] sm:$0xff] %vm441_vm0, %v6094_v31 }
  0x1c   : > { %5347 = vmatmul.mubr.msk.bf16.gmra.mrb[4].mxu0 %vm441_vm0, %v357_v15  ;;  %v370_v52 = vpack.c.bf16 %v259_v50, %v258_v49  ;;  %v262_v55 = vld [vmem:[%s6145_s27 + $0x120] sm:$0xff]  ;;  %v263_v56 = vld [vmem:[%s6145_s27 + $0x128] sm:$0xff]  ;;  %v371_v57 = vpack.c.bf16 %v261_v54, %v260_v53  ;;  %v264_v59 = vld [vmem:[%s6145_s27 + $0x130] sm:$0xff]  ;;  %1788 = vst.msk [vmem:[#allocation4 + $0x10] sm:$0xff] %vm441_vm0, %v6094_v31 }
  0x1d   : > { %5350 = vmatprep.mubr.msk.bf16.mxu0 %vm441_vm0, %v358_v16  ;;  %v372_v58 = vpack.c.bf16 %v263_v56, %v262_v55  ;;  %v265_v60 = vld [vmem:[%s6145_s27 + $0x138] sm:$0xff]  ;;  %v266_v61 = vld [vmem:[%s6145_s27 + $0x140] sm:$0xff]  ;;  %v267_v62 = vld [vmem:[%s6145_s27 + $0x148] sm:$0xff]  ;;  %1789 = vst.msk [vmem:[#allocation4 + $0x18] sm:$0xff] %vm441_vm0, %v6094_v31 }
  0x1e   : > { %v373_v63 = vpack.c.bf16 %v265_v60, %v264_v59  ;;  %v374_v0 = vpack.c.bf16 %v267_v62, %v266_v61  ;;  %v268_v1 = vld [vmem:[%s6145_s27 + $0x150] sm:$0xff]  ;;  %v269_v2 = vld [vmem:[%s6145_s27 + $0x158] sm:$0xff]  ;;  %v270_v3 = vld [vmem:[%s6145_s27 + $0x160] sm:$0xff]  ;;  %1790 = vst.msk [vmem:[#allocation4 + $0x20] sm:$0xff] %vm441_vm0, %v6094_v31 }
  0x1f   : > { %v271_v4 = vld [vmem:[%s6145_s27 + $0x168] sm:$0xff]  ;;  %v375_v5 = vpack.c.bf16 %v269_v2, %v268_v1  ;;  %v272_v7 = vld [vmem:[%s6145_s27 + $0x170] sm:$0xff]  ;;  %v273_v8 = vld [vmem:[%s6145_s27 + $0x178] sm:$0xff]  ;;  %1791 = vst.msk [vmem:[#allocation4 + $0x28] sm:$0xff] %vm441_vm0, %v6094_v31 }
  0x20   : > { %v376_v6 = vpack.c.bf16 %v271_v4, %v270_v3  ;;  %v274_v9 = vld [vmem:[%s6145_s27 + $0x180] sm:$0xff]  ;;  %v275_v10 = vld [vmem:[%s6145_s27 + $0x188] sm:$0xff]  ;;  %v377_v11 = vpack.c.bf16 %v273_v8, %v272_v7  ;;  %v276_v13 = vld [vmem:[%s6145_s27 + $0x190] sm:$0xff]  ;;  %1793 = vst.msk [vmem:[#allocation4 + $0x38] sm:$0xff] %vm441_vm0, %v6094_v31 }
  0x21   : > { %v378_v12 = vpack.c.bf16 %v275_v10, %v274_v9  ;;  %v277_v14 = vld [vmem:[%s6145_s27 + $0x198] sm:$0xff]  ;;  %v278_v15 = vld [vmem:[%s6145_s27 + $0x1a0] sm:$0xff]  ;;  %v279_v16 = vld [vmem:[%s6145_s27 + $0x1a8] sm:$0xff]  ;;  %1794 = vst.msk [vmem:[#allocation4 + $0x40] sm:$0xff] %vm441_vm0, %v6094_v31 }
  0x22   : > { %v379_v17 = vpack.c.bf16 %v277_v14, %v276_v13  ;;  %v380_v18 = vpack.c.bf16 %v279_v16, %v278_v15  ;;  %v280_v19 = vld [vmem:[%s6145_s27 + $0x1b0] sm:$0xff]  ;;  %v281_v20 = vld [vmem:[%s6145_s27 + $0x1b8] sm:$0xff]  ;;  %1795 = vst.msk [vmem:[#allocation4 + $0x48] sm:$0xff] %vm441_vm0, %v6094_v31  ;;  %1796 = vst.msk [vmem:[#allocation4 + $0x50] sm:$0xff] %vm441_vm0, %v6094_v31 }
  0x23   : > { %v381_v23 = vpack.c.bf16 %v281_v20, %v280_v19  ;;  %v6235_v25 = vld [vmem:[%s6145_s27 + $0x1d0] sm:$0xff]  ;;  %v6238_v26 = vld [vmem:[%s6145_s27 + $0x1d8] sm:$0xff]  ;;  %1797 = vst.msk [vmem:[#allocation4 + $0x58] sm:$0xff] %vm441_vm0, %v6094_v31  ;;  %1798 = vst.msk [vmem:[#allocation4 + $0x60] sm:$0xff] %vm441_vm0, %v6094_v31 }
  0x24   : > { %5351 = vmatmul.mubr.msk.bf16.gmra.mrb[8].mxu0 %vm441_vm0, %v359_v21  ;;  %v282_v21 = vld [vmem:[%s6145_s27 + $0x1c0] sm:$0xff]  ;;  %v383_v29 = vpack.c.bf16 %v6238_v26, %v6235_v25  ;;  %1799 = vst.msk [vmem:[#allocation4 + $0x68] sm:$0xff] %vm441_vm0, %v6094_v31  ;;  %1800 = vst.msk [vmem:[#allocation4 + $0x70] sm:$0xff] %vm441_vm0, %v6094_v31  ;;  %v288_v32 = vld [vmem:[%s6145_s27 + $0x1f0] sm:$0xff] }
  0x25   : > { %5354 = vmatprep.mubr.msk.bf16.mxu0 %vm441_vm0, %v360_v22  ;;  %v283_v22 = vld [vmem:[%s6145_s27 + $0x1c8] sm:$0xff]  ;;  %1801 = vst.msk [vmem:[#allocation4 + $0x78] sm:$0xff] %vm441_vm0, %v6094_v31  ;;  %1802 = vst.msk [vmem:[#allocation4 + $0x80] sm:$0xff] %vm441_vm0, %v6094_v31  ;;  %v6065_v38 = vld [vmem:[%s7417_s3 + $0x10] sm:$0xff]  }
  0x26   : > { %v382_v24 = vpack.c.bf16 %v283_v22, %v282_v21  ;;  %1803 = vst.msk [vmem:[#allocation4 + $0x88] sm:$0xff] %vm441_vm0, %v6094_v31  ;;  %1804 = vst.msk [vmem:[#allocation4 + $0x90] sm:$0xff] %vm441_vm0, %v6094_v31  ;;  %v291_v35 = vld [vmem:[%s6145_s27 + $0x208] sm:$0xff]  ;;  %5470 = vmatprep.subr.bf16.mxu0 %v6065_v38  ;;  %v294_v41 = vld [vmem:[%s6145_s27 + $0x220] sm:$0xff] }
  0x27   : > { %1805 = vst.msk [vmem:[#allocation4 + $0x98] sm:$0xff] %vm441_vm0, %v6094_v31  ;;  %1806 = vst.msk [vmem:[#allocation4 + $0xa0] sm:$0xff] %vm441_vm0, %v6094_v31  ;;  %5471 = vmatpush3.bf16.msra.mxu0 %v6065_v38  ;;  %v295_v42 = vld [vmem:[%s6145_s27 + $0x228] sm:$0xff]  ;;  %v6066_v43 = vld [vmem:[%s7417_s3 + $0x18] sm:$0xff]  }
  0x28   : > { %1807 = vst.msk [vmem:[#allocation4 + $0xa8] sm:$0xff] %vm441_vm0, %v6094_v31  ;;  %1808 = vst.msk [vmem:[#allocation4 + $0xb0] sm:$0xff] %vm441_vm0, %v6094_v31  ;;  %5472 = vmatprep.subr.bf16.mxu0 %v6066_v43  ;;  %v297_v47 = vld [vmem:[%s6145_s27 + $0x238] sm:$0xff]  ;;  %v298_v48 = vld [vmem:[%s6145_s27 + $0x240] sm:$0xff] }
  0x29   : > { %1809 = vst.msk [vmem:[#allocation4 + $0xb8] sm:$0xff] %vm441_vm0, %v6094_v31  ;;  %1810 = vst.msk [vmem:[#allocation4 + $0xc0] sm:$0xff] %vm441_vm0, %v6094_v31  ;;  %v299_v49 = vld [vmem:[%s6145_s27 + $0x248] sm:$0xff]  ;;  %v301_v53 = vld [vmem:[%s6145_s27 + $0x258] sm:$0xff] }
  0x2a   : > { %1811 = vst.msk [vmem:[#allocation4 + $0xc8] sm:$0xff] %vm441_vm0, %v6094_v31  ;;  %1812 = vst.msk [vmem:[#allocation4 + $0xd0] sm:$0xff] %vm441_vm0, %v6094_v31  ;;  %v302_v54 = vld [vmem:[%s6145_s27 + $0x260] sm:$0xff]  ;;  %v303_v55 = vld [vmem:[%s6145_s27 + $0x268] sm:$0xff] }
  0x2b   : > { %1813 = vst.msk [vmem:[#allocation4 + $0xd8] sm:$0xff] %vm441_vm0, %v6094_v31  ;;  %1814 = vst.msk [vmem:[#allocation4 + $0xe0] sm:$0xff] %vm441_vm0, %v6094_v31  ;;  %5473 = vmatpush3.bf16.msra.mxu0 %v6066_v43  ;;  %v305_v59 = vld [vmem:[%s6145_s27 + $0x278] sm:$0xff]  ;;  %v306_v60 = vld [vmem:[%s6145_s27 + $0x280] sm:$0xff] }
  0x2c   : > { %5355 = vmatmul.mubr.msk.bf16.gmra.mrb[12].mxu0 %vm441_vm0, %v361_v27  ;;  %v6241_v27 = vld [vmem:[%s6145_s27 + $0x1e0] sm:$0xff]  ;;  %1815 = vst.msk [vmem:[#allocation4 + $0xe8] sm:$0xff] %vm441_vm0, %v6094_v31  ;;  %1816 = vst.msk [vmem:[#allocation4 + $0xf0] sm:$0xff] %vm441_vm0, %v6094_v31  ;;  %v307_v61 = vld [vmem:[%s6145_s27 + $0x288] sm:$0xff] }
  0x2d   : > { %5358 = vmatprep.mubr.msk.bf16.mxu0 %vm441_vm0, %v362_v28  ;;  %v6244_v28 = vld [vmem:[%s6145_s27 + $0x1e8] sm:$0xff]  ;;  %1817 = vst.msk [vmem:[#allocation4 + $0xf8] sm:$0xff] %vm441_vm0, %v6094_v31  ;;  %1818 = vst.msk [vmem:[#allocation4 + $0x100] sm:$0xff] %vm441_vm0, %v6094_v31  ;;  %v309_v1 = vld [vmem:[%s6145_s27 + $0x298] sm:$0xff] }
  0x2e   : > { %v384_v30 = vpack.c.bf16 %v6244_v28, %v6241_v27  ;;  %1819 = vst.msk [vmem:[#allocation4 + $0x108] sm:$0xff] %vm441_vm0, %v6094_v31  ;;  %1820 = vst.msk [vmem:[#allocation4 + $0x110] sm:$0xff] %vm441_vm0, %v6094_v31  ;;  %v310_v2 = vld [vmem:[%s6145_s27 + $0x2a0] sm:$0xff]  ;;  %v311_v3 = vld [vmem:[%s6145_s27 + $0x2a8] sm:$0xff] }
  0x2f   : > { %1821 = vst.msk [vmem:[#allocation4 + $0x118] sm:$0xff] %vm441_vm0, %v6094_v31  ;;  %1822 = vst.msk [vmem:[#allocation4 + $0x120] sm:$0xff] %vm441_vm0, %v6094_v31  ;;  %v313_v7 = vld [vmem:[%s6145_s27 + $0x2b8] sm:$0xff]  ;;  %v314_v8 = vld [vmem:[%s6145_s27 + $0x2c0] sm:$0xff] }
  0x30   : > { %1823 = vst.msk [vmem:[#allocation4 + $0x128] sm:$0xff] %vm441_vm0, %v6094_v31  ;;  %1824 = vst.msk [vmem:[#allocation4 + $0x130] sm:$0xff] %vm441_vm0, %v6094_v31  ;;  %v315_v9 = vld [vmem:[%s6145_s27 + $0x2c8] sm:$0xff]  ;;  %v317_v13 = vld [vmem:[%s6145_s27 + $0x2d8] sm:$0xff] }
  0x31   : > { %1825 = vst.msk [vmem:[#allocation4 + $0x138] sm:$0xff] %vm441_vm0, %v6094_v31  ;;  %1826 = vst.msk [vmem:[#allocation4 + $0x140] sm:$0xff] %vm441_vm0, %v6094_v31  ;;  %v318_v14 = vld [vmem:[%s6145_s27 + $0x2e0] sm:$0xff]  ;;  %v319_v15 = vld [vmem:[%s6145_s27 + $0x2e8] sm:$0xff] }
  0x32   : > { %1827 = vst.msk [vmem:[#allocation4 + $0x148] sm:$0xff] %vm441_vm0, %v6094_v31  ;;  %1828 = vst.msk [vmem:[#allocation4 + $0x150] sm:$0xff] %vm441_vm0, %v6094_v31  ;;  %v321_v19 = vld [vmem:[%s6145_s27 + $0x2f8] sm:$0xff]  ;;  %v322_v20 = vld [vmem:[%s6145_s27 + $0x300] sm:$0xff] }
  0x33   : > { %1829 = vst.msk [vmem:[#allocation4 + $0x158] sm:$0xff] %vm441_vm0, %v6094_v31  ;;  %1830 = vst.msk [vmem:[#allocation4 + $0x160] sm:$0xff] %vm441_vm0, %v6094_v31  ;;  %v323_v21 = vld [vmem:[%s6145_s27 + $0x308] sm:$0xff]  ;;  %v325_v25 = vld [vmem:[%s6145_s27 + $0x318] sm:$0xff] }
  0x34   : > { %5359 = vmatmul.mubr.msk.bf16.gmra.mrb[16].mxu0 %vm441_vm0, %v363_v33  ;;  %1831 = vst.msk [vmem:[#allocation4 + $0x168] sm:$0xff] %vm441_vm0, %v6094_v31  ;;  %1832 = vst.msk [vmem:[#allocation4 + $0x170] sm:$0xff] %vm441_vm0, %v6094_v31  ;;  %v289_v33 = vld [vmem:[%s6145_s27 + $0x1f8] sm:$0xff]  ;;  %v326_v26 = vld [vmem:[%s6145_s27 + $0x320] sm:$0xff] }
  0x35   : > { %5362 = vmatprep.mubr.msk.bf16.mxu0 %vm441_vm0, %v364_v34  ;;  %1833 = vst.msk [vmem:[#allocation4 + $0x178] sm:$0xff] %vm441_vm0, %v6094_v31  ;;  %1834 = vst.msk [vmem:[#allocation4 + $0x180] sm:$0xff] %vm441_vm0, %v6094_v31  ;;  %v290_v34 = vld [vmem:[%s6145_s27 + $0x200] sm:$0xff]  ;;  %v385_v36 = vpack.c.bf16 %v289_v33, %v288_v32  ;;  %v327_v27 = vld [vmem:[%s6145_s27 + $0x328] sm:$0xff] }
  0x36   : > { %1835 = vst.msk [vmem:[#allocation4 + $0x188] sm:$0xff] %vm441_vm0, %v6094_v31  ;;  %1836 = vst.msk [vmem:[#allocation4 + $0x190] sm:$0xff] %vm441_vm0, %v6094_v31  ;;  %v386_v37 = vpack.c.bf16 %v291_v35, %v290_v34  ;;  %v330_v32 = vld [vmem:[%s6145_s27 + $0x340] sm:$0xff]  ;;  %v331_v33 = vld [vmem:[%s6145_s27 + $0x348] sm:$0xff] }
  0x37   : > { %1837 = vst.msk [vmem:[#allocation4 + $0x198] sm:$0xff] %vm441_vm0, %v6094_v31  ;;  %1838 = vst.msk [vmem:[#allocation4 + $0x1a0] sm:$0xff] %vm441_vm0, %v6094_v31  ;;  %v406_v35 = vpack.c.bf16 %v331_v33, %v330_v32  ;;  %v334_v38 = vld [vmem:[%s6145_s27 + $0x360] sm:$0xff]  ;;  %v336_v43 = vld [vmem:[%s6145_s27 + $0x370] sm:$0xff] }
  0x38   : > { %1839 = vst.msk [vmem:[#allocation4 + $0x1a8] sm:$0xff] %vm441_vm0, %v6094_v31  ;;  %1840 = vst.msk [vmem:[#allocation4 + $0x1b0] sm:$0xff] %vm441_vm0, %v6094_v31  ;;  %v348_v33 = vld [vmem:[%s6145_s27 + $0x3d0] sm:$0xff] }
  0x39   : > { %1841 = vst.msk [vmem:[#allocation4 + $0x1b8] sm:$0xff] %vm441_vm0, %v6094_v31  ;;  %1842 = vst.msk [vmem:[#allocation4 + $0x1c0] sm:$0xff] %vm441_vm0, %v6094_v31 }
  0x3a   : > { %1843 = vst.msk [vmem:[#allocation4 + $0x1c8] sm:$0xff] %vm441_vm0, %v6094_v31  ;;  %1844 = vst.msk [vmem:[#allocation4 + $0x1d0] sm:$0xff] %vm441_vm0, %v6094_v31 }
  0x3b   : > { %1845 = vst.msk [vmem:[#allocation4 + $0x1d8] sm:$0xff] %vm441_vm0, %v6094_v31  ;;  %1846 = vst.msk [vmem:[#allocation4 + $0x1e0] sm:$0xff] %vm441_vm0, %v6094_v31 }
  0x3c   : > { %5363 = vmatmul.mubr.msk.bf16.gmra.mrb[20].mxu0 %vm441_vm0, %v365_v39  ;;  %1847 = vst.msk [vmem:[#allocation4 + $0x1e8] sm:$0xff] %vm441_vm0, %v6094_v31  ;;  %1848 = vst.msk [vmem:[#allocation4 + $0x1f0] sm:$0xff] %vm441_vm0, %v6094_v31  ;;  %v292_v39 = vld [vmem:[%s6145_s27 + $0x210] sm:$0xff] }
  0x3d   : > { %5366 = vmatprep.mubr.msk.bf16.mxu0 %vm441_vm0, %v366_v40  ;;  %1849 = vst.msk [vmem:[#allocation4 + $0x1f8] sm:$0xff] %vm441_vm0, %v6094_v31  ;;  %1850 = vst.msk [vmem:[#allocation4 + $0x200] sm:$0xff] %vm441_vm0, %v6094_v31  ;;  %v293_v40 = vld [vmem:[%s6145_s27 + $0x218] sm:$0xff] }
  0x3e   : > { %1851 = vst.msk [vmem:[#allocation4 + $0x208] sm:$0xff] %vm441_vm0, %v6094_v31  ;;  %1852 = vst.msk [vmem:[#allocation4 + $0x210] sm:$0xff] %vm441_vm0, %v6094_v31  ;;  %v387_v44 = vpack.c.bf16 %v293_v40, %v292_v39  ;;  %v335_v39 = vld [vmem:[%s6145_s27 + $0x368] sm:$0xff] }
  0x3f   : > { %1853 = vst.msk [vmem:[#allocation4 + $0x218] sm:$0xff] %vm441_vm0, %v6094_v31  ;;  %1854 = vst.msk [vmem:[#allocation4 + $0x220] sm:$0xff] %vm441_vm0, %v6094_v31 }
  0x40   : > { %1855 = vst.msk [vmem:[#allocation4 + $0x228] sm:$0xff] %vm441_vm0, %v6094_v31  ;;  %1856 = vst.msk [vmem:[#allocation4 + $0x230] sm:$0xff] %vm441_vm0, %v6094_v31 }
  0x41   : > { %1857 = vst.msk [vmem:[#allocation4 + $0x238] sm:$0xff] %vm441_vm0, %v6094_v31  ;;  %v329_v31 = vld [vmem:[%s6145_s27 + $0x338] sm:$0xff] }
  0x44   : > { %5367 = vmatmul.mubr.msk.bf16.gmra.mrb[24].mxu0 %vm441_vm0, %v367_v45  ;;  %v388_v45 = vpack.c.bf16 %v295_v42, %v294_v41  ;;  %v408_v41 = vpack.c.bf16 %v335_v39, %v334_v38  ;;  %v6482_v42 = vld [vmem:[%s7416_s2] ss:$0 sm:$0xff] }
  0x45   : > { %5370 = vmatprep.mubr.msk.bf16.mxu0 %vm441_vm0, %v368_v46  ;;  %v296_v46 = vld [vmem:[%s6145_s27 + $0x230] sm:$0xff] }
  0x46   : > { %v389_v50 = vpack.c.bf16 %v297_v47, %v296_v46  ;;  %v339_v46 = vld [vmem:[%s6145_s27 + $0x388] sm:$0xff] }
  0x4c   : > { %5371 = vmatmul.mubr.msk.bf16.gmra.mrb[28].mxu0 %vm441_vm0, %v369_v51  ;;  %v390_v51 = vpack.c.bf16 %v299_v49, %v298_v48 }
  0x4d   : > { %5374 = vmatprep.mubr.msk.bf16.mxu0 %vm441_vm0, %v370_v52  ;;  %v300_v52 = vld [vmem:[%s6145_s27 + $0x250] sm:$0xff] }
  0x4e   : > { %v391_v56 = vpack.c.bf16 %v301_v53, %v300_v52 }
  0x54   : > { %5375 = vmatmul.mubr.msk.bf16.gmra.mrb[32].mxu0 %vm441_vm0, %v371_v57  ;;  %v392_v57 = vpack.c.bf16 %v303_v55, %v302_v54 }
  0x55   : > { %5378 = vmatprep.mubr.msk.bf16.mxu0 %vm441_vm0, %v372_v58  ;;  %v304_v58 = vld [vmem:[%s6145_s27 + $0x270] sm:$0xff] }
  0x56   : > { %v393_v62 = vpack.c.bf16 %v305_v59, %v304_v58 }
  0x5c   : > { %5379 = vmatmul.mubr.msk.bf16.gmra.mrb[36].mxu0 %vm441_vm0, %v373_v63  ;;  %v394_v63 = vpack.c.bf16 %v307_v61, %v306_v60  ;;  %v340_v61 = vld [vmem:[%s6145_s27 + $0x390] sm:$0xff] }
  0x5d   : > { %5382 = vmatprep.mubr.msk.bf16.mxu0 %vm441_vm0, %v374_v0  ;;  %v308_v0 = vld [vmem:[%s6145_s27 + $0x290] sm:$0xff] }
  0x5e   : > { %v395_v4 = vpack.c.bf16 %v309_v1, %v308_v0  ;;  %v343_v0 = vld [vmem:[%s6145_s27 + $0x3a8] sm:$0xff] }
  0x64   : > { %5383 = vmatmul.mubr.msk.bf16.gmra.mrb[40].mxu0 %vm441_vm0, %v375_v5  ;;  %v396_v5 = vpack.c.bf16 %v311_v3, %v310_v2 }
  0x65   : > { %5386 = vmatprep.mubr.msk.bf16.mxu0 %vm441_vm0, %v376_v6  ;;  %v312_v6 = vld [vmem:[%s6145_s27 + $0x2b0] sm:$0xff] }
  0x66   : > { %v397_v10 = vpack.c.bf16 %v313_v7, %v312_v6 }
  0x6c   : > { %5387 = vmatmul.mubr.msk.bf16.gmra.mrb[44].mxu0 %vm441_vm0, %v377_v11  ;;  %v398_v11 = vpack.c.bf16 %v315_v9, %v314_v8 }
  0x6d   : > { %5390 = vmatprep.mubr.msk.bf16.mxu0 %vm441_vm0, %v378_v12  ;;  %v316_v12 = vld [vmem:[%s6145_s27 + $0x2d0] sm:$0xff] }
  0x6e   : > { %v399_v16 = vpack.c.bf16 %v317_v13, %v316_v12 }
  0x74   : > { %5391 = vmatmul.mubr.msk.bf16.gmra.mrb[48].mxu0 %vm441_vm0, %v379_v17  ;;  %v400_v17 = vpack.c.bf16 %v319_v15, %v318_v14  ;;  %v344_v15 = vld [vmem:[%s6145_s27 + $0x3b0] sm:$0xff] }
  0x75   : > { %5394 = vmatprep.mubr.msk.bf16.mxu0 %vm441_vm0, %v380_v18  ;;  %v320_v18 = vld [vmem:[%s6145_s27 + $0x2f0] sm:$0xff] }
  0x76   : > { %v401_v22 = vpack.c.bf16 %v321_v19, %v320_v18  ;;  %v347_v18 = vld [vmem:[%s6145_s27 + $0x3c8] sm:$0xff] }
  0x7c   : > { %5395 = vmatmul.mubr.msk.bf16.gmra.mrb[52].mxu0 %vm441_vm0, %v381_v23  ;;  %v402_v23 = vpack.c.bf16 %v323_v21, %v322_v20 }
  0x7d   : > { %5398 = vmatprep.mubr.msk.bf16.mxu0 %vm441_vm0, %v382_v24  ;;  %v324_v24 = vld [vmem:[%s6145_s27 + $0x310] sm:$0xff] }
  0x7e   : > { %v403_v28 = vpack.c.bf16 %v325_v25, %v324_v24 }
  0x84   : > { %5399 = vmatmul.mubr.msk.bf16.gmra.mrb[56].mxu0 %vm441_vm0, %v383_v29  ;;  %v404_v29 = vpack.c.bf16 %v327_v27, %v326_v26 }
  0x85   : > { %5402 = vmatprep.mubr.msk.bf16.mxu0 %vm441_vm0, %v384_v30  ;;  %v328_v30 = vld [vmem:[%s6145_s27 + $0x330] sm:$0xff] }
  0x86   : > { %v405_v34 = vpack.c.bf16 %v329_v31, %v328_v30 }
  0x8c   : > { %5403 = vmatmul.mubr.msk.bf16.gmra.mrb[60].mxu0 %vm441_vm0, %v385_v36  ;;  %v332_v36 = vld [vmem:[%s6145_s27 + $0x350] sm:$0xff] }
  0x8d   : > { %5406 = vmatprep.mubr.msk.bf16.mxu0 %vm441_vm0, %v386_v37  ;;  %v333_v37 = vld [vmem:[%s6145_s27 + $0x358] sm:$0xff] }
  0x8e   : > { %v407_v40 = vpack.c.bf16 %v333_v37, %v332_v36  ;;  %v349_v37 = vld [vmem:[%s6145_s27 + $0x3d8] sm:$0xff] }
  0x94   : > { %5407 = vmatmul.mubr.msk.bf16.gmra.mrb[64].mxu0 %vm441_vm0, %v387_v44  ;;  %v337_v44 = vld [vmem:[%s6145_s27 + $0x378] sm:$0xff] }
  0x95   : > { %5410 = vmatprep.mubr.msk.bf16.mxu0 %vm441_vm0, %v388_v45  ;;  %v338_v45 = vld [vmem:[%s6145_s27 + $0x380] sm:$0xff] }
  0x96   : > { %v410_v53 = vpack.c.bf16 %v339_v46, %v338_v45 }
  0x9c   : > { %5411 = vmatmul.mubr.msk.bf16.gmra.mrb[68].mxu0 %vm441_vm0, %v389_v50  ;;  %v409_v50 = vpack.c.bf16 %v337_v44, %v336_v43 }
  0x9d   : > { %5414 = vmatprep.mubr.msk.bf16.mxu0 %vm441_vm0, %v390_v51 }
  0xa4   : > { %5415 = vmatmul.mubr.msk.bf16.gmra.mrb[72].mxu0 %vm441_vm0, %v391_v56 }
  0xa5   : > { %5418 = vmatprep.mubr.msk.bf16.mxu0 %vm441_vm0, %v392_v57 }
  0xac   : > { %5419 = vmatmul.mubr.msk.bf16.gmra.mrb[76].mxu0 %vm441_vm0, %v393_v62  ;;  %v341_v62 = vld [vmem:[%s6145_s27 + $0x398] sm:$0xff] }
  0xad   : > { %5422 = vmatprep.mubr.msk.bf16.mxu0 %vm441_vm0, %v394_v63  ;;  %v342_v63 = vld [vmem:[%s6145_s27 + $0x3a0] sm:$0xff] }
  0xae   : > { %v412_v7 = vpack.c.bf16 %v343_v0, %v342_v63  ;;  %v6540_v0 = vld [vmem:[%s7417_s3 + $0x20] sm:$0xff]  }
  0xaf   : > { %5794 = vmatprep.subr.bf16.mxu1 %v6540_v0 }
  0xb0   : > { %5796 = vmatpush3.bf16.msra.mxu1 %v6540_v0 }
  0xb4   : > { %5423 = vmatmul.mubr.msk.bf16.gmra.mrb[80].mxu0 %vm441_vm0, %v395_v4  ;;  %v411_v4 = vpack.c.bf16 %v341_v62, %v340_v61 }
  0xb5   : > { %5426 = vmatprep.mubr.msk.bf16.mxu0 %vm441_vm0, %v396_v5 }
  0xbc   : > { %5427 = vmatmul.mubr.msk.bf16.gmra.mrb[84].mxu0 %vm441_vm0, %v397_v10 }
  0xbd   : > { %5430 = vmatprep.mubr.msk.bf16.mxu0 %vm441_vm0, %v398_v11 }
  0xc4   : > { %5431 = vmatmul.mubr.msk.bf16.gmra.mrb[88].mxu0 %vm441_vm0, %v399_v16  ;;  %v345_v16 = vld [vmem:[%s6145_s27 + $0x3b8] sm:$0xff] }
  0xc5   : > { %5434 = vmatprep.mubr.msk.bf16.mxu0 %vm441_vm0, %v400_v17  ;;  %v346_v17 = vld [vmem:[%s6145_s27 + $0x3c0] sm:$0xff] }
  0xc6   : > { %v414_v25 = vpack.c.bf16 %v347_v18, %v346_v17 }
  0xcc   : > { %5435 = vmatmul.mubr.msk.bf16.gmra.mrb[92].mxu0 %vm441_vm0, %v401_v22  ;;  %v413_v22 = vpack.c.bf16 %v345_v16, %v344_v15 }
  0xcd   : > { %5438 = vmatprep.mubr.msk.bf16.mxu0 %vm441_vm0, %v402_v23 }
  0xd4   : > { %5439 = vmatmul.mubr.msk.bf16.gmra.mrb[96].mxu0 %vm441_vm0, %v403_v28 }
  0xd5   : > { %5442 = vmatprep.mubr.msk.bf16.mxu0 %vm441_vm0, %v404_v29 }
  0xdc   : > { %5443 = vmatmul.mubr.msk.bf16.gmra.mrb[100].mxu0 %vm441_vm0, %v405_v34 }
  0xdd   : > { %5446 = vmatprep.mubr.msk.bf16.mxu0 %vm441_vm0, %v406_v35 }
  0xe4   : > { %5447 = vmatmul.mubr.msk.bf16.gmra.mrb[104].mxu0 %vm441_vm0, %v407_v40 }
  0xe5   : > { %5450 = vmatprep.mubr.msk.bf16.mxu0 %vm441_vm0, %v408_v41  ;;  %v350_v41 = vld [vmem:[%s6145_s27 + $0x3e0] sm:$0xff] }
  0xe7   : > { %v5344_v47 = vpop.f32.mrb[0].mxu0 }
  0xe8   : > { %v677_v48 = vadd.f32 %v5344_v47, %v6482_v42  ;;  %v668_v49 = vpop.f32.mrb[1].mxu0  ;;  %v351_v47 = vld [vmem:[%s6145_s27 + $0x3e8] sm:$0xff] }
  0xe9   : > { %v669_v51 = vadd.f32 %v6482_v42, %v668_v49  ;;  %v5345_v52 = vpop.f32.mrb[2].mxu0 }
  0xea   : > { %v1181_v54 = vmax.f32 %v677_v48, 0.0  ;;  %v680_v55 = vadd.f32 %v5345_v52, %v6482_v42  ;;  %v671_v56 = vpop.f32.mrb[3].mxu0 }
  0xeb   : > { %v1179_v57 = vmax.f32 %v669_v51, 0.0  ;;  %v672_v58 = vadd.f32 %v6482_v42, %v671_v56 }
  0xec   : > { %1309 = vst.msk [vmem:[#allocation2 + $0x10] sm:$0xff] %vm441_vm0, %v1181_v54  ;;  %v1182_v59 = vmax.f32 %v680_v55, 0.0  ;;  %5451 = vmatmul.mubr.msk.bf16.gmra.mrb[108].mxu0 %vm441_vm0, %v409_v50  ;;  %v415_v54 = vpack.c.bf16 %v349_v37, %v348_v33 }
  0xed   : > { %1307 = vst.msk [vmem:[#allocation2] sm:$0xff] %vm441_vm0, %v1179_v57  ;;  %v1180_v60 = vmax.f32 %v672_v58, 0.0  ;;  %5454 = vmatprep.mubr.msk.bf16.mxu0 %vm441_vm0, %v410_v53  ;;  %v416_v58 = vpack.c.bf16 %v351_v47, %v350_v41 }
  0xee   : > { %1310 = vst.msk [vmem:[#allocation2 + $0x18] sm:$0xff] %vm441_vm0, %v1182_v59 }
  0xef   : > { %1308 = vst.msk [vmem:[#allocation2 + $0x8] sm:$0xff] %vm441_vm0, %v1180_v60  ;;  %v5348_v1 = vpop.f32.mrb[4].mxu0 }
  0xf0   : > { %v693_v2 = vadd.f32 %v5348_v1, %v6482_v42  ;;  %v684_v3 = vpop.f32.mrb[5].mxu0 }
  0xf1   : > { %v685_v5 = vadd.f32 %v6482_v42, %v684_v3  ;;  %v5349_v6 = vpop.f32.mrb[6].mxu0  ;;  %v352_v3 = vld [vmem:[%s6145_s27 + $0x3f0] sm:$0xff] }
  0xf2   : > { %v1185_v8 = vmax.f32 %v693_v2, 0.0  ;;  %v696_v9 = vadd.f32 %v5349_v6, %v6482_v42  ;;  %v687_v10 = vpop.f32.mrb[7].mxu0  ;;  %v1944_v6 = vld [vmem:[#allocation4 + $0x10] sm:$0xff] }
  0xf3   : > { %v1183_v11 = vmax.f32 %v685_v5, 0.0  ;;  %v688_v12 = vadd.f32 %v6482_v42, %v687_v10  ;;  %v1943_v5 = vld [vmem:[#allocation4 + $0x8] sm:$0xff] }
  0xf4   : > { %1313 = vst.msk [vmem:[#allocation2 + $0x30] sm:$0xff] %vm441_vm0, %v1185_v8  ;;  %v1186_v13 = vmax.f32 %v696_v9, 0.0  ;;  %5455 = vmatmul.mubr.msk.bf16.gmra.mrb[112].mxu0 %vm441_vm0, %v411_v4  ;;  %v353_v4 = vld [vmem:[%s6145_s27 + $0x3f8] sm:$0xff]  ;;  %v6068_v8 = vld [vmem:[%s7417_s3 + $0x28] sm:$0xff]  }
  0xf5   : > { %1311 = vst.msk [vmem:[#allocation2 + $0x20] sm:$0xff] %vm441_vm0, %v1183_v11  ;;  %v1184_v14 = vmax.f32 %v688_v12, 0.0  ;;  %5458 = vmatprep.mubr.msk.bf16.mxu0 %vm441_vm0, %v412_v7  ;;  %v1437_v29 = vld [vmem:[#allocation2 + $0x10] ss:$2 sm:$0xff]  ;;  %v1565_v30 = vld [vmem:[#allocation2 + $0x11] ss:$2 sm:$0xff]  ;;  %v417_v11 = vpack.c.bf16 %v353_v4, %v352_v3  ;;  %5795 = vmatprep.subr.bf16.mxu1 %v6068_v8 }
  0xf6   : > { %1314 = vst.msk [vmem:[#allocation2 + $0x38] sm:$0xff] %vm441_vm0, %v1186_v13  ;;  %v1435_v34 = vld [vmem:[#allocation2] ss:$2 sm:$0xff]  ;;  %v1563_v35 = vld [vmem:[#allocation2 + $0x1] ss:$2 sm:$0xff]  ;;  %v1691_v43 = vmax.f32 %v1437_v29, %v1565_v30  ;;  %5797 = vmatpush3.bf16.msra.mxu1 %v6068_v8 }
  0xf7   : > { %1312 = vst.msk [vmem:[#allocation2 + $0x28] sm:$0xff] %vm441_vm0, %v1184_v14  ;;  %v5352_v19 = vpop.f32.mrb[8].mxu0  ;;  %v1690_v48 = vmax.f32 %v1435_v34, %v1563_v35  ;;  %v1975_v14 = vpack.c.bf16 %v1944_v6, %v1943_v5 }
  0xf8   : > { %v709_v20 = vadd.f32 %v5352_v19, %v6482_v42  ;;  %v700_v21 = vpop.f32.mrb[9].mxu0 }
  0xf9   : > { %v701_v23 = vadd.f32 %v6482_v42, %v700_v21  ;;  %v5353_v24 = vpop.f32.mrb[10].mxu0 }
  0xfa   : > { %v1189_v26 = vmax.f32 %v709_v20, 0.0  ;;  %v712_v27 = vadd.f32 %v5353_v24, %v6482_v42  ;;  %v703_v28 = vpop.f32.mrb[11].mxu0 }
  0xfb   : > { %v1187_v31 = vmax.f32 %v701_v23, 0.0  ;;  %v704_v32 = vadd.f32 %v6482_v42, %v703_v28 }
  0xfc   : > { %1317 = vst.msk [vmem:[#allocation2 + $0x50] sm:$0xff] %vm441_vm0, %v1189_v26  ;;  %v1190_v36 = vmax.f32 %v712_v27, 0.0  ;;  %5459 = vmatmul.mubr.msk.bf16.gmra.mrb[116].mxu0 %vm441_vm0, %v413_v22 }
  0xfd   : > { %v1441_v38 = vld [vmem:[#allocation2 + $0x30] ss:$2 sm:$0xff]  ;;  %v1569_v39 = vld [vmem:[#allocation2 + $0x31] ss:$2 sm:$0xff]  ;;  %1315 = vst.msk [vmem:[#allocation2 + $0x40] sm:$0xff] %vm441_vm0, %v1187_v31  ;;  %v1188_v40 = vmax.f32 %v704_v32, 0.0  ;;  %5462 = vmatprep.mubr.msk.bf16.mxu0 %vm441_vm0, %v414_v25 }
  0xfe   : > { %v1693_v44 = vmax.f32 %v1441_v38, %v1569_v39  ;;  %v1439_v45 = vld [vmem:[#allocation2 + $0x20] ss:$2 sm:$0xff]  ;;  %v1567_v46 = vld [vmem:[#allocation2 + $0x21] ss:$2 sm:$0xff]  ;;  %1318 = vst.msk [vmem:[#allocation2 + $0x58] sm:$0xff] %vm441_vm0, %v1190_v36 }
  0xff   : > { %v1692_v49 = vmax.f32 %v1439_v45, %v1567_v46  ;;  %1316 = vst.msk [vmem:[#allocation2 + $0x48] sm:$0xff] %vm441_vm0, %v1188_v40  ;;  %v5356_v50 = vpop.f32.mrb[12].mxu0 }
 0x100   : > { %v1755_v51 = vmax.f32 %v1691_v43, %v1693_v44  ;;  %v725_v52 = vadd.f32 %v5356_v50, %v6482_v42  ;;  %v716_v53 = vpop.f32.mrb[13].mxu0 }
 0x101   : > { %v1754_v55 = vmax.f32 %v1690_v48, %v1692_v49  ;;  %v717_v56 = vadd.f32 %v6482_v42, %v716_v53  ;;  %v5357_v57 = vpop.f32.mrb[14].mxu0 }
 0x102   : > { %1860 = vst.msk [vmem:[#allocation4 + $0x30] sm:$0xff] %vm441_vm0, %v1755_v51  ;;  %v1193_v59 = vmax.f32 %v725_v52, 0.0  ;;  %v728_v60 = vadd.f32 %v5357_v57, %v6482_v42  ;;  %v719_v61 = vpop.f32.mrb[15].mxu0 }
 0x103   : > { %1859 = vst.msk [vmem:[#allocation4 + $0x28] sm:$0xff] %vm441_vm0, %v1754_v55  ;;  %v1191_v62 = vmax.f32 %v717_v56, 0.0  ;;  %v720_v63 = vadd.f32 %v6482_v42, %v719_v61 }
 0x104   : > { %1321 = vst.msk [vmem:[#allocation2 + $0x70] sm:$0xff] %vm441_vm0, %v1193_v59  ;;  %v1194_v1 = vmax.f32 %v728_v60, 0.0  ;;  %5463 = vmatmul.mubr.msk.bf16.gmra.mrb[120].mxu0 %vm441_vm0, %v415_v54 }
 0x105   : > { %1319 = vst.msk [vmem:[#allocation2 + $0x60] sm:$0xff] %vm441_vm0, %v1191_v62  ;;  %v1192_v2 = vmax.f32 %v720_v63, 0.0  ;;  %5466 = vmatprep.mubr.msk.bf16.mxu0 %vm441_vm0, %v416_v58  ;;  %v1445_v18 = vld [vmem:[#allocation2 + $0x50] ss:$2 sm:$0xff]  ;;  %v1573_v19 = vld [vmem:[#allocation2 + $0x51] ss:$2 sm:$0xff] }
 0x106   : > { %1322 = vst.msk [vmem:[#allocation2 + $0x78] sm:$0xff] %vm441_vm0, %v1194_v1  ;;  %v1443_v22 = vld [vmem:[#allocation2 + $0x40] ss:$2 sm:$0xff]  ;;  %v1571_v23 = vld [vmem:[#allocation2 + $0x41] ss:$2 sm:$0xff]  ;;  %v1695_v28 = vmax.f32 %v1445_v18, %v1573_v19 }
 0x107   : > { %1320 = vst.msk [vmem:[#allocation2 + $0x68] sm:$0xff] %vm441_vm0, %v1192_v2  ;;  %v5360_v7 = vpop.f32.mrb[16].mxu0  ;;  %v1694_v32 = vmax.f32 %v1443_v22, %v1571_v23 }
 0x108   : > { %v741_v9 = vadd.f32 %v5360_v7, %v6482_v42  ;;  %v732_v10 = vpop.f32.mrb[17].mxu0 }
 0x109   : > { %v733_v12 = vadd.f32 %v6482_v42, %v732_v10  ;;  %v5361_v13 = vpop.f32.mrb[18].mxu0  ;;  %v1946_v36 = vld [vmem:[#allocation4 + $0x30] sm:$0xff] }
 0x10a   : > { %v1197_v15 = vmax.f32 %v741_v9, 0.0  ;;  %v744_v16 = vadd.f32 %v5361_v13, %v6482_v42  ;;  %v735_v17 = vpop.f32.mrb[19].mxu0  ;;  %v1945_v35 = vld [vmem:[#allocation4 + $0x28] sm:$0xff] }
 0x10b   : > { %v1195_v20 = vmax.f32 %v733_v12, 0.0  ;;  %v736_v21 = vadd.f32 %v6482_v42, %v735_v17  ;;  %v1976_v47 = vpack.c.bf16 %v1946_v36, %v1945_v35 }
 0x10c   : > { %1325 = vst.msk [vmem:[#allocation2 + $0x90] sm:$0xff] %vm441_vm0, %v1197_v15  ;;  %v1198_v24 = vmax.f32 %v744_v16, 0.0  ;;  %5467 = vmatmul.mubr.msk.bf16.gmra.mrb[124].mxu0 %vm441_vm0, %v417_v11 }
 0x10d   : > { %v1449_v25 = vld [vmem:[#allocation2 + $0x70] ss:$2 sm:$0xff]  ;;  %v1577_v26 = vld [vmem:[#allocation2 + $0x71] ss:$2 sm:$0xff]  ;;  %1323 = vst.msk [vmem:[#allocation2 + $0x80] sm:$0xff] %vm441_vm0, %v1195_v20  ;;  %v1196_v27 = vmax.f32 %v736_v21, 0.0  ;;  %5474 = vmatprep.mubr.msk.bf16.mxu0 %vm441_vm0, %v1975_v14 }
 0x10e   : > { %v1697_v29 = vmax.f32 %v1449_v25, %v1577_v26  ;;  %v1447_v30 = vld [vmem:[#allocation2 + $0x60] ss:$2 sm:$0xff]  ;;  %v1575_v31 = vld [vmem:[#allocation2 + $0x61] ss:$2 sm:$0xff]  ;;  %1326 = vst.msk [vmem:[#allocation2 + $0x98] sm:$0xff] %vm441_vm0, %v1198_v24 }
 0x10f   : > { %v1696_v33 = vmax.f32 %v1447_v30, %v1575_v31  ;;  %1324 = vst.msk [vmem:[#allocation2 + $0x88] sm:$0xff] %vm441_vm0, %v1196_v27  ;;  %v5364_v34 = vpop.f32.mrb[20].mxu0 }
 0x110   : > { %v1757_v37 = vmax.f32 %v1695_v28, %v1697_v29  ;;  %v757_v38 = vadd.f32 %v5364_v34, %v6482_v42  ;;  %v748_v39 = vpop.f32.mrb[21].mxu0 }
 0x111   : > { %v1756_v40 = vmax.f32 %v1694_v32, %v1696_v33  ;;  %v749_v41 = vadd.f32 %v6482_v42, %v748_v39  ;;  %v5365_v43 = vpop.f32.mrb[22].mxu0 }
 0x112   : > { %1862 = vst.msk [vmem:[#allocation4 + $0x50] sm:$0xff] %vm441_vm0, %v1757_v37  ;;  %v1201_v44 = vmax.f32 %v757_v38, 0.0  ;;  %v760_v45 = vadd.f32 %v5365_v43, %v6482_v42  ;;  %v751_v46 = vpop.f32.mrb[23].mxu0 }
 0x113   : > { %1861 = vst.msk [vmem:[#allocation4 + $0x48] sm:$0xff] %vm441_vm0, %v1756_v40  ;;  %v1199_v48 = vmax.f32 %v749_v41, 0.0  ;;  %v752_v49 = vadd.f32 %v6482_v42, %v751_v46 }
 0x114   : > { %1329 = vst.msk [vmem:[#allocation2 + $0xb0] sm:$0xff] %vm441_vm0, %v1201_v44  ;;  %v1202_v50 = vmax.f32 %v760_v45, 0.0  ;;  %5475 = vmatmul.mubr.msk.bf16.vlgmr.msra.gmra.mrb[128].mxu0 %vm441_vm0, %v1976_v47 }
 0x115   : > { %1327 = vst.msk [vmem:[#allocation2 + $0xa0] sm:$0xff] %vm441_vm0, %v1199_v48  ;;  %v1200_v51 = vmax.f32 %v752_v49, 0.0  ;;  %v1453_v62 = vld [vmem:[#allocation2 + $0x90] ss:$2 sm:$0xff]  ;;  %v1581_v63 = vld [vmem:[#allocation2 + $0x91] ss:$2 sm:$0xff] }
 0x116   : > { %1330 = vst.msk [vmem:[#allocation2 + $0xb8] sm:$0xff] %vm441_vm0, %v1202_v50  ;;  %v1451_v4 = vld [vmem:[#allocation2 + $0x80] ss:$2 sm:$0xff]  ;;  %v1579_v5 = vld [vmem:[#allocation2 + $0x81] ss:$2 sm:$0xff]  ;;  %v1699_v10 = vmax.f32 %v1453_v62, %v1581_v63 }
 0x117   : > { %1328 = vst.msk [vmem:[#allocation2 + $0xa8] sm:$0xff] %vm441_vm0, %v1200_v51  ;;  %v5368_v52 = vpop.f32.mrb[24].mxu0  ;;  %v1698_v14 = vmax.f32 %v1451_v4, %v1579_v5 }
 0x118   : > { %v773_v53 = vadd.f32 %v5368_v52, %v6482_v42  ;;  %v764_v54 = vpop.f32.mrb[25].mxu0 }
 0x119   : > { %v765_v55 = vadd.f32 %v6482_v42, %v764_v54  ;;  %v5369_v56 = vpop.f32.mrb[26].mxu0  ;;  %v1948_v57 = vld [vmem:[#allocation4 + $0x50] sm:$0xff] }
 0x11a   : > { %v1205_v58 = vmax.f32 %v773_v53, 0.0  ;;  %v776_v59 = vadd.f32 %v5369_v56, %v6482_v42  ;;  %v767_v60 = vpop.f32.mrb[27].mxu0  ;;  %v1947_v61 = vld [vmem:[#allocation4 + $0x48] sm:$0xff] }
 0x11b   : > { %v1203_v1 = vmax.f32 %v765_v55, 0.0  ;;  %v768_v2 = vadd.f32 %v6482_v42, %v767_v60  ;;  %v1977_v3 = vpack.c.bf16 %v1948_v57, %v1947_v61 }
 0x11c   : > { %1333 = vst.msk [vmem:[#allocation2 + $0xd0] sm:$0xff] %vm441_vm0, %v1205_v58  ;;  %v1206_v6 = vmax.f32 %v776_v59, 0.0 }
 0x11d   : > { %v1457_v7 = vld [vmem:[#allocation2 + $0xb0] ss:$2 sm:$0xff]  ;;  %v1585_v8 = vld [vmem:[#allocation2 + $0xb1] ss:$2 sm:$0xff]  ;;  %1331 = vst.msk [vmem:[#allocation2 + $0xc0] sm:$0xff] %vm441_vm0, %v1203_v1  ;;  %v1204_v9 = vmax.f32 %v768_v2, 0.0  ;;  %5478 = vmatprep.mubr.msk.bf16.mxu0 %vm441_vm0, %v1977_v3 }
 0x11e   : > { %v1701_v11 = vmax.f32 %v1457_v7, %v1585_v8  ;;  %v1455_v12 = vld [vmem:[#allocation2 + $0xa0] ss:$2 sm:$0xff]  ;;  %v1583_v13 = vld [vmem:[#allocation2 + $0xa1] ss:$2 sm:$0xff]  ;;  %1334 = vst.msk [vmem:[#allocation2 + $0xd8] sm:$0xff] %vm441_vm0, %v1206_v6 }
 0x11f   : > { %v1700_v15 = vmax.f32 %v1455_v12, %v1583_v13  ;;  %1332 = vst.msk [vmem:[#allocation2 + $0xc8] sm:$0xff] %vm441_vm0, %v1204_v9  ;;  %v5372_v16 = vpop.f32.mrb[28].mxu0 }
 0x120   : > { %v1759_v17 = vmax.f32 %v1699_v10, %v1701_v11  ;;  %v789_v18 = vadd.f32 %v5372_v16, %v6482_v42  ;;  %v780_v19 = vpop.f32.mrb[29].mxu0 }
 0x121   : > { %v1758_v20 = vmax.f32 %v1698_v14, %v1700_v15  ;;  %v781_v21 = vadd.f32 %v6482_v42, %v780_v19  ;;  %v5373_v22 = vpop.f32.mrb[30].mxu0 }
 0x122   : > { %1864 = vst.msk [vmem:[#allocation4 + $0x70] sm:$0xff] %vm441_vm0, %v1759_v17  ;;  %v1209_v23 = vmax.f32 %v789_v18, 0.0  ;;  %v792_v24 = vadd.f32 %v5373_v22, %v6482_v42  ;;  %v783_v25 = vpop.f32.mrb[31].mxu0 }
 0x123   : > { %1863 = vst.msk [vmem:[#allocation4 + $0x68] sm:$0xff] %vm441_vm0, %v1758_v20  ;;  %v1207_v26 = vmax.f32 %v781_v21, 0.0  ;;  %v784_v27 = vadd.f32 %v6482_v42, %v783_v25 }
 0x124   : > { %1337 = vst.msk [vmem:[#allocation2 + $0xf0] sm:$0xff] %vm441_vm0, %v1209_v23  ;;  %v1210_v28 = vmax.f32 %v792_v24, 0.0 }
 0x125   : > { %1335 = vst.msk [vmem:[#allocation2 + $0xe0] sm:$0xff] %vm441_vm0, %v1207_v26  ;;  %v1208_v29 = vmax.f32 %v784_v27, 0.0  ;;  %v1461_v40 = vld [vmem:[#allocation2 + $0xd0] ss:$2 sm:$0xff]  ;;  %v1589_v41 = vld [vmem:[#allocation2 + $0xd1] ss:$2 sm:$0xff] }
 0x126   : > { %1338 = vst.msk [vmem:[#allocation2 + $0xf8] sm:$0xff] %vm441_vm0, %v1210_v28  ;;  %v1459_v46 = vld [vmem:[#allocation2 + $0xc0] ss:$2 sm:$0xff]  ;;  %v1587_v47 = vld [vmem:[#allocation2 + $0xc1] ss:$2 sm:$0xff]  ;;  %v1703_v52 = vmax.f32 %v1461_v40, %v1589_v41 }
 0x127   : > { %1336 = vst.msk [vmem:[#allocation2 + $0xe8] sm:$0xff] %vm441_vm0, %v1208_v29  ;;  %v5376_v30 = vpop.f32.mrb[32].mxu0  ;;  %v1702_v56 = vmax.f32 %v1459_v46, %v1587_v47 }
 0x128   : > { %v805_v31 = vadd.f32 %v5376_v30, %v6482_v42  ;;  %v796_v32 = vpop.f32.mrb[33].mxu0 }
 0x129   : > { %v797_v33 = vadd.f32 %v6482_v42, %v796_v32  ;;  %v5377_v34 = vpop.f32.mrb[34].mxu0  ;;  %v1950_v35 = vld [vmem:[#allocation4 + $0x70] sm:$0xff] }
 0x12a   : > { %v1213_v36 = vmax.f32 %v805_v31, 0.0  ;;  %v808_v37 = vadd.f32 %v5377_v34, %v6482_v42  ;;  %v799_v38 = vpop.f32.mrb[35].mxu0  ;;  %v1949_v39 = vld [vmem:[#allocation4 + $0x68] sm:$0xff] }
 0x12b   : > { %v1211_v43 = vmax.f32 %v797_v33, 0.0  ;;  %v800_v44 = vadd.f32 %v6482_v42, %v799_v38  ;;  %v1978_v45 = vpack.c.bf16 %v1950_v35, %v1949_v39 }
 0x12c   : > { %1341 = vst.msk [vmem:[#allocation2 + $0x110] sm:$0xff] %vm441_vm0, %v1213_v36  ;;  %v1214_v48 = vmax.f32 %v808_v37, 0.0 }
 0x12d   : > { %v1465_v49 = vld [vmem:[#allocation2 + $0xf0] ss:$2 sm:$0xff]  ;;  %v1593_v50 = vld [vmem:[#allocation2 + $0xf1] ss:$2 sm:$0xff]  ;;  %1339 = vst.msk [vmem:[#allocation2 + $0x100] sm:$0xff] %vm441_vm0, %v1211_v43  ;;  %v1212_v51 = vmax.f32 %v800_v44, 0.0  ;;  %5479 = vmatmul.mubr.msk.bf16.gmra.mrb[132].mxu0 %vm441_vm0, %v1978_v45 }
 0x12e   : > { %v1705_v53 = vmax.f32 %v1465_v49, %v1593_v50  ;;  %v1463_v54 = vld [vmem:[#allocation2 + $0xe0] ss:$2 sm:$0xff]  ;;  %v1591_v55 = vld [vmem:[#allocation2 + $0xe1] ss:$2 sm:$0xff]  ;;  %1342 = vst.msk [vmem:[#allocation2 + $0x118] sm:$0xff] %vm441_vm0, %v1214_v48 }
 0x12f   : > { %v1704_v57 = vmax.f32 %v1463_v54, %v1591_v55  ;;  %1340 = vst.msk [vmem:[#allocation2 + $0x108] sm:$0xff] %vm441_vm0, %v1212_v51  ;;  %v5380_v58 = vpop.f32.mrb[36].mxu0 }
 0x130   : > { %v1761_v59 = vmax.f32 %v1703_v52, %v1705_v53  ;;  %v821_v60 = vadd.f32 %v5380_v58, %v6482_v42  ;;  %v812_v61 = vpop.f32.mrb[37].mxu0 }
 0x131   : > { %v1760_v62 = vmax.f32 %v1702_v56, %v1704_v57  ;;  %v813_v63 = vadd.f32 %v6482_v42, %v812_v61  ;;  %v5381_v1 = vpop.f32.mrb[38].mxu0 }
 0x132   : > { %1866 = vst.msk [vmem:[#allocation4 + $0x90] sm:$0xff] %vm441_vm0, %v1761_v59  ;;  %v1217_v2 = vmax.f32 %v821_v60, 0.0  ;;  %v824_v3 = vadd.f32 %v5381_v1, %v6482_v42  ;;  %v815_v4 = vpop.f32.mrb[39].mxu0 }
 0x133   : > { %1865 = vst.msk [vmem:[#allocation4 + $0x88] sm:$0xff] %vm441_vm0, %v1760_v62  ;;  %v1215_v5 = vmax.f32 %v813_v63, 0.0  ;;  %v816_v6 = vadd.f32 %v6482_v42, %v815_v4 }
 0x134   : > { %1345 = vst.msk [vmem:[#allocation2 + $0x130] sm:$0xff] %vm441_vm0, %v1217_v2  ;;  %v1218_v7 = vmax.f32 %v824_v3, 0.0 }
 0x135   : > { %1343 = vst.msk [vmem:[#allocation2 + $0x120] sm:$0xff] %vm441_vm0, %v1215_v5  ;;  %v1216_v8 = vmax.f32 %v816_v6, 0.0  ;;  %v1469_v19 = vld [vmem:[#allocation2 + $0x110] ss:$2 sm:$0xff]  ;;  %v1597_v20 = vld [vmem:[#allocation2 + $0x111] ss:$2 sm:$0xff] }
 0x136   : > { %1346 = vst.msk [vmem:[#allocation2 + $0x138] sm:$0xff] %vm441_vm0, %v1218_v7  ;;  %v1467_v24 = vld [vmem:[#allocation2 + $0x100] ss:$2 sm:$0xff]  ;;  %v1595_v25 = vld [vmem:[#allocation2 + $0x101] ss:$2 sm:$0xff]  ;;  %v1707_v30 = vmax.f32 %v1469_v19, %v1597_v20 }
 0x137   : > { %1344 = vst.msk [vmem:[#allocation2 + $0x128] sm:$0xff] %vm441_vm0, %v1216_v8  ;;  %v5384_v9 = vpop.f32.mrb[40].mxu0  ;;  %v1706_v34 = vmax.f32 %v1467_v24, %v1595_v25 }
 0x138   : > { %v837_v10 = vadd.f32 %v5384_v9, %v6482_v42  ;;  %v828_v11 = vpop.f32.mrb[41].mxu0 }
 0x139   : > { %v829_v12 = vadd.f32 %v6482_v42, %v828_v11  ;;  %v5385_v13 = vpop.f32.mrb[42].mxu0  ;;  %v1952_v14 = vld [vmem:[#allocation4 + $0x90] sm:$0xff] }
 0x13a   : > { %v1221_v15 = vmax.f32 %v837_v10, 0.0  ;;  %v840_v16 = vadd.f32 %v5385_v13, %v6482_v42  ;;  %v831_v17 = vpop.f32.mrb[43].mxu0  ;;  %v1951_v18 = vld [vmem:[#allocation4 + $0x88] sm:$0xff] }
 0x13b   : > { %v1219_v21 = vmax.f32 %v829_v12, 0.0  ;;  %v832_v22 = vadd.f32 %v6482_v42, %v831_v17  ;;  %v1979_v23 = vpack.c.bf16 %v1952_v14, %v1951_v18 }
 0x13c   : > { %1349 = vst.msk [vmem:[#allocation2 + $0x150] sm:$0xff] %vm441_vm0, %v1221_v15  ;;  %v1222_v26 = vmax.f32 %v840_v16, 0.0 }
 0x13d   : > { %v1473_v27 = vld [vmem:[#allocation2 + $0x130] ss:$2 sm:$0xff]  ;;  %v1601_v28 = vld [vmem:[#allocation2 + $0x131] ss:$2 sm:$0xff]  ;;  %1347 = vst.msk [vmem:[#allocation2 + $0x140] sm:$0xff] %vm441_vm0, %v1219_v21  ;;  %v1220_v29 = vmax.f32 %v832_v22, 0.0  ;;  %5482 = vmatprep.mubr.msk.bf16.mxu0 %vm441_vm0, %v1979_v23 }
 0x13e   : > { %v1709_v31 = vmax.f32 %v1473_v27, %v1601_v28  ;;  %v1471_v32 = vld [vmem:[#allocation2 + $0x120] ss:$2 sm:$0xff]  ;;  %v1599_v33 = vld [vmem:[#allocation2 + $0x121] ss:$2 sm:$0xff]  ;;  %1350 = vst.msk [vmem:[#allocation2 + $0x158] sm:$0xff] %vm441_vm0, %v1222_v26 }
 0x13f   : > { %v1708_v35 = vmax.f32 %v1471_v32, %v1599_v33  ;;  %1348 = vst.msk [vmem:[#allocation2 + $0x148] sm:$0xff] %vm441_vm0, %v1220_v29  ;;  %v5388_v36 = vpop.f32.mrb[44].mxu0 }
 0x140   : > { %v1763_v37 = vmax.f32 %v1707_v30, %v1709_v31  ;;  %v853_v38 = vadd.f32 %v5388_v36, %v6482_v42  ;;  %v844_v39 = vpop.f32.mrb[45].mxu0 }
 0x141   : > { %v1762_v40 = vmax.f32 %v1706_v34, %v1708_v35  ;;  %v845_v41 = vadd.f32 %v6482_v42, %v844_v39  ;;  %v5389_v43 = vpop.f32.mrb[46].mxu0 }
 0x142   : > { %1868 = vst.msk [vmem:[#allocation4 + $0xb0] sm:$0xff] %vm441_vm0, %v1763_v37  ;;  %v1225_v44 = vmax.f32 %v853_v38, 0.0  ;;  %v856_v45 = vadd.f32 %v5389_v43, %v6482_v42  ;;  %v847_v46 = vpop.f32.mrb[47].mxu0 }
 0x143   : > { %1867 = vst.msk [vmem:[#allocation4 + $0xa8] sm:$0xff] %vm441_vm0, %v1762_v40  ;;  %v1223_v47 = vmax.f32 %v845_v41, 0.0  ;;  %v848_v48 = vadd.f32 %v6482_v42, %v847_v46 }
 0x144   : > { %1353 = vst.msk [vmem:[#allocation2 + $0x170] sm:$0xff] %vm441_vm0, %v1225_v44  ;;  %v1226_v49 = vmax.f32 %v856_v45, 0.0 }
 0x145   : > { %1351 = vst.msk [vmem:[#allocation2 + $0x160] sm:$0xff] %vm441_vm0, %v1223_v47  ;;  %v1224_v50 = vmax.f32 %v848_v48, 0.0  ;;  %v1477_v61 = vld [vmem:[#allocation2 + $0x150] ss:$2 sm:$0xff]  ;;  %v1605_v62 = vld [vmem:[#allocation2 + $0x151] ss:$2 sm:$0xff] }
 0x146   : > { %1354 = vst.msk [vmem:[#allocation2 + $0x178] sm:$0xff] %vm441_vm0, %v1226_v49  ;;  %v1475_v3 = vld [vmem:[#allocation2 + $0x140] ss:$2 sm:$0xff]  ;;  %v1603_v4 = vld [vmem:[#allocation2 + $0x141] ss:$2 sm:$0xff]  ;;  %v1711_v9 = vmax.f32 %v1477_v61, %v1605_v62 }
 0x147   : > { %1352 = vst.msk [vmem:[#allocation2 + $0x168] sm:$0xff] %vm441_vm0, %v1224_v50  ;;  %v5392_v51 = vpop.f32.mrb[48].mxu0  ;;  %v1710_v13 = vmax.f32 %v1475_v3, %v1603_v4 }
 0x148   : > { %v869_v52 = vadd.f32 %v5392_v51, %v6482_v42  ;;  %v860_v53 = vpop.f32.mrb[49].mxu0 }
 0x149   : > { %v861_v54 = vadd.f32 %v6482_v42, %v860_v53  ;;  %v5393_v55 = vpop.f32.mrb[50].mxu0  ;;  %v1954_v56 = vld [vmem:[#allocation4 + $0xb0] sm:$0xff] }
 0x14a   : > { %v1229_v57 = vmax.f32 %v869_v52, 0.0  ;;  %v872_v58 = vadd.f32 %v5393_v55, %v6482_v42  ;;  %v863_v59 = vpop.f32.mrb[51].mxu0  ;;  %v1953_v60 = vld [vmem:[#allocation4 + $0xa8] sm:$0xff] }
 0x14b   : > { %v1227_v63 = vmax.f32 %v861_v54, 0.0  ;;  %v864_v1 = vadd.f32 %v6482_v42, %v863_v59  ;;  %v1980_v2 = vpack.c.bf16 %v1954_v56, %v1953_v60 }
 0x14c   : > { %1357 = vst.msk [vmem:[#allocation2 + $0x190] sm:$0xff] %vm441_vm0, %v1229_v57  ;;  %v1230_v5 = vmax.f32 %v872_v58, 0.0 }
 0x14d   : > { %v1481_v6 = vld [vmem:[#allocation2 + $0x170] ss:$2 sm:$0xff]  ;;  %v1609_v7 = vld [vmem:[#allocation2 + $0x171] ss:$2 sm:$0xff]  ;;  %1355 = vst.msk [vmem:[#allocation2 + $0x180] sm:$0xff] %vm441_vm0, %v1227_v63  ;;  %v1228_v8 = vmax.f32 %v864_v1, 0.0  ;;  %5483 = vmatmul.mubr.msk.bf16.gmra.mrb[136].mxu0 %vm441_vm0, %v1980_v2 }
 0x14e   : > { %v1713_v10 = vmax.f32 %v1481_v6, %v1609_v7  ;;  %v1479_v11 = vld [vmem:[#allocation2 + $0x160] ss:$2 sm:$0xff]  ;;  %v1607_v12 = vld [vmem:[#allocation2 + $0x161] ss:$2 sm:$0xff]  ;;  %1358 = vst.msk [vmem:[#allocation2 + $0x198] sm:$0xff] %vm441_vm0, %v1230_v5  ;;  %v6670_v6 = vld [vmem:[%s7417_s3 + $0x30] sm:$0xff]  }
 0x14f   : > { %v1712_v14 = vmax.f32 %v1479_v11, %v1607_v12  ;;  %1356 = vst.msk [vmem:[#allocation2 + $0x188] sm:$0xff] %vm441_vm0, %v1228_v8  ;;  %v5396_v15 = vpop.f32.mrb[52].mxu0  ;;  %5578 = vmatprep.subr.bf16.mxu1 %v6670_v6 }
 0x150   : > { %v1765_v16 = vmax.f32 %v1711_v9, %v1713_v10  ;;  %v885_v17 = vadd.f32 %v5396_v15, %v6482_v42  ;;  %v876_v18 = vpop.f32.mrb[53].mxu0 }
 0x151   : > { %v1764_v19 = vmax.f32 %v1710_v13, %v1712_v14  ;;  %v877_v20 = vadd.f32 %v6482_v42, %v876_v18  ;;  %v5397_v21 = vpop.f32.mrb[54].mxu0 }
 0x152   : > { %1870 = vst.msk [vmem:[#allocation4 + $0xd0] sm:$0xff] %vm441_vm0, %v1765_v16  ;;  %v1233_v22 = vmax.f32 %v885_v17, 0.0  ;;  %v888_v23 = vadd.f32 %v5397_v21, %v6482_v42  ;;  %v879_v24 = vpop.f32.mrb[55].mxu0 }
 0x153   : > { %1869 = vst.msk [vmem:[#allocation4 + $0xc8] sm:$0xff] %vm441_vm0, %v1764_v19  ;;  %v1231_v25 = vmax.f32 %v877_v20, 0.0  ;;  %v880_v26 = vadd.f32 %v6482_v42, %v879_v24  ;;  %v6071_v24 = vld [vmem:[%s7417_s3] sm:$0xff]  }
 0x154   : > { %1361 = vst.msk [vmem:[#allocation2 + $0x1b0] sm:$0xff] %vm441_vm0, %v1233_v22  ;;  %v1234_v27 = vmax.f32 %v888_v23, 0.0  ;;  %5506 = vmatprep.subr.bf16.mxu0 %v6071_v24 }
 0x155   : > { %1359 = vst.msk [vmem:[#allocation2 + $0x1a0] sm:$0xff] %vm441_vm0, %v1231_v25  ;;  %v1232_v28 = vmax.f32 %v880_v26, 0.0  ;;  %v1485_v39 = vld [vmem:[#allocation2 + $0x190] ss:$2 sm:$0xff]  ;;  %v1613_v40 = vld [vmem:[#allocation2 + $0x191] ss:$2 sm:$0xff]  ;;  %5507 = vmatpush3.bf16.msra.mxu0 %v6071_v24 }
 0x156   : > { %1362 = vst.msk [vmem:[#allocation2 + $0x1b8] sm:$0xff] %vm441_vm0, %v1234_v27  ;;  %v1483_v45 = vld [vmem:[#allocation2 + $0x180] ss:$2 sm:$0xff]  ;;  %v1611_v46 = vld [vmem:[#allocation2 + $0x181] ss:$2 sm:$0xff]  ;;  %v1715_v51 = vmax.f32 %v1485_v39, %v1613_v40 }
 0x157   : > { %1360 = vst.msk [vmem:[#allocation2 + $0x1a8] sm:$0xff] %vm441_vm0, %v1232_v28  ;;  %v5400_v29 = vpop.f32.mrb[56].mxu0  ;;  %v1714_v55 = vmax.f32 %v1483_v45, %v1611_v46 }
 0x158   : > { %v901_v30 = vadd.f32 %v5400_v29, %v6482_v42  ;;  %v892_v31 = vpop.f32.mrb[57].mxu0 }
 0x159   : > { %v893_v32 = vadd.f32 %v6482_v42, %v892_v31  ;;  %v5401_v33 = vpop.f32.mrb[58].mxu0  ;;  %v1956_v34 = vld [vmem:[#allocation4 + $0xd0] sm:$0xff] }
 0x15a   : > { %v1237_v35 = vmax.f32 %v901_v30, 0.0  ;;  %v904_v36 = vadd.f32 %v5401_v33, %v6482_v42  ;;  %v895_v37 = vpop.f32.mrb[59].mxu0  ;;  %v1955_v38 = vld [vmem:[#allocation4 + $0xc8] sm:$0xff] }
 0x15b   : > { %v1235_v41 = vmax.f32 %v893_v32, 0.0  ;;  %v896_v43 = vadd.f32 %v6482_v42, %v895_v37  ;;  %v1981_v44 = vpack.c.bf16 %v1956_v34, %v1955_v38 }
 0x15c   : > { %1365 = vst.msk [vmem:[#allocation2 + $0x1d0] sm:$0xff] %vm441_vm0, %v1237_v35  ;;  %v1238_v47 = vmax.f32 %v904_v36, 0.0  ;;  %v6072_v35 = vld [vmem:[%s7417_s3 + $0x8] sm:$0xff]  }
 0x15d   : > { %v1489_v48 = vld [vmem:[#allocation2 + $0x1b0] ss:$2 sm:$0xff]  ;;  %v1617_v49 = vld [vmem:[#allocation2 + $0x1b1] ss:$2 sm:$0xff]  ;;  %1363 = vst.msk [vmem:[#allocation2 + $0x1c0] sm:$0xff] %vm441_vm0, %v1235_v41  ;;  %v1236_v50 = vmax.f32 %v896_v43, 0.0  ;;  %5486 = vmatprep.mubr.msk.bf16.mxu0 %vm441_vm0, %v1981_v44  ;;  %5508 = vmatprep.subr.bf16.mxu0 %v6072_v35 }
 0x15e   : > { %v1717_v52 = vmax.f32 %v1489_v48, %v1617_v49  ;;  %v1487_v53 = vld [vmem:[#allocation2 + $0x1a0] ss:$2 sm:$0xff]  ;;  %v1615_v54 = vld [vmem:[#allocation2 + $0x1a1] ss:$2 sm:$0xff]  ;;  %1366 = vst.msk [vmem:[#allocation2 + $0x1d8] sm:$0xff] %vm441_vm0, %v1238_v47  ;;  %5509 = vmatpush3.bf16.msra.mxu0 %v6072_v35 }
 0x15f   : > { %v1716_v56 = vmax.f32 %v1487_v53, %v1615_v54  ;;  %1364 = vst.msk [vmem:[#allocation2 + $0x1c8] sm:$0xff] %vm441_vm0, %v1236_v50  ;;  %v5404_v57 = vpop.f32.mrb[60].mxu0  ;;  %5542 = vmatprep.subr.bf16.mxu0 %v6540_v0 }
 0x160   : > { %v1767_v58 = vmax.f32 %v1715_v51, %v1717_v52  ;;  %v917_v59 = vadd.f32 %v5404_v57, %v6482_v42  ;;  %v908_v60 = vpop.f32.mrb[61].mxu0 }
 0x161   : > { %v1766_v61 = vmax.f32 %v1714_v55, %v1716_v56  ;;  %v909_v62 = vadd.f32 %v6482_v42, %v908_v60  ;;  %v5405_v63 = vpop.f32.mrb[62].mxu0 }
 0x162   : > { %1872 = vst.msk [vmem:[#allocation4 + $0xf0] sm:$0xff] %vm441_vm0, %v1767_v58  ;;  %v1241_v1 = vmax.f32 %v917_v59, 0.0  ;;  %v920_v2 = vadd.f32 %v5405_v63, %v6482_v42  ;;  %v911_v3 = vpop.f32.mrb[63].mxu0 }
 0x163   : > { %1871 = vst.msk [vmem:[#allocation4 + $0xe8] sm:$0xff] %vm441_vm0, %v1766_v61  ;;  %v1239_v4 = vmax.f32 %v909_v62, 0.0  ;;  %v912_v5 = vadd.f32 %v6482_v42, %v911_v3 }
 0x164   : > { %1369 = vst.msk [vmem:[#allocation2 + $0x1f0] sm:$0xff] %vm441_vm0, %v1241_v1  ;;  %v1242_v7 = vmax.f32 %v920_v2, 0.0 }
 0x165   : > { %1367 = vst.msk [vmem:[#allocation2 + $0x1e0] sm:$0xff] %vm441_vm0, %v1239_v4  ;;  %v1240_v8 = vmax.f32 %v912_v5, 0.0  ;;  %v1493_v19 = vld [vmem:[#allocation2 + $0x1d0] ss:$2 sm:$0xff]  ;;  %v1621_v20 = vld [vmem:[#allocation2 + $0x1d1] ss:$2 sm:$0xff] }
 0x166   : > { %1370 = vst.msk [vmem:[#allocation2 + $0x1f8] sm:$0xff] %vm441_vm0, %v1242_v7  ;;  %v1491_v25 = vld [vmem:[#allocation2 + $0x1c0] ss:$2 sm:$0xff]  ;;  %v1619_v26 = vld [vmem:[#allocation2 + $0x1c1] ss:$2 sm:$0xff]  ;;  %v1719_v31 = vmax.f32 %v1493_v19, %v1621_v20 }
 0x167   : > { %1368 = vst.msk [vmem:[#allocation2 + $0x1e8] sm:$0xff] %vm441_vm0, %v1240_v8  ;;  %v5408_v9 = vpop.f32.mrb[64].mxu0  ;;  %v1718_v36 = vmax.f32 %v1491_v25, %v1619_v26  ;;  %v6709_v4 = vld [vmem:[%s7416_s2] ss:$0 sm:$0xff] }
 0x168   : > { %v933_v10 = vadd.f32 %v5408_v9, %v6482_v42  ;;  %v924_v11 = vpop.f32.mrb[65].mxu0 }
 0x169   : > { %v925_v12 = vadd.f32 %v6482_v42, %v924_v11  ;;  %v5409_v13 = vpop.f32.mrb[66].mxu0  ;;  %v1958_v14 = vld [vmem:[#allocation4 + $0xf0] sm:$0xff] }
 0x16a   : > { %v1245_v15 = vmax.f32 %v933_v10, 0.0  ;;  %v936_v16 = vadd.f32 %v5409_v13, %v6482_v42  ;;  %v927_v17 = vpop.f32.mrb[67].mxu0  ;;  %v1957_v18 = vld [vmem:[#allocation4 + $0xe8] sm:$0xff] }
 0x16b   : > { %v1243_v21 = vmax.f32 %v925_v12, 0.0  ;;  %v928_v22 = vadd.f32 %v6482_v42, %v927_v17  ;;  %v1982_v23 = vpack.c.bf16 %v1958_v14, %v1957_v18 }
 0x16c   : > { %1373 = vst.msk [vmem:[#allocation2 + $0x210] sm:$0xff] %vm441_vm0, %v1245_v15  ;;  %v1246_v27 = vmax.f32 %v936_v16, 0.0 }
 0x16d   : > { %v1497_v28 = vld [vmem:[#allocation2 + $0x1f0] ss:$2 sm:$0xff]  ;;  %v1625_v29 = vld [vmem:[#allocation2 + $0x1f1] ss:$2 sm:$0xff]  ;;  %1371 = vst.msk [vmem:[#allocation2 + $0x200] sm:$0xff] %vm441_vm0, %v1243_v21  ;;  %v1244_v30 = vmax.f32 %v928_v22, 0.0  ;;  %5487 = vmatmul.mubr.msk.bf16.gmra.mrb[140].mxu0 %vm441_vm0, %v1982_v23 }
 0x16e   : > { %v1721_v32 = vmax.f32 %v1497_v28, %v1625_v29  ;;  %v1495_v33 = vld [vmem:[#allocation2 + $0x1e0] ss:$2 sm:$0xff]  ;;  %v1623_v34 = vld [vmem:[#allocation2 + $0x1e1] ss:$2 sm:$0xff]  ;;  %1374 = vst.msk [vmem:[#allocation2 + $0x218] sm:$0xff] %vm441_vm0, %v1246_v27 }
 0x16f   : > { %v1720_v37 = vmax.f32 %v1495_v33, %v1623_v34  ;;  %1372 = vst.msk [vmem:[#allocation2 + $0x208] sm:$0xff] %vm441_vm0, %v1244_v30  ;;  %v5412_v38 = vpop.f32.mrb[68].mxu0 }
 0x170   : > { %v1769_v39 = vmax.f32 %v1719_v31, %v1721_v32  ;;  %v949_v40 = vadd.f32 %v5412_v38, %v6482_v42  ;;  %v940_v41 = vpop.f32.mrb[69].mxu0 }
 0x171   : > { %v1768_v43 = vmax.f32 %v1718_v36, %v1720_v37  ;;  %v941_v44 = vadd.f32 %v6482_v42, %v940_v41  ;;  %v5413_v45 = vpop.f32.mrb[70].mxu0 }
 0x172   : > { %1874 = vst.msk [vmem:[#allocation4 + $0x110] sm:$0xff] %vm441_vm0, %v1769_v39  ;;  %v1249_v46 = vmax.f32 %v949_v40, 0.0  ;;  %v952_v47 = vadd.f32 %v5413_v45, %v6482_v42  ;;  %v943_v48 = vpop.f32.mrb[71].mxu0 }
 0x173   : > { %1873 = vst.msk [vmem:[#allocation4 + $0x108] sm:$0xff] %vm441_vm0, %v1768_v43  ;;  %v1247_v49 = vmax.f32 %v941_v44, 0.0  ;;  %v944_v50 = vadd.f32 %v6482_v42, %v943_v48 }
 0x174   : > { %1377 = vst.msk [vmem:[#allocation2 + $0x230] sm:$0xff] %vm441_vm0, %v1249_v46  ;;  %v1250_v51 = vmax.f32 %v952_v47, 0.0 }
 0x175   : > { %1375 = vst.msk [vmem:[#allocation2 + $0x220] sm:$0xff] %vm441_vm0, %v1247_v49  ;;  %v1248_v52 = vmax.f32 %v944_v50, 0.0  ;;  %v1501_v1 = vld [vmem:[#allocation2 + $0x210] ss:$2 sm:$0xff]  ;;  %v1629_v2 = vld [vmem:[#allocation2 + $0x211] ss:$2 sm:$0xff] }
 0x176   : > { %1378 = vst.msk [vmem:[#allocation2 + $0x238] sm:$0xff] %vm441_vm0, %v1250_v51  ;;  %v1499_v9 = vld [vmem:[#allocation2 + $0x200] ss:$2 sm:$0xff]  ;;  %v1627_v10 = vld [vmem:[#allocation2 + $0x201] ss:$2 sm:$0xff]  ;;  %v1723_v14 = vmax.f32 %v1501_v1, %v1629_v2 }
 0x177   : > { %1376 = vst.msk [vmem:[#allocation2 + $0x228] sm:$0xff] %vm441_vm0, %v1248_v52  ;;  %v5416_v53 = vpop.f32.mrb[72].mxu0  ;;  %v1722_v18 = vmax.f32 %v1499_v9, %v1627_v10 }
 0x178   : > { %v965_v54 = vadd.f32 %v5416_v53, %v6482_v42  ;;  %v956_v55 = vpop.f32.mrb[73].mxu0  ;;  %v6070_v53 = vld [vmem:[%s7417_s3 + $0x38] sm:$0xff]  }
 0x179   : > { %v957_v56 = vadd.f32 %v6482_v42, %v956_v55  ;;  %v5417_v57 = vpop.f32.mrb[74].mxu0  ;;  %v1960_v58 = vld [vmem:[#allocation4 + $0x110] sm:$0xff] }
 0x17a   : > { %v2455_v59 = vld [vmem:[#allocation4 + $0x111] sm:$0xff]  ;;  %v1253_v0 = vmax.f32 %v965_v54, 0.0  ;;  %v968_v60 = vadd.f32 %v5417_v57, %v6482_v42  ;;  %v959_v61 = vpop.f32.mrb[75].mxu0  ;;  %v1959_v62 = vld [vmem:[#allocation4 + $0x108] sm:$0xff] }
 0x17b   : > { %v2454_v63 = vld [vmem:[#allocation4 + $0x109] sm:$0xff]  ;;  %v1251_v3 = vmax.f32 %v957_v56, 0.0  ;;  %v960_v5 = vadd.f32 %v6709_v4, %v959_v61  ;;  %v1983_v7 = vpack.c.bf16 %v1960_v58, %v1959_v62 }
 0x17c   : > { %v2478_v8 = vpack.c.bf16 %v2455_v59, %v2454_v63  ;;  %1381 = vst.msk [vmem:[#allocation2 + $0x250] sm:$0xff] %vm441_vm0, %v1253_v0  ;;  %v1254_v42 = vmax.f32 %v968_v60, 0.0 }
 0x17d   : > { %v1505_v11 = vld [vmem:[#allocation2 + $0x230] ss:$2 sm:$0xff]  ;;  %v1633_v12 = vld [vmem:[#allocation2 + $0x231] ss:$2 sm:$0xff]  ;;  %1379 = vst.msk [vmem:[#allocation2 + $0x240] sm:$0xff] %vm441_vm0, %v1251_v3  ;;  %v1252_v13 = vmax.f32 %v960_v5, 0.0  ;;  %5490 = vmatprep.mubr.msk.bf16.mxu0 %vm441_vm0, %v1983_v7 }
 0x17e   : > { %5562 = vmatprep.mubr.msk.bf16.mxu1 %vm441_vm0, %v2478_v8  ;;  %v1725_v15 = vmax.f32 %v1505_v11, %v1633_v12  ;;  %v1503_v16 = vld [vmem:[#allocation2 + $0x220] ss:$2 sm:$0xff]  ;;  %v1631_v17 = vld [vmem:[#allocation2 + $0x221] ss:$2 sm:$0xff]  ;;  %1382 = vst.msk [vmem:[#allocation2 + $0x258] sm:$0xff] %vm441_vm0, %v1254_v42 }
 0x17f   : > { %v1724_v19 = vmax.f32 %v1503_v16, %v1631_v17  ;;  %1380 = vst.msk [vmem:[#allocation2 + $0x248] sm:$0xff] %vm441_vm0, %v1252_v13  ;;  %v5420_v20 = vpop.f32.mrb[76].mxu0  ;;  %v6745_v3 = vld [vmem:[%s7417_s3 + $0x40] sm:$0xff]  }
 0x180   : > { %v1771_v21 = vmax.f32 %v1723_v14, %v1725_v15  ;;  %v981_v22 = vadd.f32 %v6709_v4, %v5420_v20  ;;  %v972_v23 = vpop.f32.mrb[77].mxu0 }
 0x181   : > { %v1770_v24 = vmax.f32 %v1722_v18, %v1724_v19  ;;  %v973_v25 = vadd.f32 %v6709_v4, %v972_v23  ;;  %v5421_v26 = vpop.f32.mrb[78].mxu0 }
 0x182   : > { %1876 = vst.msk [vmem:[#allocation4 + $0x130] sm:$0xff] %vm441_vm0, %v1771_v21  ;;  %v1257_v27 = vmax.f32 %v981_v22, 0.0  ;;  %v984_v28 = vadd.f32 %v6709_v4, %v5421_v26  ;;  %v975_v29 = vpop.f32.mrb[79].mxu0 }
 0x183   : > { %1875 = vst.msk [vmem:[#allocation4 + $0x128] sm:$0xff] %vm441_vm0, %v1770_v24  ;;  %v1255_v30 = vmax.f32 %v973_v25, 0.0  ;;  %v976_v31 = vadd.f32 %v6709_v4, %v975_v29 }
 0x184   : > { %1385 = vst.msk [vmem:[#allocation2 + $0x270] sm:$0xff] %vm441_vm0, %v1257_v27  ;;  %v1258_v32 = vmax.f32 %v984_v28, 0.0 }
 0x185   : > { %1383 = vst.msk [vmem:[#allocation2 + $0x260] sm:$0xff] %vm441_vm0, %v1255_v30  ;;  %v1256_v33 = vmax.f32 %v976_v31, 0.0  ;;  %v1509_v47 = vld [vmem:[#allocation2 + $0x250] ss:$2 sm:$0xff]  ;;  %v1637_v48 = vld [vmem:[#allocation2 + $0x251] ss:$2 sm:$0xff] }
 0x186   : > { %1386 = vst.msk [vmem:[#allocation2 + $0x278] sm:$0xff] %vm441_vm0, %v1258_v32  ;;  %v1507_v54 = vld [vmem:[#allocation2 + $0x240] ss:$2 sm:$0xff]  ;;  %v1635_v55 = vld [vmem:[#allocation2 + $0x241] ss:$2 sm:$0xff]  ;;  %v1727_v0 = vmax.f32 %v1509_v47, %v1637_v48 }
 0x187   : > { %1384 = vst.msk [vmem:[#allocation2 + $0x268] sm:$0xff] %vm441_vm0, %v1256_v33  ;;  %v5424_v34 = vpop.f32.mrb[80].mxu0  ;;  %v1726_v63 = vmax.f32 %v1507_v54, %v1635_v55 }
 0x188   : > { %v997_v35 = vadd.f32 %v6709_v4, %v5424_v34  ;;  %v988_v36 = vpop.f32.mrb[81].mxu0 }
 0x189   : > { %v989_v37 = vadd.f32 %v6709_v4, %v988_v36  ;;  %v5425_v38 = vpop.f32.mrb[82].mxu0  ;;  %v1962_v39 = vld [vmem:[#allocation4 + $0x130] sm:$0xff] }
 0x18a   : > { %v2457_v40 = vld [vmem:[#allocation4 + $0x131] sm:$0xff]  ;;  %v1261_v41 = vmax.f32 %v997_v35, 0.0  ;;  %v1000_v43 = vadd.f32 %v6709_v4, %v5425_v38  ;;  %v991_v44 = vpop.f32.mrb[83].mxu0  ;;  %v1961_v45 = vld [vmem:[#allocation4 + $0x128] sm:$0xff] }
 0x18b   : > { %v2456_v46 = vld [vmem:[#allocation4 + $0x129] sm:$0xff]  ;;  %v1259_v49 = vmax.f32 %v989_v37, 0.0  ;;  %v992_v50 = vadd.f32 %v6709_v4, %v991_v44  ;;  %v1984_v51 = vpack.c.bf16 %v1962_v39, %v1961_v45 }
 0x18c   : > { %v2479_v52 = vpack.c.bf16 %v2457_v40, %v2456_v46  ;;  %1389 = vst.msk [vmem:[#allocation2 + $0x290] sm:$0xff] %vm441_vm0, %v1261_v41  ;;  %v1262_v56 = vmax.f32 %v1000_v43, 0.0 }
 0x18d   : > { %v1513_v57 = vld [vmem:[#allocation2 + $0x270] ss:$2 sm:$0xff]  ;;  %v1641_v58 = vld [vmem:[#allocation2 + $0x271] ss:$2 sm:$0xff]  ;;  %1387 = vst.msk [vmem:[#allocation2 + $0x280] sm:$0xff] %vm441_vm0, %v1259_v49  ;;  %v1260_v59 = vmax.f32 %v992_v50, 0.0  ;;  %5491 = vmatmul.mubr.msk.bf16.gmra.mrb[144].mxu0 %vm441_vm0, %v1984_v51 }
 0x18e   : > { %5563 = vmatmul.mubr.msk.bf16.vlgmr.msra.gmra.mrb[0].mxu1 %vm441_vm0, %v2479_v52  ;;  %v1729_v60 = vmax.f32 %v1513_v57, %v1641_v58  ;;  %v1511_v61 = vld [vmem:[#allocation2 + $0x260] ss:$2 sm:$0xff]  ;;  %v1639_v62 = vld [vmem:[#allocation2 + $0x261] ss:$2 sm:$0xff]  ;;  %1390 = vst.msk [vmem:[#allocation2 + $0x298] sm:$0xff] %vm441_vm0, %v1262_v56 }
 0x18f   : > { %5579 = vmatpush3.bf16.msra.mxu1 %v6670_v6  ;;  %v1728_v1 = vmax.f32 %v1511_v61, %v1639_v62  ;;  %1388 = vst.msk [vmem:[#allocation2 + $0x288] sm:$0xff] %vm441_vm0, %v1260_v59  ;;  %v5428_v2 = vpop.f32.mrb[84].mxu0 }
 0x190   : > { %5580 = vmatprep.subr.bf16.mxu1 %v6070_v53  ;;  %v1773_v5 = vmax.f32 %v1727_v0, %v1729_v60  ;;  %v1013_v7 = vadd.f32 %v6709_v4, %v5428_v2  ;;  %v1004_v8 = vpop.f32.mrb[85].mxu0 }
 0x191   : > { %v1772_v9 = vmax.f32 %v1726_v63, %v1728_v1  ;;  %v1005_v10 = vadd.f32 %v6709_v4, %v1004_v8  ;;  %v5429_v42 = vpop.f32.mrb[86].mxu0 }
 0x192   : > { %1878 = vst.msk [vmem:[#allocation4 + $0x150] sm:$0xff] %vm441_vm0, %v1773_v5  ;;  %v1265_v6 = vmax.f32 %v1013_v7, 0.0  ;;  %v1016_v11 = vadd.f32 %v6709_v4, %v5429_v42  ;;  %v1007_v12 = vpop.f32.mrb[87].mxu0 }
 0x193   : > { %5581 = vmatpush3.bf16.msra.mxu1 %v6070_v53  ;;  %1877 = vst.msk [vmem:[#allocation4 + $0x148] sm:$0xff] %vm441_vm0, %v1772_v9  ;;  %v1263_v13 = vmax.f32 %v1005_v10, 0.0  ;;  %v1008_v14 = vadd.f32 %v6709_v4, %v1007_v12 }
 0x194   : > { %5614 = vmatprep.subr.bf16.mxu1 %v6745_v3  ;;  %1393 = vst.msk [vmem:[#allocation2 + $0x2b0] sm:$0xff] %vm441_vm0, %v1265_v6  ;;  %v1266_v15 = vmax.f32 %v1016_v11, 0.0 }
 0x195   : > { %1391 = vst.msk [vmem:[#allocation2 + $0x2a0] sm:$0xff] %vm441_vm0, %v1263_v13  ;;  %v1264_v16 = vmax.f32 %v1008_v14, 0.0  ;;  %v1517_v29 = vld [vmem:[#allocation2 + $0x290] ss:$2 sm:$0xff]  ;;  %v1645_v30 = vld [vmem:[#allocation2 + $0x291] ss:$2 sm:$0xff] }
 0x196   : > { %1394 = vst.msk [vmem:[#allocation2 + $0x2b8] sm:$0xff] %vm441_vm0, %v1266_v15  ;;  %v1515_v35 = vld [vmem:[#allocation2 + $0x280] ss:$2 sm:$0xff]  ;;  %v1643_v36 = vld [vmem:[#allocation2 + $0x281] ss:$2 sm:$0xff]  ;;  %v1731_v41 = vmax.f32 %v1517_v29, %v1645_v30 }
 0x197   : > { %1392 = vst.msk [vmem:[#allocation2 + $0x2a8] sm:$0xff] %vm441_vm0, %v1264_v16  ;;  %v5432_v17 = vpop.f32.mrb[88].mxu0  ;;  %v1730_v46 = vmax.f32 %v1515_v35, %v1643_v36 }
 0x198   : > { %v1029_v18 = vadd.f32 %v6709_v4, %v5432_v17  ;;  %v1020_v19 = vpop.f32.mrb[89].mxu0 }
 0x199   : > { %v1021_v20 = vadd.f32 %v6709_v4, %v1020_v19  ;;  %v5433_v21 = vpop.f32.mrb[90].mxu0  ;;  %v1964_v22 = vld [vmem:[#allocation4 + $0x150] sm:$0xff] }
 0x19a   : > { %v2459_v23 = vld [vmem:[#allocation4 + $0x151] sm:$0xff]  ;;  %v1269_v24 = vmax.f32 %v1029_v18, 0.0  ;;  %v1032_v25 = vadd.f32 %v6709_v4, %v5433_v21  ;;  %v1023_v26 = vpop.f32.mrb[91].mxu0  ;;  %v1963_v27 = vld [vmem:[#allocation4 + $0x148] sm:$0xff] }
 0x19b   : > { %v2458_v28 = vld [vmem:[#allocation4 + $0x149] sm:$0xff]  ;;  %v1267_v31 = vmax.f32 %v1021_v20, 0.0  ;;  %v1024_v32 = vadd.f32 %v6709_v4, %v1023_v26  ;;  %v6762_v33 = vpack.c.bf16 %v1964_v22, %v1963_v27 }
 0x19c   : > { %v2480_v34 = vpack.c.bf16 %v2459_v23, %v2458_v28  ;;  %1397 = vst.msk [vmem:[#allocation2 + $0x2d0] sm:$0xff] %vm441_vm0, %v1269_v24  ;;  %v1270_v37 = vmax.f32 %v1032_v25, 0.0 }
 0x19d   : > { %v1521_v38 = vld [vmem:[#allocation2 + $0x2b0] ss:$2 sm:$0xff]  ;;  %v1649_v39 = vld [vmem:[#allocation2 + $0x2b1] ss:$2 sm:$0xff]  ;;  %1395 = vst.msk [vmem:[#allocation2 + $0x2c0] sm:$0xff] %vm441_vm0, %v1267_v31  ;;  %v1268_v40 = vmax.f32 %v1024_v32, 0.0  ;;  %5494 = vmatprep.mubr.msk.bf16.mxu0 %vm441_vm0, %v6762_v33 }
 0x19e   : > { %5566 = vmatprep.mubr.msk.bf16.mxu1 %vm441_vm0, %v2480_v34  ;;  %v1733_v43 = vmax.f32 %v1521_v38, %v1649_v39  ;;  %v1519_v44 = vld [vmem:[#allocation2 + $0x2a0] ss:$2 sm:$0xff]  ;;  %v1647_v45 = vld [vmem:[#allocation2 + $0x2a1] ss:$2 sm:$0xff]  ;;  %1398 = vst.msk [vmem:[#allocation2 + $0x2d8] sm:$0xff] %vm441_vm0, %v1270_v37 }
 0x19f   : > { %v1732_v47 = vmax.f32 %v1519_v44, %v1647_v45  ;;  %1396 = vst.msk [vmem:[#allocation2 + $0x2c8] sm:$0xff] %vm441_vm0, %v1268_v40  ;;  %v5436_v48 = vpop.f32.mrb[92].mxu0 }
 0x1a0   : > { %v1775_v49 = vmax.f32 %v1731_v41, %v1733_v43  ;;  %v1045_v50 = vadd.f32 %v6709_v4, %v5436_v48  ;;  %v1036_v51 = vpop.f32.mrb[93].mxu0 }
 0x1a1   : > { %v1774_v52 = vmax.f32 %v1730_v46, %v1732_v47  ;;  %v1037_v53 = vadd.f32 %v6709_v4, %v1036_v51  ;;  %v5437_v54 = vpop.f32.mrb[94].mxu0 }
 0x1a2   : > { %1880 = vst.msk [vmem:[#allocation4 + $0x170] sm:$0xff] %vm441_vm0, %v1775_v49  ;;  %v1273_v55 = vmax.f32 %v1045_v50, 0.0  ;;  %v1048_v56 = vadd.f32 %v6709_v4, %v5437_v54  ;;  %v1039_v57 = vpop.f32.mrb[95].mxu0 }
 0x1a3   : > { %1879 = vst.msk [vmem:[#allocation4 + $0x168] sm:$0xff] %vm441_vm0, %v1774_v52  ;;  %v1271_v58 = vmax.f32 %v1037_v53, 0.0  ;;  %v1040_v59 = vadd.f32 %v6709_v4, %v1039_v57 }
 0x1a4   : > { %1401 = vst.msk [vmem:[#allocation2 + $0x2f0] sm:$0xff] %vm441_vm0, %v1273_v55  ;;  %v1274_v0 = vmax.f32 %v1048_v56, 0.0 }
 0x1a5   : > { %1399 = vst.msk [vmem:[#allocation2 + $0x2e0] sm:$0xff] %vm441_vm0, %v1271_v58  ;;  %v1272_v60 = vmax.f32 %v1040_v59, 0.0  ;;  %v1525_v11 = vld [vmem:[#allocation2 + $0x2d0] ss:$2 sm:$0xff]  ;;  %v1653_v12 = vld [vmem:[#allocation2 + $0x2d1] ss:$2 sm:$0xff] }
 0x1a6   : > { %1402 = vst.msk [vmem:[#allocation2 + $0x2f8] sm:$0xff] %vm441_vm0, %v1274_v0  ;;  %v1523_v17 = vld [vmem:[#allocation2 + $0x2c0] ss:$2 sm:$0xff]  ;;  %v1651_v18 = vld [vmem:[#allocation2 + $0x2c1] ss:$2 sm:$0xff]  ;;  %v1735_v23 = vmax.f32 %v1525_v11, %v1653_v12 }
 0x1a7   : > { %1400 = vst.msk [vmem:[#allocation2 + $0x2e8] sm:$0xff] %vm441_vm0, %v1272_v60  ;;  %v5440_v61 = vpop.f32.mrb[96].mxu0  ;;  %v1734_v27 = vmax.f32 %v1523_v17, %v1651_v18 }
 0x1a8   : > { %v1061_v62 = vadd.f32 %v6709_v4, %v5440_v61  ;;  %v1052_v63 = vpop.f32.mrb[97].mxu0 }
 0x1a9   : > { %v1053_v1 = vadd.f32 %v6709_v4, %v1052_v63  ;;  %v5441_v2 = vpop.f32.mrb[98].mxu0  ;;  %v1966_v5 = vld [vmem:[#allocation4 + $0x170] sm:$0xff] }
 0x1aa   : > { %v2461_v7 = vld [vmem:[#allocation4 + $0x171] sm:$0xff]  ;;  %v1277_v8 = vmax.f32 %v1061_v62, 0.0  ;;  %v1064_v9 = vadd.f32 %v6709_v4, %v5441_v2  ;;  %v1055_v10 = vpop.f32.mrb[99].mxu0  ;;  %v1965_v42 = vld [vmem:[#allocation4 + $0x168] sm:$0xff] }
 0x1ab   : > { %v2460_v6 = vld [vmem:[#allocation4 + $0x169] sm:$0xff]  ;;  %v1275_v13 = vmax.f32 %v1053_v1, 0.0  ;;  %v1056_v14 = vadd.f32 %v6709_v4, %v1055_v10  ;;  %v6785_v15 = vpack.c.bf16 %v1966_v5, %v1965_v42 }
 0x1ac   : > { %v2481_v16 = vpack.c.bf16 %v2461_v7, %v2460_v6  ;;  %1405 = vst.msk [vmem:[#allocation2 + $0x310] sm:$0xff] %vm441_vm0, %v1277_v8  ;;  %v1278_v19 = vmax.f32 %v1064_v9, 0.0 }
 0x1ad   : > { %v1529_v20 = vld [vmem:[#allocation2 + $0x2f0] ss:$2 sm:$0xff]  ;;  %v1657_v21 = vld [vmem:[#allocation2 + $0x2f1] ss:$2 sm:$0xff]  ;;  %1403 = vst.msk [vmem:[#allocation2 + $0x300] sm:$0xff] %vm441_vm0, %v1275_v13  ;;  %v1276_v22 = vmax.f32 %v1056_v14, 0.0  ;;  %5495 = vmatmul.mubr.msk.bf16.gmra.mrb[148].mxu0 %vm441_vm0, %v6785_v15 }
 0x1ae   : > { %5567 = vmatmul.mubr.msk.bf16.gmra.mrb[4].mxu1 %vm441_vm0, %v2481_v16  ;;  %v1737_v24 = vmax.f32 %v1529_v20, %v1657_v21  ;;  %v1527_v25 = vld [vmem:[#allocation2 + $0x2e0] ss:$2 sm:$0xff]  ;;  %v1655_v26 = vld [vmem:[#allocation2 + $0x2e1] ss:$2 sm:$0xff]  ;;  %1406 = vst.msk [vmem:[#allocation2 + $0x318] sm:$0xff] %vm441_vm0, %v1278_v19 }
 0x1af   : > { %v1736_v28 = vmax.f32 %v1527_v25, %v1655_v26  ;;  %1404 = vst.msk [vmem:[#allocation2 + $0x308] sm:$0xff] %vm441_vm0, %v1276_v22  ;;  %v5444_v29 = vpop.f32.mrb[100].mxu0 }
 0x1b0   : > { %v1777_v30 = vmax.f32 %v1735_v23, %v1737_v24  ;;  %v1077_v31 = vadd.f32 %v6709_v4, %v5444_v29  ;;  %v1068_v32 = vpop.f32.mrb[101].mxu0 }
 0x1b1   : > { %v1776_v34 = vmax.f32 %v1734_v27, %v1736_v28  ;;  %v1069_v35 = vadd.f32 %v6709_v4, %v1068_v32  ;;  %v5445_v36 = vpop.f32.mrb[102].mxu0 }
 0x1b2   : > { %1882 = vst.msk [vmem:[#allocation4 + $0x190] sm:$0xff] %vm441_vm0, %v1777_v30  ;;  %v1281_v37 = vmax.f32 %v1077_v31, 0.0  ;;  %v1080_v38 = vadd.f32 %v6709_v4, %v5445_v36  ;;  %v1071_v39 = vpop.f32.mrb[103].mxu0 }
 0x1b3   : > { %1881 = vst.msk [vmem:[#allocation4 + $0x188] sm:$0xff] %vm441_vm0, %v1776_v34  ;;  %v1279_v40 = vmax.f32 %v1069_v35, 0.0  ;;  %v1072_v41 = vadd.f32 %v6709_v4, %v1071_v39 }
 0x1b4   : > { %1409 = vst.msk [vmem:[#allocation2 + $0x330] sm:$0xff] %vm441_vm0, %v1281_v37  ;;  %v1282_v43 = vmax.f32 %v1080_v38, 0.0 }
 0x1b5   : > { %1407 = vst.msk [vmem:[#allocation2 + $0x320] sm:$0xff] %vm441_vm0, %v1279_v40  ;;  %v1280_v44 = vmax.f32 %v1072_v41, 0.0  ;;  %v1533_v57 = vld [vmem:[#allocation2 + $0x310] ss:$2 sm:$0xff]  ;;  %v1661_v58 = vld [vmem:[#allocation2 + $0x311] ss:$2 sm:$0xff] }
 0x1b6   : > { %1410 = vst.msk [vmem:[#allocation2 + $0x338] sm:$0xff] %vm441_vm0, %v1282_v43  ;;  %v1531_v62 = vld [vmem:[#allocation2 + $0x300] ss:$2 sm:$0xff]  ;;  %v1659_v63 = vld [vmem:[#allocation2 + $0x301] ss:$2 sm:$0xff]  ;;  %v1739_v8 = vmax.f32 %v1533_v57, %v1661_v58 }
 0x1b7   : > { %1408 = vst.msk [vmem:[#allocation2 + $0x328] sm:$0xff] %vm441_vm0, %v1280_v44  ;;  %v5448_v45 = vpop.f32.mrb[104].mxu0  ;;  %v1738_v6 = vmax.f32 %v1531_v62, %v1659_v63 }
 0x1b8   : > { %v1093_v46 = vadd.f32 %v6709_v4, %v5448_v45  ;;  %v1084_v47 = vpop.f32.mrb[105].mxu0 }
 0x1b9   : > { %v1085_v48 = vadd.f32 %v6709_v4, %v1084_v47  ;;  %v5449_v49 = vpop.f32.mrb[106].mxu0  ;;  %v1968_v50 = vld [vmem:[#allocation4 + $0x190] sm:$0xff] }
 0x1ba   : > { %v2463_v51 = vld [vmem:[#allocation4 + $0x191] sm:$0xff]  ;;  %v1285_v52 = vmax.f32 %v1093_v46, 0.0  ;;  %v1096_v53 = vadd.f32 %v6709_v4, %v5449_v49  ;;  %v1087_v54 = vpop.f32.mrb[107].mxu0  ;;  %v1967_v55 = vld [vmem:[#allocation4 + $0x188] sm:$0xff] }
 0x1bb   : > { %v2462_v56 = vld [vmem:[#allocation4 + $0x189] sm:$0xff]  ;;  %v1283_v59 = vmax.f32 %v1085_v48, 0.0  ;;  %v1088_v0 = vadd.f32 %v6709_v4, %v1087_v54  ;;  %v6808_v60 = vpack.c.bf16 %v1968_v50, %v1967_v55 }
 0x1bc   : > { %v6810_v61 = vpack.c.bf16 %v2463_v51, %v2462_v56  ;;  %1413 = vst.msk [vmem:[#allocation2 + $0x350] sm:$0xff] %vm441_vm0, %v1285_v52  ;;  %v1286_v1 = vmax.f32 %v1096_v53, 0.0 }
 0x1bd   : > { %v1537_v2 = vld [vmem:[#allocation2 + $0x330] ss:$2 sm:$0xff]  ;;  %v1665_v5 = vld [vmem:[#allocation2 + $0x331] ss:$2 sm:$0xff]  ;;  %1411 = vst.msk [vmem:[#allocation2 + $0x340] sm:$0xff] %vm441_vm0, %v1283_v59  ;;  %v1284_v7 = vmax.f32 %v1088_v0, 0.0  ;;  %5498 = vmatprep.mubr.msk.bf16.mxu0 %vm441_vm0, %v6808_v60 }
 0x1be   : > { %5570 = vmatprep.mubr.msk.bf16.mxu1 %vm441_vm0, %v6810_v61  ;;  %v1741_v9 = vmax.f32 %v1537_v2, %v1665_v5  ;;  %v1535_v10 = vld [vmem:[#allocation2 + $0x320] ss:$2 sm:$0xff]  ;;  %v1663_v42 = vld [vmem:[#allocation2 + $0x321] ss:$2 sm:$0xff]  ;;  %1414 = vst.msk [vmem:[#allocation2 + $0x358] sm:$0xff] %vm441_vm0, %v1286_v1 }
 0x1bf   : > { %v1740_v11 = vmax.f32 %v1535_v10, %v1663_v42  ;;  %1412 = vst.msk [vmem:[#allocation2 + $0x348] sm:$0xff] %vm441_vm0, %v1284_v7  ;;  %v5452_v12 = vpop.f32.mrb[108].mxu0 }
 0x1c0   : > { %v1779_v13 = vmax.f32 %v1739_v8, %v1741_v9  ;;  %v1109_v14 = vadd.f32 %v6709_v4, %v5452_v12  ;;  %v1100_v16 = vpop.f32.mrb[109].mxu0 }
 0x1c1   : > { %v1778_v17 = vmax.f32 %v1738_v6, %v1740_v11  ;;  %v1101_v18 = vadd.f32 %v6709_v4, %v1100_v16  ;;  %v5453_v19 = vpop.f32.mrb[110].mxu0 }
 0x1c2   : > { %1884 = vst.msk [vmem:[#allocation4 + $0x1b0] sm:$0xff] %vm441_vm0, %v1779_v13  ;;  %v1289_v20 = vmax.f32 %v1109_v14, 0.0  ;;  %v1112_v21 = vadd.f32 %v6709_v4, %v5453_v19  ;;  %v1103_v22 = vpop.f32.mrb[111].mxu0 }
 0x1c3   : > { %1883 = vst.msk [vmem:[#allocation4 + $0x1a8] sm:$0xff] %vm441_vm0, %v1778_v17  ;;  %v1287_v23 = vmax.f32 %v1101_v18, 0.0  ;;  %v1104_v24 = vadd.f32 %v6709_v4, %v1103_v22 }
 0x1c4   : > { %1417 = vst.msk [vmem:[#allocation2 + $0x370] sm:$0xff] %vm441_vm0, %v1289_v20  ;;  %v1290_v25 = vmax.f32 %v1112_v21, 0.0 }
 0x1c5   : > { %1415 = vst.msk [vmem:[#allocation2 + $0x360] sm:$0xff] %vm441_vm0, %v1287_v23  ;;  %v1288_v26 = vmax.f32 %v1104_v24, 0.0  ;;  %v1541_v40 = vld [vmem:[#allocation2 + $0x350] ss:$2 sm:$0xff]  ;;  %v1669_v41 = vld [vmem:[#allocation2 + $0x351] ss:$2 sm:$0xff] }
 0x1c6   : > { %1418 = vst.msk [vmem:[#allocation2 + $0x378] sm:$0xff] %vm441_vm0, %v1290_v25  ;;  %v1539_v47 = vld [vmem:[#allocation2 + $0x340] ss:$2 sm:$0xff]  ;;  %v1667_v48 = vld [vmem:[#allocation2 + $0x341] ss:$2 sm:$0xff]  ;;  %v1743_v53 = vmax.f32 %v1541_v40, %v1669_v41 }
 0x1c7   : > { %1416 = vst.msk [vmem:[#allocation2 + $0x368] sm:$0xff] %vm441_vm0, %v1288_v26  ;;  %v5456_v27 = vpop.f32.mrb[112].mxu0  ;;  %v1742_v57 = vmax.f32 %v1539_v47, %v1667_v48 }
 0x1c8   : > { %v1125_v28 = vadd.f32 %v6709_v4, %v5456_v27  ;;  %v1116_v29 = vpop.f32.mrb[113].mxu0 }
 0x1c9   : > { %v1117_v30 = vadd.f32 %v6709_v4, %v1116_v29  ;;  %v5457_v31 = vpop.f32.mrb[114].mxu0  ;;  %v1970_v32 = vld [vmem:[#allocation4 + $0x1b0] sm:$0xff] }
 0x1ca   : > { %v2465_v34 = vld [vmem:[#allocation4 + $0x1b1] sm:$0xff]  ;;  %v1293_v35 = vmax.f32 %v1125_v28, 0.0  ;;  %v1128_v36 = vadd.f32 %v6709_v4, %v5457_v31  ;;  %v1119_v37 = vpop.f32.mrb[115].mxu0  ;;  %v1969_v38 = vld [vmem:[#allocation4 + $0x1a8] sm:$0xff] }
 0x1cb   : > { %v2464_v39 = vld [vmem:[#allocation4 + $0x1a9] sm:$0xff]  ;;  %v1291_v43 = vmax.f32 %v1117_v30, 0.0  ;;  %v1120_v44 = vadd.f32 %v6709_v4, %v1119_v37  ;;  %v6834_v45 = vpack.c.bf16 %v1970_v32, %v1969_v38 }
 0x1cc   : > { %v6836_v46 = vpack.c.bf16 %v2465_v34, %v2464_v39  ;;  %1421 = vst.msk [vmem:[#allocation2 + $0x390] sm:$0xff] %vm441_vm0, %v1293_v35  ;;  %v1294_v49 = vmax.f32 %v1128_v36, 0.0 }
 0x1cd   : > { %v1545_v50 = vld [vmem:[#allocation2 + $0x370] ss:$2 sm:$0xff]  ;;  %v1673_v51 = vld [vmem:[#allocation2 + $0x371] ss:$2 sm:$0xff]  ;;  %1419 = vst.msk [vmem:[#allocation2 + $0x380] sm:$0xff] %vm441_vm0, %v1291_v43  ;;  %v1292_v52 = vmax.f32 %v1120_v44, 0.0  ;;  %5499 = vmatmul.mubr.msk.bf16.gmra.mrb[152].mxu0 %vm441_vm0, %v6834_v45 }
 0x1ce   : > { %5571 = vmatmul.mubr.msk.bf16.gmra.mrb[8].mxu1 %vm441_vm0, %v6836_v46  ;;  %v1745_v54 = vmax.f32 %v1545_v50, %v1673_v51  ;;  %v1543_v55 = vld [vmem:[#allocation2 + $0x360] ss:$2 sm:$0xff]  ;;  %v1671_v56 = vld [vmem:[#allocation2 + $0x361] ss:$2 sm:$0xff]  ;;  %1422 = vst.msk [vmem:[#allocation2 + $0x398] sm:$0xff] %vm441_vm0, %v1294_v49 }
 0x1cf   : > { %v1744_v58 = vmax.f32 %v1543_v55, %v1671_v56  ;;  %1420 = vst.msk [vmem:[#allocation2 + $0x388] sm:$0xff] %vm441_vm0, %v1292_v52  ;;  %v5460_v59 = vpop.f32.mrb[116].mxu0 }
 0x1d0   : > { %v1781_v0 = vmax.f32 %v1743_v53, %v1745_v54  ;;  %v1141_v62 = vadd.f32 %v6709_v4, %v5460_v59  ;;  %v1132_v63 = vpop.f32.mrb[117].mxu0 }
 0x1d1   : > { %v1780_v1 = vmax.f32 %v1742_v57, %v1744_v58  ;;  %v1133_v2 = vadd.f32 %v6709_v4, %v1132_v63  ;;  %v5461_v5 = vpop.f32.mrb[118].mxu0  ;;  %v1891_v63 = vld [vmem:[#allocation4 + $0x7] sm:$0xff] }
 0x1d2   : > { %1886 = vst.msk [vmem:[#allocation4 + $0x1d0] sm:$0xff] %vm441_vm0, %v1781_v0  ;;  %v1297_v7 = vmax.f32 %v1141_v62, 0.0  ;;  %v1144_v8 = vadd.f32 %v6709_v4, %v5461_v5  ;;  %v1135_v9 = vpop.f32.mrb[119].mxu0  ;;  %v2744_v62 = vld [vmem:[#allocation4 + $0x27] sm:$0xff] }
 0x1d3   : > { %1885 = vst.msk [vmem:[#allocation4 + $0x1c8] sm:$0xff] %vm441_vm0, %v1780_v1  ;;  %v1295_v10 = vmax.f32 %v1133_v2, 0.0  ;;  %v1136_v42 = vadd.f32 %v6709_v4, %v1135_v9  ;;  %v1892_v1 = vld [vmem:[#allocation4 + $0xf] sm:$0xff] }
 0x1d4   : > { %1425 = vst.msk [vmem:[#allocation2 + $0x3b0] sm:$0xff] %vm441_vm0, %v1297_v7  ;;  %v1298_v6 = vmax.f32 %v1144_v8, 0.0  ;;  %v2745_v2 = vld [vmem:[#allocation4 + $0x2f] sm:$0xff] }
 0x1d5   : > { %1423 = vst.msk [vmem:[#allocation2 + $0x3a0] sm:$0xff] %vm441_vm0, %v1295_v10  ;;  %v1296_v11 = vmax.f32 %v1136_v42, 0.0  ;;  %v1549_v25 = vld [vmem:[#allocation2 + $0x390] ss:$2 sm:$0xff]  ;;  %v1677_v26 = vld [vmem:[#allocation2 + $0x391] ss:$2 sm:$0xff] }
 0x1d6   : > { %1426 = vst.msk [vmem:[#allocation2 + $0x3b8] sm:$0xff] %vm441_vm0, %v1298_v6  ;;  %v1547_v31 = vld [vmem:[#allocation2 + $0x380] ss:$2 sm:$0xff]  ;;  %v1675_v32 = vld [vmem:[#allocation2 + $0x381] ss:$2 sm:$0xff]  ;;  %v1747_v38 = vmax.f32 %v1549_v25, %v1677_v26  ;;  %v1923_v6 = vpack.c.bf16 %v1892_v1, %v1891_v63 }
 0x1d7   : > { %1424 = vst.msk [vmem:[#allocation2 + $0x3a8] sm:$0xff] %vm441_vm0, %v1296_v11  ;;  %v5464_v12 = vpop.f32.mrb[120].mxu0  ;;  %v1746_v43 = vmax.f32 %v1547_v31, %v1675_v32  ;;  %v2747_v25 = vld [vmem:[#allocation4 + $0x4f] sm:$0xff] }
 0x1d8   : > { %v1157_v13 = vadd.f32 %v6709_v4, %v5464_v12  ;;  %v1148_v14 = vpop.f32.mrb[121].mxu0  ;;  %v2749_v31 = vld [vmem:[#allocation4 + $0x6f] sm:$0xff] }
 0x1d9   : > { %v1972_v16 = vld [vmem:[#allocation4 + $0x1d0] sm:$0xff]  ;;  %v1149_v18 = vadd.f32 %v6709_v4, %v1148_v14  ;;  %v5465_v19 = vpop.f32.mrb[122].mxu0  ;;  %v2776_v14 = vpack.c.bf16 %v2745_v2, %v2744_v62  ;;  %v2764_v62 = vld [vmem:[#allocation4 + $0x167] sm:$0xff] }
 0x1da   : > { %v2467_v17 = vld [vmem:[#allocation4 + $0x1d1] sm:$0xff]  ;;  %v1971_v20 = vld [vmem:[#allocation4 + $0x1c8] sm:$0xff]  ;;  %v1301_v22 = vmax.f32 %v1157_v13, 0.0  ;;  %v1160_v23 = vadd.f32 %v6709_v4, %v5465_v19  ;;  %v1151_v24 = vpop.f32.mrb[123].mxu0 }
 0x1db   : > { %v2466_v21 = vld [vmem:[#allocation4 + $0x1c9] sm:$0xff]  ;;  %v6859_v27 = vpack.c.bf16 %v1972_v16, %v1971_v20  ;;  %v1299_v29 = vmax.f32 %v1149_v18, 0.0  ;;  %v1152_v30 = vadd.f32 %v6709_v4, %v1151_v24 }
 0x1dc   : > { %v6861_v28 = vpack.c.bf16 %v2467_v17, %v2466_v21  ;;  %1429 = vst.msk [vmem:[#allocation2 + $0x3d0] sm:$0xff] %vm441_vm0, %v1301_v22  ;;  %v1302_v34 = vmax.f32 %v1160_v23, 0.0  ;;  %v2746_v24 = vld [vmem:[#allocation4 + $0x47] sm:$0xff]  ;;  %v2765_v63 = vld [vmem:[#allocation4 + $0x16f] sm:$0xff] }
 0x1dd   : > { %v1553_v35 = vld [vmem:[#allocation2 + $0x3b0] ss:$2 sm:$0xff]  ;;  %v1681_v36 = vld [vmem:[#allocation2 + $0x3b1] ss:$2 sm:$0xff]  ;;  %5502 = vmatprep.mubr.msk.bf16.mxu0 %vm441_vm0, %v6859_v27  ;;  %1427 = vst.msk [vmem:[#allocation2 + $0x3c0] sm:$0xff] %vm441_vm0, %v1299_v29  ;;  %v1300_v37 = vmax.f32 %v1152_v30, 0.0  ;;  %v6893_v32 = vpack.c.bf16 %v2747_v25, %v2746_v24  ;;  %v6959_v2 = vpack.c.bf16 %v2765_v63, %v2764_v62 }
 0x1de   : > { %5574 = vmatprep.mubr.msk.bf16.mxu1 %vm441_vm0, %v6861_v28  ;;  %v1749_v39 = vmax.f32 %v1553_v35, %v1681_v36  ;;  %v1551_v40 = vld [vmem:[#allocation2 + $0x3a0] ss:$2 sm:$0xff]  ;;  %v1679_v41 = vld [vmem:[#allocation2 + $0x3a1] ss:$2 sm:$0xff]  ;;  %1430 = vst.msk [vmem:[#allocation2 + $0x3d8] sm:$0xff] %vm441_vm0, %v1302_v34  ;;  %v6912_v36 = vld [vmem:[%s7417_s3 + $0x50] sm:$0xff]  }
 0x1df   : > { %v1748_v44 = vmax.f32 %v1551_v40, %v1679_v41  ;;  %1428 = vst.msk [vmem:[#allocation2 + $0x3c8] sm:$0xff] %vm441_vm0, %v1300_v37  ;;  %v5468_v47 = vpop.f32.mrb[124].mxu0  ;;  %v2748_v30 = vld [vmem:[#allocation4 + $0x67] sm:$0xff]  ;;  %v2753_v40 = vld [vmem:[#allocation4 + $0xaf] sm:$0xff] }
 0x1e0   : > { %v1783_v48 = vmax.f32 %v1747_v38, %v1749_v39  ;;  %v1173_v49 = vadd.f32 %v6709_v4, %v5468_v47  ;;  %v1164_v50 = vpop.f32.mrb[125].mxu0  ;;  %v6074_v34 = vld [vmem:[%s7417_s3 + $0x48] sm:$0xff]   ;;  %v6902_v35 = vpack.c.bf16 %v2749_v31, %v2748_v30  ;;  %v6084_v39 = vld [vmem:[%s7417_s3 + $0x20] sm:$0xff]   ;;  %v3059_v63 = vld [vmem:[#allocation4 + $0xb0] sm:$0xff] }
 0x1e1   : > { %v1782_v51 = vmax.f32 %v1746_v43, %v1748_v44  ;;  %v1165_v52 = vadd.f32 %v6709_v4, %v1164_v50  ;;  %v5469_v53 = vpop.f32.mrb[126].mxu0  ;;  %v2750_v37 = vld [vmem:[#allocation4 + $0x87] sm:$0xff]  ;;  %v2751_v38 = vld [vmem:[#allocation4 + $0x8f] sm:$0xff] }
 0x1e2   : > { %1888 = vst.msk [vmem:[#allocation4 + $0x1f0] sm:$0xff] %vm441_vm0, %v1783_v48  ;;  %v1305_v54 = vmax.f32 %v1173_v49, 0.0  ;;  %v1176_v55 = vadd.f32 %v6709_v4, %v5469_v53  ;;  %v1167_v56 = vpop.f32.mrb[127].mxu0  ;;  %v6085_v41 = vld [vmem:[%s7417_s3 + $0x28] sm:$0xff]   ;;  %v6920_v43 = vpack.c.bf16 %v2751_v38, %v2750_v37  ;;  %v2443_v38 = vld [vmem:[#allocation4 + $0x51] sm:$0xff] }
 0x1e3   : > { %1887 = vst.msk [vmem:[#allocation4 + $0x1e8] sm:$0xff] %vm441_vm0, %v1782_v51  ;;  %v1303_v57 = vmax.f32 %v1165_v52, 0.0  ;;  %v1168_v58 = vadd.f32 %v6709_v4, %v1167_v56  ;;  %v2754_v47 = vld [vmem:[#allocation4 + $0xc7] sm:$0xff]  ;;  %v2755_v48 = vld [vmem:[#allocation4 + $0xcf] sm:$0xff] }
 0x1e4   : > { %1433 = vst.msk [vmem:[#allocation2 + $0x3f0] sm:$0xff] %vm441_vm0, %v1305_v54  ;;  %v1306_v59 = vmax.f32 %v1176_v55, 0.0  ;;  %v2756_v49 = vld [vmem:[#allocation4 + $0xe7] sm:$0xff]  ;;  %v2757_v50 = vld [vmem:[#allocation4 + $0xef] sm:$0xff]  ;;  %v6933_v51 = vpack.c.bf16 %v2755_v48, %v2754_v47  ;;  %v6076_v47 = vld [vmem:[%s7417_s3 + $0x58] sm:$0xff]  }
 0x1e5   : > { %1431 = vst.msk [vmem:[#allocation2 + $0x3e0] sm:$0xff] %vm441_vm0, %v1303_v57  ;;  %v1304_v0 = vmax.f32 %v1168_v58, 0.0  ;;  %v1557_v5 = vld [vmem:[#allocation2 + $0x3d0] ss:$2 sm:$0xff]  ;;  %v1685_v7 = vld [vmem:[#allocation2 + $0x3d1] ss:$2 sm:$0xff]  ;;  %v6935_v52 = vpack.c.bf16 %v2757_v50, %v2756_v49 }
 0x1e6   : > { %1434 = vst.msk [vmem:[#allocation2 + $0x3f8] sm:$0xff] %vm441_vm0, %v1306_v59  ;;  %v1555_v10 = vld [vmem:[#allocation2 + $0x3c0] ss:$2 sm:$0xff]  ;;  %v1683_v11 = vld [vmem:[#allocation2 + $0x3c1] ss:$2 sm:$0xff]  ;;  %v1751_v16 = vmax.f32 %v1557_v5, %v1685_v7 }
 0x1e7   : > { %1432 = vst.msk [vmem:[#allocation2 + $0x3e8] sm:$0xff] %vm441_vm0, %v1304_v0  ;;  %v1750_v17 = vmax.f32 %v1555_v10, %v1683_v11  ;;  %v2758_v53 = vld [vmem:[#allocation4 + $0x107] sm:$0xff]  ;;  %v2759_v54 = vld [vmem:[#allocation4 + $0x10f] sm:$0xff] }
 0x1e8   : > { %v2760_v55 = vld [vmem:[#allocation4 + $0x127] sm:$0xff]  ;;  %v2761_v56 = vld [vmem:[#allocation4 + $0x12f] sm:$0xff]  ;;  %v6945_v57 = vpack.c.bf16 %v2759_v54, %v2758_v53 }
 0x1e9   : > { %v1974_v8 = vld [vmem:[#allocation4 + $0x1f0] sm:$0xff]  ;;  %v6947_v58 = vpack.c.bf16 %v2761_v56, %v2760_v55  ;;  %v2762_v59 = vld [vmem:[#allocation4 + $0x147] sm:$0xff] }
 0x1ea   : > { %v2469_v9 = vld [vmem:[#allocation4 + $0x1f1] sm:$0xff]  ;;  %v1973_v4 = vld [vmem:[#allocation4 + $0x1e8] sm:$0xff]  ;;  %v6077_v54 = vld [vmem:[%s7417_s3 + $0x60] sm:$0xff]  }
 0x1eb   : > { %v2468_v42 = vld [vmem:[#allocation4 + $0x1e9] sm:$0xff]  ;;  %v6882_v12 = vpack.c.bf16 %v1974_v8, %v1973_v4  ;;  %v2445_v53 = vld [vmem:[#allocation4 + $0x71] sm:$0xff] }
 0x1ec   : > { %v6884_v13 = vpack.c.bf16 %v2469_v9, %v2468_v42  ;;  %v2763_v0 = vld [vmem:[#allocation4 + $0x14f] sm:$0xff]  ;;  %v2766_v5 = vld [vmem:[#allocation4 + $0x187] sm:$0xff] }
 0x1ed   : > { %5503 = vmatmul.mubr.msk.bf16.gmra.mrb[156].mxu0 %vm441_vm0, %v6882_v12  ;;  %v1561_v18 = vld [vmem:[#allocation2 + $0x3f0] ss:$2 sm:$0xff]  ;;  %v1689_v19 = vld [vmem:[#allocation2 + $0x3f1] ss:$2 sm:$0xff]  ;;  %v6957_v1 = vpack.c.bf16 %v2763_v0, %v2762_v59  ;;  %v2768_v8 = vld [vmem:[#allocation4 + $0x1a7] sm:$0xff] }
 0x1ee   : > { %5575 = vmatmul.mubr.msk.bf16.gmra.mrb[12].mxu1 %vm441_vm0, %v6884_v13  ;;  %5510 = vmatprep.mubr.msk.bf16.mxu0 %vm441_vm0, %v1923_v6  ;;  %v1753_v20 = vmax.f32 %v1561_v18, %v1689_v19  ;;  %v1559_v21 = vld [vmem:[#allocation2 + $0x3e0] ss:$2 sm:$0xff]  ;;  %v1687_v22 = vld [vmem:[#allocation2 + $0x3e1] ss:$2 sm:$0xff]  ;;  %v2439_v19 = vld [vmem:[#allocation4 + $0x11] sm:$0xff] }
 0x1ef   : > { %5582 = vmatprep.mubr.msk.bf16.mxu1 %vm441_vm0, %v2776_v14  ;;  %v1752_v23 = vmax.f32 %v1559_v21, %v1687_v22  ;;  %v2767_v7 = vld [vmem:[#allocation4 + $0x18f] sm:$0xff]  ;;  %v2770_v42 = vld [vmem:[#allocation4 + $0x1c7] sm:$0xff] }
 0x1f0   : > { %v1785_v26 = vmax.f32 %v1751_v16, %v1753_v20  ;;  %v2769_v9 = vld [vmem:[#allocation4 + $0x1af] sm:$0xff]  ;;  %v6969_v10 = vpack.c.bf16 %v2767_v7, %v2766_v5  ;;  %v2772_v11 = vld [vmem:[#allocation4 + $0x1e7] sm:$0xff] }
 0x1f1   : > { %v1784_v29 = vmax.f32 %v1750_v17, %v1752_v23  ;;  %v6971_v4 = vpack.c.bf16 %v2769_v9, %v2768_v8  ;;  %v2771_v6 = vld [vmem:[#allocation4 + $0x1cf] sm:$0xff] }
 0x1f2   : > { %1890 = vst.msk [vmem:[#allocation4 + $0x210] sm:$0xff] %vm441_vm0, %v1785_v26  ;;  %v6981_v16 = vpack.c.bf16 %v2771_v6, %v2770_v42  ;;  %v2438_v18 = vld [vmem:[#allocation4 + $0x9] sm:$0xff]  ;;  %v2447_v59 = vld [vmem:[#allocation4 + $0x91] sm:$0xff] }
 0x1f3   : > { %1889 = vst.msk [vmem:[#allocation4 + $0x208] sm:$0xff] %vm441_vm0, %v1784_v29  ;;  %v3050_v22 = vld [vmem:[#allocation4 + $0x28] sm:$0xff]  ;;  %v3051_v23 = vld [vmem:[#allocation4 + $0x30] sm:$0xff]  ;;  %v2470_v24 = vpack.c.bf16 %v2439_v19, %v2438_v18 }
 0x1f4   : > { %v3082_v26 = vpack.c.bf16 %v3051_v23, %v3050_v22  ;;  %v2441_v29 = vld [vmem:[#allocation4 + $0x31] sm:$0xff]  ;;  %v2440_v30 = vld [vmem:[#allocation4 + $0x29] sm:$0xff] }
 0x1f5   : > { %5511 = vmatmul.mubr.msk.bf16.vlgmr.msra.gmra.mrb[128].mxu0 %vm441_vm0, %v2776_v14  ;;  %v2773_v14 = vld [vmem:[#allocation4 + $0x1ef] sm:$0xff] }
 0x1f6   : > { %5583 = vmatmul.mubr.msk.bf16.vlgmr.msra.gmra.mrb[16].mxu1 %vm441_vm0, %v6893_v32  ;;  %5514 = vmatprep.mubr.msk.bf16.mxu0 %vm441_vm0, %v6893_v32  ;;  %v6983_v17 = vpack.c.bf16 %v2773_v14, %v2772_v11  ;;  %v3052_v31 = vld [vmem:[#allocation4 + $0x48] sm:$0xff]  ;;  %v3057_v56 = vld [vmem:[#allocation4 + $0x90] sm:$0xff] }
 0x1f7   : > { %5615 = vmatpush3.bf16.msra.mxu1 %v6745_v3  ;;  %5586 = vmatprep.mubr.msk.bf16.mxu1 %vm441_vm0, %v6902_v35  ;;  %v2752_v3 = vld [vmem:[#allocation4 + $0xa7] sm:$0xff]  ;;  %v2449_v42 = vld [vmem:[#allocation4 + $0xb1] sm:$0xff] }
 0x1f8   : > { %5616 = vmatprep.subr.bf16.mxu1 %v6074_v34  ;;  %5543 = vmatpush3.bf16.msra.mxu0 %v6084_v39  ;;  %v6923_v44 = vpack.c.bf16 %v2753_v40, %v2752_v3  ;;  %v2442_v37 = vld [vmem:[#allocation4 + $0x49] sm:$0xff]  ;;  %v7001_v40 = vpack.c.bf16 %v2441_v29, %v2440_v30  ;;  %v2451_v14 = vld [vmem:[#allocation4 + $0xd1] sm:$0xff] }
 0x1f9   : > { %5544 = vmatprep.subr.bf16.mxu0 %v6085_v41  ;;  %v3054_v39 = vld [vmem:[#allocation4 + $0x68] sm:$0xff]  ;;  %v3055_v3 = vld [vmem:[#allocation4 + $0x70] sm:$0xff]  ;;  %v7008_v48 = vpack.c.bf16 %v2443_v38, %v2442_v37 }
 0x1fa   : > { %v2774_v20 = vld [vmem:[#allocation4 + $0x207] sm:$0xff]  ;;  %v2775_v21 = vld [vmem:[#allocation4 + $0x20f] sm:$0xff]  ;;  %v7014_v49 = vpack.c.bf16 %v3055_v3, %v3054_v39 }
 0x1fb   : > { %5617 = vmatpush3.bf16.msra.mxu1 %v6074_v34  ;;  %v6993_v25 = vpack.c.bf16 %v2775_v21, %v2774_v20  ;;  %v3053_v34 = vld [vmem:[#allocation4 + $0x50] sm:$0xff]  ;;  %v3056_v55 = vld [vmem:[#allocation4 + $0x88] sm:$0xff] }
 0x1fc   : > { %5650 = vmatprep.subr.bf16.mxu1 %v6912_v36  ;;  %5545 = vmatpush3.bf16.msra.mxu0 %v6085_v41  ;;  %v7003_v41 = vpack.c.bf16 %v3053_v34, %v3052_v31  ;;  %v2444_v50 = vld [vmem:[#allocation4 + $0x69] sm:$0xff]  ;;  %v7026_v5 = vpack.c.bf16 %v3057_v56, %v3056_v55  ;;  %v3375_v56 = vld [vmem:[#allocation4 + $0x151] sm:$0xff] }
 0x1fd   : > { %5515 = vmatmul.mubr.msk.bf16.gmra.mrb[132].mxu0 %vm441_vm0, %v6902_v35  ;;  %v2446_v0 = vld [vmem:[#allocation4 + $0x89] sm:$0xff] }
 0x1fe   : > { %5587 = vmatmul.mubr.msk.bf16.gmra.mrb[20].mxu1 %vm441_vm0, %v6920_v43  ;;  %5518 = vmatprep.mubr.msk.bf16.mxu0 %vm441_vm0, %v6920_v43  ;;  %v3058_v62 = vld [vmem:[#allocation4 + $0xa8] sm:$0xff]  ;;  %v7028_v7 = vpack.c.bf16 %v2447_v59, %v2446_v0  ;;  %v3061_v11 = vld [vmem:[#allocation4 + $0xd0] sm:$0xff] }
 0x1ff   : > { %5590 = vmatprep.mubr.msk.bf16.mxu1 %vm441_vm0, %v6923_v44  ;;  %v7030_v8 = vpack.c.bf16 %v3059_v63, %v3058_v62  ;;  %v2448_v9 = vld [vmem:[#allocation4 + $0xa9] sm:$0xff]  ;;  %v3377_v0 = vld [vmem:[#allocation4 + $0x171] sm:$0xff] }
 0x200   : > { %v3060_v6 = vld [vmem:[#allocation4 + $0xc8] sm:$0xff]  ;;  %v3063_v20 = vld [vmem:[#allocation4 + $0xf0] sm:$0xff]  ;;  %v7040_v21 = vpack.c.bf16 %v2449_v42, %v2448_v9 }
 0x201   : > { %v2450_v18 = vld [vmem:[#allocation4 + $0xc9] sm:$0xff]  ;;  %v7042_v22 = vpack.c.bf16 %v3061_v11, %v3060_v6  ;;  %v3387_v42 = vld [vmem:[#allocation4 + $0x211] sm:$0xff] }
 0x202   : > { %v3062_v19 = vld [vmem:[#allocation4 + $0xe8] sm:$0xff]  ;;  %v7044_v23 = vpack.c.bf16 %v2451_v14, %v2450_v18  ;;  %v3065_v31 = vld [vmem:[#allocation4 + $0x110] sm:$0xff] }
 0x203   : > { %v2452_v29 = vld [vmem:[#allocation4 + $0xe9] sm:$0xff] }
 0x204   : > { %v3064_v30 = vld [vmem:[#allocation4 + $0x108] sm:$0xff]  ;;  %v3067_v37 = vld [vmem:[#allocation4 + $0x130] sm:$0xff] }
 0x205   : > { %5519 = vmatmul.mubr.msk.bf16.gmra.mrb[136].mxu0 %vm441_vm0, %v6923_v44  ;;  %v3066_v34 = vld [vmem:[#allocation4 + $0x128] sm:$0xff]  ;;  %v7058_v39 = vpack.c.bf16 %v3065_v31, %v3064_v30  ;;  %v3986_v18 = vld [vmem:[#allocation4 + $0x150] sm:$0xff] }
 0x206   : > { %5591 = vmatmul.mubr.msk.bf16.gmra.mrb[24].mxu1 %vm441_vm0, %v6933_v51  ;;  %5522 = vmatprep.mubr.msk.bf16.mxu0 %vm441_vm0, %v6933_v51  ;;  %v7060_v3 = vpack.c.bf16 %v3067_v37, %v3066_v34  ;;  %v3374_v55 = vld [vmem:[#allocation4 + $0x149] sm:$0xff] }
 0x207   : > { %5594 = vmatprep.mubr.msk.bf16.mxu1 %vm441_vm0, %v6935_v52  ;;  %v3376_v59 = vld [vmem:[#allocation4 + $0x169] sm:$0xff]  ;;  %v7112_v62 = vpack.c.bf16 %v3375_v56, %v3374_v55 }
 0x208   : > { %v7114_v63 = vpack.c.bf16 %v3377_v0, %v3376_v59  ;;  %v3386_v9 = vld [vmem:[#allocation4 + $0x209] sm:$0xff] }
 0x209   : > { %v7128_v6 = vpack.c.bf16 %v3387_v42, %v3386_v9  ;;  %v3985_v14 = vld [vmem:[#allocation4 + $0x148] sm:$0xff]  ;;  %v3990_v34 = vld [vmem:[#allocation4 + $0x190] sm:$0xff] }
 0x20a   : > { %v3989_v31 = vld [vmem:[#allocation4 + $0x188] sm:$0xff]  ;;  %v3996_v42 = vld [vmem:[#allocation4 + $0x1f0] sm:$0xff] }
 0x20b   : > { %v3995_v9 = vld [vmem:[#allocation4 + $0x1e8] sm:$0xff] }
 0x20d   : > { %5523 = vmatmul.mubr.msk.bf16.gmra.mrb[140].mxu0 %vm441_vm0, %v6935_v52 }
 0x20e   : > { %5595 = vmatmul.mubr.msk.bf16.gmra.mrb[28].mxu1 %vm441_vm0, %v6945_v57  ;;  %5526 = vmatprep.mubr.msk.bf16.mxu0 %vm441_vm0, %v6945_v57 }
 0x20f   : > { %5598 = vmatprep.mubr.msk.bf16.mxu1 %vm441_vm0, %v6947_v58 }
 0x215   : > { %5527 = vmatmul.mubr.msk.bf16.gmra.mrb[144].mxu0 %vm441_vm0, %v6947_v58 }
 0x216   : > { %5599 = vmatmul.mubr.msk.bf16.gmra.mrb[0].mxu1 %vm441_vm0, %v6957_v1  ;;  %5530 = vmatprep.mubr.msk.bf16.mxu0 %vm441_vm0, %v6957_v1 }
 0x217   : > { %5602 = vmatprep.mubr.msk.bf16.mxu1 %vm441_vm0, %v6959_v2 }
 0x21d   : > { %5531 = vmatmul.mubr.msk.bf16.gmra.mrb[148].mxu0 %vm441_vm0, %v6959_v2 }
 0x21e   : > { %5603 = vmatmul.mubr.msk.bf16.gmra.mrb[4].mxu1 %vm441_vm0, %v6969_v10  ;;  %5534 = vmatprep.mubr.msk.bf16.mxu0 %vm441_vm0, %v6969_v10 }
 0x21f   : > { %5606 = vmatprep.mubr.msk.bf16.mxu1 %vm441_vm0, %v6971_v4 }
 0x225   : > { %5535 = vmatmul.mubr.msk.bf16.gmra.mrb[152].mxu0 %vm441_vm0, %v6971_v4 }
 0x226   : > { %5607 = vmatmul.mubr.msk.bf16.gmra.mrb[8].mxu1 %vm441_vm0, %v6981_v16  ;;  %5538 = vmatprep.mubr.msk.bf16.mxu0 %vm441_vm0, %v6981_v16 }
 0x227   : > { %5610 = vmatprep.mubr.msk.bf16.mxu1 %vm441_vm0, %v6983_v17 }
 0x22d   : > { %5539 = vmatmul.mubr.msk.bf16.gmra.mrb[156].mxu0 %vm441_vm0, %v6983_v17 }
 0x22e   : > { %5611 = vmatmul.mubr.msk.bf16.gmra.mrb[12].mxu1 %vm441_vm0, %v6993_v25  ;;  %5546 = vmatprep.mubr.msk.bf16.mxu0 %vm441_vm0, %v2470_v24  ;;  %v7046_v24 = vpack.c.bf16 %v3063_v20, %v3062_v19 }
 0x22f   : > { %5618 = vmatprep.mubr.msk.bf16.mxu1 %vm441_vm0, %v3082_v26  ;;  %v2453_v26 = vld [vmem:[#allocation4 + $0xf1] sm:$0xff] }
 0x230   : > { %v7056_v38 = vpack.c.bf16 %v2453_v26, %v2452_v29  ;;  %v3987_v26 = vld [vmem:[#allocation4 + $0x168] sm:$0xff]  ;;  %v3988_v29 = vld [vmem:[#allocation4 + $0x170] sm:$0xff] }
 0x235   : > { %5547 = vmatmul.mubr.msk.bf16.vlgmr.msra.gmra.mrb[128].mxu0 %vm441_vm0, %v7001_v40 }
 0x236   : > { %5619 = vmatmul.mubr.msk.bf16.vlgmr.msra.gmra.mrb[16].mxu1 %vm441_vm0, %v7003_v41  ;;  %5550 = vmatprep.mubr.msk.bf16.mxu0 %vm441_vm0, %v7008_v48 }
 0x237   : > { %5651 = vmatpush3.bf16.msra.mxu1 %v6912_v36  ;;  %5622 = vmatprep.mubr.msk.bf16.mxu1 %vm441_vm0, %v7014_v49  ;;  %v7024_v36 = vpack.c.bf16 %v2445_v53, %v2444_v50  ;;  %v3081_v50 = vld [vmem:[#allocation4 + $0x210] sm:$0xff] }
 0x238   : > { %5652 = vmatprep.subr.bf16.mxu1 %v6076_v47 }
 0x23b   : > { %5653 = vmatpush3.bf16.msra.mxu1 %v6076_v47  ;;  %v3080_v47 = vld [vmem:[#allocation4 + $0x208] sm:$0xff] }
 0x23c   : > { %5686 = vmatprep.subr.bf16.mxu1 %v6077_v54  ;;  %v7080_v53 = vpack.c.bf16 %v3081_v50, %v3080_v47  ;;  %v4010_v47 = vpack.c.bf16 %v3988_v29, %v3987_v26  ;;  %v4011_v50 = vpack.c.bf16 %v3990_v34, %v3989_v31  ;;  %v4306_v26 = vld [vmem:[#allocation4 + $0x231] sm:$0xff]  ;;  %v7291_v34 = vld [vmem:[%s7418_s4] ss:$0 sm:$0xff] }
 0x23d   : > { %5551 = vmatmul.mubr.msk.bf16.gmra.mrb[132].mxu0 %vm441_vm0, %v7024_v36 }
 0x23e   : > { %5623 = vmatmul.mubr.msk.bf16.gmra.mrb[20].mxu1 %vm441_vm0, %v7026_v5  ;;  %5554 = vmatprep.mubr.msk.bf16.mxu0 %vm441_vm0, %v7028_v7 }
 0x23f   : > { %5626 = vmatprep.mubr.msk.bf16.mxu1 %vm441_vm0, %v7030_v8 }
 0x245   : > { %5555 = vmatmul.mubr.msk.bf16.gmra.mrb[136].mxu0 %vm441_vm0, %v7040_v21 }
 0x246   : > { %5627 = vmatmul.mubr.msk.bf16.gmra.mrb[24].mxu1 %vm441_vm0, %v7042_v22  ;;  %5558 = vmatprep.mubr.msk.bf16.mxu0 %vm441_vm0, %v7044_v23 }
 0x247   : > { %5630 = vmatprep.mubr.msk.bf16.mxu1 %vm441_vm0, %v7046_v24 }
 0x24d   : > { %5559 = vmatmul.mubr.msk.bf16.gmra.mrb[140].mxu0 %vm441_vm0, %v7056_v38 }
 0x24e   : > { %5631 = vmatmul.mubr.msk.bf16.gmra.mrb[28].mxu1 %vm441_vm0, %v7058_v39 }
 0x24f   : > { %5634 = vmatprep.mubr.msk.bf16.mxu1 %vm441_vm0, %v7060_v3 }
 0x256   : > { %5635 = vmatmul.mubr.msk.bf16.gmra.mrb[0].mxu1 %vm441_vm0, %v6762_v33  ;;  %v6078_v33 = vld [vmem:[%s7417_s3 + $0x68] sm:$0xff]  }
 0x257   : > { %5638 = vmatprep.mubr.msk.bf16.mxu1 %vm441_vm0, %v6785_v15  ;;  %v6079_v15 = vld [vmem:[%s7417_s3 + $0x70] sm:$0xff]  }
 0x25e   : > { %5639 = vmatmul.mubr.msk.bf16.gmra.mrb[4].mxu1 %vm441_vm0, %v6808_v60  ;;  %v3370_v60 = vld [vmem:[#allocation4 + $0x109] sm:$0xff] }
 0x25f   : > { %5642 = vmatprep.mubr.msk.bf16.mxu1 %vm441_vm0, %v6834_v45  ;;  %v3371_v45 = vld [vmem:[#allocation4 + $0x111] sm:$0xff] }
 0x266   : > { %5643 = vmatmul.mubr.msk.bf16.gmra.mrb[8].mxu1 %vm441_vm0, %v6859_v27  ;;  %v3372_v27 = vld [vmem:[#allocation4 + $0x129] sm:$0xff] }
 0x267   : > { %5646 = vmatprep.mubr.msk.bf16.mxu1 %vm441_vm0, %v6882_v12  ;;  %v3373_v12 = vld [vmem:[#allocation4 + $0x131] sm:$0xff] }
 0x26e   : > { %5647 = vmatmul.mubr.msk.bf16.gmra.mrb[12].mxu1 %vm441_vm0, %v7080_v53 }
 0x26f   : > { %5654 = vmatprep.mubr.msk.bf16.mxu1 %vm441_vm0, %v7001_v40  ;;  %v7104_v40 = vpack.c.bf16 %v3371_v45, %v3370_v60  ;;  %v3993_v45 = vld [vmem:[#allocation4 + $0x1c8] sm:$0xff] }
 0x276   : > { %5655 = vmatmul.mubr.msk.bf16.vlgmr.msra.gmra.mrb[16].mxu1 %vm441_vm0, %v7008_v48 }
 0x277   : > { %5687 = vmatpush3.bf16.msra.mxu1 %v6077_v54  ;;  %5658 = vmatprep.mubr.msk.bf16.mxu1 %vm441_vm0, %v7024_v36  ;;  %v7106_v54 = vpack.c.bf16 %v3373_v12, %v3372_v27  ;;  %v3994_v27 = vld [vmem:[#allocation4 + $0x1d0] sm:$0xff] }
 0x278   : > { %5688 = vmatprep.subr.bf16.mxu1 %v6078_v33  ;;  %v4013_v59 = vpack.c.bf16 %v3994_v27, %v3993_v45 }
 0x27b   : > { %5689 = vmatpush3.bf16.msra.mxu1 %v6078_v33  ;;  %v3991_v33 = vld [vmem:[#allocation4 + $0x1a8] sm:$0xff] }
 0x27c   : > { %5722 = vmatprep.subr.bf16.mxu1 %v6079_v15 }
 0x27e   : > { %5659 = vmatmul.mubr.msk.bf16.gmra.mrb[20].mxu1 %vm441_vm0, %v7028_v7 }
 0x27f   : > { %5662 = vmatprep.mubr.msk.bf16.mxu1 %vm441_vm0, %v7040_v21 }
 0x286   : > { %5663 = vmatmul.mubr.msk.bf16.gmra.mrb[24].mxu1 %vm441_vm0, %v7044_v23 }
 0x287   : > { %5666 = vmatprep.mubr.msk.bf16.mxu1 %vm441_vm0, %v7056_v38 }
 0x28e   : > { %5667 = vmatmul.mubr.msk.bf16.gmra.mrb[28].mxu1 %vm441_vm0, %v7104_v40 }
 0x28f   : > { %5670 = vmatprep.mubr.msk.bf16.mxu1 %vm441_vm0, %v7106_v54 }
 0x296   : > { %5671 = vmatmul.mubr.msk.bf16.gmra.mrb[0].mxu1 %vm441_vm0, %v7112_v62 }
 0x297   : > { %5674 = vmatprep.mubr.msk.bf16.mxu1 %vm441_vm0, %v7114_v63 }
 0x29e   : > { %5675 = vmatmul.mubr.msk.bf16.gmra.mrb[4].mxu1 %vm441_vm0, %v6810_v61  ;;  %v6080_v61 = vld [vmem:[%s7417_s3 + $0x78] sm:$0xff]  }
 0x29f   : > { %5678 = vmatprep.mubr.msk.bf16.mxu1 %vm441_vm0, %v6836_v46  ;;  %v6081_v46 = vld [vmem:[%s7417_s3 + $0x80] sm:$0xff]  }
 0x2a6   : > { %5679 = vmatmul.mubr.msk.bf16.gmra.mrb[8].mxu1 %vm441_vm0, %v6861_v28  ;;  %v3693_v28 = vld [vmem:[#allocation4 + $0x227] sm:$0xff] }
 0x2a7   : > { %5682 = vmatprep.mubr.msk.bf16.mxu1 %vm441_vm0, %v6884_v13  ;;  %v3694_v13 = vld [vmem:[#allocation4 + $0x22f] sm:$0xff] }
 0x2ae   : > { %5683 = vmatmul.mubr.msk.bf16.gmra.mrb[12].mxu1 %vm441_vm0, %v7128_v6 }
 0x2af   : > { %5690 = vmatprep.mubr.msk.bf16.mxu1 %vm441_vm0, %v6893_v32 }
 0x2b6   : > { %5691 = vmatmul.mubr.msk.bf16.vlgmr.msra.gmra.mrb[16].mxu1 %vm441_vm0, %v6902_v35 }
 0x2b7   : > { %5723 = vmatpush3.bf16.msra.mxu1 %v6079_v15  ;;  %5694 = vmatprep.mubr.msk.bf16.mxu1 %vm441_vm0, %v6920_v43  ;;  %v3710_v43 = vpack.c.bf16 %v3694_v13, %v3693_v28  ;;  %v3992_v15 = vld [vmem:[#allocation4 + $0x1b0] sm:$0xff]  ;;  %v4014_v13 = vpack.c.bf16 %v3996_v42, %v3995_v9 }
 0x2b8   : > { %5724 = vmatprep.subr.bf16.mxu1 %v6080_v61  ;;  %v4012_v56 = vpack.c.bf16 %v3992_v15, %v3991_v33 }
 0x2bb   : > { %5725 = vmatpush3.bf16.msra.mxu1 %v6080_v61 }
 0x2bc   : > { %5758 = vmatprep.subr.bf16.mxu1 %v6081_v46 }
 0x2be   : > { %5695 = vmatmul.mubr.msk.bf16.gmra.mrb[20].mxu1 %vm441_vm0, %v6923_v44 }
 0x2bf   : > { %5698 = vmatprep.mubr.msk.bf16.mxu1 %vm441_vm0, %v6933_v51 }
 0x2c6   : > { %5699 = vmatmul.mubr.msk.bf16.gmra.mrb[24].mxu1 %vm441_vm0, %v6935_v52 }
 0x2c7   : > { %5702 = vmatprep.mubr.msk.bf16.mxu1 %vm441_vm0, %v6945_v57 }
 0x2ce   : > { %5703 = vmatmul.mubr.msk.bf16.gmra.mrb[28].mxu1 %vm441_vm0, %v6947_v58 }
 0x2cf   : > { %5706 = vmatprep.mubr.msk.bf16.mxu1 %vm441_vm0, %v6957_v1 }
 0x2d6   : > { %5707 = vmatmul.mubr.msk.bf16.gmra.mrb[0].mxu1 %vm441_vm0, %v6959_v2  ;;  %v6082_v2 = vld [vmem:[%s7417_s3 + $0x88] sm:$0xff]  }
 0x2d7   : > { %5710 = vmatprep.mubr.msk.bf16.mxu1 %vm441_vm0, %v6969_v10 }
 0x2de   : > { %5711 = vmatmul.mubr.msk.bf16.gmra.mrb[4].mxu1 %vm441_vm0, %v6971_v4 }
 0x2df   : > { %5714 = vmatprep.mubr.msk.bf16.mxu1 %vm441_vm0, %v6981_v16 }
 0x2e6   : > { %5715 = vmatmul.mubr.msk.bf16.gmra.mrb[8].mxu1 %vm441_vm0, %v6983_v17 }
 0x2e7   : > { %5718 = vmatprep.mubr.msk.bf16.mxu1 %vm441_vm0, %v6993_v25 }
 0x2e8   : > { %v7168_v32 = vpop.f32.mrb[144].mxu0 }
 0x2e9   : > { %v7170_v35 = vpop.f32.mrb[145].mxu0 }
 0x2ea   : > { %v7172_v44 = vpop.f32.mrb[146].mxu0 }
 0x2eb   : > { %v7174_v51 = vpop.f32.mrb[147].mxu0 }
 0x2ee   : > { %5719 = vmatmul.mubr.msk.bf16.gmra.mrb[12].mxu1 %vm441_vm0, %v3710_v43  ;;  %v3999_v43 = vld [vmem:[#allocation4 + $0x228] sm:$0xff] }
 0x2ef   : > { %5726 = vmatprep.mubr.msk.bf16.mxu1 %vm441_vm0, %v7003_v41 }
 0x2f0   : > { %v7179_v52 = vpop.f32.mrb[148].mxu0 }
 0x2f1   : > { %v7181_v57 = vpop.f32.mrb[149].mxu0 }
 0x2f2   : > { %v7183_v58 = vpop.f32.mrb[150].mxu0 }
 0x2f3   : > { %v7185_v1 = vpop.f32.mrb[151].mxu0 }
 0x2f6   : > { %5727 = vmatmul.mubr.msk.bf16.vlgmr.msra.gmra.mrb[16].mxu1 %vm441_vm0, %v7014_v49 }
 0x2f7   : > { %5759 = vmatpush3.bf16.msra.mxu1 %v6081_v46  ;;  %5730 = vmatprep.mubr.msk.bf16.mxu1 %vm441_vm0, %v7026_v5 }
 0x2f8   : > { %5760 = vmatprep.subr.bf16.mxu1 %v6082_v2  ;;  %v7194_v10 = vpop.f32.mrb[152].mxu0 }
 0x2f9   : > { %v7196_v4 = vpop.f32.mrb[153].mxu0 }
 0x2fa   : > { %v7198_v16 = vpop.f32.mrb[154].mxu0 }
 0x2fb   : > { %5761 = vmatpush3.bf16.msra.mxu1 %v6082_v2  ;;  %v7200_v17 = vpop.f32.mrb[155].mxu0  ;;  %v4000_v2 = vld [vmem:[#allocation4 + $0x230] sm:$0xff] }
 0x2fe   : > { %5731 = vmatmul.mubr.msk.bf16.gmra.mrb[20].mxu1 %vm441_vm0, %v7030_v8 }
 0x2ff   : > { %5734 = vmatprep.mubr.msk.bf16.mxu1 %vm441_vm0, %v7042_v22  ;;  %v4009_v22 = vpack.c.bf16 %v3986_v18, %v3985_v14  ;;  %v4016_v14 = vpack.c.bf16 %v4000_v2, %v3999_v43 }
 0x300   : > { %v7206_v25 = vpop.f32.mrb[156].mxu0 }
 0x301   : > { %v7208_v41 = vpop.f32.mrb[157].mxu0 }
 0x302   : > { %v7210_v49 = vpop.f32.mrb[158].mxu0 }
 0x303   : > { %v7212_v5 = vpop.f32.mrb[159].mxu0 }
 0x306   : > { %5735 = vmatmul.mubr.msk.bf16.gmra.mrb[24].mxu1 %vm441_vm0, %v7046_v24 }
 0x307   : > { %5738 = vmatprep.mubr.msk.bf16.mxu1 %vm441_vm0, %v7058_v39 }
 0x308   : > { %v7218_v11 = vpop.f32.mrb[128].mxu0 }
 0x309   : > { %v7220_v8 = vpop.f32.mrb[129].mxu0 }
 0x30a   : > { %v7222_v19 = vpop.f32.mrb[130].mxu0 }
 0x30b   : > { %v7224_v20 = vpop.f32.mrb[131].mxu0 }
 0x30e   : > { %5739 = vmatmul.mubr.msk.bf16.gmra.mrb[28].mxu1 %vm441_vm0, %v7060_v3 }
 0x30f   : > { %5742 = vmatprep.mubr.msk.bf16.mxu1 %vm441_vm0, %v4009_v22 }
 0x310   : > { %v7229_v24 = vpop.f32.mrb[132].mxu0 }
 0x311   : > { %v7231_v30 = vpop.f32.mrb[133].mxu0 }
 0x312   : > { %v7233_v37 = vpop.f32.mrb[134].mxu0 }
 0x313   : > { %v7235_v39 = vpop.f32.mrb[135].mxu0 }
 0x316   : > { %5743 = vmatmul.mubr.msk.bf16.gmra.mrb[0].mxu1 %vm441_vm0, %v4010_v47 }
 0x317   : > { %5746 = vmatprep.mubr.msk.bf16.mxu1 %vm441_vm0, %v4011_v50 }
 0x318   : > { %v7239_v3 = vpop.f32.mrb[136].mxu0 }
 0x319   : > { %v7241_v60 = vpop.f32.mrb[137].mxu0 }
 0x31a   : > { %v7243_v12 = vpop.f32.mrb[138].mxu0 }
 0x31b   : > { %v7245_v55 = vpop.f32.mrb[139].mxu0 }
 0x31e   : > { %5747 = vmatmul.mubr.msk.bf16.gmra.mrb[4].mxu1 %vm441_vm0, %v4012_v56 }
 0x31f   : > { %5750 = vmatprep.mubr.msk.bf16.mxu1 %vm441_vm0, %v4013_v59 }
 0x320   : > { %v7249_v0 = vpop.f32.mrb[140].mxu0 }
 0x321   : > { %v7251_v61 = vpop.f32.mrb[141].mxu0 }
 0x322   : > { %v7253_v46 = vpop.f32.mrb[142].mxu0 }
 0x323   : > { %v7255_v28 = vpop.f32.mrb[143].mxu0 }
 0x326   : > { %5751 = vmatmul.mubr.msk.bf16.gmra.mrb[8].mxu1 %vm441_vm0, %v4014_v13 }
 0x327   : > { %5754 = vmatprep.mubr.msk.bf16.mxu1 %vm441_vm0, %v7080_v53  ;;  %v4300_v53 = vld [vmem:[#allocation4 + $0x1d1] sm:$0xff] }
 0x32e   : > { %5755 = vmatmul.mubr.msk.bf16.gmra.mrb[12].mxu1 %vm441_vm0, %v4016_v14 }
 0x32f   : > { %5762 = vmatprep.mubr.msk.bf16.mxu1 %vm441_vm0, %v7008_v48  ;;  %v4295_v48 = vld [vmem:[#allocation4 + $0x189] sm:$0xff] }
 0x336   : > { %5763 = vmatmul.mubr.msk.bf16.vlgmr.msra.gmra.mrb[16].mxu1 %vm441_vm0, %v7024_v36  ;;  %v4296_v36 = vld [vmem:[#allocation4 + $0x191] sm:$0xff] }
 0x337   : > { %5766 = vmatprep.mubr.msk.bf16.mxu1 %vm441_vm0, %v7028_v7  ;;  %v4317_v7 = vpack.c.bf16 %v4296_v36, %v4295_v48 }
 0x33e   : > { %5767 = vmatmul.mubr.msk.bf16.gmra.mrb[20].mxu1 %vm441_vm0, %v7040_v21  ;;  %v4297_v21 = vld [vmem:[#allocation4 + $0x1a9] sm:$0xff] }
 0x33f   : > { %5770 = vmatprep.mubr.msk.bf16.mxu1 %vm441_vm0, %v7044_v23  ;;  %v4298_v23 = vld [vmem:[#allocation4 + $0x1b1] sm:$0xff] }
 0x340   : > { %v4318_v18 = vpack.c.bf16 %v4298_v23, %v4297_v21 }
 0x346   : > { %5771 = vmatmul.mubr.msk.bf16.gmra.mrb[24].mxu1 %vm441_vm0, %v7056_v38  ;;  %v4299_v38 = vld [vmem:[#allocation4 + $0x1c9] sm:$0xff] }
 0x347   : > { %5774 = vmatprep.mubr.msk.bf16.mxu1 %vm441_vm0, %v7104_v40  ;;  %v4319_v40 = vpack.c.bf16 %v4300_v53, %v4299_v38 }
 0x34e   : > { %5775 = vmatmul.mubr.msk.bf16.gmra.mrb[28].mxu1 %vm441_vm0, %v7106_v54  ;;  %v4301_v54 = vld [vmem:[#allocation4 + $0x1e9] sm:$0xff] }
 0x34f   : > { %5778 = vmatprep.mubr.msk.bf16.mxu1 %vm441_vm0, %v7112_v62  ;;  %v4302_v62 = vld [vmem:[#allocation4 + $0x1f1] sm:$0xff] }
 0x350   : > { %v4320_v22 = vpack.c.bf16 %v4302_v62, %v4301_v54 }
 0x356   : > { %5779 = vmatmul.mubr.msk.bf16.gmra.mrb[0].mxu1 %vm441_vm0, %v7114_v63  ;;  %v4305_v63 = vld [vmem:[#allocation4 + $0x229] sm:$0xff] }
 0x357   : > { %5782 = vmatprep.mubr.msk.bf16.mxu1 %vm441_vm0, %v4317_v7  ;;  %v4322_v29 = vpack.c.bf16 %v4306_v26, %v4305_v63 }
 0x35e   : > { %5783 = vmatmul.mubr.msk.bf16.gmra.mrb[4].mxu1 %vm441_vm0, %v4318_v18 }
 0x35f   : > { %5786 = vmatprep.mubr.msk.bf16.mxu1 %vm441_vm0, %v4319_v40 }
 0x366   : > { %5787 = vmatmul.mubr.msk.bf16.gmra.mrb[8].mxu1 %vm441_vm0, %v4320_v22 }
 0x367   : > { %5790 = vmatprep.mubr.msk.bf16.mxu1 %vm441_vm0, %v7128_v6 }
 0x36e   : > { %5791 = vmatmul.mubr.msk.bf16.gmra.mrb[12].mxu1 %vm441_vm0, %v4322_v29 }
 0x409   : > { %v5764_v31 = vpop.f32.mrb[16].mxu1 }
 0x40a   : > { %v5798_v47 = vadd.f32 %v5764_v31, %v7218_v11  ;;  %v4422_v50 = vpop.f32.mrb[17].mxu1 }
 0x40b   : > { %v5799_v33 = vadd.f32 %v4422_v50, %v7220_v8  ;;  %v5765_v15 = vpop.f32.mrb[18].mxu1 }
 0x40c   : > { %v4590_v45 = vadd.f32 %v5798_v47, %v7291_v34  ;;  %v5800_v6 = vadd.f32 %v5765_v15, %v7222_v19  ;;  %v4425_v27 = vpop.f32.mrb[19].mxu1 }
 0x40d   : > { %v4588_v56 = vadd.f32 %v5799_v33, %v7291_v34  ;;  %v5801_v59 = vadd.f32 %v4425_v27, %v7224_v20 }
 0x40e   : > { %v4622_v9 = vmax.f32 %v4590_v45, 0.0  ;;  %v4591_v42 = vadd.f32 %v5800_v6, %v7291_v34 }
 0x40f   : > { %v4620_v13 = vmax.f32 %v4588_v56, 0.0  ;;  %v4589_v11 = vadd.f32 %v5801_v59, %v7291_v34 }
 0x410   : > { %4655 = vst.msk [vmem:[#allocation3 + $0x10] sm:$0xff] %vm4652_vm1, %v4622_v9  ;;  %v4623_v8 = vmax.f32 %v4591_v42, 0.0 }
 0x411   : > { %4653 = vst.msk [vmem:[#allocation3] sm:$0xff] %vm4652_vm1, %v4620_v13  ;;  %v4621_v43 = vmax.f32 %v4589_v11, 0.0  ;;  %v5768_v2 = vpop.f32.mrb[20].mxu1 }
 0x412   : > { %4656 = vst.msk [vmem:[#allocation3 + $0x18] sm:$0xff] %vm4652_vm1, %v4623_v8  ;;  %v5802_v19 = vadd.f32 %v5768_v2, %v7229_v24  ;;  %v4438_v14 = vpop.f32.mrb[21].mxu1 }
 0x413   : > { %4654 = vst.msk [vmem:[#allocation3 + $0x8] sm:$0xff] %vm4652_vm1, %v4621_v43  ;;  %v5803_v20 = vadd.f32 %v4438_v14, %v7231_v30  ;;  %v5769_v48 = vpop.f32.mrb[22].mxu1 }
 0x414   : > { %v4594_v36 = vadd.f32 %v5802_v19, %v7291_v34  ;;  %v5804_v7 = vadd.f32 %v5769_v48, %v7233_v37  ;;  %v4441_v21 = vpop.f32.mrb[23].mxu1 }
 0x415   : > { %v4592_v23 = vadd.f32 %v5803_v20, %v7291_v34  ;;  %v5805_v38 = vadd.f32 %v4441_v21, %v7235_v39 }
 0x416   : > { %v4626_v53 = vmax.f32 %v4594_v36, 0.0  ;;  %v4595_v18 = vadd.f32 %v5804_v7, %v7291_v34 }
 0x417   : > { %v4624_v40 = vmax.f32 %v4592_v23, 0.0  ;;  %v4593_v24 = vadd.f32 %v5805_v38, %v7291_v34 }
 0x418   : > { %4659 = vst.msk [vmem:[#allocation3 + $0x30] sm:$0xff] %vm4652_vm1, %v4626_v53  ;;  %v4627_v30 = vmax.f32 %v4595_v18, 0.0 }
 0x419   : > { %v4687_v54 = vld [vmem:[#allocation3 + $0x10] ss:$2 sm:$0xff]  ;;  %v4719_v62 = vld [vmem:[#allocation3 + $0x11] ss:$2 sm:$0xff]  ;;  %4657 = vst.msk [vmem:[#allocation3 + $0x20] sm:$0xff] %vm4652_vm1, %v4624_v40  ;;  %v4625_v37 = vmax.f32 %v4593_v24, 0.0 }
 0x41a   : > { %v5772_v22 = vpop.f32.mrb[24].mxu1  ;;  %v4749_v63 = vmax.f32 %v4687_v54, %v4719_v62  ;;  %v4685_v26 = vld [vmem:[#allocation3] ss:$2 sm:$0xff]  ;;  %v4717_v29 = vld [vmem:[#allocation3 + $0x1] ss:$2 sm:$0xff]  ;;  %4660 = vst.msk [vmem:[#allocation3 + $0x38] sm:$0xff] %vm4652_vm1, %v4627_v30 }
 0x41b   : > { %v5806_v39 = vadd.f32 %v5772_v22, %v7239_v3  ;;  %v4454_v31 = vpop.f32.mrb[25].mxu1  ;;  %v4748_v47 = vmax.f32 %v4685_v26, %v4717_v29  ;;  %4658 = vst.msk [vmem:[#allocation3 + $0x28] sm:$0xff] %vm4652_vm1, %v4625_v37 }
 0x41c   : > { %v5807_v50 = vadd.f32 %v4454_v31, %v7241_v60  ;;  %v5773_v33 = vpop.f32.mrb[26].mxu1 }
 0x41d   : > { %v4598_v15 = vadd.f32 %v5806_v39, %v7291_v34  ;;  %v5808_v45 = vadd.f32 %v5773_v33, %v7243_v12  ;;  %v4457_v6 = vpop.f32.mrb[27].mxu1  ;;  %v4764_v27 = vmax.f32 %v4748_v47, %v4749_v63 }
 0x41e   : > { %v4596_v3 = vadd.f32 %v5807_v50, %v7291_v34  ;;  %v5809_v56 = vadd.f32 %v4457_v6, %v7245_v55 }
 0x41f   : > { %v4630_v59 = vmax.f32 %v4598_v15, 0.0  ;;  %v4599_v60 = vadd.f32 %v5808_v45, %v7291_v34  ;;  %4772 = vst.msk [vmem:[%s7323_s30] sm:$0xff] %vm4652_vm1, %v4764_v27 }
 0x420   : > { %v4628_v9 = vmax.f32 %v4596_v3, 0.0  ;;  %v4597_v42 = vadd.f32 %v5809_v56, %v7291_v34 }
 0x421   : > { %4663 = vst.msk [vmem:[#allocation3 + $0x50] sm:$0xff] %vm4652_vm1, %v4630_v59  ;;  %v4631_v13 = vmax.f32 %v4599_v60, 0.0  ;;  %v4691_v11 = vld [vmem:[#allocation3 + $0x30] ss:$2 sm:$0xff]  ;;  %v4723_v8 = vld [vmem:[#allocation3 + $0x31] ss:$2 sm:$0xff] }
 0x422   : > { %4661 = vst.msk [vmem:[#allocation3 + $0x40] sm:$0xff] %vm4652_vm1, %v4628_v9  ;;  %v4629_v12 = vmax.f32 %v4597_v42, 0.0  ;;  %v5776_v43 = vpop.f32.mrb[28].mxu1  ;;  %v4751_v2 = vmax.f32 %v4691_v11, %v4723_v8  ;;  %v4689_v19 = vld [vmem:[#allocation3 + $0x20] ss:$2 sm:$0xff] }
 0x423   : > { %v4721_v55 = vld [vmem:[#allocation3 + $0x21] ss:$2 sm:$0xff]  ;;  %4664 = vst.msk [vmem:[#allocation3 + $0x58] sm:$0xff] %vm4652_vm1, %v4631_v13  ;;  %v5810_v14 = vadd.f32 %v5776_v43, %v7249_v0  ;;  %v4470_v20 = vpop.f32.mrb[29].mxu1 }
 0x424   : > { %v4750_v48 = vmax.f32 %v4689_v19, %v4721_v55  ;;  %4662 = vst.msk [vmem:[#allocation3 + $0x48] sm:$0xff] %vm4652_vm1, %v4629_v12  ;;  %v5811_v36 = vadd.f32 %v4470_v20, %v7251_v61  ;;  %v5777_v7 = vpop.f32.mrb[30].mxu1 }
 0x425   : > { %v4602_v21 = vadd.f32 %v5810_v14, %v7291_v34  ;;  %v5812_v23 = vadd.f32 %v5777_v7, %v7253_v46  ;;  %v4473_v38 = vpop.f32.mrb[31].mxu1 }
 0x426   : > { %v4765_v53 = vmax.f32 %v4750_v48, %v4751_v2  ;;  %v4600_v18 = vadd.f32 %v5811_v36, %v7291_v34  ;;  %v5813_v40 = vadd.f32 %v4473_v38, %v7255_v28 }
 0x427   : > { %v4634_v24 = vmax.f32 %v4602_v21, 0.0  ;;  %v4603_v0 = vadd.f32 %v5812_v23, %v7291_v34 }
 0x428   : > { %4773 = vst.msk [vmem:[%s7323_s30 + $0x8] sm:$0xff] %vm4652_vm1, %v4765_v53  ;;  %v4632_v30 = vmax.f32 %v4600_v18, 0.0  ;;  %v4601_v54 = vadd.f32 %v5813_v40, %v7291_v34 }
 0x429   : > { %4667 = vst.msk [vmem:[#allocation3 + $0x70] sm:$0xff] %vm4652_vm1, %v4634_v24  ;;  %v4635_v61 = vmax.f32 %v4603_v0, 0.0  ;;  %v5780_v22 = vpop.f32.mrb[0].mxu1 }
 0x42a   : > { %v4695_v62 = vld [vmem:[#allocation3 + $0x50] ss:$2 sm:$0xff]  ;;  %v4727_v37 = vld [vmem:[#allocation3 + $0x51] ss:$2 sm:$0xff]  ;;  %4665 = vst.msk [vmem:[#allocation3 + $0x60] sm:$0xff] %vm4652_vm1, %v4632_v30  ;;  %v4633_v46 = vmax.f32 %v4601_v54, 0.0  ;;  %v5814_v29 = vadd.f32 %v5780_v22, %v7168_v32 }
 0x42b   : > { %v4753_v63 = vmax.f32 %v4695_v62, %v4727_v37  ;;  %v4693_v26 = vld [vmem:[#allocation3 + $0x40] ss:$2 sm:$0xff]  ;;  %v4725_v28 = vld [vmem:[#allocation3 + $0x41] ss:$2 sm:$0xff]  ;;  %4668 = vst.msk [vmem:[#allocation3 + $0x78] sm:$0xff] %vm4652_vm1, %v4635_v61  ;;  %v4486_v39 = vpop.f32.mrb[1].mxu1 }
 0x42c   : > { %v4752_v31 = vmax.f32 %v4693_v26, %v4725_v28  ;;  %4666 = vst.msk [vmem:[#allocation3 + $0x68] sm:$0xff] %vm4652_vm1, %v4633_v46  ;;  %v5815_v47 = vadd.f32 %v4486_v39, %v7170_v35  ;;  %v5781_v50 = vpop.f32.mrb[2].mxu1  ;;  %v4606_v33 = vadd.f32 %v5814_v29, %v7291_v34 }
 0x42d   : > { %v5816_v15 = vadd.f32 %v5781_v50, %v7172_v44  ;;  %v4489_v45 = vpop.f32.mrb[3].mxu1 }
 0x42e   : > { %v4766_v6 = vmax.f32 %v4752_v31, %v4753_v63  ;;  %v4604_v27 = vadd.f32 %v5815_v47, %v7291_v34  ;;  %v5817_v3 = vadd.f32 %v4489_v45, %v7174_v51  ;;  %v4638_v56 = vmax.f32 %v4606_v33, 0.0 }
 0x42f   : > { %v4607_v32 = vadd.f32 %v5816_v15, %v7291_v34 }
 0x430   : > { %4774 = vst.msk [vmem:[%s7323_s30 + $0x10] sm:$0xff] %vm4652_vm1, %v4766_v6  ;;  %v4636_v59 = vmax.f32 %v4604_v27, 0.0  ;;  %v4605_v60 = vadd.f32 %v5817_v3, %v7291_v34  ;;  %4671 = vst.msk [vmem:[#allocation3 + $0x90] sm:$0xff] %vm4652_vm1, %v4638_v56 }
 0x431   : > { %v4639_v35 = vmax.f32 %v4607_v32, 0.0  ;;  %v5784_v13 = vpop.f32.mrb[4].mxu1 }
 0x432   : > { %v4699_v9 = vld [vmem:[#allocation3 + $0x70] ss:$2 sm:$0xff]  ;;  %v4731_v42 = vld [vmem:[#allocation3 + $0x71] ss:$2 sm:$0xff]  ;;  %4669 = vst.msk [vmem:[#allocation3 + $0x80] sm:$0xff] %vm4652_vm1, %v4636_v59  ;;  %v4637_v44 = vmax.f32 %v4605_v60, 0.0  ;;  %v5818_v12 = vadd.f32 %v5784_v13, %v7179_v52 }
 0x433   : > { %v4755_v11 = vmax.f32 %v4699_v9, %v4731_v42  ;;  %v4697_v8 = vld [vmem:[#allocation3 + $0x60] ss:$2 sm:$0xff]  ;;  %v4729_v51 = vld [vmem:[#allocation3 + $0x61] ss:$2 sm:$0xff]  ;;  %4672 = vst.msk [vmem:[#allocation3 + $0x98] sm:$0xff] %vm4652_vm1, %v4639_v35  ;;  %v4502_v43 = vpop.f32.mrb[5].mxu1 }
 0x434   : > { %v4754_v2 = vmax.f32 %v4697_v8, %v4729_v51  ;;  %4670 = vst.msk [vmem:[#allocation3 + $0x88] sm:$0xff] %vm4652_vm1, %v4637_v44  ;;  %v5819_v19 = vadd.f32 %v4502_v43, %v7181_v57  ;;  %v5785_v55 = vpop.f32.mrb[6].mxu1  ;;  %v4610_v14 = vadd.f32 %v5818_v12, %v7291_v34 }
 0x435   : > { %v5820_v20 = vadd.f32 %v5785_v55, %v7183_v58  ;;  %v4505_v48 = vpop.f32.mrb[7].mxu1 }
 0x436   : > { %v4767_v36 = vmax.f32 %v4754_v2, %v4755_v11  ;;  %v4608_v7 = vadd.f32 %v5819_v19, %v7291_v34  ;;  %v5821_v21 = vadd.f32 %v4505_v48, %v7185_v1  ;;  %v4642_v23 = vmax.f32 %v4610_v14, 0.0 }
 0x437   : > { %v4611_v52 = vadd.f32 %v5820_v20, %v7291_v34 }
 0x438   : > { %4775 = vst.msk [vmem:[%s7323_s30 + $0x18] sm:$0xff] %vm4652_vm1, %v4767_v36  ;;  %v4640_v38 = vmax.f32 %v4608_v7, 0.0  ;;  %v4609_v53 = vadd.f32 %v5821_v21, %v7291_v34  ;;  %4675 = vst.msk [vmem:[#allocation3 + $0xb0] sm:$0xff] %vm4652_vm1, %v4642_v23 }
 0x439   : > { %v4643_v57 = vmax.f32 %v4611_v52, 0.0  ;;  %v5788_v24 = vpop.f32.mrb[8].mxu1 }
 0x43a   : > { %v4703_v18 = vld [vmem:[#allocation3 + $0x90] ss:$2 sm:$0xff]  ;;  %v4735_v40 = vld [vmem:[#allocation3 + $0x91] ss:$2 sm:$0xff]  ;;  %4673 = vst.msk [vmem:[#allocation3 + $0xa0] sm:$0xff] %vm4652_vm1, %v4640_v38  ;;  %v4641_v58 = vmax.f32 %v4609_v53, 0.0  ;;  %v5822_v54 = vadd.f32 %v5788_v24, %v7194_v10 }
 0x43b   : > { %v4757_v0 = vmax.f32 %v4703_v18, %v4735_v40  ;;  %v4701_v30 = vld [vmem:[#allocation3 + $0x80] ss:$2 sm:$0xff]  ;;  %v4733_v1 = vld [vmem:[#allocation3 + $0x81] ss:$2 sm:$0xff]  ;;  %4676 = vst.msk [vmem:[#allocation3 + $0xb8] sm:$0xff] %vm4652_vm1, %v4643_v57  ;;  %v4518_v61 = vpop.f32.mrb[9].mxu1 }
 0x43c   : > { %v4756_v62 = vmax.f32 %v4701_v30, %v4733_v1  ;;  %4674 = vst.msk [vmem:[#allocation3 + $0xa8] sm:$0xff] %vm4652_vm1, %v4641_v58  ;;  %v5823_v37 = vadd.f32 %v4518_v61, %v7196_v4  ;;  %v5789_v46 = vpop.f32.mrb[10].mxu1  ;;  %v4614_v22 = vadd.f32 %v5822_v54, %v7291_v34 }
 0x43d   : > { %v5824_v63 = vadd.f32 %v5789_v46, %v7198_v16  ;;  %v4521_v26 = vpop.f32.mrb[11].mxu1 }
 0x43e   : > { %v4768_v28 = vmax.f32 %v4756_v62, %v4757_v0  ;;  %v4612_v29 = vadd.f32 %v5823_v37, %v7291_v34  ;;  %v5825_v39 = vadd.f32 %v4521_v26, %v7200_v17  ;;  %v4646_v31 = vmax.f32 %v4614_v22, 0.0 }
 0x43f   : > { %v4615_v10 = vadd.f32 %v5824_v63, %v7291_v34 }
 0x440   : > { %4776 = vst.msk [vmem:[%s7323_s30 + $0x20] sm:$0xff] %vm4652_vm1, %v4768_v28  ;;  %v4644_v47 = vmax.f32 %v4612_v29, 0.0  ;;  %v4613_v50 = vadd.f32 %v5825_v39, %v7291_v34  ;;  %4679 = vst.msk [vmem:[#allocation3 + $0xd0] sm:$0xff] %vm4652_vm1, %v4646_v31 }
 0x441   : > { %v4647_v4 = vmax.f32 %v4615_v10, 0.0  ;;  %v5792_v45 = vpop.f32.mrb[12].mxu1 }
 0x442   : > { %v4707_v33 = vld [vmem:[#allocation3 + $0xb0] ss:$2 sm:$0xff]  ;;  %v4739_v15 = vld [vmem:[#allocation3 + $0xb1] ss:$2 sm:$0xff]  ;;  %4677 = vst.msk [vmem:[#allocation3 + $0xc0] sm:$0xff] %vm4652_vm1, %v4644_v47  ;;  %v4645_v16 = vmax.f32 %v4613_v50, 0.0  ;;  %v5826_v3 = vadd.f32 %v5792_v45, %v7206_v25 }
 0x443   : > { %v4759_v6 = vmax.f32 %v4707_v33, %v4739_v15  ;;  %v4705_v27 = vld [vmem:[#allocation3 + $0xa0] ss:$2 sm:$0xff]  ;;  %v4737_v17 = vld [vmem:[#allocation3 + $0xa1] ss:$2 sm:$0xff]  ;;  %4680 = vst.msk [vmem:[#allocation3 + $0xd8] sm:$0xff] %vm4652_vm1, %v4647_v4  ;;  %v4534_v56 = vpop.f32.mrb[13].mxu1 }
 0x444   : > { %v4758_v32 = vmax.f32 %v4705_v27, %v4737_v17  ;;  %4678 = vst.msk [vmem:[#allocation3 + $0xc8] sm:$0xff] %vm4652_vm1, %v4645_v16  ;;  %v5827_v59 = vadd.f32 %v4534_v56, %v7208_v41  ;;  %v5793_v60 = vpop.f32.mrb[14].mxu1  ;;  %v4618_v35 = vadd.f32 %v5826_v3, %v7291_v34 }
 0x445   : > { %v5828_v9 = vadd.f32 %v5793_v60, %v7210_v49  ;;  %v4537_v42 = vpop.f32.mrb[15].mxu1 }
 0x446   : > { %v4769_v44 = vmax.f32 %v4758_v32, %v4759_v6  ;;  %v4616_v13 = vadd.f32 %v5827_v59, %v7291_v34  ;;  %v5829_v11 = vadd.f32 %v4537_v42, %v7212_v5  ;;  %v4650_v8 = vmax.f32 %v4618_v35, 0.0 }
 0x447   : > { %v4619_v25 = vadd.f32 %v5828_v9, %v7291_v34 }
 0x448   : > { %4777 = vst.msk [vmem:[%s7323_s30 + $0x28] sm:$0xff] %vm4652_vm1, %v4769_v44  ;;  %v4648_v51 = vmax.f32 %v4616_v13, 0.0  ;;  %v4617_v41 = vadd.f32 %v5829_v11, %v7291_v34  ;;  %4683 = vst.msk [vmem:[#allocation3 + $0xf0] sm:$0xff] %vm4652_vm1, %v4650_v8 }
 0x449   : > { %v4651_v12 = vmax.f32 %v4619_v25, 0.0 }
 0x44a   : > { %v4711_v43 = vld [vmem:[#allocation3 + $0xd0] ss:$2 sm:$0xff]  ;;  %v4743_v49 = vld [vmem:[#allocation3 + $0xd1] ss:$2 sm:$0xff]  ;;  %4681 = vst.msk [vmem:[#allocation3 + $0xe0] sm:$0xff] %vm4652_vm1, %v4648_v51  ;;  %v4649_v2 = vmax.f32 %v4617_v41, 0.0 }
 0x44b   : > { %v4761_v19 = vmax.f32 %v4711_v43, %v4743_v49  ;;  %v4709_v5 = vld [vmem:[#allocation3 + $0xc0] ss:$2 sm:$0xff]  ;;  %v4741_v55 = vld [vmem:[#allocation3 + $0xc1] ss:$2 sm:$0xff]  ;;  %4684 = vst.msk [vmem:[#allocation3 + $0xf8] sm:$0xff] %vm4652_vm1, %v4651_v12 }
 0x44c   : > { %v4760_v14 = vmax.f32 %v4709_v5, %v4741_v55  ;;  %4682 = vst.msk [vmem:[#allocation3 + $0xe8] sm:$0xff] %vm4652_vm1, %v4649_v2 }
 0x44e   : > { %v4770_v20 = vmax.f32 %v4760_v14, %v4761_v19 }
 0x450   : > { %4778 = vst.msk [vmem:[%s7323_s30 + $0x30] sm:$0xff] %vm4652_vm1, %v4770_v20 }
 0x452   : > { %v4715_v34 = vld [vmem:[#allocation3 + $0xf0] ss:$2 sm:$0xff]  ;;  %v4747_v48 = vld [vmem:[#allocation3 + $0xf1] ss:$2 sm:$0xff] }
 0x453   : > { %v4763_v36 = vmax.f32 %v4715_v34, %v4747_v48  ;;  %v4713_v7 = vld [vmem:[#allocation3 + $0xe0] ss:$2 sm:$0xff]  ;;  %v4745_v21 = vld [vmem:[#allocation3 + $0xe1] ss:$2 sm:$0xff] }
 0x454   : > { %v4762_v23 = vmax.f32 %v4713_v7, %v4745_v21 }
 0x456   : > { %v4771_v52 = vmax.f32 %v4762_v23, %v4763_v36 }
 0x458   : > { %4779 = vst.msk [vmem:[%s7323_s30 + $0x38] sm:$0xff] %vm4652_vm1, %v4771_v52 }
 0x459 PF: > { %s15_s18 = sadd.s32 1, %s6092_s18  }
 0x45a   : > { %p12_p4 = scmp.ge.s32.totalorder %s15_s18, 4  }
 0x45c   :  { %14 = sbr.rel (!%p12_p4) target bundleno = 1 (0x1), region = 238 }

// kernel: simple_cnn_forward.3
= control target key start
LH: loop header
LB: loop body
LE: loop exit
PB: predicated region body
PF: predicated region fallthrough
CT: control target
= control target key end

     0   :  { %s8513_s15 = smov 0   ;;  %s8515_s16 = smov 0   ;;  %s9964_s0 = inlined_call_operand.vmem [shape: f32[2,4096], index: 0, kind: input, shape index: {}]   ;;  %s9965_s1 = inlined_call_operand.vmem [shape: bf16[4096,256], index: 1, kind: input, shape index: {}]   ;;  %s9966_s2 = inlined_call_operand.vmem [shape: f32[1,256], index: 2, kind: input, shape index: {}]   ;;  %s9967_s3 = inlined_call_operand.vmem [shape: bf16[256,10], index: 3, kind: input, shape index: {}]   ;;  %s9968_s4 = inlined_call_operand.vmem [shape: f32[2,2,10], index: 4, kind: output, shape index: {}]  }
   0x1   :  { %s8517_s17 = smov 0  }
   0x2 LB: > { %s8529_s18 = sadd.s32 4294967295, %s8483_s17   ;;  %s8532_s19 = sadd.s32 1, %s8483_s17   ;;  %s8483_s17 = sphi %s8517_s17, %s9971_s17   ;;  %s8479_s16 = sphi %s8515_s16, %s9970_s16   ;;  %s8475_s15 = sphi %s8513_s15, %s9969_s15  }
   0x3   : > { %s39_s20 = ssub.s32 %s8483_s17, %s8532_s19  ;;  %s42_s21 = sadd.s32 1, %s8479_s16 }
   0x4   : > { %p40_p0 = scmp.eq.s32.totalorder %s39_s20, 0  ;;  %p49_p1 = scmp.ne.s32.totalorder %s8479_s16, %s8475_s15 }
   0x5   : > { %p50_p2 = scmp.eq.s32.totalorder %s8483_s17, 0  ;;  %p7506_p4 = scmp.ge.s32.totalorder %s8483_s17, 2 }
   0x6   : > { %s8541_s22 = scalar_select %p40_p0, %s8479_s16, %s42_s21  }
   0x7   : > { %p51_p3 = por %p50_p2, %p49_p1  ;;  %156 = sbr.rel (%p7506_p4) target bundleno = 359 (0x167), region = 20 }
   0xe   : > { %159 = sbr.rel (!%p51_p3) target bundleno = 359 (0x167), region = 24  ;;  %s161_s23 = sand.u32 (%p51_p3), 1, %s8479_s16  }
   0xf   : > { %s7508_s24 = sshll.u32 (%p51_p3), %s8483_s17, 2  ;;  %s7507_s25 = sshll.u32 (%p51_p3), %s161_s23, 11 }
  0x10   : > { %s8549_s28 = scalar_lea.vmem (%p51_p3), %s9965_s1, %s7508_s24  ;;  %s8553_s29 = scalar_lea.vmem (%p51_p3), [#allocation2], %s7507_s25 }
  0x11   : > { %v181_v0 = vld [vmem:[%s8549_s28] sm:$0xf] (%p51_p3)  ;;  %v183_v1 = vld [vmem:[%s8549_s28 + $0x8] sm:$0xf] (%p51_p3)  ;;  %v185_v2 = vld [vmem:[%s8549_s28 + $0x10] sm:$0xf] (%p51_p3) }
  0x12   : > { %182 = vst [vmem:[%s8553_s29] sm:$0xf] (%p51_p3), %v181_v0  ;;  %184 = vst [vmem:[%s8553_s29 + $0x4] sm:$0xf] (%p51_p3), %v183_v1  ;;  %v187_v3 = vld [vmem:[%s8549_s28 + $0x18] sm:$0xf] (%p51_p3) }
  0x13   : > { %v189_v4 = vld [vmem:[%s8549_s28 + $0x20] sm:$0xf] (%p51_p3)  ;;  %186 = vst [vmem:[%s8553_s29 + $0x8] sm:$0xf] (%p51_p3), %v185_v2  ;;  %188 = vst [vmem:[%s8553_s29 + $0xc] sm:$0xf] (%p51_p3), %v187_v3 }
  0x14   : > { %190 = vst [vmem:[%s8553_s29 + $0x10] sm:$0xf] (%p51_p3), %v189_v4  ;;  %v191_v5 = vld [vmem:[%s8549_s28 + $0x28] sm:$0xf] (%p51_p3)  ;;  %v193_v6 = vld [vmem:[%s8549_s28 + $0x30] sm:$0xf] (%p51_p3) }
  0x15   : > { %v195_v7 = vld [vmem:[%s8549_s28 + $0x38] sm:$0xf]  ;;  %192 = vst [vmem:[%s8553_s29 + $0x14] sm:$0xf] %v191_v5  ;;  %194 = vst [vmem:[%s8553_s29 + $0x18] sm:$0xf] %v193_v6 }
  0x16   : > { %196 = vst [vmem:[%s8553_s29 + $0x1c] sm:$0xf] %v195_v7  ;;  %v197_v8 = vld [vmem:[%s8549_s28 + $0x40] sm:$0xf]  ;;  %v199_v9 = vld [vmem:[%s8549_s28 + $0x48] sm:$0xf] }
  0x17   : > { %v201_v10 = vld [vmem:[%s8549_s28 + $0x50] sm:$0xf]  ;;  %198 = vst [vmem:[%s8553_s29 + $0x20] sm:$0xf] %v197_v8  ;;  %200 = vst [vmem:[%s8553_s29 + $0x24] sm:$0xf] %v199_v9 }
  0x18   : > { %202 = vst [vmem:[%s8553_s29 + $0x28] sm:$0xf] %v201_v10  ;;  %v203_v11 = vld [vmem:[%s8549_s28 + $0x58] sm:$0xf]  ;;  %v205_v12 = vld [vmem:[%s8549_s28 + $0x60] sm:$0xf] }
  0x19   : > { %v207_v13 = vld [vmem:[%s8549_s28 + $0x68] sm:$0xf]  ;;  %204 = vst [vmem:[%s8553_s29 + $0x2c] sm:$0xf] %v203_v11  ;;  %206 = vst [vmem:[%s8553_s29 + $0x30] sm:$0xf] %v205_v12 }
  0x1a   : > { %208 = vst [vmem:[%s8553_s29 + $0x34] sm:$0xf] %v207_v13  ;;  %v209_v14 = vld [vmem:[%s8549_s28 + $0x70] sm:$0xf]  ;;  %v211_v15 = vld [vmem:[%s8549_s28 + $0x78] sm:$0xf] }
  0x1b   : > { %v213_v16 = vld [vmem:[%s8549_s28 + $0x80] sm:$0xf]  ;;  %210 = vst [vmem:[%s8553_s29 + $0x38] sm:$0xf] %v209_v14  ;;  %212 = vst [vmem:[%s8553_s29 + $0x3c] sm:$0xf] %v211_v15 }
  0x1c   : > { %214 = vst [vmem:[%s8553_s29 + $0x40] sm:$0xf] %v213_v16  ;;  %v215_v17 = vld [vmem:[%s8549_s28 + $0x88] sm:$0xf]  ;;  %v217_v18 = vld [vmem:[%s8549_s28 + $0x90] sm:$0xf] }
  0x1d   : > { %v219_v19 = vld [vmem:[%s8549_s28 + $0x98] sm:$0xf]  ;;  %216 = vst [vmem:[%s8553_s29 + $0x44] sm:$0xf] %v215_v17  ;;  %218 = vst [vmem:[%s8553_s29 + $0x48] sm:$0xf] %v217_v18 }
  0x1e   : > { %220 = vst [vmem:[%s8553_s29 + $0x4c] sm:$0xf] %v219_v19  ;;  %v221_v20 = vld [vmem:[%s8549_s28 + $0xa0] sm:$0xf]  ;;  %v223_v21 = vld [vmem:[%s8549_s28 + $0xa8] sm:$0xf] }
  0x1f   : > { %v225_v22 = vld [vmem:[%s8549_s28 + $0xb0] sm:$0xf]  ;;  %222 = vst [vmem:[%s8553_s29 + $0x50] sm:$0xf] %v221_v20  ;;  %224 = vst [vmem:[%s8553_s29 + $0x54] sm:$0xf] %v223_v21 }
  0x20   : > { %226 = vst [vmem:[%s8553_s29 + $0x58] sm:$0xf] %v225_v22  ;;  %v227_v23 = vld [vmem:[%s8549_s28 + $0xb8] sm:$0xf]  ;;  %v229_v24 = vld [vmem:[%s8549_s28 + $0xc0] sm:$0xf] }
  0x21   : > { %v231_v25 = vld [vmem:[%s8549_s28 + $0xc8] sm:$0xf]  ;;  %228 = vst [vmem:[%s8553_s29 + $0x5c] sm:$0xf] %v227_v23  ;;  %230 = vst [vmem:[%s8553_s29 + $0x60] sm:$0xf] %v229_v24 }
  0x22   : > { %232 = vst [vmem:[%s8553_s29 + $0x64] sm:$0xf] %v231_v25  ;;  %v233_v26 = vld [vmem:[%s8549_s28 + $0xd0] sm:$0xf]  ;;  %v235_v27 = vld [vmem:[%s8549_s28 + $0xd8] sm:$0xf] }
  0x23   : > { %v237_v28 = vld [vmem:[%s8549_s28 + $0xe0] sm:$0xf]  ;;  %234 = vst [vmem:[%s8553_s29 + $0x68] sm:$0xf] %v233_v26  ;;  %236 = vst [vmem:[%s8553_s29 + $0x6c] sm:$0xf] %v235_v27 }
  0x24   : > { %238 = vst [vmem:[%s8553_s29 + $0x70] sm:$0xf] %v237_v28  ;;  %v239_v29 = vld [vmem:[%s8549_s28 + $0xe8] sm:$0xf]  ;;  %v241_v30 = vld [vmem:[%s8549_s28 + $0xf0] sm:$0xf] }
  0x25   : > { %v243_v31 = vld [vmem:[%s8549_s28 + $0xf8] sm:$0xf]  ;;  %240 = vst [vmem:[%s8553_s29 + $0x74] sm:$0xf] %v239_v29  ;;  %242 = vst [vmem:[%s8553_s29 + $0x78] sm:$0xf] %v241_v30 }
  0x26   : > { %244 = vst [vmem:[%s8553_s29 + $0x7c] sm:$0xf] %v243_v31  ;;  %v245_v32 = vld [vmem:[%s8549_s28 + $0x100] sm:$0xf]  ;;  %v247_v33 = vld [vmem:[%s8549_s28 + $0x108] sm:$0xf] }
  0x27   : > { %v249_v34 = vld [vmem:[%s8549_s28 + $0x110] sm:$0xf]  ;;  %246 = vst [vmem:[%s8553_s29 + $0x80] sm:$0xf] %v245_v32  ;;  %248 = vst [vmem:[%s8553_s29 + $0x84] sm:$0xf] %v247_v33 }
  0x28   : > { %250 = vst [vmem:[%s8553_s29 + $0x88] sm:$0xf] %v249_v34  ;;  %v251_v35 = vld [vmem:[%s8549_s28 + $0x118] sm:$0xf]  ;;  %v253_v36 = vld [vmem:[%s8549_s28 + $0x120] sm:$0xf] }
  0x29   : > { %v255_v37 = vld [vmem:[%s8549_s28 + $0x128] sm:$0xf]  ;;  %252 = vst [vmem:[%s8553_s29 + $0x8c] sm:$0xf] %v251_v35  ;;  %254 = vst [vmem:[%s8553_s29 + $0x90] sm:$0xf] %v253_v36 }
  0x2a   : > { %256 = vst [vmem:[%s8553_s29 + $0x94] sm:$0xf] %v255_v37  ;;  %v257_v38 = vld [vmem:[%s8549_s28 + $0x130] sm:$0xf]  ;;  %v259_v39 = vld [vmem:[%s8549_s28 + $0x138] sm:$0xf] }
  0x2b   : > { %v261_v40 = vld [vmem:[%s8549_s28 + $0x140] sm:$0xf]  ;;  %258 = vst [vmem:[%s8553_s29 + $0x98] sm:$0xf] %v257_v38  ;;  %260 = vst [vmem:[%s8553_s29 + $0x9c] sm:$0xf] %v259_v39 }
  0x2c   : > { %262 = vst [vmem:[%s8553_s29 + $0xa0] sm:$0xf] %v261_v40  ;;  %v263_v41 = vld [vmem:[%s8549_s28 + $0x148] sm:$0xf]  ;;  %v265_v42 = vld [vmem:[%s8549_s28 + $0x150] sm:$0xf] }
  0x2d   : > { %v267_v43 = vld [vmem:[%s8549_s28 + $0x158] sm:$0xf]  ;;  %264 = vst [vmem:[%s8553_s29 + $0xa4] sm:$0xf] %v263_v41  ;;  %266 = vst [vmem:[%s8553_s29 + $0xa8] sm:$0xf] %v265_v42 }
  0x2e   : > { %268 = vst [vmem:[%s8553_s29 + $0xac] sm:$0xf] %v267_v43  ;;  %v269_v44 = vld [vmem:[%s8549_s28 + $0x160] sm:$0xf]  ;;  %v271_v45 = vld [vmem:[%s8549_s28 + $0x168] sm:$0xf] }
  0x2f   : > { %v273_v46 = vld [vmem:[%s8549_s28 + $0x170] sm:$0xf]  ;;  %270 = vst [vmem:[%s8553_s29 + $0xb0] sm:$0xf] %v269_v44  ;;  %272 = vst [vmem:[%s8553_s29 + $0xb4] sm:$0xf] %v271_v45 }
  0x30   : > { %274 = vst [vmem:[%s8553_s29 + $0xb8] sm:$0xf] %v273_v46  ;;  %v275_v47 = vld [vmem:[%s8549_s28 + $0x178] sm:$0xf]  ;;  %v277_v48 = vld [vmem:[%s8549_s28 + $0x180] sm:$0xf] }
  0x31   : > { %v279_v49 = vld [vmem:[%s8549_s28 + $0x188] sm:$0xf]  ;;  %276 = vst [vmem:[%s8553_s29 + $0xbc] sm:$0xf] %v275_v47  ;;  %278 = vst [vmem:[%s8553_s29 + $0xc0] sm:$0xf] %v277_v48 }
  0x32   : > { %280 = vst [vmem:[%s8553_s29 + $0xc4] sm:$0xf] %v279_v49  ;;  %v281_v50 = vld [vmem:[%s8549_s28 + $0x190] sm:$0xf]  ;;  %v283_v51 = vld [vmem:[%s8549_s28 + $0x198] sm:$0xf] }
  0x33   : > { %v285_v52 = vld [vmem:[%s8549_s28 + $0x1a0] sm:$0xf]  ;;  %282 = vst [vmem:[%s8553_s29 + $0xc8] sm:$0xf] %v281_v50  ;;  %284 = vst [vmem:[%s8553_s29 + $0xcc] sm:$0xf] %v283_v51 }
  0x34   : > { %286 = vst [vmem:[%s8553_s29 + $0xd0] sm:$0xf] %v285_v52  ;;  %v287_v53 = vld [vmem:[%s8549_s28 + $0x1a8] sm:$0xf]  ;;  %v289_v54 = vld [vmem:[%s8549_s28 + $0x1b0] sm:$0xf] }
  0x35   : > { %v291_v55 = vld [vmem:[%s8549_s28 + $0x1b8] sm:$0xf]  ;;  %288 = vst [vmem:[%s8553_s29 + $0xd4] sm:$0xf] %v287_v53  ;;  %290 = vst [vmem:[%s8553_s29 + $0xd8] sm:$0xf] %v289_v54 }
  0x36   : > { %292 = vst [vmem:[%s8553_s29 + $0xdc] sm:$0xf] %v291_v55  ;;  %v293_v56 = vld [vmem:[%s8549_s28 + $0x1c0] sm:$0xf]  ;;  %v295_v57 = vld [vmem:[%s8549_s28 + $0x1c8] sm:$0xf] }
  0x37   : > { %v297_v58 = vld [vmem:[%s8549_s28 + $0x1d0] sm:$0xf]  ;;  %294 = vst [vmem:[%s8553_s29 + $0xe0] sm:$0xf] %v293_v56  ;;  %296 = vst [vmem:[%s8553_s29 + $0xe4] sm:$0xf] %v295_v57 }
  0x38   : > { %298 = vst [vmem:[%s8553_s29 + $0xe8] sm:$0xf] %v297_v58  ;;  %v299_v59 = vld [vmem:[%s8549_s28 + $0x1d8] sm:$0xf]  ;;  %v301_v60 = vld [vmem:[%s8549_s28 + $0x1e0] sm:$0xf] }
  0x39   : > { %v303_v61 = vld [vmem:[%s8549_s28 + $0x1e8] sm:$0xf]  ;;  %300 = vst [vmem:[%s8553_s29 + $0xec] sm:$0xf] %v299_v59  ;;  %302 = vst [vmem:[%s8553_s29 + $0xf0] sm:$0xf] %v301_v60 }
  0x3a   : > { %304 = vst [vmem:[%s8553_s29 + $0xf4] sm:$0xf] %v303_v61  ;;  %v305_v62 = vld [vmem:[%s8549_s28 + $0x1f0] sm:$0xf]  ;;  %v307_v63 = vld [vmem:[%s8549_s28 + $0x1f8] sm:$0xf] }
  0x3b   : > { %v309_v0 = vld [vmem:[%s8549_s28 + $0x200] sm:$0xf]  ;;  %306 = vst [vmem:[%s8553_s29 + $0xf8] sm:$0xf] %v305_v62  ;;  %308 = vst [vmem:[%s8553_s29 + $0xfc] sm:$0xf] %v307_v63 }
  0x3c   : > { %310 = vst [vmem:[%s8553_s29 + $0x100] sm:$0xf] %v309_v0  ;;  %v311_v1 = vld [vmem:[%s8549_s28 + $0x208] sm:$0xf]  ;;  %v313_v2 = vld [vmem:[%s8549_s28 + $0x210] sm:$0xf] }
  0x3d   : > { %v315_v3 = vld [vmem:[%s8549_s28 + $0x218] sm:$0xf]  ;;  %312 = vst [vmem:[%s8553_s29 + $0x104] sm:$0xf] %v311_v1  ;;  %314 = vst [vmem:[%s8553_s29 + $0x108] sm:$0xf] %v313_v2 }
  0x3e   : > { %316 = vst [vmem:[%s8553_s29 + $0x10c] sm:$0xf] %v315_v3  ;;  %v317_v4 = vld [vmem:[%s8549_s28 + $0x220] sm:$0xf]  ;;  %v319_v5 = vld [vmem:[%s8549_s28 + $0x228] sm:$0xf] }
  0x3f   : > { %v321_v6 = vld [vmem:[%s8549_s28 + $0x230] sm:$0xf]  ;;  %318 = vst [vmem:[%s8553_s29 + $0x110] sm:$0xf] %v317_v4  ;;  %320 = vst [vmem:[%s8553_s29 + $0x114] sm:$0xf] %v319_v5 }
  0x40   : > { %322 = vst [vmem:[%s8553_s29 + $0x118] sm:$0xf] %v321_v6  ;;  %v323_v7 = vld [vmem:[%s8549_s28 + $0x238] sm:$0xf]  ;;  %v325_v8 = vld [vmem:[%s8549_s28 + $0x240] sm:$0xf] }
  0x41   : > { %v327_v9 = vld [vmem:[%s8549_s28 + $0x248] sm:$0xf]  ;;  %324 = vst [vmem:[%s8553_s29 + $0x11c] sm:$0xf] %v323_v7  ;;  %326 = vst [vmem:[%s8553_s29 + $0x120] sm:$0xf] %v325_v8 }
  0x42   : > { %328 = vst [vmem:[%s8553_s29 + $0x124] sm:$0xf] %v327_v9  ;;  %v329_v10 = vld [vmem:[%s8549_s28 + $0x250] sm:$0xf]  ;;  %v331_v11 = vld [vmem:[%s8549_s28 + $0x258] sm:$0xf] }
  0x43   : > { %v333_v12 = vld [vmem:[%s8549_s28 + $0x260] sm:$0xf]  ;;  %330 = vst [vmem:[%s8553_s29 + $0x128] sm:$0xf] %v329_v10  ;;  %332 = vst [vmem:[%s8553_s29 + $0x12c] sm:$0xf] %v331_v11 }
  0x44   : > { %334 = vst [vmem:[%s8553_s29 + $0x130] sm:$0xf] %v333_v12  ;;  %v335_v13 = vld [vmem:[%s8549_s28 + $0x268] sm:$0xf]  ;;  %v337_v14 = vld [vmem:[%s8549_s28 + $0x270] sm:$0xf] }
  0x45   : > { %v339_v15 = vld [vmem:[%s8549_s28 + $0x278] sm:$0xf]  ;;  %336 = vst [vmem:[%s8553_s29 + $0x134] sm:$0xf] %v335_v13  ;;  %338 = vst [vmem:[%s8553_s29 + $0x138] sm:$0xf] %v337_v14 }
  0x46   : > { %340 = vst [vmem:[%s8553_s29 + $0x13c] sm:$0xf] %v339_v15  ;;  %v341_v16 = vld [vmem:[%s8549_s28 + $0x280] sm:$0xf]  ;;  %v343_v17 = vld [vmem:[%s8549_s28 + $0x288] sm:$0xf] }
  0x47   : > { %v345_v18 = vld [vmem:[%s8549_s28 + $0x290] sm:$0xf]  ;;  %342 = vst [vmem:[%s8553_s29 + $0x140] sm:$0xf] %v341_v16  ;;  %344 = vst [vmem:[%s8553_s29 + $0x144] sm:$0xf] %v343_v17 }
  0x48   : > { %346 = vst [vmem:[%s8553_s29 + $0x148] sm:$0xf] %v345_v18  ;;  %v347_v19 = vld [vmem:[%s8549_s28 + $0x298] sm:$0xf]  ;;  %v349_v20 = vld [vmem:[%s8549_s28 + $0x2a0] sm:$0xf] }
  0x49   : > { %v351_v21 = vld [vmem:[%s8549_s28 + $0x2a8] sm:$0xf]  ;;  %348 = vst [vmem:[%s8553_s29 + $0x14c] sm:$0xf] %v347_v19  ;;  %350 = vst [vmem:[%s8553_s29 + $0x150] sm:$0xf] %v349_v20 }
  0x4a   : > { %352 = vst [vmem:[%s8553_s29 + $0x154] sm:$0xf] %v351_v21  ;;  %v353_v22 = vld [vmem:[%s8549_s28 + $0x2b0] sm:$0xf]  ;;  %v355_v23 = vld [vmem:[%s8549_s28 + $0x2b8] sm:$0xf] }
  0x4b   : > { %v357_v24 = vld [vmem:[%s8549_s28 + $0x2c0] sm:$0xf]  ;;  %354 = vst [vmem:[%s8553_s29 + $0x158] sm:$0xf] %v353_v22  ;;  %356 = vst [vmem:[%s8553_s29 + $0x15c] sm:$0xf] %v355_v23 }
  0x4c   : > { %358 = vst [vmem:[%s8553_s29 + $0x160] sm:$0xf] %v357_v24  ;;  %v359_v25 = vld [vmem:[%s8549_s28 + $0x2c8] sm:$0xf]  ;;  %v361_v26 = vld [vmem:[%s8549_s28 + $0x2d0] sm:$0xf] }
  0x4d   : > { %v363_v27 = vld [vmem:[%s8549_s28 + $0x2d8] sm:$0xf]  ;;  %360 = vst [vmem:[%s8553_s29 + $0x164] sm:$0xf] %v359_v25  ;;  %362 = vst [vmem:[%s8553_s29 + $0x168] sm:$0xf] %v361_v26 }
  0x4e   : > { %364 = vst [vmem:[%s8553_s29 + $0x16c] sm:$0xf] %v363_v27  ;;  %v365_v28 = vld [vmem:[%s8549_s28 + $0x2e0] sm:$0xf]  ;;  %v367_v29 = vld [vmem:[%s8549_s28 + $0x2e8] sm:$0xf] }
  0x4f   : > { %v369_v30 = vld [vmem:[%s8549_s28 + $0x2f0] sm:$0xf]  ;;  %366 = vst [vmem:[%s8553_s29 + $0x170] sm:$0xf] %v365_v28  ;;  %368 = vst [vmem:[%s8553_s29 + $0x174] sm:$0xf] %v367_v29 }
  0x50   : > { %370 = vst [vmem:[%s8553_s29 + $0x178] sm:$0xf] %v369_v30  ;;  %v371_v31 = vld [vmem:[%s8549_s28 + $0x2f8] sm:$0xf]  ;;  %v373_v32 = vld [vmem:[%s8549_s28 + $0x300] sm:$0xf] }
  0x51   : > { %v375_v33 = vld [vmem:[%s8549_s28 + $0x308] sm:$0xf]  ;;  %372 = vst [vmem:[%s8553_s29 + $0x17c] sm:$0xf] %v371_v31  ;;  %374 = vst [vmem:[%s8553_s29 + $0x180] sm:$0xf] %v373_v32 }
  0x52   : > { %376 = vst [vmem:[%s8553_s29 + $0x184] sm:$0xf] %v375_v33  ;;  %v377_v34 = vld [vmem:[%s8549_s28 + $0x310] sm:$0xf]  ;;  %v379_v35 = vld [vmem:[%s8549_s28 + $0x318] sm:$0xf] }
  0x53   : > { %v381_v36 = vld [vmem:[%s8549_s28 + $0x320] sm:$0xf]  ;;  %378 = vst [vmem:[%s8553_s29 + $0x188] sm:$0xf] %v377_v34  ;;  %380 = vst [vmem:[%s8553_s29 + $0x18c] sm:$0xf] %v379_v35 }
  0x54   : > { %382 = vst [vmem:[%s8553_s29 + $0x190] sm:$0xf] %v381_v36  ;;  %v383_v37 = vld [vmem:[%s8549_s28 + $0x328] sm:$0xf]  ;;  %v385_v38 = vld [vmem:[%s8549_s28 + $0x330] sm:$0xf] }
  0x55   : > { %v387_v39 = vld [vmem:[%s8549_s28 + $0x338] sm:$0xf]  ;;  %384 = vst [vmem:[%s8553_s29 + $0x194] sm:$0xf] %v383_v37  ;;  %386 = vst [vmem:[%s8553_s29 + $0x198] sm:$0xf] %v385_v38 }
  0x56   : > { %388 = vst [vmem:[%s8553_s29 + $0x19c] sm:$0xf] %v387_v39  ;;  %v389_v40 = vld [vmem:[%s8549_s28 + $0x340] sm:$0xf]  ;;  %v391_v41 = vld [vmem:[%s8549_s28 + $0x348] sm:$0xf] }
  0x57   : > { %v393_v42 = vld [vmem:[%s8549_s28 + $0x350] sm:$0xf]  ;;  %390 = vst [vmem:[%s8553_s29 + $0x1a0] sm:$0xf] %v389_v40  ;;  %392 = vst [vmem:[%s8553_s29 + $0x1a4] sm:$0xf] %v391_v41 }
  0x58   : > { %394 = vst [vmem:[%s8553_s29 + $0x1a8] sm:$0xf] %v393_v42  ;;  %v395_v43 = vld [vmem:[%s8549_s28 + $0x358] sm:$0xf]  ;;  %v397_v44 = vld [vmem:[%s8549_s28 + $0x360] sm:$0xf] }
  0x59   : > { %v399_v45 = vld [vmem:[%s8549_s28 + $0x368] sm:$0xf]  ;;  %396 = vst [vmem:[%s8553_s29 + $0x1ac] sm:$0xf] %v395_v43  ;;  %398 = vst [vmem:[%s8553_s29 + $0x1b0] sm:$0xf] %v397_v44 }
  0x5a   : > { %400 = vst [vmem:[%s8553_s29 + $0x1b4] sm:$0xf] %v399_v45  ;;  %v401_v46 = vld [vmem:[%s8549_s28 + $0x370] sm:$0xf]  ;;  %v403_v47 = vld [vmem:[%s8549_s28 + $0x378] sm:$0xf] }
  0x5b   : > { %v405_v48 = vld [vmem:[%s8549_s28 + $0x380] sm:$0xf]  ;;  %402 = vst [vmem:[%s8553_s29 + $0x1b8] sm:$0xf] %v401_v46  ;;  %404 = vst [vmem:[%s8553_s29 + $0x1bc] sm:$0xf] %v403_v47 }
  0x5c   : > { %406 = vst [vmem:[%s8553_s29 + $0x1c0] sm:$0xf] %v405_v48  ;;  %v407_v49 = vld [vmem:[%s8549_s28 + $0x388] sm:$0xf]  ;;  %v409_v50 = vld [vmem:[%s8549_s28 + $0x390] sm:$0xf] }
  0x5d   : > { %v411_v51 = vld [vmem:[%s8549_s28 + $0x398] sm:$0xf]  ;;  %408 = vst [vmem:[%s8553_s29 + $0x1c4] sm:$0xf] %v407_v49  ;;  %410 = vst [vmem:[%s8553_s29 + $0x1c8] sm:$0xf] %v409_v50 }
  0x5e   : > { %412 = vst [vmem:[%s8553_s29 + $0x1cc] sm:$0xf] %v411_v51  ;;  %v413_v52 = vld [vmem:[%s8549_s28 + $0x3a0] sm:$0xf]  ;;  %v415_v53 = vld [vmem:[%s8549_s28 + $0x3a8] sm:$0xf] }
  0x5f   : > { %v417_v54 = vld [vmem:[%s8549_s28 + $0x3b0] sm:$0xf]  ;;  %414 = vst [vmem:[%s8553_s29 + $0x1d0] sm:$0xf] %v413_v52  ;;  %416 = vst [vmem:[%s8553_s29 + $0x1d4] sm:$0xf] %v415_v53 }
  0x60   : > { %418 = vst [vmem:[%s8553_s29 + $0x1d8] sm:$0xf] %v417_v54  ;;  %v419_v55 = vld [vmem:[%s8549_s28 + $0x3b8] sm:$0xf]  ;;  %v421_v56 = vld [vmem:[%s8549_s28 + $0x3c0] sm:$0xf] }
  0x61   : > { %v423_v57 = vld [vmem:[%s8549_s28 + $0x3c8] sm:$0xf]  ;;  %420 = vst [vmem:[%s8553_s29 + $0x1dc] sm:$0xf] %v419_v55  ;;  %422 = vst [vmem:[%s8553_s29 + $0x1e0] sm:$0xf] %v421_v56 }
  0x62   : > { %424 = vst [vmem:[%s8553_s29 + $0x1e4] sm:$0xf] %v423_v57  ;;  %v425_v58 = vld [vmem:[%s8549_s28 + $0x3d0] sm:$0xf]  ;;  %v427_v59 = vld [vmem:[%s8549_s28 + $0x3d8] sm:$0xf] }
  0x63   : > { %v429_v60 = vld [vmem:[%s8549_s28 + $0x3e0] sm:$0xf]  ;;  %426 = vst [vmem:[%s8553_s29 + $0x1e8] sm:$0xf] %v425_v58  ;;  %428 = vst [vmem:[%s8553_s29 + $0x1ec] sm:$0xf] %v427_v59 }
  0x64   : > { %430 = vst [vmem:[%s8553_s29 + $0x1f0] sm:$0xf] %v429_v60  ;;  %v431_v61 = vld [vmem:[%s8549_s28 + $0x3e8] sm:$0xf]  ;;  %v433_v62 = vld [vmem:[%s8549_s28 + $0x3f0] sm:$0xf] }
  0x65   : > { %v435_v63 = vld [vmem:[%s8549_s28 + $0x3f8] sm:$0xf]  ;;  %432 = vst [vmem:[%s8553_s29 + $0x1f4] sm:$0xf] %v431_v61  ;;  %434 = vst [vmem:[%s8553_s29 + $0x1f8] sm:$0xf] %v433_v62 }
  0x66   : > { %436 = vst [vmem:[%s8553_s29 + $0x1fc] sm:$0xf] %v435_v63  ;;  %v437_v0 = vld [vmem:[%s8549_s28 + $0x400] sm:$0xf]  ;;  %v439_v1 = vld [vmem:[%s8549_s28 + $0x408] sm:$0xf] }
  0x67   : > { %v441_v2 = vld [vmem:[%s8549_s28 + $0x410] sm:$0xf]  ;;  %438 = vst [vmem:[%s8553_s29 + $0x200] sm:$0xf] %v437_v0  ;;  %440 = vst [vmem:[%s8553_s29 + $0x204] sm:$0xf] %v439_v1 }
  0x68   : > { %442 = vst [vmem:[%s8553_s29 + $0x208] sm:$0xf] %v441_v2  ;;  %v443_v3 = vld [vmem:[%s8549_s28 + $0x418] sm:$0xf]  ;;  %v445_v4 = vld [vmem:[%s8549_s28 + $0x420] sm:$0xf] }
  0x69   : > { %v447_v5 = vld [vmem:[%s8549_s28 + $0x428] sm:$0xf]  ;;  %444 = vst [vmem:[%s8553_s29 + $0x20c] sm:$0xf] %v443_v3  ;;  %446 = vst [vmem:[%s8553_s29 + $0x210] sm:$0xf] %v445_v4 }
  0x6a   : > { %448 = vst [vmem:[%s8553_s29 + $0x214] sm:$0xf] %v447_v5  ;;  %v449_v6 = vld [vmem:[%s8549_s28 + $0x430] sm:$0xf]  ;;  %v451_v7 = vld [vmem:[%s8549_s28 + $0x438] sm:$0xf] }
  0x6b   : > { %v453_v8 = vld [vmem:[%s8549_s28 + $0x440] sm:$0xf]  ;;  %450 = vst [vmem:[%s8553_s29 + $0x218] sm:$0xf] %v449_v6  ;;  %452 = vst [vmem:[%s8553_s29 + $0x21c] sm:$0xf] %v451_v7 }
  0x6c   : > { %454 = vst [vmem:[%s8553_s29 + $0x220] sm:$0xf] %v453_v8  ;;  %v455_v9 = vld [vmem:[%s8549_s28 + $0x448] sm:$0xf]  ;;  %v457_v10 = vld [vmem:[%s8549_s28 + $0x450] sm:$0xf] }
  0x6d   : > { %v459_v11 = vld [vmem:[%s8549_s28 + $0x458] sm:$0xf]  ;;  %456 = vst [vmem:[%s8553_s29 + $0x224] sm:$0xf] %v455_v9  ;;  %458 = vst [vmem:[%s8553_s29 + $0x228] sm:$0xf] %v457_v10 }
  0x6e   : > { %460 = vst [vmem:[%s8553_s29 + $0x22c] sm:$0xf] %v459_v11  ;;  %v461_v12 = vld [vmem:[%s8549_s28 + $0x460] sm:$0xf]  ;;  %v463_v13 = vld [vmem:[%s8549_s28 + $0x468] sm:$0xf] }
  0x6f   : > { %v465_v14 = vld [vmem:[%s8549_s28 + $0x470] sm:$0xf]  ;;  %462 = vst [vmem:[%s8553_s29 + $0x230] sm:$0xf] %v461_v12  ;;  %464 = vst [vmem:[%s8553_s29 + $0x234] sm:$0xf] %v463_v13 }
  0x70   : > { %466 = vst [vmem:[%s8553_s29 + $0x238] sm:$0xf] %v465_v14  ;;  %v467_v15 = vld [vmem:[%s8549_s28 + $0x478] sm:$0xf]  ;;  %v469_v16 = vld [vmem:[%s8549_s28 + $0x480] sm:$0xf] }
  0x71   : > { %v471_v17 = vld [vmem:[%s8549_s28 + $0x488] sm:$0xf]  ;;  %468 = vst [vmem:[%s8553_s29 + $0x23c] sm:$0xf] %v467_v15  ;;  %470 = vst [vmem:[%s8553_s29 + $0x240] sm:$0xf] %v469_v16 }
  0x72   : > { %472 = vst [vmem:[%s8553_s29 + $0x244] sm:$0xf] %v471_v17  ;;  %v473_v18 = vld [vmem:[%s8549_s28 + $0x490] sm:$0xf]  ;;  %v475_v19 = vld [vmem:[%s8549_s28 + $0x498] sm:$0xf] }
  0x73   : > { %v477_v20 = vld [vmem:[%s8549_s28 + $0x4a0] sm:$0xf]  ;;  %474 = vst [vmem:[%s8553_s29 + $0x248] sm:$0xf] %v473_v18  ;;  %476 = vst [vmem:[%s8553_s29 + $0x24c] sm:$0xf] %v475_v19 }
  0x74   : > { %478 = vst [vmem:[%s8553_s29 + $0x250] sm:$0xf] %v477_v20  ;;  %v479_v21 = vld [vmem:[%s8549_s28 + $0x4a8] sm:$0xf]  ;;  %v481_v22 = vld [vmem:[%s8549_s28 + $0x4b0] sm:$0xf] }
  0x75   : > { %v483_v23 = vld [vmem:[%s8549_s28 + $0x4b8] sm:$0xf]  ;;  %480 = vst [vmem:[%s8553_s29 + $0x254] sm:$0xf] %v479_v21  ;;  %482 = vst [vmem:[%s8553_s29 + $0x258] sm:$0xf] %v481_v22 }
  0x76   : > { %484 = vst [vmem:[%s8553_s29 + $0x25c] sm:$0xf] %v483_v23  ;;  %v485_v24 = vld [vmem:[%s8549_s28 + $0x4c0] sm:$0xf]  ;;  %v487_v25 = vld [vmem:[%s8549_s28 + $0x4c8] sm:$0xf] }
  0x77   : > { %v489_v26 = vld [vmem:[%s8549_s28 + $0x4d0] sm:$0xf]  ;;  %486 = vst [vmem:[%s8553_s29 + $0x260] sm:$0xf] %v485_v24  ;;  %488 = vst [vmem:[%s8553_s29 + $0x264] sm:$0xf] %v487_v25 }
  0x78   : > { %490 = vst [vmem:[%s8553_s29 + $0x268] sm:$0xf] %v489_v26  ;;  %v491_v27 = vld [vmem:[%s8549_s28 + $0x4d8] sm:$0xf]  ;;  %v493_v28 = vld [vmem:[%s8549_s28 + $0x4e0] sm:$0xf] }
  0x79   : > { %v495_v29 = vld [vmem:[%s8549_s28 + $0x4e8] sm:$0xf]  ;;  %492 = vst [vmem:[%s8553_s29 + $0x26c] sm:$0xf] %v491_v27  ;;  %494 = vst [vmem:[%s8553_s29 + $0x270] sm:$0xf] %v493_v28 }
  0x7a   : > { %496 = vst [vmem:[%s8553_s29 + $0x274] sm:$0xf] %v495_v29  ;;  %v497_v30 = vld [vmem:[%s8549_s28 + $0x4f0] sm:$0xf]  ;;  %v499_v31 = vld [vmem:[%s8549_s28 + $0x4f8] sm:$0xf] }
  0x7b   : > { %v501_v32 = vld [vmem:[%s8549_s28 + $0x500] sm:$0xf]  ;;  %498 = vst [vmem:[%s8553_s29 + $0x278] sm:$0xf] %v497_v30  ;;  %500 = vst [vmem:[%s8553_s29 + $0x27c] sm:$0xf] %v499_v31 }
  0x7c   : > { %502 = vst [vmem:[%s8553_s29 + $0x280] sm:$0xf] %v501_v32  ;;  %v503_v33 = vld [vmem:[%s8549_s28 + $0x508] sm:$0xf]  ;;  %v505_v34 = vld [vmem:[%s8549_s28 + $0x510] sm:$0xf] }
  0x7d   : > { %v507_v35 = vld [vmem:[%s8549_s28 + $0x518] sm:$0xf]  ;;  %504 = vst [vmem:[%s8553_s29 + $0x284] sm:$0xf] %v503_v33  ;;  %506 = vst [vmem:[%s8553_s29 + $0x288] sm:$0xf] %v505_v34 }
  0x7e   : > { %508 = vst [vmem:[%s8553_s29 + $0x28c] sm:$0xf] %v507_v35  ;;  %v509_v36 = vld [vmem:[%s8549_s28 + $0x520] sm:$0xf]  ;;  %v511_v37 = vld [vmem:[%s8549_s28 + $0x528] sm:$0xf] }
  0x7f   : > { %v513_v38 = vld [vmem:[%s8549_s28 + $0x530] sm:$0xf]  ;;  %510 = vst [vmem:[%s8553_s29 + $0x290] sm:$0xf] %v509_v36  ;;  %512 = vst [vmem:[%s8553_s29 + $0x294] sm:$0xf] %v511_v37 }
  0x80   : > { %514 = vst [vmem:[%s8553_s29 + $0x298] sm:$0xf] %v513_v38  ;;  %v515_v39 = vld [vmem:[%s8549_s28 + $0x538] sm:$0xf]  ;;  %v517_v40 = vld [vmem:[%s8549_s28 + $0x540] sm:$0xf] }
  0x81   : > { %v519_v41 = vld [vmem:[%s8549_s28 + $0x548] sm:$0xf]  ;;  %516 = vst [vmem:[%s8553_s29 + $0x29c] sm:$0xf] %v515_v39  ;;  %518 = vst [vmem:[%s8553_s29 + $0x2a0] sm:$0xf] %v517_v40 }
  0x82   : > { %520 = vst [vmem:[%s8553_s29 + $0x2a4] sm:$0xf] %v519_v41  ;;  %v521_v42 = vld [vmem:[%s8549_s28 + $0x550] sm:$0xf]  ;;  %v523_v43 = vld [vmem:[%s8549_s28 + $0x558] sm:$0xf] }
  0x83   : > { %v525_v44 = vld [vmem:[%s8549_s28 + $0x560] sm:$0xf]  ;;  %522 = vst [vmem:[%s8553_s29 + $0x2a8] sm:$0xf] %v521_v42  ;;  %524 = vst [vmem:[%s8553_s29 + $0x2ac] sm:$0xf] %v523_v43 }
  0x84   : > { %526 = vst [vmem:[%s8553_s29 + $0x2b0] sm:$0xf] %v525_v44  ;;  %v527_v45 = vld [vmem:[%s8549_s28 + $0x568] sm:$0xf]  ;;  %v529_v46 = vld [vmem:[%s8549_s28 + $0x570] sm:$0xf] }
  0x85   : > { %v531_v47 = vld [vmem:[%s8549_s28 + $0x578] sm:$0xf]  ;;  %528 = vst [vmem:[%s8553_s29 + $0x2b4] sm:$0xf] %v527_v45  ;;  %530 = vst [vmem:[%s8553_s29 + $0x2b8] sm:$0xf] %v529_v46 }
  0x86   : > { %532 = vst [vmem:[%s8553_s29 + $0x2bc] sm:$0xf] %v531_v47  ;;  %v533_v48 = vld [vmem:[%s8549_s28 + $0x580] sm:$0xf]  ;;  %v535_v49 = vld [vmem:[%s8549_s28 + $0x588] sm:$0xf] }
  0x87   : > { %v537_v50 = vld [vmem:[%s8549_s28 + $0x590] sm:$0xf]  ;;  %534 = vst [vmem:[%s8553_s29 + $0x2c0] sm:$0xf] %v533_v48  ;;  %536 = vst [vmem:[%s8553_s29 + $0x2c4] sm:$0xf] %v535_v49 }
  0x88   : > { %538 = vst [vmem:[%s8553_s29 + $0x2c8] sm:$0xf] %v537_v50  ;;  %v539_v51 = vld [vmem:[%s8549_s28 + $0x598] sm:$0xf]  ;;  %v541_v52 = vld [vmem:[%s8549_s28 + $0x5a0] sm:$0xf] }
  0x89   : > { %v543_v53 = vld [vmem:[%s8549_s28 + $0x5a8] sm:$0xf]  ;;  %540 = vst [vmem:[%s8553_s29 + $0x2cc] sm:$0xf] %v539_v51  ;;  %542 = vst [vmem:[%s8553_s29 + $0x2d0] sm:$0xf] %v541_v52 }
  0x8a   : > { %544 = vst [vmem:[%s8553_s29 + $0x2d4] sm:$0xf] %v543_v53  ;;  %v545_v54 = vld [vmem:[%s8549_s28 + $0x5b0] sm:$0xf]  ;;  %v547_v55 = vld [vmem:[%s8549_s28 + $0x5b8] sm:$0xf] }
  0x8b   : > { %v549_v56 = vld [vmem:[%s8549_s28 + $0x5c0] sm:$0xf]  ;;  %546 = vst [vmem:[%s8553_s29 + $0x2d8] sm:$0xf] %v545_v54  ;;  %548 = vst [vmem:[%s8553_s29 + $0x2dc] sm:$0xf] %v547_v55 }
  0x8c   : > { %550 = vst [vmem:[%s8553_s29 + $0x2e0] sm:$0xf] %v549_v56  ;;  %v551_v57 = vld [vmem:[%s8549_s28 + $0x5c8] sm:$0xf]  ;;  %v553_v58 = vld [vmem:[%s8549_s28 + $0x5d0] sm:$0xf] }
  0x8d   : > { %v555_v59 = vld [vmem:[%s8549_s28 + $0x5d8] sm:$0xf]  ;;  %552 = vst [vmem:[%s8553_s29 + $0x2e4] sm:$0xf] %v551_v57  ;;  %554 = vst [vmem:[%s8553_s29 + $0x2e8] sm:$0xf] %v553_v58 }
  0x8e   : > { %556 = vst [vmem:[%s8553_s29 + $0x2ec] sm:$0xf] %v555_v59  ;;  %v557_v60 = vld [vmem:[%s8549_s28 + $0x5e0] sm:$0xf]  ;;  %v559_v61 = vld [vmem:[%s8549_s28 + $0x5e8] sm:$0xf] }
  0x8f   : > { %v561_v62 = vld [vmem:[%s8549_s28 + $0x5f0] sm:$0xf]  ;;  %558 = vst [vmem:[%s8553_s29 + $0x2f0] sm:$0xf] %v557_v60  ;;  %560 = vst [vmem:[%s8553_s29 + $0x2f4] sm:$0xf] %v559_v61 }
  0x90   : > { %562 = vst [vmem:[%s8553_s29 + $0x2f8] sm:$0xf] %v561_v62  ;;  %v563_v63 = vld [vmem:[%s8549_s28 + $0x5f8] sm:$0xf]  ;;  %v565_v0 = vld [vmem:[%s8549_s28 + $0x600] sm:$0xf] }
  0x91   : > { %v567_v1 = vld [vmem:[%s8549_s28 + $0x608] sm:$0xf]  ;;  %564 = vst [vmem:[%s8553_s29 + $0x2fc] sm:$0xf] %v563_v63  ;;  %566 = vst [vmem:[%s8553_s29 + $0x300] sm:$0xf] %v565_v0 }
  0x92   : > { %568 = vst [vmem:[%s8553_s29 + $0x304] sm:$0xf] %v567_v1  ;;  %v569_v2 = vld [vmem:[%s8549_s28 + $0x610] sm:$0xf]  ;;  %v571_v3 = vld [vmem:[%s8549_s28 + $0x618] sm:$0xf] }
  0x93   : > { %v573_v4 = vld [vmem:[%s8549_s28 + $0x620] sm:$0xf]  ;;  %570 = vst [vmem:[%s8553_s29 + $0x308] sm:$0xf] %v569_v2  ;;  %572 = vst [vmem:[%s8553_s29 + $0x30c] sm:$0xf] %v571_v3 }
  0x94   : > { %574 = vst [vmem:[%s8553_s29 + $0x310] sm:$0xf] %v573_v4  ;;  %v575_v5 = vld [vmem:[%s8549_s28 + $0x628] sm:$0xf]  ;;  %v577_v6 = vld [vmem:[%s8549_s28 + $0x630] sm:$0xf] }
  0x95   : > { %v579_v7 = vld [vmem:[%s8549_s28 + $0x638] sm:$0xf]  ;;  %576 = vst [vmem:[%s8553_s29 + $0x314] sm:$0xf] %v575_v5  ;;  %578 = vst [vmem:[%s8553_s29 + $0x318] sm:$0xf] %v577_v6 }
  0x96   : > { %580 = vst [vmem:[%s8553_s29 + $0x31c] sm:$0xf] %v579_v7  ;;  %v581_v8 = vld [vmem:[%s8549_s28 + $0x640] sm:$0xf]  ;;  %v583_v9 = vld [vmem:[%s8549_s28 + $0x648] sm:$0xf] }
  0x97   : > { %v585_v10 = vld [vmem:[%s8549_s28 + $0x650] sm:$0xf]  ;;  %582 = vst [vmem:[%s8553_s29 + $0x320] sm:$0xf] %v581_v8  ;;  %584 = vst [vmem:[%s8553_s29 + $0x324] sm:$0xf] %v583_v9 }
  0x98   : > { %586 = vst [vmem:[%s8553_s29 + $0x328] sm:$0xf] %v585_v10  ;;  %v587_v11 = vld [vmem:[%s8549_s28 + $0x658] sm:$0xf]  ;;  %v589_v12 = vld [vmem:[%s8549_s28 + $0x660] sm:$0xf] }
  0x99   : > { %v591_v13 = vld [vmem:[%s8549_s28 + $0x668] sm:$0xf]  ;;  %588 = vst [vmem:[%s8553_s29 + $0x32c] sm:$0xf] %v587_v11  ;;  %590 = vst [vmem:[%s8553_s29 + $0x330] sm:$0xf] %v589_v12 }
  0x9a   : > { %592 = vst [vmem:[%s8553_s29 + $0x334] sm:$0xf] %v591_v13  ;;  %v593_v14 = vld [vmem:[%s8549_s28 + $0x670] sm:$0xf]  ;;  %v595_v15 = vld [vmem:[%s8549_s28 + $0x678] sm:$0xf] }
  0x9b   : > { %v597_v16 = vld [vmem:[%s8549_s28 + $0x680] sm:$0xf]  ;;  %594 = vst [vmem:[%s8553_s29 + $0x338] sm:$0xf] %v593_v14  ;;  %596 = vst [vmem:[%s8553_s29 + $0x33c] sm:$0xf] %v595_v15 }
  0x9c   : > { %598 = vst [vmem:[%s8553_s29 + $0x340] sm:$0xf] %v597_v16  ;;  %v599_v17 = vld [vmem:[%s8549_s28 + $0x688] sm:$0xf]  ;;  %v601_v18 = vld [vmem:[%s8549_s28 + $0x690] sm:$0xf] }
  0x9d   : > { %v603_v19 = vld [vmem:[%s8549_s28 + $0x698] sm:$0xf]  ;;  %600 = vst [vmem:[%s8553_s29 + $0x344] sm:$0xf] %v599_v17  ;;  %602 = vst [vmem:[%s8553_s29 + $0x348] sm:$0xf] %v601_v18 }
  0x9e   : > { %604 = vst [vmem:[%s8553_s29 + $0x34c] sm:$0xf] %v603_v19  ;;  %v605_v20 = vld [vmem:[%s8549_s28 + $0x6a0] sm:$0xf]  ;;  %v607_v21 = vld [vmem:[%s8549_s28 + $0x6a8] sm:$0xf] }
  0x9f   : > { %v609_v22 = vld [vmem:[%s8549_s28 + $0x6b0] sm:$0xf]  ;;  %606 = vst [vmem:[%s8553_s29 + $0x350] sm:$0xf] %v605_v20  ;;  %608 = vst [vmem:[%s8553_s29 + $0x354] sm:$0xf] %v607_v21 }
  0xa0   : > { %610 = vst [vmem:[%s8553_s29 + $0x358] sm:$0xf] %v609_v22  ;;  %v611_v23 = vld [vmem:[%s8549_s28 + $0x6b8] sm:$0xf]  ;;  %v613_v24 = vld [vmem:[%s8549_s28 + $0x6c0] sm:$0xf] }
  0xa1   : > { %v615_v25 = vld [vmem:[%s8549_s28 + $0x6c8] sm:$0xf]  ;;  %612 = vst [vmem:[%s8553_s29 + $0x35c] sm:$0xf] %v611_v23  ;;  %614 = vst [vmem:[%s8553_s29 + $0x360] sm:$0xf] %v613_v24 }
  0xa2   : > { %616 = vst [vmem:[%s8553_s29 + $0x364] sm:$0xf] %v615_v25  ;;  %v617_v26 = vld [vmem:[%s8549_s28 + $0x6d0] sm:$0xf]  ;;  %v619_v27 = vld [vmem:[%s8549_s28 + $0x6d8] sm:$0xf] }
  0xa3   : > { %v621_v28 = vld [vmem:[%s8549_s28 + $0x6e0] sm:$0xf]  ;;  %618 = vst [vmem:[%s8553_s29 + $0x368] sm:$0xf] %v617_v26  ;;  %620 = vst [vmem:[%s8553_s29 + $0x36c] sm:$0xf] %v619_v27 }
  0xa4   : > { %622 = vst [vmem:[%s8553_s29 + $0x370] sm:$0xf] %v621_v28  ;;  %v623_v29 = vld [vmem:[%s8549_s28 + $0x6e8] sm:$0xf]  ;;  %v625_v30 = vld [vmem:[%s8549_s28 + $0x6f0] sm:$0xf] }
  0xa5   : > { %v627_v31 = vld [vmem:[%s8549_s28 + $0x6f8] sm:$0xf]  ;;  %624 = vst [vmem:[%s8553_s29 + $0x374] sm:$0xf] %v623_v29  ;;  %626 = vst [vmem:[%s8553_s29 + $0x378] sm:$0xf] %v625_v30 }
  0xa6   : > { %628 = vst [vmem:[%s8553_s29 + $0x37c] sm:$0xf] %v627_v31  ;;  %v629_v32 = vld [vmem:[%s8549_s28 + $0x700] sm:$0xf]  ;;  %v631_v33 = vld [vmem:[%s8549_s28 + $0x708] sm:$0xf] }
  0xa7   : > { %v633_v34 = vld [vmem:[%s8549_s28 + $0x710] sm:$0xf]  ;;  %630 = vst [vmem:[%s8553_s29 + $0x380] sm:$0xf] %v629_v32  ;;  %632 = vst [vmem:[%s8553_s29 + $0x384] sm:$0xf] %v631_v33 }
  0xa8   : > { %634 = vst [vmem:[%s8553_s29 + $0x388] sm:$0xf] %v633_v34  ;;  %v635_v35 = vld [vmem:[%s8549_s28 + $0x718] sm:$0xf]  ;;  %v637_v36 = vld [vmem:[%s8549_s28 + $0x720] sm:$0xf] }
  0xa9   : > { %v639_v37 = vld [vmem:[%s8549_s28 + $0x728] sm:$0xf]  ;;  %636 = vst [vmem:[%s8553_s29 + $0x38c] sm:$0xf] %v635_v35  ;;  %638 = vst [vmem:[%s8553_s29 + $0x390] sm:$0xf] %v637_v36 }
  0xaa   : > { %640 = vst [vmem:[%s8553_s29 + $0x394] sm:$0xf] %v639_v37  ;;  %v641_v38 = vld [vmem:[%s8549_s28 + $0x730] sm:$0xf]  ;;  %v643_v39 = vld [vmem:[%s8549_s28 + $0x738] sm:$0xf] }
  0xab   : > { %v645_v40 = vld [vmem:[%s8549_s28 + $0x740] sm:$0xf]  ;;  %642 = vst [vmem:[%s8553_s29 + $0x398] sm:$0xf] %v641_v38  ;;  %644 = vst [vmem:[%s8553_s29 + $0x39c] sm:$0xf] %v643_v39 }
  0xac   : > { %646 = vst [vmem:[%s8553_s29 + $0x3a0] sm:$0xf] %v645_v40  ;;  %v647_v41 = vld [vmem:[%s8549_s28 + $0x748] sm:$0xf]  ;;  %v649_v42 = vld [vmem:[%s8549_s28 + $0x750] sm:$0xf] }
  0xad   : > { %v651_v43 = vld [vmem:[%s8549_s28 + $0x758] sm:$0xf]  ;;  %648 = vst [vmem:[%s8553_s29 + $0x3a4] sm:$0xf] %v647_v41  ;;  %650 = vst [vmem:[%s8553_s29 + $0x3a8] sm:$0xf] %v649_v42 }
  0xae   : > { %652 = vst [vmem:[%s8553_s29 + $0x3ac] sm:$0xf] %v651_v43  ;;  %v653_v44 = vld [vmem:[%s8549_s28 + $0x760] sm:$0xf]  ;;  %v655_v45 = vld [vmem:[%s8549_s28 + $0x768] sm:$0xf] }
  0xaf   : > { %v657_v46 = vld [vmem:[%s8549_s28 + $0x770] sm:$0xf]  ;;  %654 = vst [vmem:[%s8553_s29 + $0x3b0] sm:$0xf] %v653_v44  ;;  %656 = vst [vmem:[%s8553_s29 + $0x3b4] sm:$0xf] %v655_v45 }
  0xb0   : > { %658 = vst [vmem:[%s8553_s29 + $0x3b8] sm:$0xf] %v657_v46  ;;  %v659_v47 = vld [vmem:[%s8549_s28 + $0x778] sm:$0xf]  ;;  %v661_v48 = vld [vmem:[%s8549_s28 + $0x780] sm:$0xf] }
  0xb1   : > { %v663_v49 = vld [vmem:[%s8549_s28 + $0x788] sm:$0xf]  ;;  %660 = vst [vmem:[%s8553_s29 + $0x3bc] sm:$0xf] %v659_v47  ;;  %662 = vst [vmem:[%s8553_s29 + $0x3c0] sm:$0xf] %v661_v48 }
  0xb2   : > { %664 = vst [vmem:[%s8553_s29 + $0x3c4] sm:$0xf] %v663_v49  ;;  %v665_v50 = vld [vmem:[%s8549_s28 + $0x790] sm:$0xf]  ;;  %v667_v51 = vld [vmem:[%s8549_s28 + $0x798] sm:$0xf] }
  0xb3   : > { %v669_v52 = vld [vmem:[%s8549_s28 + $0x7a0] sm:$0xf]  ;;  %666 = vst [vmem:[%s8553_s29 + $0x3c8] sm:$0xf] %v665_v50  ;;  %668 = vst [vmem:[%s8553_s29 + $0x3cc] sm:$0xf] %v667_v51 }
  0xb4   : > { %670 = vst [vmem:[%s8553_s29 + $0x3d0] sm:$0xf] %v669_v52  ;;  %v671_v53 = vld [vmem:[%s8549_s28 + $0x7a8] sm:$0xf]  ;;  %v673_v54 = vld [vmem:[%s8549_s28 + $0x7b0] sm:$0xf] }
  0xb5   : > { %v675_v55 = vld [vmem:[%s8549_s28 + $0x7b8] sm:$0xf]  ;;  %672 = vst [vmem:[%s8553_s29 + $0x3d4] sm:$0xf] %v671_v53  ;;  %674 = vst [vmem:[%s8553_s29 + $0x3d8] sm:$0xf] %v673_v54 }
  0xb6   : > { %676 = vst [vmem:[%s8553_s29 + $0x3dc] sm:$0xf] %v675_v55  ;;  %v677_v56 = vld [vmem:[%s8549_s28 + $0x7c0] sm:$0xf]  ;;  %v679_v57 = vld [vmem:[%s8549_s28 + $0x7c8] sm:$0xf] }
  0xb7   : > { %v681_v58 = vld [vmem:[%s8549_s28 + $0x7d0] sm:$0xf]  ;;  %678 = vst [vmem:[%s8553_s29 + $0x3e0] sm:$0xf] %v677_v56  ;;  %680 = vst [vmem:[%s8553_s29 + $0x3e4] sm:$0xf] %v679_v57 }
  0xb8   : > { %682 = vst [vmem:[%s8553_s29 + $0x3e8] sm:$0xf] %v681_v58  ;;  %v683_v59 = vld [vmem:[%s8549_s28 + $0x7d8] sm:$0xf]  ;;  %v685_v60 = vld [vmem:[%s8549_s28 + $0x7e0] sm:$0xf] }
  0xb9   : > { %v687_v61 = vld [vmem:[%s8549_s28 + $0x7e8] sm:$0xf]  ;;  %684 = vst [vmem:[%s8553_s29 + $0x3ec] sm:$0xf] %v683_v59  ;;  %686 = vst [vmem:[%s8553_s29 + $0x3f0] sm:$0xf] %v685_v60 }
  0xba   : > { %688 = vst [vmem:[%s8553_s29 + $0x3f4] sm:$0xf] %v687_v61  ;;  %v689_v62 = vld [vmem:[%s8549_s28 + $0x7f0] sm:$0xf]  ;;  %v691_v63 = vld [vmem:[%s8549_s28 + $0x7f8] sm:$0xf] }
  0xbb   : > { %v693_v0 = vld [vmem:[%s8549_s28 + $0x800] sm:$0xf]  ;;  %690 = vst [vmem:[%s8553_s29 + $0x3f8] sm:$0xf] %v689_v62  ;;  %692 = vst [vmem:[%s8553_s29 + $0x3fc] sm:$0xf] %v691_v63 }
  0xbc   : > { %694 = vst [vmem:[%s8553_s29 + $0x400] sm:$0xf] %v693_v0  ;;  %v695_v1 = vld [vmem:[%s8549_s28 + $0x808] sm:$0xf]  ;;  %v697_v2 = vld [vmem:[%s8549_s28 + $0x810] sm:$0xf] }
  0xbd   : > { %v699_v3 = vld [vmem:[%s8549_s28 + $0x818] sm:$0xf]  ;;  %696 = vst [vmem:[%s8553_s29 + $0x404] sm:$0xf] %v695_v1  ;;  %698 = vst [vmem:[%s8553_s29 + $0x408] sm:$0xf] %v697_v2 }
  0xbe   : > { %700 = vst [vmem:[%s8553_s29 + $0x40c] sm:$0xf] %v699_v3  ;;  %v701_v4 = vld [vmem:[%s8549_s28 + $0x820] sm:$0xf]  ;;  %v703_v5 = vld [vmem:[%s8549_s28 + $0x828] sm:$0xf] }
  0xbf   : > { %v705_v6 = vld [vmem:[%s8549_s28 + $0x830] sm:$0xf]  ;;  %702 = vst [vmem:[%s8553_s29 + $0x410] sm:$0xf] %v701_v4  ;;  %704 = vst [vmem:[%s8553_s29 + $0x414] sm:$0xf] %v703_v5 }
  0xc0   : > { %706 = vst [vmem:[%s8553_s29 + $0x418] sm:$0xf] %v705_v6  ;;  %v707_v7 = vld [vmem:[%s8549_s28 + $0x838] sm:$0xf]  ;;  %v709_v8 = vld [vmem:[%s8549_s28 + $0x840] sm:$0xf] }
  0xc1   : > { %v711_v9 = vld [vmem:[%s8549_s28 + $0x848] sm:$0xf]  ;;  %708 = vst [vmem:[%s8553_s29 + $0x41c] sm:$0xf] %v707_v7  ;;  %710 = vst [vmem:[%s8553_s29 + $0x420] sm:$0xf] %v709_v8 }
  0xc2   : > { %712 = vst [vmem:[%s8553_s29 + $0x424] sm:$0xf] %v711_v9  ;;  %v713_v10 = vld [vmem:[%s8549_s28 + $0x850] sm:$0xf]  ;;  %v715_v11 = vld [vmem:[%s8549_s28 + $0x858] sm:$0xf] }
  0xc3   : > { %v717_v12 = vld [vmem:[%s8549_s28 + $0x860] sm:$0xf]  ;;  %714 = vst [vmem:[%s8553_s29 + $0x428] sm:$0xf] %v713_v10  ;;  %716 = vst [vmem:[%s8553_s29 + $0x42c] sm:$0xf] %v715_v11 }
  0xc4   : > { %718 = vst [vmem:[%s8553_s29 + $0x430] sm:$0xf] %v717_v12  ;;  %v719_v13 = vld [vmem:[%s8549_s28 + $0x868] sm:$0xf]  ;;  %v721_v14 = vld [vmem:[%s8549_s28 + $0x870] sm:$0xf] }
  0xc5   : > { %v723_v15 = vld [vmem:[%s8549_s28 + $0x878] sm:$0xf]  ;;  %720 = vst [vmem:[%s8553_s29 + $0x434] sm:$0xf] %v719_v13  ;;  %722 = vst [vmem:[%s8553_s29 + $0x438] sm:$0xf] %v721_v14 }
  0xc6   : > { %724 = vst [vmem:[%s8553_s29 + $0x43c] sm:$0xf] %v723_v15  ;;  %v725_v16 = vld [vmem:[%s8549_s28 + $0x880] sm:$0xf]  ;;  %v727_v17 = vld [vmem:[%s8549_s28 + $0x888] sm:$0xf] }
  0xc7   : > { %v729_v18 = vld [vmem:[%s8549_s28 + $0x890] sm:$0xf]  ;;  %726 = vst [vmem:[%s8553_s29 + $0x440] sm:$0xf] %v725_v16  ;;  %728 = vst [vmem:[%s8553_s29 + $0x444] sm:$0xf] %v727_v17 }
  0xc8   : > { %730 = vst [vmem:[%s8553_s29 + $0x448] sm:$0xf] %v729_v18  ;;  %v731_v19 = vld [vmem:[%s8549_s28 + $0x898] sm:$0xf]  ;;  %v733_v20 = vld [vmem:[%s8549_s28 + $0x8a0] sm:$0xf] }
  0xc9   : > { %v735_v21 = vld [vmem:[%s8549_s28 + $0x8a8] sm:$0xf]  ;;  %732 = vst [vmem:[%s8553_s29 + $0x44c] sm:$0xf] %v731_v19  ;;  %734 = vst [vmem:[%s8553_s29 + $0x450] sm:$0xf] %v733_v20 }
  0xca   : > { %736 = vst [vmem:[%s8553_s29 + $0x454] sm:$0xf] %v735_v21  ;;  %v737_v22 = vld [vmem:[%s8549_s28 + $0x8b0] sm:$0xf]  ;;  %v739_v23 = vld [vmem:[%s8549_s28 + $0x8b8] sm:$0xf] }
  0xcb   : > { %v741_v24 = vld [vmem:[%s8549_s28 + $0x8c0] sm:$0xf]  ;;  %738 = vst [vmem:[%s8553_s29 + $0x458] sm:$0xf] %v737_v22  ;;  %740 = vst [vmem:[%s8553_s29 + $0x45c] sm:$0xf] %v739_v23 }
  0xcc   : > { %742 = vst [vmem:[%s8553_s29 + $0x460] sm:$0xf] %v741_v24  ;;  %v743_v25 = vld [vmem:[%s8549_s28 + $0x8c8] sm:$0xf]  ;;  %v745_v26 = vld [vmem:[%s8549_s28 + $0x8d0] sm:$0xf] }
  0xcd   : > { %v747_v27 = vld [vmem:[%s8549_s28 + $0x8d8] sm:$0xf]  ;;  %744 = vst [vmem:[%s8553_s29 + $0x464] sm:$0xf] %v743_v25  ;;  %746 = vst [vmem:[%s8553_s29 + $0x468] sm:$0xf] %v745_v26 }
  0xce   : > { %748 = vst [vmem:[%s8553_s29 + $0x46c] sm:$0xf] %v747_v27  ;;  %v749_v28 = vld [vmem:[%s8549_s28 + $0x8e0] sm:$0xf]  ;;  %v751_v29 = vld [vmem:[%s8549_s28 + $0x8e8] sm:$0xf] }
  0xcf   : > { %v753_v30 = vld [vmem:[%s8549_s28 + $0x8f0] sm:$0xf]  ;;  %750 = vst [vmem:[%s8553_s29 + $0x470] sm:$0xf] %v749_v28  ;;  %752 = vst [vmem:[%s8553_s29 + $0x474] sm:$0xf] %v751_v29 }
  0xd0   : > { %754 = vst [vmem:[%s8553_s29 + $0x478] sm:$0xf] %v753_v30  ;;  %v755_v31 = vld [vmem:[%s8549_s28 + $0x8f8] sm:$0xf]  ;;  %v757_v32 = vld [vmem:[%s8549_s28 + $0x900] sm:$0xf] }
  0xd1   : > { %v759_v33 = vld [vmem:[%s8549_s28 + $0x908] sm:$0xf]  ;;  %756 = vst [vmem:[%s8553_s29 + $0x47c] sm:$0xf] %v755_v31  ;;  %758 = vst [vmem:[%s8553_s29 + $0x480] sm:$0xf] %v757_v32 }
  0xd2   : > { %760 = vst [vmem:[%s8553_s29 + $0x484] sm:$0xf] %v759_v33  ;;  %v761_v34 = vld [vmem:[%s8549_s28 + $0x910] sm:$0xf]  ;;  %v763_v35 = vld [vmem:[%s8549_s28 + $0x918] sm:$0xf] }
  0xd3   : > { %v765_v36 = vld [vmem:[%s8549_s28 + $0x920] sm:$0xf]  ;;  %762 = vst [vmem:[%s8553_s29 + $0x488] sm:$0xf] %v761_v34  ;;  %764 = vst [vmem:[%s8553_s29 + $0x48c] sm:$0xf] %v763_v35 }
  0xd4   : > { %766 = vst [vmem:[%s8553_s29 + $0x490] sm:$0xf] %v765_v36  ;;  %v767_v37 = vld [vmem:[%s8549_s28 + $0x928] sm:$0xf]  ;;  %v769_v38 = vld [vmem:[%s8549_s28 + $0x930] sm:$0xf] }
  0xd5   : > { %v771_v39 = vld [vmem:[%s8549_s28 + $0x938] sm:$0xf]  ;;  %768 = vst [vmem:[%s8553_s29 + $0x494] sm:$0xf] %v767_v37  ;;  %770 = vst [vmem:[%s8553_s29 + $0x498] sm:$0xf] %v769_v38 }
  0xd6   : > { %772 = vst [vmem:[%s8553_s29 + $0x49c] sm:$0xf] %v771_v39  ;;  %v773_v40 = vld [vmem:[%s8549_s28 + $0x940] sm:$0xf]  ;;  %v775_v41 = vld [vmem:[%s8549_s28 + $0x948] sm:$0xf] }
  0xd7   : > { %v777_v42 = vld [vmem:[%s8549_s28 + $0x950] sm:$0xf]  ;;  %774 = vst [vmem:[%s8553_s29 + $0x4a0] sm:$0xf] %v773_v40  ;;  %776 = vst [vmem:[%s8553_s29 + $0x4a4] sm:$0xf] %v775_v41 }
  0xd8   : > { %778 = vst [vmem:[%s8553_s29 + $0x4a8] sm:$0xf] %v777_v42  ;;  %v779_v43 = vld [vmem:[%s8549_s28 + $0x958] sm:$0xf]  ;;  %v781_v44 = vld [vmem:[%s8549_s28 + $0x960] sm:$0xf] }
  0xd9   : > { %v783_v45 = vld [vmem:[%s8549_s28 + $0x968] sm:$0xf]  ;;  %780 = vst [vmem:[%s8553_s29 + $0x4ac] sm:$0xf] %v779_v43  ;;  %782 = vst [vmem:[%s8553_s29 + $0x4b0] sm:$0xf] %v781_v44 }
  0xda   : > { %784 = vst [vmem:[%s8553_s29 + $0x4b4] sm:$0xf] %v783_v45  ;;  %v785_v46 = vld [vmem:[%s8549_s28 + $0x970] sm:$0xf]  ;;  %v787_v47 = vld [vmem:[%s8549_s28 + $0x978] sm:$0xf] }
  0xdb   : > { %v789_v48 = vld [vmem:[%s8549_s28 + $0x980] sm:$0xf]  ;;  %786 = vst [vmem:[%s8553_s29 + $0x4b8] sm:$0xf] %v785_v46  ;;  %788 = vst [vmem:[%s8553_s29 + $0x4bc] sm:$0xf] %v787_v47 }
  0xdc   : > { %790 = vst [vmem:[%s8553_s29 + $0x4c0] sm:$0xf] %v789_v48  ;;  %v791_v49 = vld [vmem:[%s8549_s28 + $0x988] sm:$0xf]  ;;  %v793_v50 = vld [vmem:[%s8549_s28 + $0x990] sm:$0xf] }
  0xdd   : > { %v795_v51 = vld [vmem:[%s8549_s28 + $0x998] sm:$0xf]  ;;  %792 = vst [vmem:[%s8553_s29 + $0x4c4] sm:$0xf] %v791_v49  ;;  %794 = vst [vmem:[%s8553_s29 + $0x4c8] sm:$0xf] %v793_v50 }
  0xde   : > { %796 = vst [vmem:[%s8553_s29 + $0x4cc] sm:$0xf] %v795_v51  ;;  %v797_v52 = vld [vmem:[%s8549_s28 + $0x9a0] sm:$0xf]  ;;  %v799_v53 = vld [vmem:[%s8549_s28 + $0x9a8] sm:$0xf] }
  0xdf   : > { %v801_v54 = vld [vmem:[%s8549_s28 + $0x9b0] sm:$0xf]  ;;  %798 = vst [vmem:[%s8553_s29 + $0x4d0] sm:$0xf] %v797_v52  ;;  %800 = vst [vmem:[%s8553_s29 + $0x4d4] sm:$0xf] %v799_v53 }
  0xe0   : > { %802 = vst [vmem:[%s8553_s29 + $0x4d8] sm:$0xf] %v801_v54  ;;  %v803_v55 = vld [vmem:[%s8549_s28 + $0x9b8] sm:$0xf]  ;;  %v805_v56 = vld [vmem:[%s8549_s28 + $0x9c0] sm:$0xf] }
  0xe1   : > { %v807_v57 = vld [vmem:[%s8549_s28 + $0x9c8] sm:$0xf]  ;;  %804 = vst [vmem:[%s8553_s29 + $0x4dc] sm:$0xf] %v803_v55  ;;  %806 = vst [vmem:[%s8553_s29 + $0x4e0] sm:$0xf] %v805_v56 }
  0xe2   : > { %808 = vst [vmem:[%s8553_s29 + $0x4e4] sm:$0xf] %v807_v57  ;;  %v809_v58 = vld [vmem:[%s8549_s28 + $0x9d0] sm:$0xf]  ;;  %v811_v59 = vld [vmem:[%s8549_s28 + $0x9d8] sm:$0xf] }
  0xe3   : > { %v813_v60 = vld [vmem:[%s8549_s28 + $0x9e0] sm:$0xf]  ;;  %810 = vst [vmem:[%s8553_s29 + $0x4e8] sm:$0xf] %v809_v58  ;;  %812 = vst [vmem:[%s8553_s29 + $0x4ec] sm:$0xf] %v811_v59 }
  0xe4   : > { %814 = vst [vmem:[%s8553_s29 + $0x4f0] sm:$0xf] %v813_v60  ;;  %v815_v61 = vld [vmem:[%s8549_s28 + $0x9e8] sm:$0xf]  ;;  %v817_v62 = vld [vmem:[%s8549_s28 + $0x9f0] sm:$0xf] }
  0xe5   : > { %v819_v63 = vld [vmem:[%s8549_s28 + $0x9f8] sm:$0xf]  ;;  %816 = vst [vmem:[%s8553_s29 + $0x4f4] sm:$0xf] %v815_v61  ;;  %818 = vst [vmem:[%s8553_s29 + $0x4f8] sm:$0xf] %v817_v62 }
  0xe6   : > { %820 = vst [vmem:[%s8553_s29 + $0x4fc] sm:$0xf] %v819_v63  ;;  %v821_v0 = vld [vmem:[%s8549_s28 + $0xa00] sm:$0xf]  ;;  %v823_v1 = vld [vmem:[%s8549_s28 + $0xa08] sm:$0xf] }
  0xe7   : > { %v825_v2 = vld [vmem:[%s8549_s28 + $0xa10] sm:$0xf]  ;;  %822 = vst [vmem:[%s8553_s29 + $0x500] sm:$0xf] %v821_v0  ;;  %824 = vst [vmem:[%s8553_s29 + $0x504] sm:$0xf] %v823_v1 }
  0xe8   : > { %826 = vst [vmem:[%s8553_s29 + $0x508] sm:$0xf] %v825_v2  ;;  %v827_v3 = vld [vmem:[%s8549_s28 + $0xa18] sm:$0xf]  ;;  %v829_v4 = vld [vmem:[%s8549_s28 + $0xa20] sm:$0xf] }
  0xe9   : > { %v831_v5 = vld [vmem:[%s8549_s28 + $0xa28] sm:$0xf]  ;;  %828 = vst [vmem:[%s8553_s29 + $0x50c] sm:$0xf] %v827_v3  ;;  %830 = vst [vmem:[%s8553_s29 + $0x510] sm:$0xf] %v829_v4 }
  0xea   : > { %832 = vst [vmem:[%s8553_s29 + $0x514] sm:$0xf] %v831_v5  ;;  %v833_v6 = vld [vmem:[%s8549_s28 + $0xa30] sm:$0xf]  ;;  %v835_v7 = vld [vmem:[%s8549_s28 + $0xa38] sm:$0xf] }
  0xeb   : > { %v837_v8 = vld [vmem:[%s8549_s28 + $0xa40] sm:$0xf]  ;;  %834 = vst [vmem:[%s8553_s29 + $0x518] sm:$0xf] %v833_v6  ;;  %836 = vst [vmem:[%s8553_s29 + $0x51c] sm:$0xf] %v835_v7 }
  0xec   : > { %838 = vst [vmem:[%s8553_s29 + $0x520] sm:$0xf] %v837_v8  ;;  %v839_v9 = vld [vmem:[%s8549_s28 + $0xa48] sm:$0xf]  ;;  %v841_v10 = vld [vmem:[%s8549_s28 + $0xa50] sm:$0xf] }
  0xed   : > { %v843_v11 = vld [vmem:[%s8549_s28 + $0xa58] sm:$0xf]  ;;  %840 = vst [vmem:[%s8553_s29 + $0x524] sm:$0xf] %v839_v9  ;;  %842 = vst [vmem:[%s8553_s29 + $0x528] sm:$0xf] %v841_v10 }
  0xee   : > { %844 = vst [vmem:[%s8553_s29 + $0x52c] sm:$0xf] %v843_v11  ;;  %v845_v12 = vld [vmem:[%s8549_s28 + $0xa60] sm:$0xf]  ;;  %v847_v13 = vld [vmem:[%s8549_s28 + $0xa68] sm:$0xf] }
  0xef   : > { %v849_v14 = vld [vmem:[%s8549_s28 + $0xa70] sm:$0xf]  ;;  %846 = vst [vmem:[%s8553_s29 + $0x530] sm:$0xf] %v845_v12  ;;  %848 = vst [vmem:[%s8553_s29 + $0x534] sm:$0xf] %v847_v13 }
  0xf0   : > { %850 = vst [vmem:[%s8553_s29 + $0x538] sm:$0xf] %v849_v14  ;;  %v851_v15 = vld [vmem:[%s8549_s28 + $0xa78] sm:$0xf]  ;;  %v853_v16 = vld [vmem:[%s8549_s28 + $0xa80] sm:$0xf] }
  0xf1   : > { %v855_v17 = vld [vmem:[%s8549_s28 + $0xa88] sm:$0xf]  ;;  %852 = vst [vmem:[%s8553_s29 + $0x53c] sm:$0xf] %v851_v15  ;;  %854 = vst [vmem:[%s8553_s29 + $0x540] sm:$0xf] %v853_v16 }
  0xf2   : > { %856 = vst [vmem:[%s8553_s29 + $0x544] sm:$0xf] %v855_v17  ;;  %v857_v18 = vld [vmem:[%s8549_s28 + $0xa90] sm:$0xf]  ;;  %v859_v19 = vld [vmem:[%s8549_s28 + $0xa98] sm:$0xf] }
  0xf3   : > { %v861_v20 = vld [vmem:[%s8549_s28 + $0xaa0] sm:$0xf]  ;;  %858 = vst [vmem:[%s8553_s29 + $0x548] sm:$0xf] %v857_v18  ;;  %860 = vst [vmem:[%s8553_s29 + $0x54c] sm:$0xf] %v859_v19 }
  0xf4   : > { %862 = vst [vmem:[%s8553_s29 + $0x550] sm:$0xf] %v861_v20  ;;  %v863_v21 = vld [vmem:[%s8549_s28 + $0xaa8] sm:$0xf]  ;;  %v865_v22 = vld [vmem:[%s8549_s28 + $0xab0] sm:$0xf] }
  0xf5   : > { %v867_v23 = vld [vmem:[%s8549_s28 + $0xab8] sm:$0xf]  ;;  %864 = vst [vmem:[%s8553_s29 + $0x554] sm:$0xf] %v863_v21  ;;  %866 = vst [vmem:[%s8553_s29 + $0x558] sm:$0xf] %v865_v22 }
  0xf6   : > { %868 = vst [vmem:[%s8553_s29 + $0x55c] sm:$0xf] %v867_v23  ;;  %v869_v24 = vld [vmem:[%s8549_s28 + $0xac0] sm:$0xf]  ;;  %v871_v25 = vld [vmem:[%s8549_s28 + $0xac8] sm:$0xf] }
  0xf7   : > { %v873_v26 = vld [vmem:[%s8549_s28 + $0xad0] sm:$0xf]  ;;  %870 = vst [vmem:[%s8553_s29 + $0x560] sm:$0xf] %v869_v24  ;;  %872 = vst [vmem:[%s8553_s29 + $0x564] sm:$0xf] %v871_v25 }
  0xf8   : > { %874 = vst [vmem:[%s8553_s29 + $0x568] sm:$0xf] %v873_v26  ;;  %v875_v27 = vld [vmem:[%s8549_s28 + $0xad8] sm:$0xf]  ;;  %v877_v28 = vld [vmem:[%s8549_s28 + $0xae0] sm:$0xf] }
  0xf9   : > { %v879_v29 = vld [vmem:[%s8549_s28 + $0xae8] sm:$0xf]  ;;  %876 = vst [vmem:[%s8553_s29 + $0x56c] sm:$0xf] %v875_v27  ;;  %878 = vst [vmem:[%s8553_s29 + $0x570] sm:$0xf] %v877_v28 }
  0xfa   : > { %880 = vst [vmem:[%s8553_s29 + $0x574] sm:$0xf] %v879_v29  ;;  %v881_v30 = vld [vmem:[%s8549_s28 + $0xaf0] sm:$0xf]  ;;  %v883_v31 = vld [vmem:[%s8549_s28 + $0xaf8] sm:$0xf] }
  0xfb   : > { %v885_v32 = vld [vmem:[%s8549_s28 + $0xb00] sm:$0xf]  ;;  %882 = vst [vmem:[%s8553_s29 + $0x578] sm:$0xf] %v881_v30  ;;  %884 = vst [vmem:[%s8553_s29 + $0x57c] sm:$0xf] %v883_v31 }
  0xfc   : > { %886 = vst [vmem:[%s8553_s29 + $0x580] sm:$0xf] %v885_v32  ;;  %v887_v33 = vld [vmem:[%s8549_s28 + $0xb08] sm:$0xf]  ;;  %v889_v34 = vld [vmem:[%s8549_s28 + $0xb10] sm:$0xf] }
  0xfd   : > { %v891_v35 = vld [vmem:[%s8549_s28 + $0xb18] sm:$0xf]  ;;  %888 = vst [vmem:[%s8553_s29 + $0x584] sm:$0xf] %v887_v33  ;;  %890 = vst [vmem:[%s8553_s29 + $0x588] sm:$0xf] %v889_v34 }
  0xfe   : > { %892 = vst [vmem:[%s8553_s29 + $0x58c] sm:$0xf] %v891_v35  ;;  %v893_v36 = vld [vmem:[%s8549_s28 + $0xb20] sm:$0xf]  ;;  %v895_v37 = vld [vmem:[%s8549_s28 + $0xb28] sm:$0xf] }
  0xff   : > { %v897_v38 = vld [vmem:[%s8549_s28 + $0xb30] sm:$0xf]  ;;  %894 = vst [vmem:[%s8553_s29 + $0x590] sm:$0xf] %v893_v36  ;;  %896 = vst [vmem:[%s8553_s29 + $0x594] sm:$0xf] %v895_v37 }
 0x100   : > { %898 = vst [vmem:[%s8553_s29 + $0x598] sm:$0xf] %v897_v38  ;;  %v899_v39 = vld [vmem:[%s8549_s28 + $0xb38] sm:$0xf]  ;;  %v901_v40 = vld [vmem:[%s8549_s28 + $0xb40] sm:$0xf] }
 0x101   : > { %v903_v41 = vld [vmem:[%s8549_s28 + $0xb48] sm:$0xf]  ;;  %900 = vst [vmem:[%s8553_s29 + $0x59c] sm:$0xf] %v899_v39  ;;  %902 = vst [vmem:[%s8553_s29 + $0x5a0] sm:$0xf] %v901_v40 }
 0x102   : > { %904 = vst [vmem:[%s8553_s29 + $0x5a4] sm:$0xf] %v903_v41  ;;  %v905_v42 = vld [vmem:[%s8549_s28 + $0xb50] sm:$0xf]  ;;  %v907_v43 = vld [vmem:[%s8549_s28 + $0xb58] sm:$0xf] }
 0x103   : > { %v909_v44 = vld [vmem:[%s8549_s28 + $0xb60] sm:$0xf]  ;;  %906 = vst [vmem:[%s8553_s29 + $0x5a8] sm:$0xf] %v905_v42  ;;  %908 = vst [vmem:[%s8553_s29 + $0x5ac] sm:$0xf] %v907_v43 }
 0x104   : > { %910 = vst [vmem:[%s8553_s29 + $0x5b0] sm:$0xf] %v909_v44  ;;  %v911_v45 = vld [vmem:[%s8549_s28 + $0xb68] sm:$0xf]  ;;  %v913_v46 = vld [vmem:[%s8549_s28 + $0xb70] sm:$0xf] }
 0x105   : > { %v915_v47 = vld [vmem:[%s8549_s28 + $0xb78] sm:$0xf]  ;;  %912 = vst [vmem:[%s8553_s29 + $0x5b4] sm:$0xf] %v911_v45  ;;  %914 = vst [vmem:[%s8553_s29 + $0x5b8] sm:$0xf] %v913_v46 }
 0x106   : > { %916 = vst [vmem:[%s8553_s29 + $0x5bc] sm:$0xf] %v915_v47  ;;  %v917_v48 = vld [vmem:[%s8549_s28 + $0xb80] sm:$0xf]  ;;  %v919_v49 = vld [vmem:[%s8549_s28 + $0xb88] sm:$0xf] }
 0x107   : > { %v921_v50 = vld [vmem:[%s8549_s28 + $0xb90] sm:$0xf]  ;;  %918 = vst [vmem:[%s8553_s29 + $0x5c0] sm:$0xf] %v917_v48  ;;  %920 = vst [vmem:[%s8553_s29 + $0x5c4] sm:$0xf] %v919_v49 }
 0x108   : > { %922 = vst [vmem:[%s8553_s29 + $0x5c8] sm:$0xf] %v921_v50  ;;  %v923_v51 = vld [vmem:[%s8549_s28 + $0xb98] sm:$0xf]  ;;  %v925_v52 = vld [vmem:[%s8549_s28 + $0xba0] sm:$0xf] }
 0x109   : > { %v927_v53 = vld [vmem:[%s8549_s28 + $0xba8] sm:$0xf]  ;;  %924 = vst [vmem:[%s8553_s29 + $0x5cc] sm:$0xf] %v923_v51  ;;  %926 = vst [vmem:[%s8553_s29 + $0x5d0] sm:$0xf] %v925_v52 }
 0x10a   : > { %928 = vst [vmem:[%s8553_s29 + $0x5d4] sm:$0xf] %v927_v53  ;;  %v929_v54 = vld [vmem:[%s8549_s28 + $0xbb0] sm:$0xf]  ;;  %v931_v55 = vld [vmem:[%s8549_s28 + $0xbb8] sm:$0xf] }
 0x10b   : > { %v933_v56 = vld [vmem:[%s8549_s28 + $0xbc0] sm:$0xf]  ;;  %930 = vst [vmem:[%s8553_s29 + $0x5d8] sm:$0xf] %v929_v54  ;;  %932 = vst [vmem:[%s8553_s29 + $0x5dc] sm:$0xf] %v931_v55 }
 0x10c   : > { %934 = vst [vmem:[%s8553_s29 + $0x5e0] sm:$0xf] %v933_v56  ;;  %v935_v57 = vld [vmem:[%s8549_s28 + $0xbc8] sm:$0xf]  ;;  %v937_v58 = vld [vmem:[%s8549_s28 + $0xbd0] sm:$0xf] }
 0x10d   : > { %v939_v59 = vld [vmem:[%s8549_s28 + $0xbd8] sm:$0xf]  ;;  %936 = vst [vmem:[%s8553_s29 + $0x5e4] sm:$0xf] %v935_v57  ;;  %938 = vst [vmem:[%s8553_s29 + $0x5e8] sm:$0xf] %v937_v58 }
 0x10e   : > { %940 = vst [vmem:[%s8553_s29 + $0x5ec] sm:$0xf] %v939_v59  ;;  %v941_v60 = vld [vmem:[%s8549_s28 + $0xbe0] sm:$0xf]  ;;  %v943_v61 = vld [vmem:[%s8549_s28 + $0xbe8] sm:$0xf] }
 0x10f   : > { %v945_v62 = vld [vmem:[%s8549_s28 + $0xbf0] sm:$0xf]  ;;  %942 = vst [vmem:[%s8553_s29 + $0x5f0] sm:$0xf] %v941_v60  ;;  %944 = vst [vmem:[%s8553_s29 + $0x5f4] sm:$0xf] %v943_v61 }
 0x110   : > { %946 = vst [vmem:[%s8553_s29 + $0x5f8] sm:$0xf] %v945_v62  ;;  %v947_v63 = vld [vmem:[%s8549_s28 + $0xbf8] sm:$0xf]  ;;  %v949_v0 = vld [vmem:[%s8549_s28 + $0xc00] sm:$0xf] }
 0x111   : > { %v951_v1 = vld [vmem:[%s8549_s28 + $0xc08] sm:$0xf]  ;;  %948 = vst [vmem:[%s8553_s29 + $0x5fc] sm:$0xf] %v947_v63  ;;  %950 = vst [vmem:[%s8553_s29 + $0x600] sm:$0xf] %v949_v0 }
 0x112   : > { %952 = vst [vmem:[%s8553_s29 + $0x604] sm:$0xf] %v951_v1  ;;  %v953_v2 = vld [vmem:[%s8549_s28 + $0xc10] sm:$0xf]  ;;  %v955_v3 = vld [vmem:[%s8549_s28 + $0xc18] sm:$0xf] }
 0x113   : > { %v957_v4 = vld [vmem:[%s8549_s28 + $0xc20] sm:$0xf]  ;;  %954 = vst [vmem:[%s8553_s29 + $0x608] sm:$0xf] %v953_v2  ;;  %956 = vst [vmem:[%s8553_s29 + $0x60c] sm:$0xf] %v955_v3 }
 0x114   : > { %958 = vst [vmem:[%s8553_s29 + $0x610] sm:$0xf] %v957_v4  ;;  %v959_v5 = vld [vmem:[%s8549_s28 + $0xc28] sm:$0xf]  ;;  %v961_v6 = vld [vmem:[%s8549_s28 + $0xc30] sm:$0xf] }
 0x115   : > { %v963_v7 = vld [vmem:[%s8549_s28 + $0xc38] sm:$0xf]  ;;  %960 = vst [vmem:[%s8553_s29 + $0x614] sm:$0xf] %v959_v5  ;;  %962 = vst [vmem:[%s8553_s29 + $0x618] sm:$0xf] %v961_v6 }
 0x116   : > { %964 = vst [vmem:[%s8553_s29 + $0x61c] sm:$0xf] %v963_v7  ;;  %v965_v8 = vld [vmem:[%s8549_s28 + $0xc40] sm:$0xf]  ;;  %v967_v9 = vld [vmem:[%s8549_s28 + $0xc48] sm:$0xf] }
 0x117   : > { %v969_v10 = vld [vmem:[%s8549_s28 + $0xc50] sm:$0xf]  ;;  %966 = vst [vmem:[%s8553_s29 + $0x620] sm:$0xf] %v965_v8  ;;  %968 = vst [vmem:[%s8553_s29 + $0x624] sm:$0xf] %v967_v9 }
 0x118   : > { %970 = vst [vmem:[%s8553_s29 + $0x628] sm:$0xf] %v969_v10  ;;  %v971_v11 = vld [vmem:[%s8549_s28 + $0xc58] sm:$0xf]  ;;  %v973_v12 = vld [vmem:[%s8549_s28 + $0xc60] sm:$0xf] }
 0x119   : > { %v975_v13 = vld [vmem:[%s8549_s28 + $0xc68] sm:$0xf]  ;;  %972 = vst [vmem:[%s8553_s29 + $0x62c] sm:$0xf] %v971_v11  ;;  %974 = vst [vmem:[%s8553_s29 + $0x630] sm:$0xf] %v973_v12 }
 0x11a   : > { %976 = vst [vmem:[%s8553_s29 + $0x634] sm:$0xf] %v975_v13  ;;  %v977_v14 = vld [vmem:[%s8549_s28 + $0xc70] sm:$0xf]  ;;  %v979_v15 = vld [vmem:[%s8549_s28 + $0xc78] sm:$0xf] }
 0x11b   : > { %v981_v16 = vld [vmem:[%s8549_s28 + $0xc80] sm:$0xf]  ;;  %978 = vst [vmem:[%s8553_s29 + $0x638] sm:$0xf] %v977_v14  ;;  %980 = vst [vmem:[%s8553_s29 + $0x63c] sm:$0xf] %v979_v15 }
 0x11c   : > { %982 = vst [vmem:[%s8553_s29 + $0x640] sm:$0xf] %v981_v16  ;;  %v983_v17 = vld [vmem:[%s8549_s28 + $0xc88] sm:$0xf]  ;;  %v985_v18 = vld [vmem:[%s8549_s28 + $0xc90] sm:$0xf] }
 0x11d   : > { %v987_v19 = vld [vmem:[%s8549_s28 + $0xc98] sm:$0xf]  ;;  %984 = vst [vmem:[%s8553_s29 + $0x644] sm:$0xf] %v983_v17  ;;  %986 = vst [vmem:[%s8553_s29 + $0x648] sm:$0xf] %v985_v18 }
 0x11e   : > { %988 = vst [vmem:[%s8553_s29 + $0x64c] sm:$0xf] %v987_v19  ;;  %v989_v20 = vld [vmem:[%s8549_s28 + $0xca0] sm:$0xf]  ;;  %v991_v21 = vld [vmem:[%s8549_s28 + $0xca8] sm:$0xf] }
 0x11f   : > { %v993_v22 = vld [vmem:[%s8549_s28 + $0xcb0] sm:$0xf]  ;;  %990 = vst [vmem:[%s8553_s29 + $0x650] sm:$0xf] %v989_v20  ;;  %992 = vst [vmem:[%s8553_s29 + $0x654] sm:$0xf] %v991_v21 }
 0x120   : > { %994 = vst [vmem:[%s8553_s29 + $0x658] sm:$0xf] %v993_v22  ;;  %v995_v23 = vld [vmem:[%s8549_s28 + $0xcb8] sm:$0xf]  ;;  %v997_v24 = vld [vmem:[%s8549_s28 + $0xcc0] sm:$0xf] }
 0x121   : > { %v999_v25 = vld [vmem:[%s8549_s28 + $0xcc8] sm:$0xf]  ;;  %996 = vst [vmem:[%s8553_s29 + $0x65c] sm:$0xf] %v995_v23  ;;  %998 = vst [vmem:[%s8553_s29 + $0x660] sm:$0xf] %v997_v24 }
 0x122   : > { %1000 = vst [vmem:[%s8553_s29 + $0x664] sm:$0xf] %v999_v25  ;;  %v1001_v26 = vld [vmem:[%s8549_s28 + $0xcd0] sm:$0xf]  ;;  %v1003_v27 = vld [vmem:[%s8549_s28 + $0xcd8] sm:$0xf] }
 0x123   : > { %v1005_v28 = vld [vmem:[%s8549_s28 + $0xce0] sm:$0xf]  ;;  %1002 = vst [vmem:[%s8553_s29 + $0x668] sm:$0xf] %v1001_v26  ;;  %1004 = vst [vmem:[%s8553_s29 + $0x66c] sm:$0xf] %v1003_v27 }
 0x124   : > { %1006 = vst [vmem:[%s8553_s29 + $0x670] sm:$0xf] %v1005_v28  ;;  %v1007_v29 = vld [vmem:[%s8549_s28 + $0xce8] sm:$0xf]  ;;  %v1009_v30 = vld [vmem:[%s8549_s28 + $0xcf0] sm:$0xf] }
 0x125   : > { %v1011_v31 = vld [vmem:[%s8549_s28 + $0xcf8] sm:$0xf]  ;;  %1008 = vst [vmem:[%s8553_s29 + $0x674] sm:$0xf] %v1007_v29  ;;  %1010 = vst [vmem:[%s8553_s29 + $0x678] sm:$0xf] %v1009_v30 }
 0x126   : > { %1012 = vst [vmem:[%s8553_s29 + $0x67c] sm:$0xf] %v1011_v31  ;;  %v1013_v32 = vld [vmem:[%s8549_s28 + $0xd00] sm:$0xf]  ;;  %v1015_v33 = vld [vmem:[%s8549_s28 + $0xd08] sm:$0xf] }
 0x127   : > { %v1017_v34 = vld [vmem:[%s8549_s28 + $0xd10] sm:$0xf]  ;;  %1014 = vst [vmem:[%s8553_s29 + $0x680] sm:$0xf] %v1013_v32  ;;  %1016 = vst [vmem:[%s8553_s29 + $0x684] sm:$0xf] %v1015_v33 }
 0x128   : > { %1018 = vst [vmem:[%s8553_s29 + $0x688] sm:$0xf] %v1017_v34  ;;  %v1019_v35 = vld [vmem:[%s8549_s28 + $0xd18] sm:$0xf]  ;;  %v1021_v36 = vld [vmem:[%s8549_s28 + $0xd20] sm:$0xf] }
 0x129   : > { %v1023_v37 = vld [vmem:[%s8549_s28 + $0xd28] sm:$0xf]  ;;  %1020 = vst [vmem:[%s8553_s29 + $0x68c] sm:$0xf] %v1019_v35  ;;  %1022 = vst [vmem:[%s8553_s29 + $0x690] sm:$0xf] %v1021_v36 }
 0x12a   : > { %1024 = vst [vmem:[%s8553_s29 + $0x694] sm:$0xf] %v1023_v37  ;;  %v1025_v38 = vld [vmem:[%s8549_s28 + $0xd30] sm:$0xf]  ;;  %v1027_v39 = vld [vmem:[%s8549_s28 + $0xd38] sm:$0xf] }
 0x12b   : > { %v1029_v40 = vld [vmem:[%s8549_s28 + $0xd40] sm:$0xf]  ;;  %1026 = vst [vmem:[%s8553_s29 + $0x698] sm:$0xf] %v1025_v38  ;;  %1028 = vst [vmem:[%s8553_s29 + $0x69c] sm:$0xf] %v1027_v39 }
 0x12c   : > { %1030 = vst [vmem:[%s8553_s29 + $0x6a0] sm:$0xf] %v1029_v40  ;;  %v1031_v41 = vld [vmem:[%s8549_s28 + $0xd48] sm:$0xf]  ;;  %v1033_v42 = vld [vmem:[%s8549_s28 + $0xd50] sm:$0xf] }
 0x12d   : > { %v1035_v43 = vld [vmem:[%s8549_s28 + $0xd58] sm:$0xf]  ;;  %1032 = vst [vmem:[%s8553_s29 + $0x6a4] sm:$0xf] %v1031_v41  ;;  %1034 = vst [vmem:[%s8553_s29 + $0x6a8] sm:$0xf] %v1033_v42 }
 0x12e   : > { %1036 = vst [vmem:[%s8553_s29 + $0x6ac] sm:$0xf] %v1035_v43  ;;  %v1037_v44 = vld [vmem:[%s8549_s28 + $0xd60] sm:$0xf]  ;;  %v1039_v45 = vld [vmem:[%s8549_s28 + $0xd68] sm:$0xf] }
 0x12f   : > { %v1041_v46 = vld [vmem:[%s8549_s28 + $0xd70] sm:$0xf]  ;;  %1038 = vst [vmem:[%s8553_s29 + $0x6b0] sm:$0xf] %v1037_v44  ;;  %1040 = vst [vmem:[%s8553_s29 + $0x6b4] sm:$0xf] %v1039_v45 }
 0x130   : > { %1042 = vst [vmem:[%s8553_s29 + $0x6b8] sm:$0xf] %v1041_v46  ;;  %v1043_v47 = vld [vmem:[%s8549_s28 + $0xd78] sm:$0xf]  ;;  %v1045_v48 = vld [vmem:[%s8549_s28 + $0xd80] sm:$0xf] }
 0x131   : > { %v1047_v49 = vld [vmem:[%s8549_s28 + $0xd88] sm:$0xf]  ;;  %1044 = vst [vmem:[%s8553_s29 + $0x6bc] sm:$0xf] %v1043_v47  ;;  %1046 = vst [vmem:[%s8553_s29 + $0x6c0] sm:$0xf] %v1045_v48 }
 0x132   : > { %1048 = vst [vmem:[%s8553_s29 + $0x6c4] sm:$0xf] %v1047_v49  ;;  %v1049_v50 = vld [vmem:[%s8549_s28 + $0xd90] sm:$0xf]  ;;  %v1051_v51 = vld [vmem:[%s8549_s28 + $0xd98] sm:$0xf] }
 0x133   : > { %v1053_v52 = vld [vmem:[%s8549_s28 + $0xda0] sm:$0xf]  ;;  %1050 = vst [vmem:[%s8553_s29 + $0x6c8] sm:$0xf] %v1049_v50  ;;  %1052 = vst [vmem:[%s8553_s29 + $0x6cc] sm:$0xf] %v1051_v51 }
 0x134   : > { %1054 = vst [vmem:[%s8553_s29 + $0x6d0] sm:$0xf] %v1053_v52  ;;  %v1055_v53 = vld [vmem:[%s8549_s28 + $0xda8] sm:$0xf]  ;;  %v1057_v54 = vld [vmem:[%s8549_s28 + $0xdb0] sm:$0xf] }
 0x135   : > { %v1059_v55 = vld [vmem:[%s8549_s28 + $0xdb8] sm:$0xf]  ;;  %1056 = vst [vmem:[%s8553_s29 + $0x6d4] sm:$0xf] %v1055_v53  ;;  %1058 = vst [vmem:[%s8553_s29 + $0x6d8] sm:$0xf] %v1057_v54 }
 0x136   : > { %1060 = vst [vmem:[%s8553_s29 + $0x6dc] sm:$0xf] %v1059_v55  ;;  %v1061_v56 = vld [vmem:[%s8549_s28 + $0xdc0] sm:$0xf]  ;;  %v1063_v57 = vld [vmem:[%s8549_s28 + $0xdc8] sm:$0xf] }
 0x137   : > { %v1065_v58 = vld [vmem:[%s8549_s28 + $0xdd0] sm:$0xf]  ;;  %1062 = vst [vmem:[%s8553_s29 + $0x6e0] sm:$0xf] %v1061_v56  ;;  %1064 = vst [vmem:[%s8553_s29 + $0x6e4] sm:$0xf] %v1063_v57 }
 0x138   : > { %1066 = vst [vmem:[%s8553_s29 + $0x6e8] sm:$0xf] %v1065_v58  ;;  %v1067_v59 = vld [vmem:[%s8549_s28 + $0xdd8] sm:$0xf]  ;;  %v1069_v60 = vld [vmem:[%s8549_s28 + $0xde0] sm:$0xf] }
 0x139   : > { %v1071_v61 = vld [vmem:[%s8549_s28 + $0xde8] sm:$0xf]  ;;  %1068 = vst [vmem:[%s8553_s29 + $0x6ec] sm:$0xf] %v1067_v59  ;;  %1070 = vst [vmem:[%s8553_s29 + $0x6f0] sm:$0xf] %v1069_v60 }
 0x13a   : > { %1072 = vst [vmem:[%s8553_s29 + $0x6f4] sm:$0xf] %v1071_v61  ;;  %v1073_v62 = vld [vmem:[%s8549_s28 + $0xdf0] sm:$0xf]  ;;  %v1075_v63 = vld [vmem:[%s8549_s28 + $0xdf8] sm:$0xf] }
 0x13b   : > { %v1077_v0 = vld [vmem:[%s8549_s28 + $0xe00] sm:$0xf]  ;;  %1074 = vst [vmem:[%s8553_s29 + $0x6f8] sm:$0xf] %v1073_v62  ;;  %1076 = vst [vmem:[%s8553_s29 + $0x6fc] sm:$0xf] %v1075_v63 }
 0x13c   : > { %1078 = vst [vmem:[%s8553_s29 + $0x700] sm:$0xf] %v1077_v0  ;;  %v1079_v1 = vld [vmem:[%s8549_s28 + $0xe08] sm:$0xf]  ;;  %v1081_v2 = vld [vmem:[%s8549_s28 + $0xe10] sm:$0xf] }
 0x13d   : > { %v1083_v3 = vld [vmem:[%s8549_s28 + $0xe18] sm:$0xf]  ;;  %1080 = vst [vmem:[%s8553_s29 + $0x704] sm:$0xf] %v1079_v1  ;;  %1082 = vst [vmem:[%s8553_s29 + $0x708] sm:$0xf] %v1081_v2 }
 0x13e   : > { %1084 = vst [vmem:[%s8553_s29 + $0x70c] sm:$0xf] %v1083_v3  ;;  %v1085_v4 = vld [vmem:[%s8549_s28 + $0xe20] sm:$0xf]  ;;  %v1087_v5 = vld [vmem:[%s8549_s28 + $0xe28] sm:$0xf] }
 0x13f   : > { %v1089_v6 = vld [vmem:[%s8549_s28 + $0xe30] sm:$0xf]  ;;  %1086 = vst [vmem:[%s8553_s29 + $0x710] sm:$0xf] %v1085_v4  ;;  %1088 = vst [vmem:[%s8553_s29 + $0x714] sm:$0xf] %v1087_v5 }
 0x140   : > { %1090 = vst [vmem:[%s8553_s29 + $0x718] sm:$0xf] %v1089_v6  ;;  %v1091_v7 = vld [vmem:[%s8549_s28 + $0xe38] sm:$0xf]  ;;  %v1093_v8 = vld [vmem:[%s8549_s28 + $0xe40] sm:$0xf] }
 0x141   : > { %v1095_v9 = vld [vmem:[%s8549_s28 + $0xe48] sm:$0xf]  ;;  %1092 = vst [vmem:[%s8553_s29 + $0x71c] sm:$0xf] %v1091_v7  ;;  %1094 = vst [vmem:[%s8553_s29 + $0x720] sm:$0xf] %v1093_v8 }
 0x142   : > { %1096 = vst [vmem:[%s8553_s29 + $0x724] sm:$0xf] %v1095_v9  ;;  %v1097_v10 = vld [vmem:[%s8549_s28 + $0xe50] sm:$0xf]  ;;  %v1099_v11 = vld [vmem:[%s8549_s28 + $0xe58] sm:$0xf] }
 0x143   : > { %v1101_v12 = vld [vmem:[%s8549_s28 + $0xe60] sm:$0xf]  ;;  %1098 = vst [vmem:[%s8553_s29 + $0x728] sm:$0xf] %v1097_v10  ;;  %1100 = vst [vmem:[%s8553_s29 + $0x72c] sm:$0xf] %v1099_v11 }
 0x144   : > { %1102 = vst [vmem:[%s8553_s29 + $0x730] sm:$0xf] %v1101_v12  ;;  %v1103_v13 = vld [vmem:[%s8549_s28 + $0xe68] sm:$0xf]  ;;  %v1105_v14 = vld [vmem:[%s8549_s28 + $0xe70] sm:$0xf] }
 0x145   : > { %v1107_v15 = vld [vmem:[%s8549_s28 + $0xe78] sm:$0xf]  ;;  %1104 = vst [vmem:[%s8553_s29 + $0x734] sm:$0xf] %v1103_v13  ;;  %1106 = vst [vmem:[%s8553_s29 + $0x738] sm:$0xf] %v1105_v14 }
 0x146   : > { %1108 = vst [vmem:[%s8553_s29 + $0x73c] sm:$0xf] %v1107_v15  ;;  %v1109_v16 = vld [vmem:[%s8549_s28 + $0xe80] sm:$0xf]  ;;  %v1111_v17 = vld [vmem:[%s8549_s28 + $0xe88] sm:$0xf] }
 0x147   : > { %v1113_v18 = vld [vmem:[%s8549_s28 + $0xe90] sm:$0xf]  ;;  %1110 = vst [vmem:[%s8553_s29 + $0x740] sm:$0xf] %v1109_v16  ;;  %1112 = vst [vmem:[%s8553_s29 + $0x744] sm:$0xf] %v1111_v17 }
 0x148   : > { %1114 = vst [vmem:[%s8553_s29 + $0x748] sm:$0xf] %v1113_v18  ;;  %v1115_v19 = vld [vmem:[%s8549_s28 + $0xe98] sm:$0xf]  ;;  %v1117_v20 = vld [vmem:[%s8549_s28 + $0xea0] sm:$0xf] }
 0x149   : > { %v1119_v21 = vld [vmem:[%s8549_s28 + $0xea8] sm:$0xf]  ;;  %1116 = vst [vmem:[%s8553_s29 + $0x74c] sm:$0xf] %v1115_v19  ;;  %1118 = vst [vmem:[%s8553_s29 + $0x750] sm:$0xf] %v1117_v20 }
 0x14a   : > { %1120 = vst [vmem:[%s8553_s29 + $0x754] sm:$0xf] %v1119_v21  ;;  %v1121_v22 = vld [vmem:[%s8549_s28 + $0xeb0] sm:$0xf]  ;;  %v1123_v23 = vld [vmem:[%s8549_s28 + $0xeb8] sm:$0xf] }
 0x14b   : > { %v1125_v24 = vld [vmem:[%s8549_s28 + $0xec0] sm:$0xf]  ;;  %1122 = vst [vmem:[%s8553_s29 + $0x758] sm:$0xf] %v1121_v22  ;;  %1124 = vst [vmem:[%s8553_s29 + $0x75c] sm:$0xf] %v1123_v23 }
 0x14c   : > { %1126 = vst [vmem:[%s8553_s29 + $0x760] sm:$0xf] %v1125_v24  ;;  %v1127_v25 = vld [vmem:[%s8549_s28 + $0xec8] sm:$0xf]  ;;  %v1129_v26 = vld [vmem:[%s8549_s28 + $0xed0] sm:$0xf] }
 0x14d   : > { %v1131_v27 = vld [vmem:[%s8549_s28 + $0xed8] sm:$0xf]  ;;  %1128 = vst [vmem:[%s8553_s29 + $0x764] sm:$0xf] %v1127_v25  ;;  %1130 = vst [vmem:[%s8553_s29 + $0x768] sm:$0xf] %v1129_v26 }
 0x14e   : > { %1132 = vst [vmem:[%s8553_s29 + $0x76c] sm:$0xf] %v1131_v27  ;;  %v1133_v28 = vld [vmem:[%s8549_s28 + $0xee0] sm:$0xf]  ;;  %v1135_v29 = vld [vmem:[%s8549_s28 + $0xee8] sm:$0xf] }
 0x14f   : > { %v1137_v30 = vld [vmem:[%s8549_s28 + $0xef0] sm:$0xf]  ;;  %1134 = vst [vmem:[%s8553_s29 + $0x770] sm:$0xf] %v1133_v28  ;;  %1136 = vst [vmem:[%s8553_s29 + $0x774] sm:$0xf] %v1135_v29 }
 0x150   : > { %1138 = vst [vmem:[%s8553_s29 + $0x778] sm:$0xf] %v1137_v30  ;;  %v1139_v31 = vld [vmem:[%s8549_s28 + $0xef8] sm:$0xf]  ;;  %v1141_v32 = vld [vmem:[%s8549_s28 + $0xf00] sm:$0xf] }
 0x151   : > { %v1143_v33 = vld [vmem:[%s8549_s28 + $0xf08] sm:$0xf]  ;;  %1140 = vst [vmem:[%s8553_s29 + $0x77c] sm:$0xf] %v1139_v31  ;;  %1142 = vst [vmem:[%s8553_s29 + $0x780] sm:$0xf] %v1141_v32 }
 0x152   : > { %1144 = vst [vmem:[%s8553_s29 + $0x784] sm:$0xf] %v1143_v33  ;;  %v1145_v34 = vld [vmem:[%s8549_s28 + $0xf10] sm:$0xf]  ;;  %v1147_v35 = vld [vmem:[%s8549_s28 + $0xf18] sm:$0xf] }
 0x153   : > { %v1149_v36 = vld [vmem:[%s8549_s28 + $0xf20] sm:$0xf]  ;;  %1146 = vst [vmem:[%s8553_s29 + $0x788] sm:$0xf] %v1145_v34  ;;  %1148 = vst [vmem:[%s8553_s29 + $0x78c] sm:$0xf] %v1147_v35 }
 0x154   : > { %1150 = vst [vmem:[%s8553_s29 + $0x790] sm:$0xf] %v1149_v36  ;;  %v1151_v37 = vld [vmem:[%s8549_s28 + $0xf28] sm:$0xf]  ;;  %v1153_v38 = vld [vmem:[%s8549_s28 + $0xf30] sm:$0xf] }
 0x155   : > { %v1155_v39 = vld [vmem:[%s8549_s28 + $0xf38] sm:$0xf]  ;;  %1152 = vst [vmem:[%s8553_s29 + $0x794] sm:$0xf] %v1151_v37  ;;  %1154 = vst [vmem:[%s8553_s29 + $0x798] sm:$0xf] %v1153_v38 }
 0x156   : > { %1156 = vst [vmem:[%s8553_s29 + $0x79c] sm:$0xf] %v1155_v39  ;;  %v1157_v40 = vld [vmem:[%s8549_s28 + $0xf40] sm:$0xf]  ;;  %v1159_v41 = vld [vmem:[%s8549_s28 + $0xf48] sm:$0xf] }
 0x157   : > { %v1161_v42 = vld [vmem:[%s8549_s28 + $0xf50] sm:$0xf]  ;;  %1158 = vst [vmem:[%s8553_s29 + $0x7a0] sm:$0xf] %v1157_v40  ;;  %1160 = vst [vmem:[%s8553_s29 + $0x7a4] sm:$0xf] %v1159_v41 }
 0x158   : > { %1162 = vst [vmem:[%s8553_s29 + $0x7a8] sm:$0xf] %v1161_v42  ;;  %v1163_v43 = vld [vmem:[%s8549_s28 + $0xf58] sm:$0xf]  ;;  %v1165_v44 = vld [vmem:[%s8549_s28 + $0xf60] sm:$0xf] }
 0x159   : > { %v1167_v45 = vld [vmem:[%s8549_s28 + $0xf68] sm:$0xf]  ;;  %1164 = vst [vmem:[%s8553_s29 + $0x7ac] sm:$0xf] %v1163_v43  ;;  %1166 = vst [vmem:[%s8553_s29 + $0x7b0] sm:$0xf] %v1165_v44 }
 0x15a   : > { %1168 = vst [vmem:[%s8553_s29 + $0x7b4] sm:$0xf] %v1167_v45  ;;  %v1169_v46 = vld [vmem:[%s8549_s28 + $0xf70] sm:$0xf]  ;;  %v1171_v47 = vld [vmem:[%s8549_s28 + $0xf78] sm:$0xf] }
 0x15b   : > { %v1173_v48 = vld [vmem:[%s8549_s28 + $0xf80] sm:$0xf]  ;;  %1170 = vst [vmem:[%s8553_s29 + $0x7b8] sm:$0xf] %v1169_v46  ;;  %1172 = vst [vmem:[%s8553_s29 + $0x7bc] sm:$0xf] %v1171_v47 }
 0x15c   : > { %1174 = vst [vmem:[%s8553_s29 + $0x7c0] sm:$0xf] %v1173_v48  ;;  %v1175_v49 = vld [vmem:[%s8549_s28 + $0xf88] sm:$0xf]  ;;  %v1177_v50 = vld [vmem:[%s8549_s28 + $0xf90] sm:$0xf] }
 0x15d   : > { %v1179_v51 = vld [vmem:[%s8549_s28 + $0xf98] sm:$0xf]  ;;  %1176 = vst [vmem:[%s8553_s29 + $0x7c4] sm:$0xf] %v1175_v49  ;;  %1178 = vst [vmem:[%s8553_s29 + $0x7c8] sm:$0xf] %v1177_v50 }
 0x15e   : > { %1180 = vst [vmem:[%s8553_s29 + $0x7cc] sm:$0xf] %v1179_v51  ;;  %v1181_v52 = vld [vmem:[%s8549_s28 + $0xfa0] sm:$0xf]  ;;  %v1183_v53 = vld [vmem:[%s8549_s28 + $0xfa8] sm:$0xf] }
 0x15f   : > { %v1185_v54 = vld [vmem:[%s8549_s28 + $0xfb0] sm:$0xf]  ;;  %1182 = vst [vmem:[%s8553_s29 + $0x7d0] sm:$0xf] %v1181_v52  ;;  %1184 = vst [vmem:[%s8553_s29 + $0x7d4] sm:$0xf] %v1183_v53 }
 0x160   : > { %1186 = vst [vmem:[%s8553_s29 + $0x7d8] sm:$0xf] %v1185_v54  ;;  %v1187_v55 = vld [vmem:[%s8549_s28 + $0xfb8] sm:$0xf]  ;;  %v1189_v56 = vld [vmem:[%s8549_s28 + $0xfc0] sm:$0xf] }
 0x161   : > { %v1191_v57 = vld [vmem:[%s8549_s28 + $0xfc8] sm:$0xf]  ;;  %1188 = vst [vmem:[%s8553_s29 + $0x7dc] sm:$0xf] %v1187_v55  ;;  %1190 = vst [vmem:[%s8553_s29 + $0x7e0] sm:$0xf] %v1189_v56 }
 0x162   : > { %1192 = vst [vmem:[%s8553_s29 + $0x7e4] sm:$0xf] %v1191_v57  ;;  %v1193_v58 = vld [vmem:[%s8549_s28 + $0xfd0] sm:$0xf]  ;;  %v1195_v59 = vld [vmem:[%s8549_s28 + $0xfd8] sm:$0xf] }
 0x163   : > { %v1197_v60 = vld [vmem:[%s8549_s28 + $0xfe0] sm:$0xf]  ;;  %1194 = vst [vmem:[%s8553_s29 + $0x7e8] sm:$0xf] %v1193_v58  ;;  %1196 = vst [vmem:[%s8553_s29 + $0x7ec] sm:$0xf] %v1195_v59 }
 0x164   : > { %1198 = vst [vmem:[%s8553_s29 + $0x7f0] sm:$0xf] %v1197_v60  ;;  %v1199_v61 = vld [vmem:[%s8549_s28 + $0xfe8] sm:$0xf]  ;;  %v1201_v62 = vld [vmem:[%s8549_s28 + $0xff0] sm:$0xf] }
 0x165   : > { %v1203_v63 = vld [vmem:[%s8549_s28 + $0xff8] sm:$0xf]  ;;  %1200 = vst [vmem:[%s8553_s29 + $0x7f4] sm:$0xf] %v1199_v61  ;;  %1202 = vst [vmem:[%s8553_s29 + $0x7f8] sm:$0xf] %v1201_v62 }
 0x166   : > { %1204 = vst [vmem:[%s8553_s29 + $0x7fc] sm:$0xf] %v1203_v63 }
 0x167 PF: > { %p7509_p5 = scmp.ge.s32.totalorder %s8483_s17, 1  ;;  %p4343_p6 = scmp.lt.s32.totalorder %s8483_s17, 3 }
 0x169   : > { %p4344_p7 = pnand %p7509_p5, %p4343_p6 }
 0x16a   : > { %s4350_s30 = sand.u32 (!%p4344_p7), 1, %s8475_s15   ;;  %v4396_v0 = vld [vmem:[%s9964_s0] sm:$0xff] (!%p4344_p7)  ;;  %v4416_v1 = vlaneseq (!%p4344_p7)  ;;  %v8485_v2 = vmov (!%p4344_p7), 1983009808   ;;  %v4397_v32 = vld [vmem:[%s9964_s0 + $0x8] sm:$0xff] (!%p4344_p7)  ;;  %p4382_p8 = scmp.lt.s32.totalorder (!%p4344_p7), %s8529_s18, 1 }
 0x16b   : > { %4347 = sbr.rel (%p4344_p7) target bundleno = 1061 (0x425), region = 84  ;;  %s7510_s7 = sshll.u32 (!%p4344_p7), %s4350_s30, 11  ;;  %v4414_v3 = vunpack.c.l.s4 (!%p4344_p7), %v8485_v2  ;;  %v4412_v7 = vcombine.high (!%p4344_p7), %v4396_v0, %v4396_v0  ;;  %v4429_v38 = vcombine.high (!%p4344_p7), %v4397_v32, %v4397_v32  ;;  %vm8487_vm0 = vmmov (!%p4344_p7), 0  }
 0x16c   : > { %v4417_v4 = vshrl.u32 (!%p4344_p7), %v4416_v1, 7  ;;  %s9583_s8 = scalar_lea.vmem (!%p4344_p7), [#allocation2], %s7510_s7  ;;  %s7511_s5 = sshll.u32 (!%p4344_p7), %s8529_s18, 4  ;;  %vm7413_vm1 = vcmask (!%p4344_p7), 74752  }
 0x16d   : > { %v8189_v5 = vld [vmem:[%s9583_s8 + $0x40] sm:$0xff] (!%p4344_p7)   ;;  %v4415_v6 = vunpack.c.0.s8 (!%p4344_p7), %v4414_v3  ;;  %v8193_v12 = vld [vmem:[%s9583_s8 + $0x48] sm:$0xff] (!%p4344_p7)   ;;  %v8197_v20 = vld [vmem:[%s9583_s8 + $0x50] sm:$0xff] (!%p4344_p7)   ;;  %p4386_p9 = scmp.lt.s32.totalorder (!%p4344_p7), %s7511_s5, 31 }
 0x16e   : > { %v8190_v8 = vld [vmem:[%s9583_s8 + $0xc0] sm:$0xff] (!%p4344_p7)   ;;  %7781 = vmatprep.subr.bf16.mxu0 (!%p4344_p7), %v8189_v5  ;;  %v8194_v15 = vld [vmem:[%s9583_s8 + $0xc8] sm:$0xff] (!%p4344_p7)   ;;  %v8198_v23 = vld [vmem:[%s9583_s8 + $0xd0] sm:$0xff] (!%p4344_p7)  }
 0x16f   : > { %v8191_v9 = vld [vmem:[%s9583_s8] sm:$0xff] (!%p4344_p7)   ;;  %v9588_v10 = vsub.s32 (!%p4344_p7), %v4415_v6, %v4417_v4  ;;  %7803 = vmatprep.subr.bf16.mxu1 (!%p4344_p7), %v8190_v8  ;;  %v8195_v16 = vld [vmem:[%s9583_s8 + $0x8] sm:$0xff] (!%p4344_p7)   ;;  %v8199_v24 = vld [vmem:[%s9583_s8 + $0x10] sm:$0xff] (!%p4344_p7)  }
 0x170   : > { %v8192_v11 = vld [vmem:[%s9583_s8 + $0x80] sm:$0xff] (!%p4344_p7)   ;;  %7782 = vmatpush3.bf16.msra.mxu0 (!%p4344_p7), %v8191_v9  ;;  %v8196_v19 = vld [vmem:[%s9583_s8 + $0x88] sm:$0xff] (!%p4344_p7)   ;;  %v8200_v25 = vld [vmem:[%s9583_s8 + $0x90] sm:$0xff] (!%p4344_p7)  }
 0x171   : > { %v9593_v13 = vrot.slane (!%p4344_p7), %v4396_v0, %v9588_v10  ;;  %v9596_v14 = vrot.slane (!%p4344_p7), %v4412_v7, %v9588_v10  ;;  %7804 = vmatpush3.bf16.msra.mxu1 (!%p4344_p7), %v8192_v11  ;;  %7783 = vmatprep.subr.bf16.mxu0 (!%p4344_p7), %v8193_v12  ;;  %v8201_v26 = vld [vmem:[%s9583_s8 + $0x58] sm:$0xff] (!%p4344_p7)   ;;  %v8205_v30 = vld [vmem:[%s9583_s8 + $0x60] sm:$0xff] (!%p4344_p7)   ;;  %v8209_v35 = vld [vmem:[%s9583_s8 + $0x68] sm:$0xff] (!%p4344_p7)   ;;  %v9627_v42 = vrot.slane (!%p4344_p7), %v4397_v32, %v9588_v10 }
 0x172   : > { %7805 = vmatprep.subr.bf16.mxu1 %v8194_v15  ;;  %v8202_v27 = vld [vmem:[%s9583_s8 + $0xd8] sm:$0xff]   ;;  %v8206_v31 = vld [vmem:[%s9583_s8 + $0xe0] sm:$0xff]   ;;  %v8210_v36 = vld [vmem:[%s9583_s8 + $0xe8] sm:$0xff]   ;;  %v9631_v44 = vrot.slane %v4429_v38, %v9588_v10  ;;  %s9906_s25 = scalar_select %p4382_p8, %s8529_s18, 1 }
 0x173   : > { %v4427_v17 = vcombine.high %v9593_v13, %v9593_v13  ;;  %v4428_v18 = vcombine.high %v9596_v14, %v9596_v14  ;;  %v8203_v28 = vld [vmem:[%s9583_s8 + $0x18] sm:$0xff]   ;;  %v8207_v33 = vld [vmem:[%s9583_s8 + $0x20] sm:$0xff]   ;;  %v8211_v37 = vld [vmem:[%s9583_s8 + $0x28] sm:$0xff]   ;;  %v4444_v48 = vcombine.high %v9627_v42, %v9627_v42  ;;  %v4580_v52 = vpack.c.bf16 %v9593_v13, %v9593_v13  ;;  %s9973_s5 = smov (!%p4386_p9, %s7511_s5), 31 }
 0x174   : > { %7784 = vmatpush3.bf16.msra.mxu0 %v8195_v16  ;;  %v8204_v29 = vld [vmem:[%s9583_s8 + $0x98] sm:$0xff]   ;;  %v8208_v34 = vld [vmem:[%s9583_s8 + $0xa0] sm:$0xff]   ;;  %v8212_v39 = vld [vmem:[%s9583_s8 + $0xa8] sm:$0xff]   ;;  %v4445_v50 = vcombine.high %v9631_v44, %v9631_v44  ;;  %v4582_v53 = vpack.c.bf16 %v9596_v14, %v9596_v14  ;;  %v4586_v32 = vpack.c.bf16 %v9631_v44, %v9631_v44  ;;  %s4384_s28 = scalar_lea.vmem %s9966_s2, %s9906_s25  ;;  %s7512_s6 = sshll.u32 %s9973_s5, 2 }
 0x175   : > { %v4581_v21 = vpack.c.bf16 %v4427_v17, %v4427_v17  ;;  %v4583_v22 = vpack.c.bf16 %v4428_v18, %v4428_v18  ;;  %7806 = vmatpush3.bf16.msra.mxu1 %v8196_v19  ;;  %7785 = vmatprep.subr.bf16.mxu0 %v8197_v20  ;;  %v8213_v40 = vld [vmem:[%s9583_s8 + $0x70] sm:$0xff]   ;;  %v8217_v46 = vld [vmem:[%s9583_s8 + $0x78] sm:$0xff]   ;;  %v8222_v54 = vld [vmem:[%s9583_s8 + $0x140] sm:$0xff]   ;;  %v4585_v56 = vpack.c.bf16 %v4444_v48, %v4444_v48  ;;  %s9940_s9 = scalar_lea.vmem %s9967_s3, %s7512_s6  ;;  %s7513_s18 = sshll.u32 %s9906_s25, 1 }
 0x176   : > { %7807 = vmatprep.subr.bf16.mxu1 %v8198_v23  ;;  %v8214_v41 = vld [vmem:[%s9583_s8 + $0xf0] sm:$0xff]   ;;  %v8218_v47 = vld [vmem:[%s9583_s8 + $0xf8] sm:$0xff]   ;;  %v8223_v55 = vld [vmem:[%s9583_s8 + $0x1c0] sm:$0xff]   ;;  %v4587_v58 = vpack.c.bf16 %v4445_v50, %v4445_v50  ;;  %s4394_s12 = scalar_lea.vmem %s9968_s4, %s7513_s18 }
 0x177   : > { %6699 = vmatprep.mubr.bf16.mxu0 %v4581_v21  ;;  %6739 = vmatprep.mubr.bf16.mxu1 %v4583_v22  ;;  %v8215_v43 = vld [vmem:[%s9583_s8 + $0x30] sm:$0xff]   ;;  %v8219_v49 = vld [vmem:[%s9583_s8 + $0x38] sm:$0xff]   ;;  %v8224_v57 = vld [vmem:[%s9583_s8 + $0x100] sm:$0xff]  }
 0x178   : > { %7786 = vmatpush3.bf16.msra.mxu0 %v8199_v24  ;;  %v8216_v45 = vld [vmem:[%s9583_s8 + $0xb0] sm:$0xff]   ;;  %v8220_v51 = vld [vmem:[%s9583_s8 + $0xb8] sm:$0xff]   ;;  %v8225_v59 = vld [vmem:[%s9583_s8 + $0x180] sm:$0xff]  }
 0x179   : > { %7808 = vmatpush3.bf16.msra.mxu1 %v8200_v25  ;;  %7787 = vmatprep.subr.bf16.mxu0 %v8201_v26  ;;  %v8226_v60 = vld [vmem:[%s9583_s8 + $0x148] sm:$0xff]   ;;  %v8230_v0 = vld [vmem:[%s9583_s8 + $0x150] sm:$0xff]   ;;  %v8234_v4 = vld [vmem:[%s9583_s8 + $0x158] sm:$0xff]  }
 0x17a   : > { %7809 = vmatprep.subr.bf16.mxu1 %v8202_v27  ;;  %v8227_v61 = vld [vmem:[%s9583_s8 + $0x1c8] sm:$0xff]   ;;  %v8231_v1 = vld [vmem:[%s9583_s8 + $0x1d0] sm:$0xff]   ;;  %v8235_v5 = vld [vmem:[%s9583_s8 + $0x1d8] sm:$0xff]  }
 0x17b   : > { %v8228_v62 = vld [vmem:[%s9583_s8 + $0x108] sm:$0xff]   ;;  %v8232_v2 = vld [vmem:[%s9583_s8 + $0x110] sm:$0xff]   ;;  %v8236_v6 = vld [vmem:[%s9583_s8 + $0x118] sm:$0xff]  }
 0x17c   : > { %7788 = vmatpush3.bf16.msra.mxu0 %v8203_v28  ;;  %v8229_v63 = vld [vmem:[%s9583_s8 + $0x188] sm:$0xff]   ;;  %v8233_v3 = vld [vmem:[%s9583_s8 + $0x190] sm:$0xff]   ;;  %v8237_v7 = vld [vmem:[%s9583_s8 + $0x198] sm:$0xff]  }
 0x17d   : > { %7810 = vmatpush3.bf16.msra.mxu1 %v8204_v29  ;;  %7789 = vmatprep.subr.bf16.mxu0 %v8205_v30  ;;  %v8238_v8 = vld [vmem:[%s9583_s8 + $0x160] sm:$0xff]   ;;  %v4398_v11 = vld [vmem:[%s9964_s0 + $0x10] sm:$0xff]  ;;  %v8242_v14 = vld [vmem:[%s9583_s8 + $0x168] sm:$0xff]  }
 0x17e   : > { %7811 = vmatprep.subr.bf16.mxu1 %v8206_v31  ;;  %v8239_v9 = vld [vmem:[%s9583_s8 + $0x1e0] sm:$0xff]   ;;  %v8243_v15 = vld [vmem:[%s9583_s8 + $0x1e8] sm:$0xff]   ;;  %v4446_v17 = vcombine.high %v4398_v11, %v4398_v11  ;;  %v8246_v19 = vld [vmem:[%s9583_s8 + $0x170] sm:$0xff]   ;;  %v9676_v21 = vrot.slane %v4398_v11, %v9588_v10  ;;  %v4584_v31 = vpack.c.bf16 %v9627_v42, %v9627_v42 }
 0x17f   : > { %v8240_v12 = vld [vmem:[%s9583_s8 + $0x120] sm:$0xff]   ;;  %v8244_v16 = vld [vmem:[%s9583_s8 + $0x128] sm:$0xff]   ;;  %v8247_v20 = vld [vmem:[%s9583_s8 + $0x1f0] sm:$0xff]  }
 0x180   : > { %7790 = vmatpush3.bf16.msra.mxu0 %v8207_v33  ;;  %v8241_v13 = vld [vmem:[%s9583_s8 + $0x1a0] sm:$0xff]   ;;  %v8245_v18 = vld [vmem:[%s9583_s8 + $0x1a8] sm:$0xff]   ;;  %v8248_v22 = vld [vmem:[%s9583_s8 + $0x130] sm:$0xff]   ;;  %v9680_v23 = vrot.slane %v4446_v17, %v9588_v10  ;;  %v4461_v27 = vcombine.high %v9676_v21, %v9676_v21 }
 0x181   : > { %7812 = vmatpush3.bf16.msra.mxu1 %v8208_v34  ;;  %7791 = vmatprep.subr.bf16.mxu0 %v8209_v35  ;;  %v8249_v24 = vld [vmem:[%s9583_s8 + $0x1b0] sm:$0xff]   ;;  %v8250_v25 = vld [vmem:[%s9583_s8 + $0x178] sm:$0xff]   ;;  %v8255_v33 = vld [vmem:[%s9583_s8 + $0x240] sm:$0xff]  }
 0x182   : > { %7813 = vmatprep.subr.bf16.mxu1 %v8210_v36  ;;  %v8251_v26 = vld [vmem:[%s9583_s8 + $0x1f8] sm:$0xff]   ;;  %v4462_v29 = vcombine.high %v9680_v23, %v9680_v23  ;;  %v8256_v34 = vld [vmem:[%s9583_s8 + $0x2c0] sm:$0xff]   ;;  %v4589_v35 = vpack.c.bf16 %v4461_v27, %v4461_v27  ;;  %v8262_v42 = vld [vmem:[%s9583_s8 + $0x288] sm:$0xff]   ;;  %v4590_v11 = vpack.c.bf16 %v9680_v23, %v9680_v23 }
 0x183   : > { %v8252_v28 = vld [vmem:[%s9583_s8 + $0x138] sm:$0xff]   ;;  %v8257_v36 = vld [vmem:[%s9583_s8 + $0x200] sm:$0xff]   ;;  %v8264_v44 = vld [vmem:[%s9583_s8 + $0x2d0] sm:$0xff]  }
 0x184   : > { %7792 = vmatpush3.bf16.msra.mxu0 %v8211_v37  ;;  %v8253_v30 = vld [vmem:[%s9583_s8 + $0x1b8] sm:$0xff]   ;;  %v4591_v37 = vpack.c.bf16 %v4462_v29, %v4462_v29  ;;  %v8258_v38 = vld [vmem:[%s9583_s8 + $0x280] sm:$0xff]   ;;  %v8297_v23 = vld [vmem:[%s9583_s8 + $0x3d0] sm:$0xff]  }
 0x185   : > { %7814 = vmatpush3.bf16.msra.mxu1 %v8212_v39  ;;  %7793 = vmatprep.subr.bf16.mxu0 %v8213_v40  ;;  %v8259_v39 = vld [vmem:[%s9583_s8 + $0x248] sm:$0xff]   ;;  %v8268_v48 = vld [vmem:[%s9583_s8 + $0x2d8] sm:$0xff]   ;;  %v8291_v17 = vld [vmem:[%s9583_s8 + $0x380] sm:$0xff]  }
 0x186   : > { %7815 = vmatprep.subr.bf16.mxu1 %v8214_v41  ;;  %v8260_v40 = vld [vmem:[%s9583_s8 + $0x2c8] sm:$0xff]   ;;  %v8270_v50 = vld [vmem:[%s9583_s8 + $0x298] sm:$0xff]  }
 0x187   : > { %v8261_v41 = vld [vmem:[%s9583_s8 + $0x208] sm:$0xff]   ;;  %v8301_v27 = vld [vmem:[%s9583_s8 + $0x3d8] sm:$0xff]  }
 0x188   : > { %7794 = vmatpush3.bf16.msra.mxu0 %v8215_v43  ;;  %v8263_v43 = vld [vmem:[%s9583_s8 + $0x250] sm:$0xff]   ;;  %v8303_v29 = vld [vmem:[%s9583_s8 + $0x398] sm:$0xff]  }
 0x189   : > { %7816 = vmatpush3.bf16.msra.mxu1 %v8216_v45  ;;  %7795 = vmatprep.subr.bf16.mxu0 %v8217_v46  ;;  %v8265_v45 = vld [vmem:[%s9583_s8 + $0x210] sm:$0xff]  }
 0x18a   : > { %7817 = vmatprep.subr.bf16.mxu1 %v8218_v47  ;;  %v8266_v46 = vld [vmem:[%s9583_s8 + $0x290] sm:$0xff]   ;;  %v8267_v47 = vld [vmem:[%s9583_s8 + $0x258] sm:$0xff]  }
 0x18c   : > { %7796 = vmatpush3.bf16.msra.mxu0 %v8219_v49  ;;  %v8269_v49 = vld [vmem:[%s9583_s8 + $0x218] sm:$0xff]  }
 0x18d   : > { %7818 = vmatpush3.bf16.msra.mxu1 %v8220_v51  ;;  %7825 = vmatprep.subr.bf16.mxu0 %v8222_v54  ;;  %v8271_v51 = vld [vmem:[%s9583_s8 + $0x260] sm:$0xff]  }
 0x18e   : > { %7847 = vmatprep.subr.bf16.mxu1 %v8223_v55  ;;  %v8273_v54 = vld [vmem:[%s9583_s8 + $0x220] sm:$0xff]  }
 0x18f   : > { %6700 = vmatmul.mubr.bf16.vlgmr.msra.gmra.mrb[0].mxu0 %v4580_v52  ;;  %v8272_v52 = vld [vmem:[%s9583_s8 + $0x2e0] sm:$0xff]  }
 0x190   : > { %6740 = vmatmul.mubr.bf16.vlgmr.msra.gmra.mrb[0].mxu1 %v4582_v53  ;;  %7826 = vmatpush3.bf16.msra.mxu0 %v8224_v57  ;;  %v4399_v53 = vld [vmem:[%s9964_s0 + $0x18] sm:$0xff]  ;;  %v8274_v55 = vld [vmem:[%s9583_s8 + $0x2a0] sm:$0xff]   ;;  %v8276_v57 = vld [vmem:[%s9583_s8 + $0x2e8] sm:$0xff]  }
 0x191   : > { %7848 = vmatpush3.bf16.msra.mxu1 %v8225_v59  ;;  %6779 = vmatprep.mubr.bf16.mxu0 %v4585_v56  ;;  %v8275_v56 = vld [vmem:[%s9583_s8 + $0x268] sm:$0xff]   ;;  %v4463_v59 = vcombine.high %v4399_v53, %v4399_v53 }
 0x192   : > { %7827 = vmatprep.subr.bf16.mxu0 %v8226_v60  ;;  %6819 = vmatprep.mubr.bf16.mxu1 %v4587_v58  ;;  %v8277_v58 = vld [vmem:[%s9583_s8 + $0x228] sm:$0xff]  }
 0x193   : > { %7849 = vmatprep.subr.bf16.mxu1 %v8227_v61  ;;  %v8278_v60 = vld [vmem:[%s9583_s8 + $0x2a8] sm:$0xff]   ;;  %v8279_v61 = vld [vmem:[%s9583_s8 + $0x270] sm:$0xff]  }
 0x194   : > { %7828 = vmatpush3.bf16.msra.mxu0 %v8228_v62  ;;  %v8280_v62 = vld [vmem:[%s9583_s8 + $0x2f0] sm:$0xff]  }
 0x195   : > { %7850 = vmatpush3.bf16.msra.mxu1 %v8229_v63  ;;  %7829 = vmatprep.subr.bf16.mxu0 %v8230_v0  ;;  %v9725_v63 = vrot.slane %v4399_v53, %v9588_v10  ;;  %v8281_v0 = vld [vmem:[%s9583_s8 + $0x230] sm:$0xff]   ;;  %v8326_v53 = vld [vmem:[%s9583_s8 + $0x4c8] sm:$0xff]  }
 0x196   : > { %7851 = vmatprep.subr.bf16.mxu1 %v8231_v1  ;;  %v9729_v1 = vrot.slane %v4463_v59, %v9588_v10  ;;  %v8332_v59 = vld [vmem:[%s9583_s8 + $0x490] sm:$0xff]  }
 0x198   : > { %7830 = vmatpush3.bf16.msra.mxu0 %v8232_v2  ;;  %v8282_v2 = vld [vmem:[%s9583_s8 + $0x2b0] sm:$0xff]  }
 0x199   : > { %7852 = vmatpush3.bf16.msra.mxu1 %v8233_v3  ;;  %7831 = vmatprep.subr.bf16.mxu0 %v8234_v4  ;;  %v8283_v3 = vld [vmem:[%s9583_s8 + $0x278] sm:$0xff]  }
 0x19a   : > { %7853 = vmatprep.subr.bf16.mxu1 %v8235_v5  ;;  %v8284_v4 = vld [vmem:[%s9583_s8 + $0x2f8] sm:$0xff]   ;;  %v4478_v5 = vcombine.high %v9725_v63, %v9725_v63 }
 0x19c   : > { %7832 = vmatpush3.bf16.msra.mxu0 %v8236_v6  ;;  %v8285_v6 = vld [vmem:[%s9583_s8 + $0x238] sm:$0xff]  }
 0x19d   : > { %7854 = vmatpush3.bf16.msra.mxu1 %v8237_v7  ;;  %7833 = vmatprep.subr.bf16.mxu0 %v8238_v8  ;;  %v4479_v7 = vcombine.high %v9729_v1, %v9729_v1  ;;  %v8286_v8 = vld [vmem:[%s9583_s8 + $0x2b8] sm:$0xff]  }
 0x19e   : > { %7855 = vmatprep.subr.bf16.mxu1 %v8239_v9  ;;  %v4588_v9 = vpack.c.bf16 %v9676_v21, %v9676_v21  ;;  %v8295_v21 = vld [vmem:[%s9583_s8 + $0x388] sm:$0xff]  }
 0x1a0   : > { %7834 = vmatpush3.bf16.msra.mxu0 %v8240_v12  ;;  %v8288_v12 = vld [vmem:[%s9583_s8 + $0x340] sm:$0xff]  }
 0x1a1   : > { %7856 = vmatpush3.bf16.msra.mxu1 %v8241_v13  ;;  %7835 = vmatprep.subr.bf16.mxu0 %v8242_v14  ;;  %v8289_v13 = vld [vmem:[%s9583_s8 + $0x3c0] sm:$0xff]   ;;  %v4593_v14 = vpack.c.bf16 %v4478_v5, %v4478_v5  ;;  %v8342_v5 = vld [vmem:[%s9583_s8 + $0x4e8] sm:$0xff]  }
 0x1a2   : > { %7857 = vmatprep.subr.bf16.mxu1 %v8243_v15  ;;  %v8290_v15 = vld [vmem:[%s9583_s8 + $0x300] sm:$0xff]  }
 0x1a4   : > { %7836 = vmatpush3.bf16.msra.mxu0 %v8244_v16  ;;  %v4595_v16 = vpack.c.bf16 %v4479_v7, %v4479_v7  ;;  %v8344_v7 = vld [vmem:[%s9583_s8 + $0x4a8] sm:$0xff]  }
 0x1a5   : > { %7858 = vmatpush3.bf16.msra.mxu1 %v8245_v18  ;;  %7837 = vmatprep.subr.bf16.mxu0 %v8246_v19  ;;  %v8292_v18 = vld [vmem:[%s9583_s8 + $0x348] sm:$0xff]  }
 0x1a6   : > { %7859 = vmatprep.subr.bf16.mxu1 %v8247_v20  ;;  %v8293_v19 = vld [vmem:[%s9583_s8 + $0x3c8] sm:$0xff]  }
 0x1a7   : > { %v8294_v20 = vld [vmem:[%s9583_s8 + $0x308] sm:$0xff]  }
 0x1a8   : > { %7838 = vmatpush3.bf16.msra.mxu0 %v8248_v22  ;;  %v8296_v22 = vld [vmem:[%s9583_s8 + $0x350] sm:$0xff]  }
 0x1a9   : > { %7860 = vmatpush3.bf16.msra.mxu1 %v8249_v24  ;;  %7839 = vmatprep.subr.bf16.mxu0 %v8250_v25  ;;  %v8298_v24 = vld [vmem:[%s9583_s8 + $0x310] sm:$0xff]  }
 0x1aa   : > { %7861 = vmatprep.subr.bf16.mxu1 %v8251_v26  ;;  %v8299_v25 = vld [vmem:[%s9583_s8 + $0x390] sm:$0xff]   ;;  %v8300_v26 = vld [vmem:[%s9583_s8 + $0x358] sm:$0xff]  }
 0x1ac   : > { %7840 = vmatpush3.bf16.msra.mxu0 %v8252_v28  ;;  %v8302_v28 = vld [vmem:[%s9583_s8 + $0x318] sm:$0xff]  }
 0x1ad   : > { %7862 = vmatpush3.bf16.msra.mxu1 %v8253_v30  ;;  %7869 = vmatprep.subr.bf16.mxu0 %v8255_v33  ;;  %v8304_v30 = vld [vmem:[%s9583_s8 + $0x360] sm:$0xff]  }
 0x1ae   : > { %7891 = vmatprep.subr.bf16.mxu1 %v8256_v34  ;;  %v8307_v33 = vld [vmem:[%s9583_s8 + $0x3a0] sm:$0xff]   ;;  %v8308_v34 = vld [vmem:[%s9583_s8 + $0x368] sm:$0xff]  }
 0x1af   : > { %6780 = vmatmul.mubr.bf16.vlgmr.msra.gmra.mrb[4].mxu0 %v4584_v31  ;;  %v8305_v31 = vld [vmem:[%s9583_s8 + $0x3e0] sm:$0xff]  }
 0x1b0   : > { %6820 = vmatmul.mubr.bf16.vlgmr.msra.gmra.mrb[4].mxu1 %v4586_v32  ;;  %7870 = vmatpush3.bf16.msra.mxu0 %v8257_v36  ;;  %v8306_v32 = vld [vmem:[%s9583_s8 + $0x320] sm:$0xff]   ;;  %v8310_v36 = vld [vmem:[%s9583_s8 + $0x328] sm:$0xff]  }
 0x1b1   : > { %7892 = vmatpush3.bf16.msra.mxu1 %v8258_v38  ;;  %6859 = vmatprep.mubr.bf16.mxu0 %v4589_v35  ;;  %v8309_v35 = vld [vmem:[%s9583_s8 + $0x3e8] sm:$0xff]   ;;  %v8312_v38 = vld [vmem:[%s9583_s8 + $0x370] sm:$0xff]  }
 0x1b2   : > { %7871 = vmatprep.subr.bf16.mxu0 %v8259_v39  ;;  %6899 = vmatprep.mubr.bf16.mxu1 %v4591_v37  ;;  %v8311_v37 = vld [vmem:[%s9583_s8 + $0x3a8] sm:$0xff]   ;;  %v8313_v39 = vld [vmem:[%s9583_s8 + $0x3f0] sm:$0xff]  }
 0x1b3   : > { %7893 = vmatprep.subr.bf16.mxu1 %v8260_v40  ;;  %v8314_v40 = vld [vmem:[%s9583_s8 + $0x330] sm:$0xff]  }
 0x1b4   : > { %7872 = vmatpush3.bf16.msra.mxu0 %v8261_v41  ;;  %v8315_v41 = vld [vmem:[%s9583_s8 + $0x3b0] sm:$0xff]  }
 0x1b5   : > { %7894 = vmatpush3.bf16.msra.mxu1 %v8262_v42  ;;  %7873 = vmatprep.subr.bf16.mxu0 %v8263_v43  ;;  %v8316_v42 = vld [vmem:[%s9583_s8 + $0x378] sm:$0xff]  }
 0x1b6   : > { %7895 = vmatprep.subr.bf16.mxu1 %v8264_v44  ;;  %v8317_v43 = vld [vmem:[%s9583_s8 + $0x3f8] sm:$0xff]  }
 0x1b7   : > { %v8318_v44 = vld [vmem:[%s9583_s8 + $0x338] sm:$0xff]  }
 0x1b8   : > { %7874 = vmatpush3.bf16.msra.mxu0 %v8265_v45  ;;  %v8319_v45 = vld [vmem:[%s9583_s8 + $0x3b8] sm:$0xff]  }
 0x1b9   : > { %7896 = vmatpush3.bf16.msra.mxu1 %v8266_v46  ;;  %7875 = vmatprep.subr.bf16.mxu0 %v8267_v47  ;;  %v4592_v46 = vpack.c.bf16 %v9725_v63, %v9725_v63  ;;  %v4594_v47 = vpack.c.bf16 %v9729_v1, %v9729_v1  ;;  %v8336_v63 = vld [vmem:[%s9583_s8 + $0x498] sm:$0xff]   ;;  %v8338_v1 = vld [vmem:[%s9583_s8 + $0x4e0] sm:$0xff]  }
 0x1ba   : > { %7897 = vmatprep.subr.bf16.mxu1 %v8268_v48  ;;  %v8321_v48 = vld [vmem:[%s9583_s8 + $0x440] sm:$0xff]  }
 0x1bc   : > { %7876 = vmatpush3.bf16.msra.mxu0 %v8269_v49  ;;  %v8322_v49 = vld [vmem:[%s9583_s8 + $0x4c0] sm:$0xff]  }
 0x1bd   : > { %7898 = vmatpush3.bf16.msra.mxu1 %v8270_v50  ;;  %7877 = vmatprep.subr.bf16.mxu0 %v8271_v51  ;;  %v8323_v50 = vld [vmem:[%s9583_s8 + $0x400] sm:$0xff]  }
 0x1be   : > { %7899 = vmatprep.subr.bf16.mxu1 %v8272_v52  ;;  %v8324_v51 = vld [vmem:[%s9583_s8 + $0x480] sm:$0xff]   ;;  %v8325_v52 = vld [vmem:[%s9583_s8 + $0x448] sm:$0xff]  }
 0x1c0   : > { %7878 = vmatpush3.bf16.msra.mxu0 %v8273_v54  ;;  %v8327_v54 = vld [vmem:[%s9583_s8 + $0x408] sm:$0xff]  }
 0x1c1   : > { %7900 = vmatpush3.bf16.msra.mxu1 %v8274_v55  ;;  %7879 = vmatprep.subr.bf16.mxu0 %v8275_v56  ;;  %v8328_v55 = vld [vmem:[%s9583_s8 + $0x488] sm:$0xff]   ;;  %v8329_v56 = vld [vmem:[%s9583_s8 + $0x450] sm:$0xff]  }
 0x1c2   : > { %7901 = vmatprep.subr.bf16.mxu1 %v8276_v57  ;;  %v8330_v57 = vld [vmem:[%s9583_s8 + $0x4d0] sm:$0xff]  }
 0x1c4   : > { %7880 = vmatpush3.bf16.msra.mxu0 %v8277_v58  ;;  %v8331_v58 = vld [vmem:[%s9583_s8 + $0x410] sm:$0xff]  }
 0x1c5   : > { %7902 = vmatpush3.bf16.msra.mxu1 %v8278_v60  ;;  %7881 = vmatprep.subr.bf16.mxu0 %v8279_v61  ;;  %v8333_v60 = vld [vmem:[%s9583_s8 + $0x458] sm:$0xff]  }
 0x1c6   : > { %7903 = vmatprep.subr.bf16.mxu1 %v8280_v62  ;;  %v8334_v61 = vld [vmem:[%s9583_s8 + $0x4d8] sm:$0xff]  }
 0x1c7   : > { %v8335_v62 = vld [vmem:[%s9583_s8 + $0x418] sm:$0xff]  }
 0x1c8   : > { %7882 = vmatpush3.bf16.msra.mxu0 %v8281_v0  ;;  %v8337_v0 = vld [vmem:[%s9583_s8 + $0x460] sm:$0xff]  }
 0x1c9   : > { %7904 = vmatpush3.bf16.msra.mxu1 %v8282_v2  ;;  %7883 = vmatprep.subr.bf16.mxu0 %v8283_v3  ;;  %v8339_v2 = vld [vmem:[%s9583_s8 + $0x420] sm:$0xff]  }
 0x1ca   : > { %7905 = vmatprep.subr.bf16.mxu1 %v8284_v4  ;;  %v8340_v3 = vld [vmem:[%s9583_s8 + $0x4a0] sm:$0xff]   ;;  %v8341_v4 = vld [vmem:[%s9583_s8 + $0x468] sm:$0xff]  }
 0x1cc   : > { %7884 = vmatpush3.bf16.msra.mxu0 %v8285_v6  ;;  %v8343_v6 = vld [vmem:[%s9583_s8 + $0x428] sm:$0xff]  }
 0x1cd   : > { %7906 = vmatpush3.bf16.msra.mxu1 %v8286_v8  ;;  %7913 = vmatprep.subr.bf16.mxu0 %v8288_v12  ;;  %v8345_v8 = vld [vmem:[%s9583_s8 + $0x470] sm:$0xff]  }
 0x1ce   : > { %7935 = vmatprep.subr.bf16.mxu1 %v8289_v13  ;;  %v8348_v12 = vld [vmem:[%s9583_s8 + $0x4b0] sm:$0xff]   ;;  %v8349_v13 = vld [vmem:[%s9583_s8 + $0x478] sm:$0xff]  }
 0x1cf   : > { %6860 = vmatmul.mubr.bf16.vlgmr.msra.gmra.mrb[8].mxu0 %v4588_v9  ;;  %v8346_v9 = vld [vmem:[%s9583_s8 + $0x4f0] sm:$0xff]  }
 0x1d0   : > { %6900 = vmatmul.mubr.bf16.vlgmr.msra.gmra.mrb[8].mxu1 %v4590_v11  ;;  %7914 = vmatpush3.bf16.msra.mxu0 %v8290_v15  ;;  %v8347_v11 = vld [vmem:[%s9583_s8 + $0x430] sm:$0xff]   ;;  %v8351_v15 = vld [vmem:[%s9583_s8 + $0x438] sm:$0xff]  }
 0x1d1   : > { %7936 = vmatpush3.bf16.msra.mxu1 %v8291_v17  ;;  %6939 = vmatprep.mubr.bf16.mxu0 %v4593_v14  ;;  %v8350_v14 = vld [vmem:[%s9583_s8 + $0x4f8] sm:$0xff]   ;;  %v4400_v17 = vld [vmem:[%s9964_s0 + $0x20] sm:$0xff] }
 0x1d2   : > { %7915 = vmatprep.subr.bf16.mxu0 %v8292_v18  ;;  %6979 = vmatprep.mubr.bf16.mxu1 %v4595_v16  ;;  %v8352_v16 = vld [vmem:[%s9583_s8 + $0x4b8] sm:$0xff]   ;;  %v4487_v18 = vrot.slane %v4400_v17, %v9588_v10 }
 0x1d3   : > { %7937 = vmatprep.subr.bf16.mxu1 %v8293_v19  ;;  %v4480_v19 = vcombine.high %v4400_v17, %v4400_v17  ;;  %v8398_v17 = vld [vmem:[%s9583_s8 + $0x690] sm:$0xff]  }
 0x1d4   : > { %7916 = vmatpush3.bf16.msra.mxu0 %v8294_v20  ;;  %v8354_v20 = vld [vmem:[%s9583_s8 + $0x540] sm:$0xff]  }
 0x1d5   : > { %7938 = vmatpush3.bf16.msra.mxu1 %v8295_v21  ;;  %7917 = vmatprep.subr.bf16.mxu0 %v8296_v22  ;;  %v8355_v21 = vld [vmem:[%s9583_s8 + $0x5c0] sm:$0xff]   ;;  %v4495_v22 = vcombine.high %v4487_v18, %v4487_v18 }
 0x1d6   : > { %7939 = vmatprep.subr.bf16.mxu1 %v8297_v23  ;;  %v4494_v23 = vrot.slane %v4480_v19, %v9588_v10  ;;  %v8400_v19 = vld [vmem:[%s9583_s8 + $0x6d8] sm:$0xff]  }
 0x1d8   : > { %7918 = vmatpush3.bf16.msra.mxu0 %v8298_v24  ;;  %v4596_v24 = vpack.c.bf16 %v4487_v18, %v4487_v18  ;;  %v8399_v18 = vld [vmem:[%s9583_s8 + $0x658] sm:$0xff]  }
 0x1d9   : > { %7940 = vmatpush3.bf16.msra.mxu1 %v8299_v25  ;;  %7919 = vmatprep.subr.bf16.mxu0 %v8300_v26  ;;  %v8356_v25 = vld [vmem:[%s9583_s8 + $0x500] sm:$0xff]   ;;  %v4597_v26 = vpack.c.bf16 %v4495_v22, %v4495_v22 }
 0x1da   : > { %7941 = vmatprep.subr.bf16.mxu1 %v8301_v27  ;;  %v4496_v27 = vcombine.high %v4494_v23, %v4494_v23  ;;  %v8403_v22 = vld [vmem:[%s9583_s8 + $0x660] sm:$0xff]  }
 0x1dc   : > { %7920 = vmatpush3.bf16.msra.mxu0 %v8302_v28  ;;  %v8357_v28 = vld [vmem:[%s9583_s8 + $0x580] sm:$0xff]  }
 0x1dd   : > { %7942 = vmatpush3.bf16.msra.mxu1 %v8303_v29  ;;  %7921 = vmatprep.subr.bf16.mxu0 %v8304_v30  ;;  %v4598_v29 = vpack.c.bf16 %v4494_v23, %v4494_v23  ;;  %v8358_v30 = vld [vmem:[%s9583_s8 + $0x548] sm:$0xff]   ;;  %v8404_v23 = vld [vmem:[%s9583_s8 + $0x6e0] sm:$0xff]  }
 0x1de   : > { %7943 = vmatprep.subr.bf16.mxu1 %v8305_v31  ;;  %v4599_v31 = vpack.c.bf16 %v4496_v27, %v4496_v27  ;;  %v8408_v27 = vld [vmem:[%s9583_s8 + $0x6e8] sm:$0xff]  }
 0x1e0   : > { %7922 = vmatpush3.bf16.msra.mxu0 %v8306_v32  ;;  %v8359_v32 = vld [vmem:[%s9583_s8 + $0x5c8] sm:$0xff]  }
 0x1e1   : > { %7944 = vmatpush3.bf16.msra.mxu1 %v8307_v33  ;;  %7923 = vmatprep.subr.bf16.mxu0 %v8308_v34  ;;  %v8360_v33 = vld [vmem:[%s9583_s8 + $0x508] sm:$0xff]  }
 0x1e2   : > { %7945 = vmatprep.subr.bf16.mxu1 %v8309_v35  ;;  %v8361_v34 = vld [vmem:[%s9583_s8 + $0x588] sm:$0xff]   ;;  %v8362_v35 = vld [vmem:[%s9583_s8 + $0x550] sm:$0xff]  }
 0x1e4   : > { %7924 = vmatpush3.bf16.msra.mxu0 %v8310_v36  ;;  %v8363_v36 = vld [vmem:[%s9583_s8 + $0x5d0] sm:$0xff]  }
 0x1e5   : > { %7946 = vmatpush3.bf16.msra.mxu1 %v8311_v37  ;;  %7925 = vmatprep.subr.bf16.mxu0 %v8312_v38  ;;  %v8364_v37 = vld [vmem:[%s9583_s8 + $0x510] sm:$0xff]  }
 0x1e6   : > { %7947 = vmatprep.subr.bf16.mxu1 %v8313_v39  ;;  %v8365_v38 = vld [vmem:[%s9583_s8 + $0x590] sm:$0xff]   ;;  %v8366_v39 = vld [vmem:[%s9583_s8 + $0x558] sm:$0xff]  }
 0x1e8   : > { %7926 = vmatpush3.bf16.msra.mxu0 %v8314_v40  ;;  %v8367_v40 = vld [vmem:[%s9583_s8 + $0x5d8] sm:$0xff]  }
 0x1e9   : > { %7948 = vmatpush3.bf16.msra.mxu1 %v8315_v41  ;;  %7927 = vmatprep.subr.bf16.mxu0 %v8316_v42  ;;  %v8368_v41 = vld [vmem:[%s9583_s8 + $0x518] sm:$0xff]  }
 0x1ea   : > { %7949 = vmatprep.subr.bf16.mxu1 %v8317_v43  ;;  %v8369_v42 = vld [vmem:[%s9583_s8 + $0x598] sm:$0xff]   ;;  %v8370_v43 = vld [vmem:[%s9583_s8 + $0x560] sm:$0xff]  }
 0x1ec   : > { %7928 = vmatpush3.bf16.msra.mxu0 %v8318_v44  ;;  %v8371_v44 = vld [vmem:[%s9583_s8 + $0x5e0] sm:$0xff]  }
 0x1ed   : > { %7950 = vmatpush3.bf16.msra.mxu1 %v8319_v45  ;;  %7957 = vmatprep.subr.bf16.mxu0 %v8321_v48  ;;  %v8372_v45 = vld [vmem:[%s9583_s8 + $0x520] sm:$0xff]   ;;  %v8375_v48 = vld [vmem:[%s9583_s8 + $0x5e8] sm:$0xff]  }
 0x1ee   : > { %7979 = vmatprep.subr.bf16.mxu1 %v8322_v49  ;;  %v8376_v49 = vld [vmem:[%s9583_s8 + $0x528] sm:$0xff]  }
 0x1ef   : > { %6940 = vmatmul.mubr.bf16.vlgmr.msra.gmra.mrb[12].mxu0 %v4592_v46  ;;  %v8373_v46 = vld [vmem:[%s9583_s8 + $0x5a0] sm:$0xff]  }
 0x1f0   : > { %6980 = vmatmul.mubr.bf16.vlgmr.msra.gmra.mrb[12].mxu1 %v4594_v47  ;;  %7958 = vmatpush3.bf16.msra.mxu0 %v8323_v50  ;;  %v8374_v47 = vld [vmem:[%s9583_s8 + $0x568] sm:$0xff]  }
 0x1f1   : > { %7980 = vmatpush3.bf16.msra.mxu1 %v8324_v51  ;;  %7959 = vmatprep.subr.bf16.mxu0 %v8325_v52  ;;  %v8377_v50 = vld [vmem:[%s9583_s8 + $0x5a8] sm:$0xff]   ;;  %v8378_v51 = vld [vmem:[%s9583_s8 + $0x570] sm:$0xff]  }
 0x1f2   : > { %7981 = vmatprep.subr.bf16.mxu1 %v8326_v53  ;;  %7019 = vmatprep.mubr.bf16.mxu0 %v4597_v26  ;;  %v8379_v52 = vld [vmem:[%s9583_s8 + $0x5f0] sm:$0xff]   ;;  %v8407_v26 = vld [vmem:[%s9583_s8 + $0x668] sm:$0xff]  }
 0x1f3   : > { %7059 = vmatprep.mubr.bf16.mxu1 %v4599_v31  ;;  %v8380_v53 = vld [vmem:[%s9583_s8 + $0x530] sm:$0xff]  }
 0x1f4   : > { %7960 = vmatpush3.bf16.msra.mxu0 %v8327_v54  ;;  %v8381_v54 = vld [vmem:[%s9583_s8 + $0x5b0] sm:$0xff]  }
 0x1f5   : > { %7982 = vmatpush3.bf16.msra.mxu1 %v8328_v55  ;;  %7961 = vmatprep.subr.bf16.mxu0 %v8329_v56  ;;  %v8382_v55 = vld [vmem:[%s9583_s8 + $0x578] sm:$0xff]   ;;  %v8412_v31 = vld [vmem:[%s9583_s8 + $0x6f0] sm:$0xff]  }
 0x1f6   : > { %7983 = vmatprep.subr.bf16.mxu1 %v8330_v57  ;;  %v8383_v56 = vld [vmem:[%s9583_s8 + $0x5f8] sm:$0xff]  }
 0x1f7   : > { %v8384_v57 = vld [vmem:[%s9583_s8 + $0x538] sm:$0xff]  }
 0x1f8   : > { %7962 = vmatpush3.bf16.msra.mxu0 %v8331_v58  ;;  %v4401_v58 = vld [vmem:[%s9964_s0 + $0x28] sm:$0xff] }
 0x1f9   : > { %7984 = vmatpush3.bf16.msra.mxu1 %v8332_v59  ;;  %7963 = vmatprep.subr.bf16.mxu0 %v8333_v60  ;;  %v8385_v59 = vld [vmem:[%s9583_s8 + $0x5b8] sm:$0xff]   ;;  %v4504_v60 = vrot.slane %v4401_v58, %v9588_v10 }
 0x1fa   : > { %7985 = vmatprep.subr.bf16.mxu1 %v8334_v61  ;;  %v4497_v61 = vcombine.high %v4401_v58, %v4401_v58  ;;  %v8430_v58 = vld [vmem:[%s9583_s8 + $0x710] sm:$0xff]  }
 0x1fc   : > { %7964 = vmatpush3.bf16.msra.mxu0 %v8335_v62  ;;  %v8387_v62 = vld [vmem:[%s9583_s8 + $0x640] sm:$0xff]  }
 0x1fd   : > { %7986 = vmatpush3.bf16.msra.mxu1 %v8336_v63  ;;  %7965 = vmatprep.subr.bf16.mxu0 %v8337_v0  ;;  %v4512_v63 = vcombine.high %v4504_v60, %v4504_v60  ;;  %v4511_v0 = vrot.slane %v4497_v61, %v9588_v10  ;;  %v8433_v61 = vld [vmem:[%s9583_s8 + $0x7d8] sm:$0xff]  }
 0x1fe   : > { %7987 = vmatprep.subr.bf16.mxu1 %v8338_v1  ;;  %v8388_v1 = vld [vmem:[%s9583_s8 + $0x6c0] sm:$0xff]  }
 0x200   : > { %7966 = vmatpush3.bf16.msra.mxu0 %v8339_v2  ;;  %v4600_v2 = vpack.c.bf16 %v4504_v60, %v4504_v60  ;;  %v8432_v60 = vld [vmem:[%s9583_s8 + $0x758] sm:$0xff]  }
 0x201   : > { %7988 = vmatpush3.bf16.msra.mxu1 %v8340_v3  ;;  %7967 = vmatprep.subr.bf16.mxu0 %v8341_v4  ;;  %v8389_v3 = vld [vmem:[%s9583_s8 + $0x600] sm:$0xff]   ;;  %v4601_v4 = vpack.c.bf16 %v4512_v63, %v4512_v63  ;;  %v8435_v63 = vld [vmem:[%s9583_s8 + $0x798] sm:$0xff]  }
 0x202   : > { %7989 = vmatprep.subr.bf16.mxu1 %v8342_v5  ;;  %v4513_v5 = vcombine.high %v4511_v0, %v4511_v0 }
 0x204   : > { %7968 = vmatpush3.bf16.msra.mxu0 %v8343_v6  ;;  %v8390_v6 = vld [vmem:[%s9583_s8 + $0x680] sm:$0xff]  }
 0x205   : > { %7990 = vmatpush3.bf16.msra.mxu1 %v8344_v7  ;;  %7969 = vmatprep.subr.bf16.mxu0 %v8345_v8  ;;  %v4602_v7 = vpack.c.bf16 %v4511_v0, %v4511_v0  ;;  %v8391_v8 = vld [vmem:[%s9583_s8 + $0x648] sm:$0xff]   ;;  %v8436_v0 = vld [vmem:[%s9583_s8 + $0x760] sm:$0xff]  }
 0x206   : > { %7991 = vmatprep.subr.bf16.mxu1 %v8346_v9  ;;  %v4603_v9 = vpack.c.bf16 %v4513_v5, %v4513_v5  ;;  %v8440_v5 = vld [vmem:[%s9583_s8 + $0x768] sm:$0xff]  }
 0x208   : > { %7970 = vmatpush3.bf16.msra.mxu0 %v8347_v11  ;;  %v8392_v11 = vld [vmem:[%s9583_s8 + $0x6c8] sm:$0xff]  }
 0x209   : > { %7992 = vmatpush3.bf16.msra.mxu1 %v8348_v12  ;;  %7971 = vmatprep.subr.bf16.mxu0 %v8349_v13  ;;  %v8393_v12 = vld [vmem:[%s9583_s8 + $0x608] sm:$0xff]  }
 0x20a   : > { %7993 = vmatprep.subr.bf16.mxu1 %v8350_v14  ;;  %v8394_v13 = vld [vmem:[%s9583_s8 + $0x688] sm:$0xff]   ;;  %v8395_v14 = vld [vmem:[%s9583_s8 + $0x650] sm:$0xff]  }
 0x20c   : > { %7972 = vmatpush3.bf16.msra.mxu0 %v8351_v15  ;;  %v8396_v15 = vld [vmem:[%s9583_s8 + $0x6d0] sm:$0xff]  }
 0x20d   : > { %7994 = vmatpush3.bf16.msra.mxu1 %v8352_v16  ;;  %8001 = vmatprep.subr.bf16.mxu0 %v8354_v20  ;;  %v8397_v16 = vld [vmem:[%s9583_s8 + $0x610] sm:$0xff]   ;;  %v8401_v20 = vld [vmem:[%s9583_s8 + $0x618] sm:$0xff]  }
 0x20e   : > { %8023 = vmatprep.subr.bf16.mxu1 %v8355_v21  ;;  %v8402_v21 = vld [vmem:[%s9583_s8 + $0x698] sm:$0xff]  }
 0x20f   : > { %7020 = vmatmul.mubr.bf16.vlgmr.msra.gmra.mrb[16].mxu0 %v4596_v24  ;;  %v8405_v24 = vld [vmem:[%s9583_s8 + $0x620] sm:$0xff]  }
 0x210   : > { %8002 = vmatpush3.bf16.msra.mxu0 %v8356_v25  ;;  %7060 = vmatmul.mubr.bf16.vlgmr.msra.gmra.mrb[16].mxu1 %v4598_v29  ;;  %v8406_v25 = vld [vmem:[%s9583_s8 + $0x6a0] sm:$0xff]   ;;  %v8410_v29 = vld [vmem:[%s9583_s8 + $0x6a8] sm:$0xff]  }
 0x211   : > { %8003 = vmatprep.subr.bf16.mxu0 %v8358_v30  ;;  %8024 = vmatpush3.bf16.msra.mxu1 %v8357_v28  ;;  %v8409_v28 = vld [vmem:[%s9583_s8 + $0x628] sm:$0xff]   ;;  %v8411_v30 = vld [vmem:[%s9583_s8 + $0x670] sm:$0xff]  }
 0x212   : > { %8025 = vmatprep.subr.bf16.mxu1 %v8359_v32  ;;  %7099 = vmatprep.mubr.bf16.mxu0 %v4601_v4  ;;  %v8413_v32 = vld [vmem:[%s9583_s8 + $0x630] sm:$0xff]  }
 0x213   : > { %7139 = vmatprep.mubr.bf16.mxu1 %v4603_v9  ;;  %v8441_v9 = vld [vmem:[%s9583_s8 + $0x7e8] sm:$0xff]  }
 0x214   : > { %8004 = vmatpush3.bf16.msra.mxu0 %v8360_v33  ;;  %v8414_v33 = vld [vmem:[%s9583_s8 + $0x6b0] sm:$0xff]  }
 0x215   : > { %8005 = vmatprep.subr.bf16.mxu0 %v8362_v35  ;;  %8026 = vmatpush3.bf16.msra.mxu1 %v8361_v34  ;;  %v8415_v34 = vld [vmem:[%s9583_s8 + $0x678] sm:$0xff]  }
 0x216   : > { %8027 = vmatprep.subr.bf16.mxu1 %v8363_v36  ;;  %v8416_v35 = vld [vmem:[%s9583_s8 + $0x6f8] sm:$0xff]  }
 0x217   : > { %v8417_v36 = vld [vmem:[%s9583_s8 + $0x638] sm:$0xff]  }
 0x218   : > { %8006 = vmatpush3.bf16.msra.mxu0 %v8364_v37  ;;  %v4402_v37 = vld [vmem:[%s9964_s0 + $0x30] sm:$0xff] }
 0x219   : > { %8007 = vmatprep.subr.bf16.mxu0 %v8366_v39  ;;  %8028 = vmatpush3.bf16.msra.mxu1 %v8365_v38  ;;  %v8418_v38 = vld [vmem:[%s9583_s8 + $0x6b8] sm:$0xff]   ;;  %v4521_v39 = vrot.slane %v4402_v37, %v9588_v10 }
 0x21a   : > { %8029 = vmatprep.subr.bf16.mxu1 %v8367_v40  ;;  %v4514_v40 = vcombine.high %v4402_v37, %v4402_v37 }
 0x21c   : > { %8008 = vmatpush3.bf16.msra.mxu0 %v8368_v41  ;;  %v8420_v41 = vld [vmem:[%s9583_s8 + $0x740] sm:$0xff]  }
 0x21d   : > { %8009 = vmatprep.subr.bf16.mxu0 %v8370_v43  ;;  %8030 = vmatpush3.bf16.msra.mxu1 %v8369_v42  ;;  %v4529_v42 = vcombine.high %v4521_v39, %v4521_v39  ;;  %v4528_v43 = vrot.slane %v4514_v40, %v9588_v10 }
 0x21e   : > { %8031 = vmatprep.subr.bf16.mxu1 %v8371_v44  ;;  %v8421_v44 = vld [vmem:[%s9583_s8 + $0x7c0] sm:$0xff]  }
 0x220   : > { %8010 = vmatpush3.bf16.msra.mxu0 %v8372_v45  ;;  %v4604_v45 = vpack.c.bf16 %v4521_v39, %v4521_v39 }
 0x221   : > { %8011 = vmatprep.subr.bf16.mxu0 %v8374_v47  ;;  %8032 = vmatpush3.bf16.msra.mxu1 %v8373_v46  ;;  %v8422_v46 = vld [vmem:[%s9583_s8 + $0x700] sm:$0xff]   ;;  %v4605_v47 = vpack.c.bf16 %v4529_v42, %v4529_v42 }
 0x222   : > { %8033 = vmatprep.subr.bf16.mxu1 %v8375_v48  ;;  %v4530_v48 = vcombine.high %v4528_v43, %v4528_v43 }
 0x224   : > { %8012 = vmatpush3.bf16.msra.mxu0 %v8376_v49  ;;  %v8423_v49 = vld [vmem:[%s9583_s8 + $0x780] sm:$0xff]  }
 0x225   : > { %8013 = vmatprep.subr.bf16.mxu0 %v8378_v51  ;;  %8034 = vmatpush3.bf16.msra.mxu1 %v8377_v50  ;;  %v4606_v50 = vpack.c.bf16 %v4528_v43, %v4528_v43  ;;  %v8424_v51 = vld [vmem:[%s9583_s8 + $0x748] sm:$0xff]  }
 0x226   : > { %8035 = vmatprep.subr.bf16.mxu1 %v8379_v52  ;;  %v4607_v52 = vpack.c.bf16 %v4530_v48, %v4530_v48 }
 0x228   : > { %8014 = vmatpush3.bf16.msra.mxu0 %v8380_v53  ;;  %v8425_v53 = vld [vmem:[%s9583_s8 + $0x7c8] sm:$0xff]  }
 0x229   : > { %8015 = vmatprep.subr.bf16.mxu0 %v8382_v55  ;;  %8036 = vmatpush3.bf16.msra.mxu1 %v8381_v54  ;;  %v8426_v54 = vld [vmem:[%s9583_s8 + $0x708] sm:$0xff]  }
 0x22a   : > { %8037 = vmatprep.subr.bf16.mxu1 %v8383_v56  ;;  %v8427_v55 = vld [vmem:[%s9583_s8 + $0x788] sm:$0xff]   ;;  %v8428_v56 = vld [vmem:[%s9583_s8 + $0x750] sm:$0xff]  }
 0x22c   : > { %8016 = vmatpush3.bf16.msra.mxu0 %v8384_v57  ;;  %v8429_v57 = vld [vmem:[%s9583_s8 + $0x7d0] sm:$0xff]  }
 0x22d   : > { %8045 = vmatprep.subr.bf16.mxu0 %v8387_v62  ;;  %8038 = vmatpush3.bf16.msra.mxu1 %v8385_v59  ;;  %v8431_v59 = vld [vmem:[%s9583_s8 + $0x790] sm:$0xff]   ;;  %v8434_v62 = vld [vmem:[%s9583_s8 + $0x718] sm:$0xff]  }
 0x22e   : > { %8067 = vmatprep.subr.bf16.mxu1 %v8388_v1  ;;  %v8437_v1 = vld [vmem:[%s9583_s8 + $0x7e0] sm:$0xff]  }
 0x22f   : > { %7100 = vmatmul.mubr.bf16.vlgmr.msra.gmra.mrb[20].mxu0 %v4600_v2  ;;  %v8438_v2 = vld [vmem:[%s9583_s8 + $0x720] sm:$0xff]  }
 0x230   : > { %8046 = vmatpush3.bf16.msra.mxu0 %v8389_v3  ;;  %7140 = vmatmul.mubr.bf16.vlgmr.msra.gmra.mrb[20].mxu1 %v4602_v7  ;;  %v7514_v3 = vld [vmem:[%s4384_s28] ss:$0 sm:$0xff] }
 0x231   : > { %8047 = vmatprep.subr.bf16.mxu0 %v8391_v8  ;;  %8068 = vmatpush3.bf16.msra.mxu1 %v8390_v6  ;;  %v8439_v6 = vld [vmem:[%s9583_s8 + $0x7a0] sm:$0xff]  }
 0x232   : > { %8069 = vmatprep.subr.bf16.mxu1 %v8392_v11  ;;  %7179 = vmatprep.mubr.bf16.mxu0 %v4605_v47 }
 0x233   : > { %7219 = vmatprep.mubr.bf16.mxu1 %v4607_v52 }
 0x234   : > { %8048 = vmatpush3.bf16.msra.mxu0 %v8393_v12 }
 0x235   : > { %8049 = vmatprep.subr.bf16.mxu0 %v8395_v14  ;;  %8070 = vmatpush3.bf16.msra.mxu1 %v8394_v13 }
 0x236   : > { %8071 = vmatprep.subr.bf16.mxu1 %v8396_v15 }
 0x238   : > { %8050 = vmatpush3.bf16.msra.mxu0 %v8397_v16  ;;  %v8442_v16 = vld [vmem:[%s9583_s8 + $0x728] sm:$0xff]  }
 0x239   : > { %8051 = vmatprep.subr.bf16.mxu0 %v8399_v18  ;;  %8072 = vmatpush3.bf16.msra.mxu1 %v8398_v17  ;;  %v8443_v17 = vld [vmem:[%s9583_s8 + $0x7a8] sm:$0xff]  }
 0x23a   : > { %8073 = vmatprep.subr.bf16.mxu1 %v8400_v19 }
 0x23c   : > { %8052 = vmatpush3.bf16.msra.mxu0 %v8401_v20 }
 0x23d   : > { %8053 = vmatprep.subr.bf16.mxu0 %v8403_v22  ;;  %8074 = vmatpush3.bf16.msra.mxu1 %v8402_v21  ;;  %v8444_v21 = vld [vmem:[%s9583_s8 + $0x770] sm:$0xff]  }
 0x23e   : > { %8075 = vmatprep.subr.bf16.mxu1 %v8404_v23  ;;  %v8445_v23 = vld [vmem:[%s9583_s8 + $0x7f0] sm:$0xff]  }
 0x240   : > { %8054 = vmatpush3.bf16.msra.mxu0 %v8405_v24  ;;  %v8446_v24 = vld [vmem:[%s9583_s8 + $0x730] sm:$0xff]  }
 0x241   : > { %8055 = vmatprep.subr.bf16.mxu0 %v8407_v26  ;;  %8076 = vmatpush3.bf16.msra.mxu1 %v8406_v25  ;;  %v8448_v25 = vld [vmem:[%s9583_s8 + $0x778] sm:$0xff]   ;;  %v8447_v26 = vld [vmem:[%s9583_s8 + $0x7b0] sm:$0xff]  }
 0x242   : > { %8077 = vmatprep.subr.bf16.mxu1 %v8408_v27  ;;  %v8449_v27 = vld [vmem:[%s9583_s8 + $0x7f8] sm:$0xff]  }
 0x244   : > { %8056 = vmatpush3.bf16.msra.mxu0 %v8409_v28  ;;  %v8450_v28 = vld [vmem:[%s9583_s8 + $0x738] sm:$0xff]  }
 0x245   : > { %8057 = vmatprep.subr.bf16.mxu0 %v8411_v30  ;;  %8078 = vmatpush3.bf16.msra.mxu1 %v8410_v29  ;;  %v4403_v29 = vld [vmem:[%s9964_s0 + $0x38] sm:$0xff] }
 0x246   : > { %8079 = vmatprep.subr.bf16.mxu1 %v8412_v31  ;;  %v4538_v30 = vrot.slane %v4403_v29, %v9588_v10  ;;  %v4531_v31 = vcombine.high %v4403_v29, %v4403_v29 }
 0x248   : > { %8058 = vmatpush3.bf16.msra.mxu0 %v8413_v32  ;;  %v8451_v32 = vld [vmem:[%s9583_s8 + $0x7b8] sm:$0xff]  }
 0x249   : > { %8059 = vmatprep.subr.bf16.mxu0 %v8415_v34  ;;  %8080 = vmatpush3.bf16.msra.mxu1 %v8414_v33  ;;  %v4546_v33 = vcombine.high %v4538_v30, %v4538_v30  ;;  %v4545_v34 = vrot.slane %v4531_v31, %v9588_v10 }
 0x24a   : > { %8081 = vmatprep.subr.bf16.mxu1 %v8416_v35  ;;  %v4608_v35 = vpack.c.bf16 %v4538_v30, %v4538_v30 }
 0x24b   : > { %v4547_v37 = vcombine.high %v4545_v34, %v4545_v34 }
 0x24c   : > { %8060 = vmatpush3.bf16.msra.mxu0 %v8417_v36  ;;  %v4609_v36 = vpack.c.bf16 %v4546_v33, %v4546_v33 }
 0x24d   : > { %8089 = vmatprep.subr.bf16.mxu0 %v8420_v41  ;;  %8082 = vmatpush3.bf16.msra.mxu1 %v8418_v38  ;;  %v4610_v38 = vpack.c.bf16 %v4545_v34, %v4545_v34  ;;  %v4611_v39 = vpack.c.bf16 %v4547_v37, %v4547_v37 }
 0x24e   : > { %8111 = vmatprep.subr.bf16.mxu1 %v8421_v44 }
 0x24f   : > { %7180 = vmatmul.mubr.bf16.vlgmr.msra.gmra.mrb[24].mxu0 %v4604_v45 }
 0x250   : > { %8090 = vmatpush3.bf16.msra.mxu0 %v8422_v46  ;;  %7220 = vmatmul.mubr.bf16.vlgmr.msra.gmra.mrb[24].mxu1 %v4606_v50 }
 0x251   : > { %8091 = vmatprep.subr.bf16.mxu0 %v8424_v51  ;;  %8112 = vmatpush3.bf16.msra.mxu1 %v8423_v49 }
 0x252   : > { %8113 = vmatprep.subr.bf16.mxu1 %v8425_v53  ;;  %7259 = vmatprep.mubr.bf16.mxu0 %v4609_v36 }
 0x253   : > { %7299 = vmatprep.mubr.bf16.mxu1 %v4611_v39 }
 0x254   : > { %8092 = vmatpush3.bf16.msra.mxu0 %v8426_v54 }
 0x255   : > { %8093 = vmatprep.subr.bf16.mxu0 %v8428_v56  ;;  %8114 = vmatpush3.bf16.msra.mxu1 %v8427_v55 }
 0x256   : > { %8115 = vmatprep.subr.bf16.mxu1 %v8429_v57 }
 0x258   : > { %8094 = vmatpush3.bf16.msra.mxu0 %v8430_v58 }
 0x259   : > { %8095 = vmatprep.subr.bf16.mxu0 %v8432_v60  ;;  %8116 = vmatpush3.bf16.msra.mxu1 %v8431_v59 }
 0x25a   : > { %8117 = vmatprep.subr.bf16.mxu1 %v8433_v61 }
 0x25c   : > { %8096 = vmatpush3.bf16.msra.mxu0 %v8434_v62 }
 0x25d   : > { %8097 = vmatprep.subr.bf16.mxu0 %v8436_v0  ;;  %8118 = vmatpush3.bf16.msra.mxu1 %v8435_v63  ;;  %v8486_v63 = vmov 0.0   ;;  %v8453_v0 = vld [vmem:[%s9940_s9] sm:$0xff]  }
 0x25e   : > { %8119 = vmatprep.subr.bf16.mxu1 %v8437_v1  ;;  %v8454_v1 = vld [vmem:[%s9940_s9 + $0x8] sm:$0xff]  }
 0x260   : > { %8098 = vmatpush3.bf16.msra.mxu0 %v8438_v2  ;;  %v8455_v2 = vld [vmem:[%s9940_s9 + $0x10] sm:$0xff]  }
 0x261   : > { %8099 = vmatprep.subr.bf16.mxu0 %v8440_v5  ;;  %8120 = vmatpush3.bf16.msra.mxu1 %v8439_v6  ;;  %v8457_v5 = vld [vmem:[%s9940_s9 + $0x20] sm:$0xff]  }
 0x262   : > { %v7797_v4 = vpop.f32.mrb[0].mxu0  ;;  %8121 = vmatprep.subr.bf16.mxu1 %v8441_v9 }
 0x263   : > { %v7819_v7 = vpop.f32.mrb[0].mxu1  ;;  %v7798_v8 = vpop.f32.mrb[1].mxu0 }
 0x264   : > { %v7799_v11 = vadd.f32 %v7798_v8, %v7797_v4  ;;  %v7820_v12 = vpop.f32.mrb[1].mxu1  ;;  %v7800_v13 = vpop.f32.mrb[2].mxu0  ;;  %8100 = vmatpush3.bf16.msra.mxu0 %v8442_v16 }
 0x265   : > { %v7821_v14 = vadd.f32 %v7820_v12, %v7819_v7  ;;  %v7822_v15 = vpop.f32.mrb[2].mxu1  ;;  %v7801_v18 = vpop.f32.mrb[3].mxu0  ;;  %8101 = vmatprep.subr.bf16.mxu0 %v8444_v21  ;;  %8122 = vmatpush3.bf16.msra.mxu1 %v8443_v17 }
 0x266   : > { %v6702_v19 = vadd.f32 %v7799_v11, %v7514_v3  ;;  %v7823_v20 = vpop.f32.mrb[3].mxu1  ;;  %8123 = vmatprep.subr.bf16.mxu1 %v8445_v23  ;;  %v8456_v3 = vld [vmem:[%s9940_s9 + $0x18] sm:$0xff]   ;;  %v8458_v18 = vld [vmem:[%s9940_s9 + $0x28] sm:$0xff]  }
 0x267   : > { %v8460_v20 = vld [vmem:[%s9940_s9 + $0x38] sm:$0xff]  }
 0x268   : > { %v6742_v22 = vadd.f32 %v7821_v14, %v6702_v19  ;;  %8102 = vmatpush3.bf16.msra.mxu0 %v8446_v24  ;;  %v8459_v19 = vld [vmem:[%s9940_s9 + $0x30] sm:$0xff]  }
 0x269   : > { %8103 = vmatprep.subr.bf16.mxu0 %v8448_v25  ;;  %8124 = vmatpush3.bf16.msra.mxu1 %v8447_v26 }
 0x26a   : > { %8125 = vmatprep.subr.bf16.mxu1 %v8449_v27 }
 0x26c   : > { %8104 = vmatpush3.bf16.msra.mxu0 %v8450_v28 }
 0x26d   : > { %8126 = vmatpush3.bf16.msra.mxu1 %v8451_v32  ;;  %8142 = vmatprep.subr.bf16.mxu0 %v8486_v63 }
 0x26f   : > { %7260 = vmatmul.mubr.bf16.vlgmr.msra.gmra.mrb[28].mxu0 %v4608_v35 }
 0x270   : > { %7300 = vmatmul.mubr.bf16.vlgmr.msra.gmra.mrb[28].mxu1 %v4610_v38  ;;  %8143 = vmatpush3.bf16.msra.mxu0 %v8453_v0 }
 0x271   : > { %8144 = vmatprep.subr.bf16.mxu0 %v8486_v63  ;;  %8158 = vmatprep.mubr.msk.bf16.mxu0 %vm8487_vm0, %v8486_v63 }
 0x274   : > { %8145 = vmatpush3.bf16.msra.mxu0 %v8454_v1 }
 0x275   : > { %8146 = vmatprep.subr.bf16.mxu0 %v8486_v63 }
 0x278   : > { %8147 = vmatpush3.bf16.msra.mxu0 %v8455_v2 }
 0x279   : > { %8148 = vmatprep.subr.bf16.mxu0 %v8486_v63 }
 0x27c   : > { %8149 = vmatpush3.bf16.msra.mxu0 %v8456_v3 }
 0x27d   : > { %8150 = vmatprep.subr.bf16.mxu0 %v8486_v63 }
 0x280   : > { %8151 = vmatpush3.bf16.msra.mxu0 %v8457_v5 }
 0x281   : > { %8152 = vmatprep.subr.bf16.mxu0 %v8486_v63 }
 0x282   : > { %v7841_v40 = vpop.f32.mrb[4].mxu0 }
 0x283   : > { %v7863_v41 = vpop.f32.mrb[4].mxu1  ;;  %v7842_v42 = vpop.f32.mrb[5].mxu0 }
 0x284   : > { %v7843_v43 = vadd.f32 %v7842_v42, %v7841_v40  ;;  %v7864_v44 = vpop.f32.mrb[5].mxu1  ;;  %v7844_v45 = vpop.f32.mrb[6].mxu0  ;;  %8153 = vmatpush3.bf16.msra.mxu0 %v8458_v18 }
 0x285   : > { %v7865_v46 = vadd.f32 %v7864_v44, %v7863_v41  ;;  %v7866_v47 = vpop.f32.mrb[6].mxu1  ;;  %v7845_v10 = vpop.f32.mrb[7].mxu0  ;;  %8154 = vmatprep.subr.bf16.mxu0 %v8486_v63 }
 0x286   : > { %v6782_v48 = vadd.f32 %v7843_v43, %v6742_v22  ;;  %v7867_v49 = vpop.f32.mrb[7].mxu1 }
 0x288   : > { %v6822_v50 = vadd.f32 %v7865_v46, %v6782_v48  ;;  %8155 = vmatpush3.bf16.msra.mxu0 %v8459_v19 }
 0x289   : > { %8156 = vmatprep.subr.bf16.mxu0 %v8486_v63 }
 0x28c   : > { %8157 = vmatpush3.bf16.msra.mxu0 %v8460_v20 }
 0x2a2   : > { %v7885_v51 = vpop.f32.mrb[8].mxu0 }
 0x2a3   : > { %v7907_v52 = vpop.f32.mrb[8].mxu1  ;;  %v7886_v53 = vpop.f32.mrb[9].mxu0 }
 0x2a4   : > { %v7887_v54 = vadd.f32 %v7886_v53, %v7885_v51  ;;  %v7908_v55 = vpop.f32.mrb[9].mxu1  ;;  %v7888_v56 = vpop.f32.mrb[10].mxu0 }
 0x2a5   : > { %v7909_v57 = vadd.f32 %v7908_v55, %v7907_v52  ;;  %v7910_v58 = vpop.f32.mrb[10].mxu1  ;;  %v7889_v59 = vpop.f32.mrb[11].mxu0 }
 0x2a6   : > { %v6862_v60 = vadd.f32 %v7887_v54, %v6822_v50  ;;  %v7911_v61 = vpop.f32.mrb[11].mxu1 }
 0x2a8   : > { %v6902_v62 = vadd.f32 %v7909_v57, %v6862_v60 }
 0x2c2   : > { %v7929_v4 = vpop.f32.mrb[12].mxu0 }
 0x2c3   : > { %v7951_v6 = vpop.f32.mrb[12].mxu1  ;;  %v7930_v7 = vpop.f32.mrb[13].mxu0 }
 0x2c4   : > { %v7931_v8 = vadd.f32 %v7930_v7, %v7929_v4  ;;  %v7952_v9 = vpop.f32.mrb[13].mxu1  ;;  %v7932_v11 = vpop.f32.mrb[14].mxu0 }
 0x2c5   : > { %v7953_v12 = vadd.f32 %v7952_v9, %v7951_v6  ;;  %v7954_v13 = vpop.f32.mrb[14].mxu1  ;;  %v7933_v14 = vpop.f32.mrb[15].mxu0 }
 0x2c6   : > { %v6942_v15 = vadd.f32 %v7931_v8, %v6902_v62  ;;  %v7955_v16 = vpop.f32.mrb[15].mxu1 }
 0x2c8   : > { %v6982_v17 = vadd.f32 %v7953_v12, %v6942_v15 }
 0x2e2   : > { %v7973_v21 = vpop.f32.mrb[16].mxu0 }
 0x2e3   : > { %v7974_v22 = vpop.f32.mrb[17].mxu0  ;;  %v7995_v23 = vpop.f32.mrb[16].mxu1 }
 0x2e4   : > { %v7975_v24 = vadd.f32 %v7974_v22, %v7973_v21  ;;  %v7976_v25 = vpop.f32.mrb[18].mxu0  ;;  %v7996_v26 = vpop.f32.mrb[17].mxu1 }
 0x2e5   : > { %v7977_v27 = vpop.f32.mrb[19].mxu0  ;;  %v7997_v29 = vadd.f32 %v7996_v26, %v7995_v23  ;;  %v7998_v30 = vpop.f32.mrb[18].mxu1 }
 0x2e6   : > { %v7022_v28 = vadd.f32 %v7975_v24, %v6982_v17  ;;  %v7999_v31 = vpop.f32.mrb[19].mxu1 }
 0x2e8   : > { %v7062_v32 = vadd.f32 %v7997_v29, %v7022_v28 }
 0x302   : > { %v8017_v33 = vpop.f32.mrb[20].mxu0 }
 0x303   : > { %v8018_v34 = vpop.f32.mrb[21].mxu0  ;;  %v8039_v35 = vpop.f32.mrb[20].mxu1 }
 0x304   : > { %v8019_v36 = vadd.f32 %v8018_v34, %v8017_v33  ;;  %v8020_v37 = vpop.f32.mrb[22].mxu0  ;;  %v8040_v38 = vpop.f32.mrb[21].mxu1 }
 0x305   : > { %v8021_v39 = vpop.f32.mrb[23].mxu0  ;;  %v8041_v41 = vadd.f32 %v8040_v38, %v8039_v35  ;;  %v8042_v42 = vpop.f32.mrb[22].mxu1 }
 0x306   : > { %v7102_v40 = vadd.f32 %v8019_v36, %v7062_v32  ;;  %v8043_v43 = vpop.f32.mrb[23].mxu1 }
 0x308   : > { %v7142_v44 = vadd.f32 %v8041_v41, %v7102_v40 }
 0x322   : > { %v8061_v45 = vpop.f32.mrb[24].mxu0 }
 0x323   : > { %v8062_v46 = vpop.f32.mrb[25].mxu0  ;;  %v8083_v47 = vpop.f32.mrb[24].mxu1 }
 0x324   : > { %v8063_v10 = vadd.f32 %v8062_v46, %v8061_v45  ;;  %v8064_v48 = vpop.f32.mrb[26].mxu0  ;;  %v8084_v49 = vpop.f32.mrb[25].mxu1 }
 0x325   : > { %v8065_v50 = vpop.f32.mrb[27].mxu0  ;;  %v8085_v52 = vadd.f32 %v8084_v49, %v8083_v47  ;;  %v8086_v53 = vpop.f32.mrb[26].mxu1 }
 0x326   : > { %v7182_v51 = vadd.f32 %v8063_v10, %v7142_v44  ;;  %v8087_v54 = vpop.f32.mrb[27].mxu1 }
 0x328   : > { %v7222_v55 = vadd.f32 %v8085_v52, %v7182_v51 }
 0x342   : > { %v8105_v56 = vpop.f32.mrb[28].mxu0 }
 0x343   : > { %v8106_v57 = vpop.f32.mrb[29].mxu0  ;;  %v8127_v58 = vpop.f32.mrb[28].mxu1 }
 0x344   : > { %v8107_v59 = vadd.f32 %v8106_v57, %v8105_v56  ;;  %v8108_v60 = vpop.f32.mrb[30].mxu0  ;;  %v8128_v61 = vpop.f32.mrb[29].mxu1 }
 0x345   : > { %v8109_v62 = vpop.f32.mrb[31].mxu0  ;;  %v8129_v0 = vadd.f32 %v8128_v61, %v8127_v58  ;;  %v8130_v1 = vpop.f32.mrb[30].mxu1 }
 0x346   : > { %v7262_v63 = vadd.f32 %v8107_v59, %v7222_v55  ;;  %v8131_v2 = vpop.f32.mrb[31].mxu1 }
 0x348   : > { %v7302_v3 = vadd.f32 %v8129_v0, %v7262_v63 }
 0x34a   : > { %v7307_v4 = vmax.f32 %v7302_v3, 0.0 }
 0x34c   : > { %v7308_v5 = vpack.c.bf16 %v7307_v4, %v7307_v4 }
 0x34e   : > { %8159 = vmatmul.mubr.bf16.vlgmr.msra.gmra.mrb[32].mxu0 %v7308_v5 }
 0x421   : > { %v7407_v6 = vpop.f32.mrb[32].mxu0 }
 0x422   : > { %7414 = vst.msk [vmem:[%s4394_s12] sm:$0x3] %vm7413_vm1, %v7407_v6  ;;  %v8160_v7 = vpop.f32.mrb[33].mxu0 }
 0x423   : > { %v7410_v8 = vpop.f32.mrb[34].mxu0 }
 0x424   : > { %v8161_v9 = vpop.f32.mrb[35].mxu0 }
 0x425 PF: > { %p11_p10 = scmp.ge.s32.totalorder %s8532_s19, 4   ;;  %s9969_s15 = smov %s8479_s16 }
 0x426   : > { %s9970_s16 = smov %s8541_s22  ;;  %s9971_s17 = smov %s8532_s19 }
 0x427   :  { %13 = sbr.rel (!%p11_p10) target bundleno = 2 (0x2), region = 133 }

</bundles_post_ra>
